<compile_context>
chip_gen: v7x
topology: tpu7x:2x2x1
jax: 0.10.0
libtpu: 0.0.40
codegen_flags: <defaults>
</compile_context>

<pallas_src>
import functools

import jax
import jax.numpy as jnp
import numpy as np
from jax.experimental import pallas as pl
from jax.experimental.pallas import tpu as pltpu


def _round_up(x, m):
    return ((x + m - 1) // m) * m


def _pick_vmem_limit():
    """Generation-aware scoped-VMEM limit: ~3/4 of physical, capped at 96 MiB."""
    cap = 64 * 1024 * 1024            # conservative fallback (v7x-sized part)
    try:
        cap = int(pltpu.get_tpu_info().vmem_capacity_bytes)
    except Exception:
        pass
    return int(min(96 * 1024 * 1024, max(32 * 1024 * 1024, (cap * 3) // 4)))


# -------------------- Kernel 1: matmul with fused bias -----------------------
# ConvTranspose3d(k=2, s=2) == one (M, Cin) x (Cin, 8*Cout) matmul (each of
# the 8 kernel taps is a 1x1x1 conv scattered onto an output sub-grid).

def _matmul_bias_kernel(a_ref, w_ref, b_ref, o_ref):
    acc = jnp.dot(a_ref[...], w_ref[...], preferred_element_type=jnp.float32)
    o_ref[...] = (acc + b_ref[...]).astype(o_ref.dtype)


def pallas_matmul_bias(a, w, bias_row, *, tm=512, tn=1024,
                       out_dtype=jnp.bfloat16):
    """(M, K) x (K, N) + bias(1, N); bf16 operands, f32 accumulation.
    Tiled & pipelined over M and N so VMEM stays bounded for large N."""
    M, K = a.shape
    Nn = w.shape[1]
    a = a.astype(jnp.bfloat16)
    w = w.astype(jnp.bfloat16)
    bias_row = bias_row.astype(jnp.float32)

    tm = min(tm, _round_up(M, 8))
    Mp = _round_up(M, tm)
    if Mp != M:
        a = jnp.pad(a, ((0, Mp - M), (0, 0)))

    if Nn >= 128:
        tn = min(tn, _round_up(Nn, 128))
        Np = _round_up(Nn, tn)
    else:                              # small N: single full-width tile
        tn, Np = Nn, Nn
    if Np != Nn:
        w = jnp.pad(w, ((0, 0), (0, Np - Nn)))
        bias_row = jnp.pad(bias_row, ((0, 0), (0, Np - Nn)))

    out = pl.pallas_call(
        _matmul_bias_kernel,
        out_shape=jax.ShapeDtypeStruct((Mp, Np), out_dtype),
        grid=(Mp // tm, Np // tn),
        in_specs=[pl.BlockSpec((tm, K), lambda i, j: (i, 0)),
                  pl.BlockSpec((K, tn), lambda i, j: (0, j)),
                  pl.BlockSpec((1, tn), lambda i, j: (0, j))],
        out_specs=pl.BlockSpec((tm, tn), lambda i, j: (i, j)),
        compiler_params=pltpu.CompilerParams(
            dimension_semantics=("parallel", "parallel"),
            vmem_limit_bytes=_pick_vmem_limit()),
        cost_estimate=pl.CostEstimate(
            flops=2 * Mp * K * Np, transcendentals=0,
            bytes_accessed=2 * (Mp * K + K * Np + Mp * Np) + 4 * Np),
    )(a, w, bias_row)
    return out[:M, :Nn]


# ------ Kernel 2: fused 3x3x3 conv + bias + BatchNorm partial statistics -----
# grid = (N, D2, 3).  The last axis is the depth-tap reduction; a VMEM scratch
# accumulator stays resident across it.  H/W taps are contiguous slices of the
# flattened (Hp*Wp, C) padded plane: output (h, w) lives at accumulator row
# h*Wp + w; rows with (row % Wp) >= W2 are junk and are stripped before the
# z store and the BN partial sums.

def _conv3d_bn_kernel(yp_ref, w_ref, b_ref, z_ref, psum_ref, psq_ref, acc_ref,
                      *, H2, W2, Wp):
    kd = pl.program_id(2)
    Lfull = H2 * Wp                    # accumulator rows (flattened plane)

    part = None
    for kh in range(3):
        for kw in range(3):
            r0 = kh * Wp + kw          # Wp multiple of 8 -> kh*Wp is aligned
            tap = yp_ref[0, 0, r0:r0 + Lfull, :]           # (Lfull, C) bf16
            contrib = jnp.dot(tap, w_ref[kd * 9 + kh * 3 + kw],
                              preferred_element_type=jnp.float32)
            part = contrib if part is None else part + contrib

    @pl.when(kd == 0)
    def _():
        acc_ref[...] = part + b_ref[...]                   # fused conv bias

    @pl.when(kd > 0)
    def _():
        acc_ref[...] = acc_ref[...] + part

    @pl.when(kd == pl.num_programs(2) - 1)
    def _():
        psum = jnp.zeros_like(b_ref[...])
        psq = jnp.zeros_like(b_ref[...])
        for h in range(H2):            # strip padded W columns row by row
            zc = acc_ref[h * Wp:h * Wp + W2, :]            # (W2, C) f32
            z_ref[0, 0, h] = zc
            psum = psum + jnp.sum(zc, axis=0, keepdims=True)
            psq = psq + jnp.sum(zc * zc, axis=0, keepdims=True)
        psum_ref[0, 0] = psum
        psq_ref[0, 0] = psq


def pallas_conv3d_bn(yp_flat, w27, bc, H2, W2, Wp):
    """yp_flat: (N, D2+2, Hp*Wp + 8, C) bf16 padded channel-last deconv output,
    flattened over the (Hp, Wp) plane (Wp a multiple of 8).
    w27: (27, C, C) bf16, tap-major (kd*9 + kh*3 + kw).
    Returns z (N, D2, H2, W2, C) f32 plus per-plane BN sums / sums-of-squares."""
    Nb, Dp, HWslab, C = yp_flat.shape
    D2 = Dp - 2
    Lfull = H2 * Wp
    bias = bc.reshape(1, C).astype(jnp.float32)
    kern = functools.partial(_conv3d_bn_kernel, H2=H2, W2=W2, Wp=Wp)
    z, psum, psq = pl.pallas_call(
        kern,
        out_shape=(jax.ShapeDtypeStruct((Nb, D2, H2, W2, C), jnp.float32),
                   jax.ShapeDtypeStruct((Nb, D2, 1, C), jnp.float32),
                   jax.ShapeDtypeStruct((Nb, D2, 1, C), jnp.float32)),
        grid=(Nb, D2, 3),
        in_specs=[
            # overlapping depth window: block size 1 => block idx == plane idx
            pl.BlockSpec((1, 1, HWslab, C), lambda n, d, kd: (n, d + kd, 0, 0)),
            # full 3x3x3 weight stays VMEM-resident (constant index map)
            pl.BlockSpec((27, C, C), lambda n, d, kd: (0, 0, 0)),
            pl.BlockSpec((1, C), lambda n, d, kd: (0, 0)),
        ],
        out_specs=(
            pl.BlockSpec((1, 1, H2, W2, C), lambda n, d, kd: (n, d, 0, 0, 0)),
            pl.BlockSpec((1, 1, 1, C), lambda n, d, kd: (n, d, 0, 0)),
            pl.BlockSpec((1, 1, 1, C), lambda n, d, kd: (n, d, 0, 0)),
        ),
        scratch_shapes=[pltpu.VMEM((Lfull, C), jnp.float32)],
        compiler_params=pltpu.CompilerParams(
            dimension_semantics=("parallel", "parallel", "arbitrary"),
            vmem_limit_bytes=_pick_vmem_limit()),
        cost_estimate=pl.CostEstimate(
            flops=2 * Nb * D2 * 27 * Lfull * C * C, transcendentals=0,
            bytes_accessed=(2 * 3 * Nb * D2 * HWslab * C    # bf16 planes (x3)
                            + 2 * 27 * C * C                # resident weight
                            + 4 * Nb * D2 * H2 * W2 * C)),  # f32 z out
    )(yp_flat, w27, bias)
    return z, psum, psq


# ----- Kernel 3: fused BatchNorm affine + ReLU + NDHWC -> NCDHW layout -------

def _bn_relu_nc_kernel(z_ref, s_ref, t_ref, o_ref):
    _, Td, H2, W2, _C = z_ref.shape
    zb = z_ref[0]                                          # (Td, H2, W2, C) f32
    yb = jnp.maximum(zb * s_ref[...] + t_ref[...], 0.0)    # lane-dense VPU pass
    for td in range(Td):
        for h in range(H2):
            o_ref[0, :, td, h, :] = yb[td, h].T            # (C, W2) store


def pallas_bn_relu_ncdhw(z, scale, shift):
    """out = relu(z * scale + shift), written directly in (N, C, D2, H2, W2)."""
    Nb, D2, H2, W2, C = z.shape
    plane_bytes = H2 * W2 * C * 4
    Td = 1
    for t in range(1, D2 + 1):        # largest divisor of D2 under ~2 MiB/step
        if D2 % t == 0 and t * plane_bytes <= 2 * 1024 * 1024 and t * H2 <= 512:
            Td = t
    s2 = scale.reshape(1, C).astype(jnp.float32)
    t2 = shift.reshape(1, C).astype(jnp.float32)
    return pl.pallas_call(
        _bn_relu_nc_kernel,
        out_shape=jax.ShapeDtypeStruct((Nb, C, D2, H2, W2), jnp.float32),
        grid=(Nb, D2 // Td),
        in_specs=[pl.BlockSpec((1, Td, H2, W2, C), lambda n, d: (n, d, 0, 0, 0)),
                  pl.BlockSpec((1, C), lambda n, d: (0, 0)),
                  pl.BlockSpec((1, C), lambda n, d: (0, 0))],
        out_specs=pl.BlockSpec((1, C, Td, H2, W2), lambda n, d: (n, 0, d, 0, 0)),
        compiler_params=pltpu.CompilerParams(
            dimension_semantics=("parallel", "parallel"),
            vmem_limit_bytes=_pick_vmem_limit()),
        cost_estimate=pl.CostEstimate(
            flops=2 * Nb * D2 * H2 * W2 * C, transcendentals=0,
            bytes_accessed=8 * Nb * D2 * H2 * W2 * C),
    )(z, s2, t2)


# ------------------------------ forward (glue) -------------------------------

def _deconv_scatter(y2d, N, D, H, W, Cout):
    """Scatter the 8 k=2/s=2 deconv taps onto the upsampled grid (NDHWC).
    Columns are (2,2,2)-tap outer, Cout inner, so the transpose keeps the
    minor (channel) dim fixed (sublane-only shuffle)."""
    y = y2d.reshape(N, D, H, W, 2, 2, 2, Cout)
    y = y.transpose(0, 1, 4, 2, 5, 3, 6, 7)
    return y.reshape(N, 2 * D, 2 * H, 2 * W, Cout)


def deconv3d_block_forward(x, params):
    """Deconv3DBlock forward. x: (N, Cin, D, H, W) f32 -> (N, Cout, 2D, 2H, 2W)."""
    N, Cin, D, H, W = x.shape
    wt, bt = params["deconv_w"], params["deconv_b"]    # (Cin, Cout, 2,2,2), (Cout,)
    wc, bc = params["conv_w"], params["conv_b"]        # (Cout, Cout, 3,3,3), (Cout,)
    Cout = wt.shape[1]
    D2, H2, W2 = 2 * D, 2 * H, 2 * W
    Hp = H2 + 2
    Wp = _round_up(W2 + 2, 8)          # sublane-aligned tap offsets
    eps = 1e-5

    # ---- ConvTranspose3d(k=2, s=2): one (M, Cin) x (Cin, 8*Cout) matmul ----
    x2d = x.transpose(0, 2, 3, 4, 1).reshape(N * D * H * W, Cin)
    w2d = wt.transpose(0, 2, 3, 4, 1).reshape(Cin, 8 * Cout)   # Cout stays minor
    bias_dec = jnp.tile(bt, 8).reshape(1, 8 * Cout)
    y2d = pallas_matmul_bias(x2d, w2d, bias_dec)               # bf16 (M, 8*Cout)
    y = _deconv_scatter(y2d, N, D, H, W, Cout)                 # (N,D2,H2,W2,C) bf16

    # ---- Conv3d(k=3, s=1, pad=1) + bias + BN partial stats, fully fused ----
    yp = jnp.pad(y, ((0, 0), (1, 1), (1, 1), (1, Wp - W2 - 1), (0, 0)))
    yp_flat = yp.reshape(N, D2 + 2, Hp * Wp, Cout)
    yp_flat = jnp.pad(yp_flat, ((0, 0), (0, 0), (0, 8), (0, 0)))  # tap overhang slack
    w27 = jnp.transpose(wc, (2, 3, 4, 1, 0)).reshape(27, Cout, Cout)
    w27 = w27.astype(jnp.bfloat16)
    z, psum, psq = pallas_conv3d_bn(yp_flat, w27, bc, H2, W2, Wp)

    # ---- BatchNorm3d (training-mode batch statistics), per-channel scalars ----
    M2 = N * D2 * H2 * W2
    sum_c = jnp.sum(psum, axis=(0, 1, 2))
    sq_c = jnp.sum(psq, axis=(0, 1, 2))
    mean = sum_c / M2
    var = jnp.maximum(sq_c / M2 - mean * mean, 0.0)   # clamp: cancellation safety
    scale = params["bn_gamma"] * jax.lax.rsqrt(var + eps)
    shift = params["bn_beta"] - mean * scale

    # ---- BN affine + ReLU + NCDHW layout, fused ----
    return pallas_bn_relu_ncdhw(z, scale, shift)


# ----------------------------- pure-JAX reference ----------------------------
# Mirrors the kernel's precision choices (bf16 MXU operands, f32 accumulation,
# bf16 deconv intermediate) so the tolerance check is tight and meaningful.

def _reference_forward(x, params):
    N, Cin, D, H, W = x.shape
    wt, bt = params["deconv_w"], params["deconv_b"]
    wc, bc = params["conv_w"], params["conv_b"]
    Cout = wt.shape[1]
    D2, H2, W2 = 2 * D, 2 * H, 2 * W

    x2d = x.transpose(0, 2, 3, 4, 1).reshape(N * D * H * W, Cin).astype(jnp.bfloat16)
    w2d = wt.transpose(0, 2, 3, 4, 1).reshape(Cin, 8 * Cout).astype(jnp.bfloat16)
    y2d = (jnp.dot(x2d, w2d, preferred_element_type=jnp.float32)
           + jnp.tile(bt, 8)[None, :]).astype(jnp.bfloat16)
    y = _deconv_scatter(y2d, N, D, H, W, Cout)

    yp = jnp.pad(y, ((0, 0), (1, 1), (1, 1), (1, 1), (0, 0)))
    wct = jnp.transpose(wc, (2, 3, 4, 1, 0)).astype(jnp.bfloat16)
    z = jnp.zeros((N, D2, H2, W2, Cout), jnp.float32)
    for kd in range(3):
        for kh in range(3):
            for kw in range(3):
                z = z + jnp.einsum('ndhwc,cf->ndhwf',
                                   yp[:, kd:kd + D2, kh:kh + H2, kw:kw + W2, :],
                                   wct[kd, kh, kw],
                                   preferred_element_type=jnp.float32)
    z = z + bc

    z2d = z.reshape(-1, Cout)
    mean = jnp.mean(z2d, axis=0)
    var = jnp.maximum(jnp.mean(z2d * z2d, axis=0) - mean * mean, 0.0)
    scale = params["bn_gamma"] * jax.lax.rsqrt(var + 1e-5)
    shift = params["bn_beta"] - mean * scale
    out = jnp.maximum(z * scale + shift, 0.0)
    return out.transpose(0, 4, 1, 2, 3)


# --------------------------------- main --------------------------------------

if __name__ == "__main__":
    key = jax.random.PRNGKey(0)
    N, Cin, Cout, D = 2, 8, 16, 4     # small shapes; deconv doubles spatial to 8

    k1, k2, k3, k4, k5 = jax.random.split(key, 5)
    x = jax.random.normal(k1, (N, Cin, D, D, D), jnp.float32)
    params = {
        "deconv_w": jax.random.normal(k2, (Cin, Cout, 2, 2, 2), jnp.float32) * 0.1,
        "deconv_b": jax.random.normal(k3, (Cout,), jnp.float32) * 0.1,
        "conv_w":   jax.random.normal(k4, (Cout, Cout, 3, 3, 3), jnp.float32) * 0.1,
        "conv_b":   jax.random.normal(k5, (Cout,), jnp.float32) * 0.1,
        "bn_gamma": jnp.ones((Cout,), jnp.float32),
        "bn_beta":  jnp.zeros((Cout,), jnp.float32),
    }

    fwd = jax.jit(deconv3d_block_forward)
    out = jax.block_until_ready(fwd(x, params))
    ref = jax.block_until_ready(jax.jit(_reference_forward)(x, params))

    assert out.shape == (N, Cout, 2 * D, 2 * D, 2 * D), out.shape
    np.testing.assert_allclose(np.asarray(out), np.asarray(ref),
                               rtol=1e-3, atol=1e-3)
    print("KERNEL_OK")
</pallas_src>

<mosaic_0001>
module attributes {stable_mosaic.version = 11 : i64} {
  func.func @_matmul_bias_kernel(%arg0: i32, %arg1: i32, %arg2: memref<128x8xbf16, #tpu.memory_space<vmem>>, %arg3: memref<8x128xbf16, #tpu.memory_space<vmem>>, %arg4: memref<1x128xf32, #tpu.memory_space<vmem>>, %arg5: memref<128x128xbf16, #tpu.memory_space<vmem>>) attributes {dimension_semantics = [#tpu.dimension_semantics<parallel>, #tpu.dimension_semantics<parallel>], iteration_bounds = array<i64: 1, 1>, scalar_prefetch = 0 : i64, scratch_operands = 0 : i64, tpu.core_type = #tpu.core_type<tc>, window_params = [{transform_indices = @transform_0, window_bounds = array<i64: 128, 8>}, {transform_indices = @transform_1, window_bounds = array<i64: 8, 128>}, {transform_indices = @transform_2, window_bounds = array<i64: 1, 128>}, {transform_indices = @transform_3, window_bounds = array<i64: 128, 128>}]} {
    %c0 = arith.constant 0 : index
    %c0_0 = arith.constant 0 : index
    %0 = vector.load %arg2[%c0, %c0_0] : memref<128x8xbf16, #tpu.memory_space<vmem>>, vector<128x8xbf16>
    %c0_1 = arith.constant 0 : index
    %c0_2 = arith.constant 0 : index
    %1 = vector.load %arg3[%c0_1, %c0_2] : memref<8x128xbf16, #tpu.memory_space<vmem>>, vector<8x128xbf16>
    %cst = arith.constant dense<0.000000e+00> : vector<128x128xf32>
    %2 = tpu.matmul %0, %1, %cst {dimension_numbers = #tpu.dot_dimension_numbers<[1], [0], [0], [1], [0, 0, 1, 1], [], []>} : vector<128x8xbf16>, vector<8x128xbf16>, vector<128x128xf32> -> vector<128x128xf32>
    %c0_3 = arith.constant 0 : index
    %c0_4 = arith.constant 0 : index
    %3 = vector.load %arg4[%c0_3, %c0_4] : memref<1x128xf32, #tpu.memory_space<vmem>>, vector<1x128xf32>
    %4 = vector.broadcast %3 : vector<1x128xf32> to vector<128x128xf32>
    %5 = arith.addf %2, %4 : vector<128x128xf32>
    %6 = arith.truncf %5 : vector<128x128xf32> to vector<128x128xbf16>
    %c0_5 = arith.constant 0 : index
    %c0_6 = arith.constant 0 : index
    %7 = vector.load %arg5[%c0_5, %c0_6] : memref<128x128xbf16, #tpu.memory_space<vmem>>, vector<128x128xbf16>
    tpu.vector_store %arg5[%c0_5, %c0_6], %6 {strides = array<i32>} : memref<128x128xbf16, #tpu.memory_space<vmem>>, vector<128x128xbf16>,
    return
  }
  func.func @transform_0(%arg0: i32, %arg1: i32) -> (i32, i32) {
    %c0_i32 = arith.constant 0 : i32
    %c0_i32_0 = arith.constant 0 : i32
    return %arg0, %c0_i32 : i32, i32
  }
  func.func @transform_1(%arg0: i32, %arg1: i32) -> (i32, i32) {
    %c0_i32 = arith.constant 0 : i32
    %c0_i32_0 = arith.constant 0 : i32
    return %c0_i32, %arg1 : i32, i32
  }
  func.func @transform_2(%arg0: i32, %arg1: i32) -> (i32, i32) {
    %c0_i32 = arith.constant 0 : i32
    %c0_i32_0 = arith.constant 0 : i32
    return %c0_i32, %arg1 : i32, i32
  }
  func.func @transform_3(%arg0: i32, %arg1: i32) -> (i32, i32) {
    %c0_i32 = arith.constant 0 : i32
    return %arg0, %arg1 : i32, i32
  }
}

module attributes {stable_mosaic.version = 11 : i64} {
  func.func @_conv3d_bn_kernel(%arg0: i32, %arg1: i32, %arg2: i32, %arg3: memref<1x1x168x16xbf16, #tpu.memory_space<vmem>>, %arg4: memref<27x16x16xbf16, #tpu.memory_space<vmem>>, %arg5: memref<1x16xf32, #tpu.memory_space<vmem>>, %arg6: memref<1x1x8x8x16xf32, #tpu.memory_space<vmem>>, %arg7: memref<1x1x1x16xf32, #tpu.memory_space<vmem>>, %arg8: memref<1x1x1x16xf32, #tpu.memory_space<vmem>>, %arg9: memref<128x16xf32, #tpu.memory_space<vmem>>) attributes {dimension_semantics = [#tpu.dimension_semantics<parallel>, #tpu.dimension_semantics<parallel>, #tpu.dimension_semantics<arbitrary>], iteration_bounds = array<i64: 2, 8, 3>, scalar_prefetch = 0 : i64, scratch_operands = 1 : i64, tpu.core_type = #tpu.core_type<tc>, window_params = [{transform_indices = @transform_0, window_bounds = array<i64: 1, 1, 168, 16>}, {pipeline_mode = #tpu.pipeline_mode<synchronous>, transform_indices = @transform_1, window_bounds = array<i64: 27, 16, 16>}, {pipeline_mode = #tpu.pipeline_mode<synchronous>, transform_indices = @transform_2, window_bounds = array<i64: 1, 16>}, {transform_indices = @transform_3, window_bounds = array<i64: 1, 1, 8, 8, 16>}, {transform_indices = @transform_4, window_bounds = array<i64: 1, 1, 1, 16>}, {transform_indices = @transform_5, window_bounds = array<i64: 1, 1, 1, 16>}]} {
    %c0 = arith.constant 0 : index
    %c0_0 = arith.constant 0 : index
    %c0_1 = arith.constant 0 : index
    %c0_2 = arith.constant 0 : index
    %0 = vector.load %arg3[%c0, %c0_0, %c0_1, %c0_2] : memref<1x1x168x16xbf16, #tpu.memory_space<vmem>>, vector<1x1x128x16xbf16>
    %1 = vector.shape_cast %0 : vector<1x1x128x16xbf16> to vector<128x16xbf16>
    %c9_i32 = arith.constant 9 : i32
    %2 = arith.muli %arg2, %c9_i32 : i32
    %c0_i32 = arith.constant 0 : i32
    %3 = arith.addi %2, %c0_i32 : i32
    %c0_i32_3 = arith.constant 0 : i32
    %4 = arith.addi %3, %c0_i32_3 : i32
    %5 = arith.index_cast %4 : i32 to index
    %c0_4 = arith.constant 0 : index
    %c0_5 = arith.constant 0 : index
    %6 = vector.load %arg4[%5, %c0_4, %c0_5] : memref<27x16x16xbf16, #tpu.memory_space<vmem>>, vector<1x16x16xbf16>
    %7 = vector.shape_cast %6 : vector<1x16x16xbf16> to vector<16x16xbf16>
    %cst = arith.constant dense<0.000000e+00> : vector<128x16xf32>
    %8 = tpu.matmul %1, %7, %cst {dimension_numbers = #tpu.dot_dimension_numbers<[1], [0], [0], [1], [0, 0, 1, 1], [], []>} : vector<128x16xbf16>, vector<16x16xbf16>, vector<128x16xf32> -> vector<128x16xf32>
    %c0_6 = arith.constant 0 : index
    %c0_7 = arith.constant 0 : index
    %c1 = arith.constant 1 : index
    %c0_8 = arith.constant 0 : index
    %9 = vector.load %arg3[%c0_6, %c0_7, %c1, %c0_8] : memref<1x1x168x16xbf16, #tpu.memory_space<vmem>>, vector<1x1x128x16xbf16>
    %10 = vector.shape_cast %9 : vector<1x1x128x16xbf16> to vector<128x16xbf16>
    %c9_i32_9 = arith.constant 9 : i32
    %11 = arith.muli %arg2, %c9_i32_9 : i32
    %c0_i32_10 = arith.constant 0 : i32
    %12 = arith.addi %11, %c0_i32_10 : i32
    %c1_i32 = arith.constant 1 : i32
    %13 = arith.addi %12, %c1_i32 : i32
    %14 = arith.index_cast %13 : i32 to index
    %c0_11 = arith.constant 0 : index
    %c0_12 = arith.constant 0 : index
    %15 = vector.load %arg4[%14, %c0_11, %c0_12] : memref<27x16x16xbf16, #tpu.memory_space<vmem>>, vector<1x16x16xbf16>
    %16 = vector.shape_cast %15 : vector<1x16x16xbf16> to vector<16x16xbf16>
    %cst_13 = arith.constant dense<0.000000e+00> : vector<128x16xf32>
    %17 = tpu.matmul %10, %16, %cst_13 {dimension_numbers = #tpu.dot_dimension_numbers<[1], [0], [0], [1], [0, 0, 1, 1], [], []>} : vector<128x16xbf16>, vector<16x16xbf16>, vector<128x16xf32> -> vector<128x16xf32>
    %18 = arith.addf %8, %17 : vector<128x16xf32>
    %c0_14 = arith.constant 0 : index
    %c0_15 = arith.constant 0 : index
    %c2 = arith.constant 2 : index
    %c0_16 = arith.constant 0 : index
    %19 = vector.load %arg3[%c0_14, %c0_15, %c2, %c0_16] : memref<1x1x168x16xbf16, #tpu.memory_space<vmem>>, vector<1x1x128x16xbf16>
    %20 = vector.shape_cast %19 : vector<1x1x128x16xbf16> to vector<128x16xbf16>
    %c9_i32_17 = arith.constant 9 : i32
    %21 = arith.muli %arg2, %c9_i32_17 : i32
    %c0_i32_18 = arith.constant 0 : i32
    %22 = arith.addi %21, %c0_i32_18 : i32
    %c2_i32 = arith.constant 2 : i32
    %23 = arith.addi %22, %c2_i32 : i32
    %24 = arith.index_cast %23 : i32 to index
    %c0_19 = arith.constant 0 : index
    %c0_20 = arith.constant 0 : index
    %25 = vector.load %arg4[%24, %c0_19, %c0_20] : memref<27x16x16xbf16, #tpu.memory_space<vmem>>, vector<1x16x16xbf16>
    %26 = vector.shape_cast %25 : vector<1x16x16xbf16> to vector<16x16xbf16>
    %cst_21 = arith.constant dense<0.000000e+00> : vector<128x16xf32>
    %27 = tpu.matmul %20, %26, %cst_21 {dimension_numbers = #tpu.dot_dimension_numbers<[1], [0], [0], [1], [0, 0, 1, 1], [], []>} : vector<128x16xbf16>, vector<16x16xbf16>, vector<128x16xf32> -> vector<128x16xf32>
    %28 = arith.addf %18, %27 : vector<128x16xf32>
    %c0_22 = arith.constant 0 : index
    %c0_23 = arith.constant 0 : index
    %c16 = arith.constant 16 : index
    %c0_24 = arith.constant 0 : index
    %29 = vector.load %arg3[%c0_22, %c0_23, %c16, %c0_24] : memref<1x1x168x16xbf16, #tpu.memory_space<vmem>>, vector<1x1x128x16xbf16>
    %30 = vector.shape_cast %29 : vector<1x1x128x16xbf16> to vector<128x16xbf16>
    %c9_i32_25 = arith.constant 9 : i32
    %31 = arith.muli %arg2, %c9_i32_25 : i32
    %c3_i32 = arith.constant 3 : i32
    %32 = arith.addi %31, %c3_i32 : i32
    %c0_i32_26 = arith.constant 0 : i32
    %33 = arith.addi %32, %c0_i32_26 : i32
    %34 = arith.index_cast %33 : i32 to index
    %c0_27 = arith.constant 0 : index
    %c0_28 = arith.constant 0 : index
    %35 = vector.load %arg4[%34, %c0_27, %c0_28] : memref<27x16x16xbf16, #tpu.memory_space<vmem>>, vector<1x16x16xbf16>
    %36 = vector.shape_cast %35 : vector<1x16x16xbf16> to vector<16x16xbf16>
    %cst_29 = arith.constant dense<0.000000e+00> : vector<128x16xf32>
    %37 = tpu.matmul %30, %36, %cst_29 {dimension_numbers = #tpu.dot_dimension_numbers<[1], [0], [0], [1], [0, 0, 1, 1], [], []>} : vector<128x16xbf16>, vector<16x16xbf16>, vector<128x16xf32> -> vector<128x16xf32>
    %38 = arith.addf %28, %37 : vector<128x16xf32>
    %c0_30 = arith.constant 0 : index
    %c0_31 = arith.constant 0 : index
    %c17 = arith.constant 17 : index
    %c0_32 = arith.constant 0 : index
    %39 = vector.load %arg3[%c0_30, %c0_31, %c17, %c0_32] : memref<1x1x168x16xbf16, #tpu.memory_space<vmem>>, vector<1x1x128x16xbf16>
    %40 = vector.shape_cast %39 : vector<1x1x128x16xbf16> to vector<128x16xbf16>
    %c9_i32_33 = arith.constant 9 : i32
    %41 = arith.muli %arg2, %c9_i32_33 : i32
    %c3_i32_34 = arith.constant 3 : i32
    %42 = arith.addi %41, %c3_i32_34 : i32
    %c1_i32_35 = arith.constant 1 : i32
    %43 = arith.addi %42, %c1_i32_35 : i32
    %44 = arith.index_cast %43 : i32 to index
    %c0_36 = arith.constant 0 : index
    %c0_37 = arith.constant 0 : index
    %45 = vector.load %arg4[%44, %c0_36, %c0_37] : memref<27x16x16xbf16, #tpu.memory_space<vmem>>, vector<1x16x16xbf16>
    %46 = vector.shape_cast %45 : vector<1x16x16xbf16> to vector<16x16xbf16>
    %cst_38 = arith.constant dense<0.000000e+00> : vector<128x16xf32>
    %47 = tpu.matmul %40, %46, %cst_38 {dimension_numbers = #tpu.dot_dimension_numbers<[1], [0], [0], [1], [0, 0, 1, 1], [], []>} : vector<128x16xbf16>, vector<16x16xbf16>, vector<128x16xf32> -> vector<128x16xf32>
    %48 = arith.addf %38, %47 : vector<128x16xf32>
    %c0_39 = arith.constant 0 : index
    %c0_40 = arith.constant 0 : index
    %c18 = arith.constant 18 : index
    %c0_41 = arith.constant 0 : index
    %49 = vector.load %arg3[%c0_39, %c0_40, %c18, %c0_41] : memref<1x1x168x16xbf16, #tpu.memory_space<vmem>>, vector<1x1x128x16xbf16>
    %50 = vector.shape_cast %49 : vector<1x1x128x16xbf16> to vector<128x16xbf16>
    %c9_i32_42 = arith.constant 9 : i32
    %51 = arith.muli %arg2, %c9_i32_42 : i32
    %c3_i32_43 = arith.constant 3 : i32
    %52 = arith.addi %51, %c3_i32_43 : i32
    %c2_i32_44 = arith.constant 2 : i32
    %53 = arith.addi %52, %c2_i32_44 : i32
    %54 = arith.index_cast %53 : i32 to index
    %c0_45 = arith.constant 0 : index
    %c0_46 = arith.constant 0 : index
    %55 = vector.load %arg4[%54, %c0_45, %c0_46] : memref<27x16x16xbf16, #tpu.memory_space<vmem>>, vector<1x16x16xbf16>
    %56 = vector.shape_cast %55 : vector<1x16x16xbf16> to vector<16x16xbf16>
    %cst_47 = arith.constant dense<0.000000e+00> : vector<128x16xf32>
    %57 = tpu.matmul %50, %56, %cst_47 {dimension_numbers = #tpu.dot_dimension_numbers<[1], [0], [0], [1], [0, 0, 1, 1], [], []>} : vector<128x16xbf16>, vector<16x16xbf16>, vector<128x16xf32> -> vector<128x16xf32>
    %58 = arith.addf %48, %57 : vector<128x16xf32>
    %c0_48 = arith.constant 0 : index
    %c0_49 = arith.constant 0 : index
    %c32 = arith.constant 32 : index
    %c0_50 = arith.constant 0 : index
    %59 = vector.load %arg3[%c0_48, %c0_49, %c32, %c0_50] : memref<1x1x168x16xbf16, #tpu.memory_space<vmem>>, vector<1x1x128x16xbf16>
    %60 = vector.shape_cast %59 : vector<1x1x128x16xbf16> to vector<128x16xbf16>
    %c9_i32_51 = arith.constant 9 : i32
    %61 = arith.muli %arg2, %c9_i32_51 : i32
    %c6_i32 = arith.constant 6 : i32
    %62 = arith.addi %61, %c6_i32 : i32
    %c0_i32_52 = arith.constant 0 : i32
    %63 = arith.addi %62, %c0_i32_52 : i32
    %64 = arith.index_cast %63 : i32 to index
    %c0_53 = arith.constant 0 : index
    %c0_54 = arith.constant 0 : index
    %65 = vector.load %arg4[%64, %c0_53, %c0_54] : memref<27x16x16xbf16, #tpu.memory_space<vmem>>, vector<1x16x16xbf16>
    %66 = vector.shape_cast %65 : vector<1x16x16xbf16> to vector<16x16xbf16>
    %cst_55 = arith.constant dense<0.000000e+00> : vector<128x16xf32>
    %67 = tpu.matmul %60, %66, %cst_55 {dimension_numbers = #tpu.dot_dimension_numbers<[1], [0], [0], [1], [0, 0, 1, 1], [], []>} : vector<128x16xbf16>, vector<16x16xbf16>, vector<128x16xf32> -> vector<128x16xf32>
    %68 = arith.addf %58, %67 : vector<128x16xf32>
    %c0_56 = arith.constant 0 : index
    %c0_57 = arith.constant 0 : index
    %c33 = arith.constant 33 : index
    %c0_58 = arith.constant 0 : index
    %69 = vector.load %arg3[%c0_56, %c0_57, %c33, %c0_58] : memref<1x1x168x16xbf16, #tpu.memory_space<vmem>>, vector<1x1x128x16xbf16>
    %70 = vector.shape_cast %69 : vector<1x1x128x16xbf16> to vector<128x16xbf16>
    %c9_i32_59 = arith.constant 9 : i32
    %71 = arith.muli %arg2, %c9_i32_59 : i32
    %c6_i32_60 = arith.constant 6 : i32
    %72 = arith.addi %71, %c6_i32_60 : i32
    %c1_i32_61 = arith.constant 1 : i32
    %73 = arith.addi %72, %c1_i32_61 : i32
    %74 = arith.index_cast %73 : i32 to index
    %c0_62 = arith.constant 0 : index
    %c0_63 = arith.constant 0 : index
    %75 = vector.load %arg4[%74, %c0_62, %c0_63] : memref<27x16x16xbf16, #tpu.memory_space<vmem>>, vector<1x16x16xbf16>
    %76 = vector.shape_cast %75 : vector<1x16x16xbf16> to vector<16x16xbf16>
    %cst_64 = arith.constant dense<0.000000e+00> : vector<128x16xf32>
    %77 = tpu.matmul %70, %76, %cst_64 {dimension_numbers = #tpu.dot_dimension_numbers<[1], [0], [0], [1], [0, 0, 1, 1], [], []>} : vector<128x16xbf16>, vector<16x16xbf16>, vector<128x16xf32> -> vector<128x16xf32>
    %78 = arith.addf %68, %77 : vector<128x16xf32>
    %c0_65 = arith.constant 0 : index
    %c0_66 = arith.constant 0 : index
    %c34 = arith.constant 34 : index
    %c0_67 = arith.constant 0 : index
    %79 = vector.load %arg3[%c0_65, %c0_66, %c34, %c0_67] : memref<1x1x168x16xbf16, #tpu.memory_space<vmem>>, vector<1x1x128x16xbf16>
    %80 = vector.shape_cast %79 : vector<1x1x128x16xbf16> to vector<128x16xbf16>
    %c9_i32_68 = arith.constant 9 : i32
    %81 = arith.muli %arg2, %c9_i32_68 : i32
    %c6_i32_69 = arith.constant 6 : i32
    %82 = arith.addi %81, %c6_i32_69 : i32
    %c2_i32_70 = arith.constant 2 : i32
    %83 = arith.addi %82, %c2_i32_70 : i32
    %84 = arith.index_cast %83 : i32 to index
    %c0_71 = arith.constant 0 : index
    %c0_72 = arith.constant 0 : index
    %85 = vector.load %arg4[%84, %c0_71, %c0_72] : memref<27x16x16xbf16, #tpu.memory_space<vmem>>, vector<1x16x16xbf16>
    %86 = vector.shape_cast %85 : vector<1x16x16xbf16> to vector<16x16xbf16>
    %cst_73 = arith.constant dense<0.000000e+00> : vector<128x16xf32>
    %87 = tpu.matmul %80, %86, %cst_73 {dimension_numbers = #tpu.dot_dimension_numbers<[1], [0], [0], [1], [0, 0, 1, 1], [], []>} : vector<128x16xbf16>, vector<16x16xbf16>, vector<128x16xf32> -> vector<128x16xf32>
    %88 = arith.addf %78, %87 : vector<128x16xf32>
    %c0_i32_74 = arith.constant 0 : i32
    %89 = arith.cmpi eq, %arg2, %c0_i32_74 : i32
    %90 = arith.extui %89 : i1 to i32
    %c0_i32_75 = arith.constant 0 : i32
    %91 = arith.cmpi ne, %90, %c0_i32_75 : i32
    scf.if %91 {
      %c0_80 = arith.constant 0 : index
      %c0_81 = arith.constant 0 : index
      %98 = vector.load %arg5[%c0_80, %c0_81] : memref<1x16xf32, #tpu.memory_space<vmem>>, vector<1x16xf32>
      %99 = vector.broadcast %98 : vector<1x16xf32> to vector<128x16xf32>
      %100 = arith.addf %88, %99 : vector<128x16xf32>
      %c0_82 = arith.constant 0 : index
      %c0_83 = arith.constant 0 : index
      %101 = vector.load %arg9[%c0_82, %c0_83] : memref<128x16xf32, #tpu.memory_space<vmem>>, vector<128x16xf32>
      tpu.vector_store %arg9[%c0_82, %c0_83], %100 {strides = array<i32>} : memref<128x16xf32, #tpu.memory_space<vmem>>, vector<128x16xf32>,
    } else {
    }
    %c0_i32_76 = arith.constant 0 : i32
    %92 = arith.cmpi sgt, %arg2, %c0_i32_76 : i32
    %93 = arith.extui %92 : i1 to i32
    %c0_i32_77 = arith.constant 0 : i32
    %94 = arith.cmpi ne, %93, %c0_i32_77 : i32
    scf.if %94 {
      %c0_80 = arith.constant 0 : index
      %c0_81 = arith.constant 0 : index
      %98 = vector.load %arg9[%c0_80, %c0_81] : memref<128x16xf32, #tpu.memory_space<vmem>>, vector<128x16xf32>
      %99 = arith.addf %98, %88 : vector<128x16xf32>
      %c0_82 = arith.constant 0 : index
      %c0_83 = arith.constant 0 : index
      %100 = vector.load %arg9[%c0_82, %c0_83] : memref<128x16xf32, #tpu.memory_space<vmem>>, vector<128x16xf32>
      tpu.vector_store %arg9[%c0_82, %c0_83], %99 {strides = array<i32>} : memref<128x16xf32, #tpu.memory_space<vmem>>, vector<128x16xf32>,
    } else {
    }
    %c2_i32_78 = arith.constant 2 : i32
    %95 = arith.cmpi eq, %arg2, %c2_i32_78 : i32
    %96 = arith.extui %95 : i1 to i32
    %c0_i32_79 = arith.constant 0 : i32
    %97 = arith.cmpi ne, %96, %c0_i32_79 : i32
    scf.if %97 {
      %cst_80 = arith.constant 0.000000e+00 : f32
      %98 = vector.broadcast %cst_80 : f32 to vector<1x16xf32>
      %cst_81 = arith.constant 0.000000e+00 : f32
      %99 = vector.broadcast %cst_81 : f32 to vector<1x16xf32>
      %c0_82 = arith.constant 0 : index
      %c0_83 = arith.constant 0 : index
      %100 = vector.load %arg9[%c0_82, %c0_83] : memref<128x16xf32, #tpu.memory_space<vmem>>, vector<8x16xf32>
      %c0_84 = arith.constant 0 : index
      %c0_85 = arith.constant 0 : index
      %c0_86 = arith.constant 0 : index
      %c0_87 = arith.constant 0 : index
      %c0_88 = arith.constant 0 : index
      %101 = vector.load %arg6[%c0_84, %c0_85, %c0_86, %c0_87, %c0_88] : memref<1x1x8x8x16xf32, #tpu.memory_space<vmem>>, vector<1x1x1x8x16xf32>
      %102 = vector.shape_cast %101 : vector<1x1x1x8x16xf32> to vector<8x16xf32>
      %103 = vector.shape_cast %100 : vector<8x16xf32> to vector<1x1x1x8x16xf32>
      tpu.vector_store %arg6[%c0_84, %c0_85, %c0_86, %c0_87, %c0_88], %103 {strides = array<i32>} : memref<1x1x8x8x16xf32, #tpu.memory_space<vmem>>, vector<1x1x1x8x16xf32>,
      %cst_89 = arith.constant dense<0.000000e+00> : vector<16xf32>
      %104 = vector.multi_reduction <add>, %100, %cst_89 [0] : vector<8x16xf32> to vector<16xf32>
      %105 = vector.shape_cast %104 : vector<16xf32> to vector<1x16xf32>
      %106 = arith.addf %98, %105 : vector<1x16xf32>
      %107 = arith.mulf %100, %100 : vector<8x16xf32>
      %cst_90 = arith.constant dense<0.000000e+00> : vector<16xf32>
      %108 = vector.multi_reduction <add>, %107, %cst_90 [0] : vector<8x16xf32> to vector<16xf32>
      %109 = vector.shape_cast %108 : vector<16xf32> to vector<1x16xf32>
      %110 = arith.addf %99, %109 : vector<1x16xf32>
      %c16_91 = arith.constant 16 : index
      %c0_92 = arith.constant 0 : index
      %111 = vector.load %arg9[%c16_91, %c0_92] : memref<128x16xf32, #tpu.memory_space<vmem>>, vector<8x16xf32>
      %c0_93 = arith.constant 0 : index
      %c0_94 = arith.constant 0 : index
      %c1_95 = arith.constant 1 : index
      %c0_96 = arith.constant 0 : index
      %c0_97 = arith.constant 0 : index
      %112 = vector.load %arg6[%c0_93, %c0_94, %c1_95, %c0_96, %c0_97] : memref<1x1x8x8x16xf32, #tpu.memory_space<vmem>>, vector<1x1x1x8x16xf32>
      %113 = vector.shape_cast %112 : vector<1x1x1x8x16xf32> to vector<8x16xf32>
      %114 = vector.shape_cast %111 : vector<8x16xf32> to vector<1x1x1x8x16xf32>
      tpu.vector_store %arg6[%c0_93, %c0_94, %c1_95, %c0_96, %c0_97], %114 {strides = array<i32>} : memref<1x1x8x8x16xf32, #tpu.memory_space<vmem>>, vector<1x1x1x8x16xf32>,
      %cst_98 = arith.constant dense<0.000000e+00> : vector<16xf32>
      %115 = vector.multi_reduction <add>, %111, %cst_98 [0] : vector<8x16xf32> to vector<16xf32>
      %116 = vector.shape_cast %115 : vector<16xf32> to vector<1x16xf32>
      %117 = arith.addf %106, %116 : vector<1x16xf32>
      %118 = arith.mulf %111, %111 : vector<8x16xf32>
      %cst_99 = arith.constant dense<0.000000e+00> : vector<16xf32>
      %119 = vector.multi_reduction <add>, %118, %cst_99 [0] : vector<8x16xf32> to vector<16xf32>
      %120 = vector.shape_cast %119 : vector<16xf32> to vector<1x16xf32>
      %121 = arith.addf %110, %120 : vector<1x16xf32>
      %c32_100 = arith.constant 32 : index
      %c0_101 = arith.constant 0 : index
      %122 = vector.load %arg9[%c32_100, %c0_101] : memref<128x16xf32, #tpu.memory_space<vmem>>, vector<8x16xf32>
      %c0_102 = arith.constant 0 : index
      %c0_103 = arith.constant 0 : index
      %c2_104 = arith.constant 2 : index
      %c0_105 = arith.constant 0 : index
      %c0_106 = arith.constant 0 : index
      %123 = vector.load %arg6[%c0_102, %c0_103, %c2_104, %c0_105, %c0_106] : memref<1x1x8x8x16xf32, #tpu.memory_space<vmem>>, vector<1x1x1x8x16xf32>
      %124 = vector.shape_cast %123 : vector<1x1x1x8x16xf32> to vector<8x16xf32>
      %125 = vector.shape_cast %122 : vector<8x16xf32> to vector<1x1x1x8x16xf32>
      tpu.vector_store %arg6[%c0_102, %c0_103, %c2_104, %c0_105, %c0_106], %125 {strides = array<i32>} : memref<1x1x8x8x16xf32, #tpu.memory_space<vmem>>, vector<1x1x1x8x16xf32>,
      %cst_107 = arith.constant dense<0.000000e+00> : vector<16xf32>
      %126 = vector.multi_reduction <add>, %122, %cst_107 [0] : vector<8x16xf32> to vector<16xf32>
      %127 = vector.shape_cast %126 : vector<16xf32> to vector<1x16xf32>
      %128 = arith.addf %117, %127 : vector<1x16xf32>
      %129 = arith.mulf %122, %122 : vector<8x16xf32>
      %cst_108 = arith.constant dense<0.000000e+00> : vector<16xf32>
      %130 = vector.multi_reduction <add>, %129, %cst_108 [0] : vector<8x16xf32> to vector<16xf32>
      %131 = vector.shape_cast %130 : vector<16xf32> to vector<1x16xf32>
      %132 = arith.addf %121, %131 : vector<1x16xf32>
      %c48 = arith.constant 48 : index
      %c0_109 = arith.constant 0 : index
      %133 = vector.load %arg9[%c48, %c0_109] : memref<128x16xf32, #tpu.memory_space<vmem>>, vector<8x16xf32>
      %c0_110 = arith.constant 0 : index
      %c0_111 = arith.constant 0 : index
      %c3 = arith.constant 3 : index
      %c0_112 = arith.constant 0 : index
      %c0_113 = arith.constant 0 : index
      %134 = vector.load %arg6[%c0_110, %c0_111, %c3, %c0_112, %c0_113] : memref<1x1x8x8x16xf32, #tpu.memory_space<vmem>>, vector<1x1x1x8x16xf32>
      %135 = vector.shape_cast %134 : vector<1x1x1x8x16xf32> to vector<8x16xf32>
      %136 = vector.shape_cast %133 : vector<8x16xf32> to vector<1x1x1x8x16xf32>
      tpu.vector_store %arg6[%c0_110, %c0_111, %c3, %c0_112, %c0_113], %136 {strides = array<i32>} : memref<1x1x8x8x16xf32, #tpu.memory_space<vmem>>, vector<1x1x1x8x16xf32>,
      %cst_114 = arith.constant dense<0.000000e+00> : vector<16xf32>
      %137 = vector.multi_reduction <add>, %133, %cst_114 [0] : vector<8x16xf32> to vector<16xf32>
      %138 = vector.shape_cast %137 : vector<16xf32> to vector<1x16xf32>
      %139 = arith.addf %128, %138 : vector<1x16xf32>
      %140 = arith.mulf %133, %133 : vector<8x16xf32>
      %cst_115 = arith.constant dense<0.000000e+00> : vector<16xf32>
      %141 = vector.multi_reduction <add>, %140, %cst_115 [0] : vector<8x16xf32> to vector<16xf32>
      %142 = vector.shape_cast %141 : vector<16xf32> to vector<1x16xf32>
      %143 = arith.addf %132, %142 : vector<1x16xf32>
      %c64 = arith.constant 64 : index
      %c0_116 = arith.constant 0 : index
      %144 = vector.load %arg9[%c64, %c0_116] : memref<128x16xf32, #tpu.memory_space<vmem>>, vector<8x16xf32>
      %c0_117 = arith.constant 0 : index
      %c0_118 = arith.constant 0 : index
      %c4 = arith.constant 4 : index
      %c0_119 = arith.constant 0 : index
      %c0_120 = arith.constant 0 : index
      %145 = vector.load %arg6[%c0_117, %c0_118, %c4, %c0_119, %c0_120] : memref<1x1x8x8x16xf32, #tpu.memory_space<vmem>>, vector<1x1x1x8x16xf32>
      %146 = vector.shape_cast %145 : vector<1x1x1x8x16xf32> to vector<8x16xf32>
      %147 = vector.shape_cast %144 : vector<8x16xf32> to vector<1x1x1x8x16xf32>
      tpu.vector_store %arg6[%c0_117, %c0_118, %c4, %c0_119, %c0_120], %147 {strides = array<i32>} : memref<1x1x8x8x16xf32, #tpu.memory_space<vmem>>, vector<1x1x1x8x16xf32>,
      %cst_121 = arith.constant dense<0.000000e+00> : vector<16xf32>
      %148 = vector.multi_reduction <add>, %144, %cst_121 [0] : vector<8x16xf32> to vector<16xf32>
      %149 = vector.shape_cast %148 : vector<16xf32> to vector<1x16xf32>
      %150 = arith.addf %139, %149 : vector<1x16xf32>
      %151 = arith.mulf %144, %144 : vector<8x16xf32>
      %cst_122 = arith.constant dense<0.000000e+00> : vector<16xf32>
      %152 = vector.multi_reduction <add>, %151, %cst_122 [0] : vector<8x16xf32> to vector<16xf32>
      %153 = vector.shape_cast %152 : vector<16xf32> to vector<1x16xf32>
      %154 = arith.addf %143, %153 : vector<1x16xf32>
      %c80 = arith.constant 80 : index
      %c0_123 = arith.constant 0 : index
      %155 = vector.load %arg9[%c80, %c0_123] : memref<128x16xf32, #tpu.memory_space<vmem>>, vector<8x16xf32>
      %c0_124 = arith.constant 0 : index
      %c0_125 = arith.constant 0 : index
      %c5 = arith.constant 5 : index
      %c0_126 = arith.constant 0 : index
      %c0_127 = arith.constant 0 : index
      %156 = vector.load %arg6[%c0_124, %c0_125, %c5, %c0_126, %c0_127] : memref<1x1x8x8x16xf32, #tpu.memory_space<vmem>>, vector<1x1x1x8x16xf32>
      %157 = vector.shape_cast %156 : vector<1x1x1x8x16xf32> to vector<8x16xf32>
      %158 = vector.shape_cast %155 : vector<8x16xf32> to vector<1x1x1x8x16xf32>
      tpu.vector_store %arg6[%c0_124, %c0_125, %c5, %c0_126, %c0_127], %158 {strides = array<i32>} : memref<1x1x8x8x16xf32, #tpu.memory_space<vmem>>, vector<1x1x1x8x16xf32>,
      %cst_128 = arith.constant dense<0.000000e+00> : vector<16xf32>
      %159 = vector.multi_reduction <add>, %155, %cst_128 [0] : vector<8x16xf32> to vector<16xf32>
      %160 = vector.shape_cast %159 : vector<16xf32> to vector<1x16xf32>
      %161 = arith.addf %150, %160 : vector<1x16xf32>
      %162 = arith.mulf %155, %155 : vector<8x16xf32>
      %cst_129 = arith.constant dense<0.000000e+00> : vector<16xf32>
      %163 = vector.multi_reduction <add>, %162, %cst_129 [0] : vector<8x16xf32> to vector<16xf32>
      %164 = vector.shape_cast %163 : vector<16xf32> to vector<1x16xf32>
      %165 = arith.addf %154, %164 : vector<1x16xf32>
      %c96 = arith.constant 96 : index
      %c0_130 = arith.constant 0 : index
      %166 = vector.load %arg9[%c96, %c0_130] : memref<128x16xf32, #tpu.memory_space<vmem>>, vector<8x16xf32>
      %c0_131 = arith.constant 0 : index
      %c0_132 = arith.constant 0 : index
      %c6 = arith.constant 6 : index
      %c0_133 = arith.constant 0 : index
      %c0_134 = arith.constant 0 : index
      %167 = vector.load %arg6[%c0_131, %c0_132, %c6, %c0_133, %c0_134] : memref<1x1x8x8x16xf32, #tpu.memory_space<vmem>>, vector<1x1x1x8x16xf32>
      %168 = vector.shape_cast %167 : vector<1x1x1x8x16xf32> to vector<8x16xf32>
      %169 = vector.shape_cast %166 : vector<8x16xf32> to vector<1x1x1x8x16xf32>
      tpu.vector_store %arg6[%c0_131, %c0_132, %c6, %c0_133, %c0_134], %169 {strides = array<i32>} : memref<1x1x8x8x16xf32, #tpu.memory_space<vmem>>, vector<1x1x1x8x16xf32>,
      %cst_135 = arith.constant dense<0.000000e+00> : vector<16xf32>
      %170 = vector.multi_reduction <add>, %166, %cst_135 [0] : vector<8x16xf32> to vector<16xf32>
      %171 = vector.shape_cast %170 : vector<16xf32> to vector<1x16xf32>
      %172 = arith.addf %161, %171 : vector<1x16xf32>
      %173 = arith.mulf %166, %166 : vector<8x16xf32>
      %cst_136 = arith.constant dense<0.000000e+00> : vector<16xf32>
      %174 = vector.multi_reduction <add>, %173, %cst_136 [0] : vector<8x16xf32> to vector<16xf32>
      %175 = vector.shape_cast %174 : vector<16xf32> to vector<1x16xf32>
      %176 = arith.addf %165, %175 : vector<1x16xf32>
      %c112 = arith.constant 112 : index
      %c0_137 = arith.constant 0 : index
      %177 = vector.load %arg9[%c112, %c0_137] : memref<128x16xf32, #tpu.memory_space<vmem>>, vector<8x16xf32>
      %c0_138 = arith.constant 0 : index
      %c0_139 = arith.constant 0 : index
      %c7 = arith.constant 7 : index
      %c0_140 = arith.constant 0 : index
      %c0_141 = arith.constant 0 : index
      %178 = vector.load %arg6[%c0_138, %c0_139, %c7, %c0_140, %c0_141] : memref<1x1x8x8x16xf32, #tpu.memory_space<vmem>>, vector<1x1x1x8x16xf32>
      %179 = vector.shape_cast %178 : vector<1x1x1x8x16xf32> to vector<8x16xf32>
      %180 = vector.shape_cast %177 : vector<8x16xf32> to vector<1x1x1x8x16xf32>
      tpu.vector_store %arg6[%c0_138, %c0_139, %c7, %c0_140, %c0_141], %180 {strides = array<i32>} : memref<1x1x8x8x16xf32, #tpu.memory_space<vmem>>, vector<1x1x1x8x16xf32>,
      %cst_142 = arith.constant dense<0.000000e+00> : vector<16xf32>
      %181 = vector.multi_reduction <add>, %177, %cst_142 [0] : vector<8x16xf32> to vector<16xf32>
      %182 = vector.shape_cast %181 : vector<16xf32> to vector<1x16xf32>
      %183 = arith.addf %172, %182 : vector<1x16xf32>
      %184 = arith.mulf %177, %177 : vector<8x16xf32>
      %cst_143 = arith.constant dense<0.000000e+00> : vector<16xf32>
      %185 = vector.multi_reduction <add>, %184, %cst_143 [0] : vector<8x16xf32> to vector<16xf32>
      %186 = vector.shape_cast %185 : vector<16xf32> to vector<1x16xf32>
      %187 = arith.addf %176, %186 : vector<1x16xf32>
      %c0_144 = arith.constant 0 : index
      %c0_145 = arith.constant 0 : index
      %c0_146 = arith.constant 0 : index
      %c0_147 = arith.constant 0 : index
      %188 = vector.load %arg7[%c0_144, %c0_145, %c0_146, %c0_147] : memref<1x1x1x16xf32, #tpu.memory_space<vmem>>, vector<1x1x1x16xf32>
      %189 = vector.shape_cast %188 : vector<1x1x1x16xf32> to vector<1x16xf32>
      %190 = vector.shape_cast %183 : vector<1x16xf32> to vector<1x1x1x16xf32>
      tpu.vector_store %arg7[%c0_144, %c0_145, %c0_146, %c0_147], %190 {strides = array<i32>} : memref<1x1x1x16xf32, #tpu.memory_space<vmem>>, vector<1x1x1x16xf32>,
      %c0_148 = arith.constant 0 : index
      %c0_149 = arith.constant 0 : index
      %c0_150 = arith.constant 0 : index
      %c0_151 = arith.constant 0 : index
      %191 = vector.load %arg8[%c0_148, %c0_149, %c0_150, %c0_151] : memref<1x1x1x16xf32, #tpu.memory_space<vmem>>, vector<1x1x1x16xf32>
      %192 = vector.shape_cast %191 : vector<1x1x1x16xf32> to vector<1x16xf32>
      %193 = vector.shape_cast %187 : vector<1x16xf32> to vector<1x1x1x16xf32>
      tpu.vector_store %arg8[%c0_148, %c0_149, %c0_150, %c0_151], %193 {strides = array<i32>} : memref<1x1x1x16xf32, #tpu.memory_space<vmem>>, vector<1x1x1x16xf32>,
    } else {
    }
    return
  }
  func.func @transform_0(%arg0: i32, %arg1: i32, %arg2: i32) -> (i32, i32, i32, i32) {
    %0 = arith.addi %arg1, %arg2 : i32
    %c0_i32 = arith.constant 0 : i32
    %c0_i32_0 = arith.constant 0 : i32
    %c0_i32_1 = arith.constant 0 : i32
    return %arg0, %0, %c0_i32, %c0_i32_0 : i32, i32, i32, i32
  }
  func.func @transform_1(%arg0: i32, %arg1: i32, %arg2: i32) -> (i32, i32, i32) {
    %c0_i32 = arith.constant 0 : i32
    %c0_i32_0 = arith.constant 0 : i32
    %c0_i32_1 = arith.constant 0 : i32
    %c0_i32_2 = arith.constant 0 : i32
    return %c0_i32, %c0_i32_0, %c0_i32_1 : i32, i32, i32
  }
  func.func @transform_2(%arg0: i32, %arg1: i32, %arg2: i32) -> (i32, i32) {
    %c0_i32 = arith.constant 0 : i32
    %c0_i32_0 = arith.constant 0 : i32
    %c0_i32_1 = arith.constant 0 : i32
    return %c0_i32, %c0_i32_0 : i32, i32
  }
  func.func @transform_3(%arg0: i32, %arg1: i32, %arg2: i32) -> (i32, i32, i32, i32, i32) {
    %c0_i32 = arith.constant 0 : i32
    %c0_i32_0 = arith.constant 0 : i32
    %c0_i32_1 = arith.constant 0 : i32
    %c0_i32_2 = arith.constant 0 : i32
    return %arg0, %arg1, %c0_i32, %c0_i32_0, %c0_i32_1 : i32, i32, i32, i32, i32
  }
  func.func @transform_4(%arg0: i32, %arg1: i32, %arg2: i32) -> (i32, i32, i32, i32) {
    %c0_i32 = arith.constant 0 : i32
    %c0_i32_0 = arith.constant 0 : i32
    %c0_i32_1 = arith.constant 0 : i32
    return %arg0, %arg1, %c0_i32, %c0_i32_0 : i32, i32, i32, i32
  }
  func.func @transform_5(%arg0: i32, %arg1: i32, %arg2: i32) -> (i32, i32, i32, i32) {
    %c0_i32 = arith.constant 0 : i32
    %c0_i32_0 = arith.constant 0 : i32
    %c0_i32_1 = arith.constant 0 : i32
    return %arg0, %arg1, %c0_i32, %c0_i32_0 : i32, i32, i32, i32
  }
}

module attributes {stable_mosaic.version = 11 : i64} {
  func.func @_bn_relu_nc_kernel(%arg0: i32, %arg1: i32, %arg2: memref<1x8x8x8x16xf32, #tpu.memory_space<vmem>>, %arg3: memref<1x16xf32, #tpu.memory_space<vmem>>, %arg4: memref<1x16xf32, #tpu.memory_space<vmem>>, %arg5: memref<1x16x8x8x8xf32, #tpu.memory_space<vmem>>) attributes {dimension_semantics = [#tpu.dimension_semantics<parallel>, #tpu.dimension_semantics<parallel>], iteration_bounds = array<i64: 2, 1>, scalar_prefetch = 0 : i64, scratch_operands = 0 : i64, tpu.core_type = #tpu.core_type<tc>, window_params = [{transform_indices = @transform_0, window_bounds = array<i64: 1, 8, 8, 8, 16>}, {pipeline_mode = #tpu.pipeline_mode<synchronous>, transform_indices = @transform_1, window_bounds = array<i64: 1, 16>}, {pipeline_mode = #tpu.pipeline_mode<synchronous>, transform_indices = @transform_2, window_bounds = array<i64: 1, 16>}, {transform_indices = @transform_3, window_bounds = array<i64: 1, 16, 8, 8, 8>}]} {
    %c0 = arith.constant 0 : index
    %c0_0 = arith.constant 0 : index
    %c0_1 = arith.constant 0 : index
    %c0_2 = arith.constant 0 : index
    %c0_3 = arith.constant 0 : index
    %0 = vector.load %arg2[%c0, %c0_0, %c0_1, %c0_2, %c0_3] : memref<1x8x8x8x16xf32, #tpu.memory_space<vmem>>, vector<1x8x8x8x16xf32>
    %1 = vector.shape_cast %0 : vector<1x8x8x8x16xf32> to vector<8x8x8x16xf32>
    %c0_4 = arith.constant 0 : index
    %c0_5 = arith.constant 0 : index
    %2 = vector.load %arg3[%c0_4, %c0_5] : memref<1x16xf32, #tpu.memory_space<vmem>>, vector<1x16xf32>
    %3 = vector.shape_cast %2 : vector<1x16xf32> to vector<1x1x1x16xf32>
    %4 = vector.broadcast %3 : vector<1x1x1x16xf32> to vector<8x8x8x16xf32>
    %5 = arith.mulf %1, %4 : vector<8x8x8x16xf32>
    %c0_6 = arith.constant 0 : index
    %c0_7 = arith.constant 0 : index
    %6 = vector.load %arg4[%c0_6, %c0_7] : memref<1x16xf32, #tpu.memory_space<vmem>>, vector<1x16xf32>
    %7 = vector.shape_cast %6 : vector<1x16xf32> to vector<1x1x1x16xf32>
    %8 = vector.broadcast %7 : vector<1x1x1x16xf32> to vector<8x8x8x16xf32>
    %9 = arith.addf %5, %8 : vector<8x8x8x16xf32>
    %cst = arith.constant 0.000000e+00 : f32
    %10 = vector.broadcast %cst : f32 to vector<8x8x8x16xf32>
    %11 = arith.maximumf %9, %10 : vector<8x8x8x16xf32>
    %12 = vector.extract_strided_slice %11 {offsets = [0, 0, 0, 0], sizes = [1, 1, 8, 16], strides = [1, 1, 1, 1]} : vector<8x8x8x16xf32> to vector<1x1x8x16xf32>
    %13 = vector.shape_cast %12 : vector<1x1x8x16xf32> to vector<8x16xf32>
    %14 = tpu.transpose %13, [1, 0] : vector<8x16xf32> -> vector<16x8xf32>
    %c0_8 = arith.constant 0 : index
    %c0_9 = arith.constant 0 : index
    %c0_10 = arith.constant 0 : index
    %c0_11 = arith.constant 0 : index
    %c0_12 = arith.constant 0 : index
    %15 = vector.load %arg5[%c0_8, %c0_9, %c0_10, %c0_11, %c0_12] : memref<1x16x8x8x8xf32, #tpu.memory_space<vmem>>, vector<1x16x1x1x8xf32>
    %16 = vector.shape_cast %15 : vector<1x16x1x1x8xf32> to vector<16x8xf32>
    %17 = vector.shape_cast %14 : vector<16x8xf32> to vector<1x16x1x1x8xf32>
    tpu.vector_store %arg5[%c0_8, %c0_9, %c0_10, %c0_11, %c0_12], %17 {strides = array<i32>} : memref<1x16x8x8x8xf32, #tpu.memory_space<vmem>>, vector<1x16x1x1x8xf32>,
    %18 = vector.extract_strided_slice %11 {offsets = [0, 1, 0, 0], sizes = [1, 1, 8, 16], strides = [1, 1, 1, 1]} : vector<8x8x8x16xf32> to vector<1x1x8x16xf32>
    %19 = vector.shape_cast %18 : vector<1x1x8x16xf32> to vector<8x16xf32>
    %20 = tpu.transpose %19, [1, 0] : vector<8x16xf32> -> vector<16x8xf32>
    %c0_13 = arith.constant 0 : index
    %c0_14 = arith.constant 0 : index
    %c0_15 = arith.constant 0 : index
    %c1 = arith.constant 1 : index
    %c0_16 = arith.constant 0 : index
    %21 = vector.load %arg5[%c0_13, %c0_14, %c0_15, %c1, %c0_16] : memref<1x16x8x8x8xf32, #tpu.memory_space<vmem>>, vector<1x16x1x1x8xf32>
    %22 = vector.shape_cast %21 : vector<1x16x1x1x8xf32> to vector<16x8xf32>
    %23 = vector.shape_cast %20 : vector<16x8xf32> to vector<1x16x1x1x8xf32>
    tpu.vector_store %arg5[%c0_13, %c0_14, %c0_15, %c1, %c0_16], %23 {strides = array<i32>} : memref<1x16x8x8x8xf32, #tpu.memory_space<vmem>>, vector<1x16x1x1x8xf32>,
    %24 = vector.extract_strided_slice %11 {offsets = [0, 2, 0, 0], sizes = [1, 1, 8, 16], strides = [1, 1, 1, 1]} : vector<8x8x8x16xf32> to vector<1x1x8x16xf32>
    %25 = vector.shape_cast %24 : vector<1x1x8x16xf32> to vector<8x16xf32>
    %26 = tpu.transpose %25, [1, 0] : vector<8x16xf32> -> vector<16x8xf32>
    %c0_17 = arith.constant 0 : index
    %c0_18 = arith.constant 0 : index
    %c0_19 = arith.constant 0 : index
    %c2 = arith.constant 2 : index
    %c0_20 = arith.constant 0 : index
    %27 = vector.load %arg5[%c0_17, %c0_18, %c0_19, %c2, %c0_20] : memref<1x16x8x8x8xf32, #tpu.memory_space<vmem>>, vector<1x16x1x1x8xf32>
    %28 = vector.shape_cast %27 : vector<1x16x1x1x8xf32> to vector<16x8xf32>
    %29 = vector.shape_cast %26 : vector<16x8xf32> to vector<1x16x1x1x8xf32>
    tpu.vector_store %arg5[%c0_17, %c0_18, %c0_19, %c2, %c0_20], %29 {strides = array<i32>} : memref<1x16x8x8x8xf32, #tpu.memory_space<vmem>>, vector<1x16x1x1x8xf32>,
    %30 = vector.extract_strided_slice %11 {offsets = [0, 3, 0, 0], sizes = [1, 1, 8, 16], strides = [1, 1, 1, 1]} : vector<8x8x8x16xf32> to vector<1x1x8x16xf32>
    %31 = vector.shape_cast %30 : vector<1x1x8x16xf32> to vector<8x16xf32>
    %32 = tpu.transpose %31, [1, 0] : vector<8x16xf32> -> vector<16x8xf32>
    %c0_21 = arith.constant 0 : index
    %c0_22 = arith.constant 0 : index
    %c0_23 = arith.constant 0 : index
    %c3 = arith.constant 3 : index
    %c0_24 = arith.constant 0 : index
    %33 = vector.load %arg5[%c0_21, %c0_22, %c0_23, %c3, %c0_24] : memref<1x16x8x8x8xf32, #tpu.memory_space<vmem>>, vector<1x16x1x1x8xf32>
    %34 = vector.shape_cast %33 : vector<1x16x1x1x8xf32> to vector<16x8xf32>
    %35 = vector.shape_cast %32 : vector<16x8xf32> to vector<1x16x1x1x8xf32>
    tpu.vector_store %arg5[%c0_21, %c0_22, %c0_23, %c3, %c0_24], %35 {strides = array<i32>} : memref<1x16x8x8x8xf32, #tpu.memory_space<vmem>>, vector<1x16x1x1x8xf32>,
    %36 = vector.extract_strided_slice %11 {offsets = [0, 4, 0, 0], sizes = [1, 1, 8, 16], strides = [1, 1, 1, 1]} : vector<8x8x8x16xf32> to vector<1x1x8x16xf32>
    %37 = vector.shape_cast %36 : vector<1x1x8x16xf32> to vector<8x16xf32>
    %38 = tpu.transpose %37, [1, 0] : vector<8x16xf32> -> vector<16x8xf32>
    %c0_25 = arith.constant 0 : index
    %c0_26 = arith.constant 0 : index
    %c0_27 = arith.constant 0 : index
    %c4 = arith.constant 4 : index
    %c0_28 = arith.constant 0 : index
    %39 = vector.load %arg5[%c0_25, %c0_26, %c0_27, %c4, %c0_28] : memref<1x16x8x8x8xf32, #tpu.memory_space<vmem>>, vector<1x16x1x1x8xf32>
    %40 = vector.shape_cast %39 : vector<1x16x1x1x8xf32> to vector<16x8xf32>
    %41 = vector.shape_cast %38 : vector<16x8xf32> to vector<1x16x1x1x8xf32>
    tpu.vector_store %arg5[%c0_25, %c0_26, %c0_27, %c4, %c0_28], %41 {strides = array<i32>} : memref<1x16x8x8x8xf32, #tpu.memory_space<vmem>>, vector<1x16x1x1x8xf32>,
    %42 = vector.extract_strided_slice %11 {offsets = [0, 5, 0, 0], sizes = [1, 1, 8, 16], strides = [1, 1, 1, 1]} : vector<8x8x8x16xf32> to vector<1x1x8x16xf32>
    %43 = vector.shape_cast %42 : vector<1x1x8x16xf32> to vector<8x16xf32>
    %44 = tpu.transpose %43, [1, 0] : vector<8x16xf32> -> vector<16x8xf32>
    %c0_29 = arith.constant 0 : index
    %c0_30 = arith.constant 0 : index
    %c0_31 = arith.constant 0 : index
    %c5 = arith.constant 5 : index
    %c0_32 = arith.constant 0 : index
    %45 = vector.load %arg5[%c0_29, %c0_30, %c0_31, %c5, %c0_32] : memref<1x16x8x8x8xf32, #tpu.memory_space<vmem>>, vector<1x16x1x1x8xf32>
    %46 = vector.shape_cast %45 : vector<1x16x1x1x8xf32> to vector<16x8xf32>
    %47 = vector.shape_cast %44 : vector<16x8xf32> to vector<1x16x1x1x8xf32>
    tpu.vector_store %arg5[%c0_29, %c0_30, %c0_31, %c5, %c0_32], %47 {strides = array<i32>} : memref<1x16x8x8x8xf32, #tpu.memory_space<vmem>>, vector<1x16x1x1x8xf32>,
    %48 = vector.extract_strided_slice %11 {offsets = [0, 6, 0, 0], sizes = [1, 1, 8, 16], strides = [1, 1, 1, 1]} : vector<8x8x8x16xf32> to vector<1x1x8x16xf32>
    %49 = vector.shape_cast %48 : vector<1x1x8x16xf32> to vector<8x16xf32>
    %50 = tpu.transpose %49, [1, 0] : vector<8x16xf32> -> vector<16x8xf32>
    %c0_33 = arith.constant 0 : index
    %c0_34 = arith.constant 0 : index
    %c0_35 = arith.constant 0 : index
    %c6 = arith.constant 6 : index
    %c0_36 = arith.constant 0 : index
    %51 = vector.load %arg5[%c0_33, %c0_34, %c0_35, %c6, %c0_36] : memref<1x16x8x8x8xf32, #tpu.memory_space<vmem>>, vector<1x16x1x1x8xf32>
    %52 = vector.shape_cast %51 : vector<1x16x1x1x8xf32> to vector<16x8xf32>
    %53 = vector.shape_cast %50 : vector<16x8xf32> to vector<1x16x1x1x8xf32>
    tpu.vector_store %arg5[%c0_33, %c0_34, %c0_35, %c6, %c0_36], %53 {strides = array<i32>} : memref<1x16x8x8x8xf32, #tpu.memory_space<vmem>>, vector<1x16x1x1x8xf32>,
    %54 = vector.extract_strided_slice %11 {offsets = [0, 7, 0, 0], sizes = [1, 1, 8, 16], strides = [1, 1, 1, 1]} : vector<8x8x8x16xf32> to vector<1x1x8x16xf32>
    %55 = vector.shape_cast %54 : vector<1x1x8x16xf32> to vector<8x16xf32>
    %56 = tpu.transpose %55, [1, 0] : vector<8x16xf32> -> vector<16x8xf32>
    %c0_37 = arith.constant 0 : index
    %c0_38 = arith.constant 0 : index
    %c0_39 = arith.constant 0 : index
    %c7 = arith.constant 7 : index
    %c0_40 = arith.constant 0 : index
    %57 = vector.load %arg5[%c0_37, %c0_38, %c0_39, %c7, %c0_40] : memref<1x16x8x8x8xf32, #tpu.memory_space<vmem>>, vector<1x16x1x1x8xf32>
    %58 = vector.shape_cast %57 : vector<1x16x1x1x8xf32> to vector<16x8xf32>
    %59 = vector.shape_cast %56 : vector<16x8xf32> to vector<1x16x1x1x8xf32>
    tpu.vector_store %arg5[%c0_37, %c0_38, %c0_39, %c7, %c0_40], %59 {strides = array<i32>} : memref<1x16x8x8x8xf32, #tpu.memory_space<vmem>>, vector<1x16x1x1x8xf32>,
    %60 = vector.extract_strided_slice %11 {offsets = [1, 0, 0, 0], sizes = [1, 1, 8, 16], strides = [1, 1, 1, 1]} : vector<8x8x8x16xf32> to vector<1x1x8x16xf32>
    %61 = vector.shape_cast %60 : vector<1x1x8x16xf32> to vector<8x16xf32>
    %62 = tpu.transpose %61, [1, 0] : vector<8x16xf32> -> vector<16x8xf32>
    %c0_41 = arith.constant 0 : index
    %c0_42 = arith.constant 0 : index
    %c1_43 = arith.constant 1 : index
    %c0_44 = arith.constant 0 : index
    %c0_45 = arith.constant 0 : index
    %63 = vector.load %arg5[%c0_41, %c0_42, %c1_43, %c0_44, %c0_45] : memref<1x16x8x8x8xf32, #tpu.memory_space<vmem>>, vector<1x16x1x1x8xf32>
    %64 = vector.shape_cast %63 : vector<1x16x1x1x8xf32> to vector<16x8xf32>
    %65 = vector.shape_cast %62 : vector<16x8xf32> to vector<1x16x1x1x8xf32>
    tpu.vector_store %arg5[%c0_41, %c0_42, %c1_43, %c0_44, %c0_45], %65 {strides = array<i32>} : memref<1x16x8x8x8xf32, #tpu.memory_space<vmem>>, vector<1x16x1x1x8xf32>,
    %66 = vector.extract_strided_slice %11 {offsets = [1, 1, 0, 0], sizes = [1, 1, 8, 16], strides = [1, 1, 1, 1]} : vector<8x8x8x16xf32> to vector<1x1x8x16xf32>
    %67 = vector.shape_cast %66 : vector<1x1x8x16xf32> to vector<8x16xf32>
    %68 = tpu.transpose %67, [1, 0] : vector<8x16xf32> -> vector<16x8xf32>
    %c0_46 = arith.constant 0 : index
    %c0_47 = arith.constant 0 : index
    %c1_48 = arith.constant 1 : index
    %c1_49 = arith.constant 1 : index
    %c0_50 = arith.constant 0 : index
    %69 = vector.load %arg5[%c0_46, %c0_47, %c1_48, %c1_49, %c0_50] : memref<1x16x8x8x8xf32, #tpu.memory_space<vmem>>, vector<1x16x1x1x8xf32>
    %70 = vector.shape_cast %69 : vector<1x16x1x1x8xf32> to vector<16x8xf32>
    %71 = vector.shape_cast %68 : vector<16x8xf32> to vector<1x16x1x1x8xf32>
    tpu.vector_store %arg5[%c0_46, %c0_47, %c1_48, %c1_49, %c0_50], %71 {strides = array<i32>} : memref<1x16x8x8x8xf32, #tpu.memory_space<vmem>>, vector<1x16x1x1x8xf32>,
    %72 = vector.extract_strided_slice %11 {offsets = [1, 2, 0, 0], sizes = [1, 1, 8, 16], strides = [1, 1, 1, 1]} : vector<8x8x8x16xf32> to vector<1x1x8x16xf32>
    %73 = vector.shape_cast %72 : vector<1x1x8x16xf32> to vector<8x16xf32>
    %74 = tpu.transpose %73, [1, 0] : vector<8x16xf32> -> vector<16x8xf32>
    %c0_51 = arith.constant 0 : index
    %c0_52 = arith.constant 0 : index
    %c1_53 = arith.constant 1 : index
    %c2_54 = arith.constant 2 : index
    %c0_55 = arith.constant 0 : index
    %75 = vector.load %arg5[%c0_51, %c0_52, %c1_53, %c2_54, %c0_55] : memref<1x16x8x8x8xf32, #tpu.memory_space<vmem>>, vector<1x16x1x1x8xf32>
    %76 = vector.shape_cast %75 : vector<1x16x1x1x8xf32> to vector<16x8xf32>
    %77 = vector.shape_cast %74 : vector<16x8xf32> to vector<1x16x1x1x8xf32>
    tpu.vector_store %arg5[%c0_51, %c0_52, %c1_53, %c2_54, %c0_55], %77 {strides = array<i32>} : memref<1x16x8x8x8xf32, #tpu.memory_space<vmem>>, vector<1x16x1x1x8xf32>,
    %78 = vector.extract_strided_slice %11 {offsets = [1, 3, 0, 0], sizes = [1, 1, 8, 16], strides = [1, 1, 1, 1]} : vector<8x8x8x16xf32> to vector<1x1x8x16xf32>
    %79 = vector.shape_cast %78 : vector<1x1x8x16xf32> to vector<8x16xf32>
    %80 = tpu.transpose %79, [1, 0] : vector<8x16xf32> -> vector<16x8xf32>
    %c0_56 = arith.constant 0 : index
    %c0_57 = arith.constant 0 : index
    %c1_58 = arith.constant 1 : index
    %c3_59 = arith.constant 3 : index
    %c0_60 = arith.constant 0 : index
    %81 = vector.load %arg5[%c0_56, %c0_57, %c1_58, %c3_59, %c0_60] : memref<1x16x8x8x8xf32, #tpu.memory_space<vmem>>, vector<1x16x1x1x8xf32>
    %82 = vector.shape_cast %81 : vector<1x16x1x1x8xf32> to vector<16x8xf32>
    %83 = vector.shape_cast %80 : vector<16x8xf32> to vector<1x16x1x1x8xf32>
    tpu.vector_store %arg5[%c0_56, %c0_57, %c1_58, %c3_59, %c0_60], %83 {strides = array<i32>} : memref<1x16x8x8x8xf32, #tpu.memory_space<vmem>>, vector<1x16x1x1x8xf32>,
    %84 = vector.extract_strided_slice %11 {offsets = [1, 4, 0, 0], sizes = [1, 1, 8, 16], strides = [1, 1, 1, 1]} : vector<8x8x8x16xf32> to vector<1x1x8x16xf32>
    %85 = vector.shape_cast %84 : vector<1x1x8x16xf32> to vector<8x16xf32>
    %86 = tpu.transpose %85, [1, 0] : vector<8x16xf32> -> vector<16x8xf32>
    %c0_61 = arith.constant 0 : index
    %c0_62 = arith.constant 0 : index
    %c1_63 = arith.constant 1 : index
    %c4_64 = arith.constant 4 : index
    %c0_65 = arith.constant 0 : index
    %87 = vector.load %arg5[%c0_61, %c0_62, %c1_63, %c4_64, %c0_65] : memref<1x16x8x8x8xf32, #tpu.memory_space<vmem>>, vector<1x16x1x1x8xf32>
    %88 = vector.shape_cast %87 : vector<1x16x1x1x8xf32> to vector<16x8xf32>
    %89 = vector.shape_cast %86 : vector<16x8xf32> to vector<1x16x1x1x8xf32>
    tpu.vector_store %arg5[%c0_61, %c0_62, %c1_63, %c4_64, %c0_65], %89 {strides = array<i32>} : memref<1x16x8x8x8xf32, #tpu.memory_space<vmem>>, vector<1x16x1x1x8xf32>,
    %90 = vector.extract_strided_slice %11 {offsets = [1, 5, 0, 0], sizes = [1, 1, 8, 16], strides = [1, 1, 1, 1]} : vector<8x8x8x16xf32> to vector<1x1x8x16xf32>
    %91 = vector.shape_cast %90 : vector<1x1x8x16xf32> to vector<8x16xf32>
    %92 = tpu.transpose %91, [1, 0] : vector<8x16xf32> -> vector<16x8xf32>
    %c0_66 = arith.constant 0 : index
    %c0_67 = arith.constant 0 : index
    %c1_68 = arith.constant 1 : index
    %c5_69 = arith.constant 5 : index
    %c0_70 = arith.constant 0 : index
    %93 = vector.load %arg5[%c0_66, %c0_67, %c1_68, %c5_69, %c0_70] : memref<1x16x8x8x8xf32, #tpu.memory_space<vmem>>, vector<1x16x1x1x8xf32>
    %94 = vector.shape_cast %93 : vector<1x16x1x1x8xf32> to vector<16x8xf32>
    %95 = vector.shape_cast %92 : vector<16x8xf32> to vector<1x16x1x1x8xf32>
    tpu.vector_store %arg5[%c0_66, %c0_67, %c1_68, %c5_69, %c0_70], %95 {strides = array<i32>} : memref<1x16x8x8x8xf32, #tpu.memory_space<vmem>>, vector<1x16x1x1x8xf32>,
    %96 = vector.extract_strided_slice %11 {offsets = [1, 6, 0, 0], sizes = [1, 1, 8, 16], strides = [1, 1, 1, 1]} : vector<8x8x8x16xf32> to vector<1x1x8x16xf32>
    %97 = vector.shape_cast %96 : vector<1x1x8x16xf32> to vector<8x16xf32>
    %98 = tpu.transpose %97, [1, 0] : vector<8x16xf32> -> vector<16x8xf32>
    %c0_71 = arith.constant 0 : index
    %c0_72 = arith.constant 0 : index
    %c1_73 = arith.constant 1 : index
    %c6_74 = arith.constant 6 : index
    %c0_75 = arith.constant 0 : index
    %99 = vector.load %arg5[%c0_71, %c0_72, %c1_73, %c6_74, %c0_75] : memref<1x16x8x8x8xf32, #tpu.memory_space<vmem>>, vector<1x16x1x1x8xf32>
    %100 = vector.shape_cast %99 : vector<1x16x1x1x8xf32> to vector<16x8xf32>
    %101 = vector.shape_cast %98 : vector<16x8xf32> to vector<1x16x1x1x8xf32>
    tpu.vector_store %arg5[%c0_71, %c0_72, %c1_73, %c6_74, %c0_75], %101 {strides = array<i32>} : memref<1x16x8x8x8xf32, #tpu.memory_space<vmem>>, vector<1x16x1x1x8xf32>,
    %102 = vector.extract_strided_slice %11 {offsets = [1, 7, 0, 0], sizes = [1, 1, 8, 16], strides = [1, 1, 1, 1]} : vector<8x8x8x16xf32> to vector<1x1x8x16xf32>
    %103 = vector.shape_cast %102 : vector<1x1x8x16xf32> to vector<8x16xf32>
    %104 = tpu.transpose %103, [1, 0] : vector<8x16xf32> -> vector<16x8xf32>
    %c0_76 = arith.constant 0 : index
    %c0_77 = arith.constant 0 : index
    %c1_78 = arith.constant 1 : index
    %c7_79 = arith.constant 7 : index
    %c0_80 = arith.constant 0 : index
    %105 = vector.load %arg5[%c0_76, %c0_77, %c1_78, %c7_79, %c0_80] : memref<1x16x8x8x8xf32, #tpu.memory_space<vmem>>, vector<1x16x1x1x8xf32>
    %106 = vector.shape_cast %105 : vector<1x16x1x1x8xf32> to vector<16x8xf32>
    %107 = vector.shape_cast %104 : vector<16x8xf32> to vector<1x16x1x1x8xf32>
    tpu.vector_store %arg5[%c0_76, %c0_77, %c1_78, %c7_79, %c0_80], %107 {strides = array<i32>} : memref<1x16x8x8x8xf32, #tpu.memory_space<vmem>>, vector<1x16x1x1x8xf32>,
    %108 = vector.extract_strided_slice %11 {offsets = [2, 0, 0, 0], sizes = [1, 1, 8, 16], strides = [1, 1, 1, 1]} : vector<8x8x8x16xf32> to vector<1x1x8x16xf32>
    %109 = vector.shape_cast %108 : vector<1x1x8x16xf32> to vector<8x16xf32>
    %110 = tpu.transpose %109, [1, 0] : vector<8x16xf32> -> vector<16x8xf32>
    %c0_81 = arith.constant 0 : index
    %c0_82 = arith.constant 0 : index
    %c2_83 = arith.constant 2 : index
    %c0_84 = arith.constant 0 : index
    %c0_85 = arith.constant 0 : index
    %111 = vector.load %arg5[%c0_81, %c0_82, %c2_83, %c0_84, %c0_85] : memref<1x16x8x8x8xf32, #tpu.memory_space<vmem>>, vector<1x16x1x1x8xf32>
    %112 = vector.shape_cast %111 : vector<1x16x1x1x8xf32> to vector<16x8xf32>
    %113 = vector.shape_cast %110 : vector<16x8xf32> to vector<1x16x1x1x8xf32>
    tpu.vector_store %arg5[%c0_81, %c0_82, %c2_83, %c0_84, %c0_85], %113 {strides = array<i32>} : memref<1x16x8x8x8xf32, #tpu.memory_space<vmem>>, vector<1x16x1x1x8xf32>,
    %114 = vector.extract_strided_slice %11 {offsets = [2, 1, 0, 0], sizes = [1, 1, 8, 16], strides = [1, 1, 1, 1]} : vector<8x8x8x16xf32> to vector<1x1x8x16xf32>
    %115 = vector.shape_cast %114 : vector<1x1x8x16xf32> to vector<8x16xf32>
    %116 = tpu.transpose %115, [1, 0] : vector<8x16xf32> -> vector<16x8xf32>
    %c0_86 = arith.constant 0 : index
    %c0_87 = arith.constant 0 : index
    %c2_88 = arith.constant 2 : index
    %c1_89 = arith.constant 1 : index
    %c0_90 = arith.constant 0 : index
    %117 = vector.load %arg5[%c0_86, %c0_87, %c2_88, %c1_89, %c0_90] : memref<1x16x8x8x8xf32, #tpu.memory_space<vmem>>, vector<1x16x1x1x8xf32>
    %118 = vector.shape_cast %117 : vector<1x16x1x1x8xf32> to vector<16x8xf32>
    %119 = vector.shape_cast %116 : vector<16x8xf32> to vector<1x16x1x1x8xf32>
    tpu.vector_store %arg5[%c0_86, %c0_87, %c2_88, %c1_89, %c0_90], %119 {strides = array<i32>} : memref<1x16x8x8x8xf32, #tpu.memory_space<vmem>>, vector<1x16x1x1x8xf32>,
    %120 = vector.extract_strided_slice %11 {offsets = [2, 2, 0, 0], sizes = [1, 1, 8, 16], strides = [1, 1, 1, 1]} : vector<8x8x8x16xf32> to vector<1x1x8x16xf32>
    %121 = vector.shape_cast %120 : vector<1x1x8x16xf32> to vector<8x16xf32>
    %122 = tpu.transpose %121, [1, 0] : vector<8x16xf32> -> vector<16x8xf32>
    %c0_91 = arith.constant 0 : index
    %c0_92 = arith.constant 0 : index
    %c2_93 = arith.constant 2 : index
    %c2_94 = arith.constant 2 : index
    %c0_95 = arith.constant 0 : index
    %123 = vector.load %arg5[%c0_91, %c0_92, %c2_93, %c2_94, %c0_95] : memref<1x16x8x8x8xf32, #tpu.memory_space<vmem>>, vector<1x16x1x1x8xf32>
    %124 = vector.shape_cast %123 : vector<1x16x1x1x8xf32> to vector<16x8xf32>
    %125 = vector.shape_cast %122 : vector<16x8xf32> to vector<1x16x1x1x8xf32>
    tpu.vector_store %arg5[%c0_91, %c0_92, %c2_93, %c2_94, %c0_95], %125 {strides = array<i32>} : memref<1x16x8x8x8xf32, #tpu.memory_space<vmem>>, vector<1x16x1x1x8xf32>,
    %126 = vector.extract_strided_slice %11 {offsets = [2, 3, 0, 0], sizes = [1, 1, 8, 16], strides = [1, 1, 1, 1]} : vector<8x8x8x16xf32> to vector<1x1x8x16xf32>
    %127 = vector.shape_cast %126 : vector<1x1x8x16xf32> to vector<8x16xf32>
    %128 = tpu.transpose %127, [1, 0] : vector<8x16xf32> -> vector<16x8xf32>
    %c0_96 = arith.constant 0 : index
    %c0_97 = arith.constant 0 : index
    %c2_98 = arith.constant 2 : index
    %c3_99 = arith.constant 3 : index
    %c0_100 = arith.constant 0 : index
    %129 = vector.load %arg5[%c0_96, %c0_97, %c2_98, %c3_99, %c0_100] : memref<1x16x8x8x8xf32, #tpu.memory_space<vmem>>, vector<1x16x1x1x8xf32>
    %130 = vector.shape_cast %129 : vector<1x16x1x1x8xf32> to vector<16x8xf32>
    %131 = vector.shape_cast %128 : vector<16x8xf32> to vector<1x16x1x1x8xf32>
    tpu.vector_store %arg5[%c0_96, %c0_97, %c2_98, %c3_99, %c0_100], %131 {strides = array<i32>} : memref<1x16x8x8x8xf32, #tpu.memory_space<vmem>>, vector<1x16x1x1x8xf32>,
    %132 = vector.extract_strided_slice %11 {offsets = [2, 4, 0, 0], sizes = [1, 1, 8, 16], strides = [1, 1, 1, 1]} : vector<8x8x8x16xf32> to vector<1x1x8x16xf32>
    %133 = vector.shape_cast %132 : vector<1x1x8x16xf32> to vector<8x16xf32>
    %134 = tpu.transpose %133, [1, 0] : vector<8x16xf32> -> vector<16x8xf32>
    %c0_101 = arith.constant 0 : index
    %c0_102 = arith.constant 0 : index
    %c2_103 = arith.constant 2 : index
    %c4_104 = arith.constant 4 : index
    %c0_105 = arith.constant 0 : index
    %135 = vector.load %arg5[%c0_101, %c0_102, %c2_103, %c4_104, %c0_105] : memref<1x16x8x8x8xf32, #tpu.memory_space<vmem>>, vector<1x16x1x1x8xf32>
    %136 = vector.shape_cast %135 : vector<1x16x1x1x8xf32> to vector<16x8xf32>
    %137 = vector.shape_cast %134 : vector<16x8xf32> to vector<1x16x1x1x8xf32>
    tpu.vector_store %arg5[%c0_101, %c0_102, %c2_103, %c4_104, %c0_105], %137 {strides = array<i32>} : memref<1x16x8x8x8xf32, #tpu.memory_space<vmem>>, vector<1x16x1x1x8xf32>,
    %138 = vector.extract_strided_slice %11 {offsets = [2, 5, 0, 0], sizes = [1, 1, 8, 16], strides = [1, 1, 1, 1]} : vector<8x8x8x16xf32> to vector<1x1x8x16xf32>
    %139 = vector.shape_cast %138 : vector<1x1x8x16xf32> to vector<8x16xf32>
    %140 = tpu.transpose %139, [1, 0] : vector<8x16xf32> -> vector<16x8xf32>
    %c0_106 = arith.constant 0 : index
    %c0_107 = arith.constant 0 : index
    %c2_108 = arith.constant 2 : index
    %c5_109 = arith.constant 5 : index
    %c0_110 = arith.constant 0 : index
    %141 = vector.load %arg5[%c0_106, %c0_107, %c2_108, %c5_109, %c0_110] : memref<1x16x8x8x8xf32, #tpu.memory_space<vmem>>, vector<1x16x1x1x8xf32>
    %142 = vector.shape_cast %141 : vector<1x16x1x1x8xf32> to vector<16x8xf32>
    %143 = vector.shape_cast %140 : vector<16x8xf32> to vector<1x16x1x1x8xf32>
    tpu.vector_store %arg5[%c0_106, %c0_107, %c2_108, %c5_109, %c0_110], %143 {strides = array<i32>} : memref<1x16x8x8x8xf32, #tpu.memory_space<vmem>>, vector<1x16x1x1x8xf32>,
    %144 = vector.extract_strided_slice %11 {offsets = [2, 6, 0, 0], sizes = [1, 1, 8, 16], strides = [1, 1, 1, 1]} : vector<8x8x8x16xf32> to vector<1x1x8x16xf32>
    %145 = vector.shape_cast %144 : vector<1x1x8x16xf32> to vector<8x16xf32>
    %146 = tpu.transpose %145, [1, 0] : vector<8x16xf32> -> vector<16x8xf32>
    %c0_111 = arith.constant 0 : index
    %c0_112 = arith.constant 0 : index
    %c2_113 = arith.constant 2 : index
    %c6_114 = arith.constant 6 : index
    %c0_115 = arith.constant 0 : index
    %147 = vector.load %arg5[%c0_111, %c0_112, %c2_113, %c6_114, %c0_115] : memref<1x16x8x8x8xf32, #tpu.memory_space<vmem>>, vector<1x16x1x1x8xf32>
    %148 = vector.shape_cast %147 : vector<1x16x1x1x8xf32> to vector<16x8xf32>
    %149 = vector.shape_cast %146 : vector<16x8xf32> to vector<1x16x1x1x8xf32>
    tpu.vector_store %arg5[%c0_111, %c0_112, %c2_113, %c6_114, %c0_115], %149 {strides = array<i32>} : memref<1x16x8x8x8xf32, #tpu.memory_space<vmem>>, vector<1x16x1x1x8xf32>,
    %150 = vector.extract_strided_slice %11 {offsets = [2, 7, 0, 0], sizes = [1, 1, 8, 16], strides = [1, 1, 1, 1]} : vector<8x8x8x16xf32> to vector<1x1x8x16xf32>
    %151 = vector.shape_cast %150 : vector<1x1x8x16xf32> to vector<8x16xf32>
    %152 = tpu.transpose %151, [1, 0] : vector<8x16xf32> -> vector<16x8xf32>
    %c0_116 = arith.constant 0 : index
    %c0_117 = arith.constant 0 : index
    %c2_118 = arith.constant 2 : index
    %c7_119 = arith.constant 7 : index
    %c0_120 = arith.constant 0 : index
    %153 = vector.load %arg5[%c0_116, %c0_117, %c2_118, %c7_119, %c0_120] : memref<1x16x8x8x8xf32, #tpu.memory_space<vmem>>, vector<1x16x1x1x8xf32>
    %154 = vector.shape_cast %153 : vector<1x16x1x1x8xf32> to vector<16x8xf32>
    %155 = vector.shape_cast %152 : vector<16x8xf32> to vector<1x16x1x1x8xf32>
    tpu.vector_store %arg5[%c0_116, %c0_117, %c2_118, %c7_119, %c0_120], %155 {strides = array<i32>} : memref<1x16x8x8x8xf32, #tpu.memory_space<vmem>>, vector<1x16x1x1x8xf32>,
    %156 = vector.extract_strided_slice %11 {offsets = [3, 0, 0, 0], sizes = [1, 1, 8, 16], strides = [1, 1, 1, 1]} : vector<8x8x8x16xf32> to vector<1x1x8x16xf32>
    %157 = vector.shape_cast %156 : vector<1x1x8x16xf32> to vector<8x16xf32>
    %158 = tpu.transpose %157, [1, 0] : vector<8x16xf32> -> vector<16x8xf32>
    %c0_121 = arith.constant 0 : index
    %c0_122 = arith.constant 0 : index
    %c3_123 = arith.constant 3 : index
    %c0_124 = arith.constant 0 : index
    %c0_125 = arith.constant 0 : index
    %159 = vector.load %arg5[%c0_121, %c0_122, %c3_123, %c0_124, %c0_125] : memref<1x16x8x8x8xf32, #tpu.memory_space<vmem>>, vector<1x16x1x1x8xf32>
    %160 = vector.shape_cast %159 : vector<1x16x1x1x8xf32> to vector<16x8xf32>
    %161 = vector.shape_cast %158 : vector<16x8xf32> to vector<1x16x1x1x8xf32>
    tpu.vector_store %arg5[%c0_121, %c0_122, %c3_123, %c0_124, %c0_125], %161 {strides = array<i32>} : memref<1x16x8x8x8xf32, #tpu.memory_space<vmem>>, vector<1x16x1x1x8xf32>,
    %162 = vector.extract_strided_slice %11 {offsets = [3, 1, 0, 0], sizes = [1, 1, 8, 16], strides = [1, 1, 1, 1]} : vector<8x8x8x16xf32> to vector<1x1x8x16xf32>
    %163 = vector.shape_cast %162 : vector<1x1x8x16xf32> to vector<8x16xf32>
    %164 = tpu.transpose %163, [1, 0] : vector<8x16xf32> -> vector<16x8xf32>
    %c0_126 = arith.constant 0 : index
    %c0_127 = arith.constant 0 : index
    %c3_128 = arith.constant 3 : index
    %c1_129 = arith.constant 1 : index
    %c0_130 = arith.constant 0 : index
    %165 = vector.load %arg5[%c0_126, %c0_127, %c3_128, %c1_129, %c0_130] : memref<1x16x8x8x8xf32, #tpu.memory_space<vmem>>, vector<1x16x1x1x8xf32>
    %166 = vector.shape_cast %165 : vector<1x16x1x1x8xf32> to vector<16x8xf32>
    %167 = vector.shape_cast %164 : vector<16x8xf32> to vector<1x16x1x1x8xf32>
    tpu.vector_store %arg5[%c0_126, %c0_127, %c3_128, %c1_129, %c0_130], %167 {strides = array<i32>} : memref<1x16x8x8x8xf32, #tpu.memory_space<vmem>>, vector<1x16x1x1x8xf32>,
    %168 = vector.extract_strided_slice %11 {offsets = [3, 2, 0, 0], sizes = [1, 1, 8, 16], strides = [1, 1, 1, 1]} : vector<8x8x8x16xf32> to vector<1x1x8x16xf32>
    %169 = vector.shape_cast %168 : vector<1x1x8x16xf32> to vector<8x16xf32>
    %170 = tpu.transpose %169, [1, 0] : vector<8x16xf32> -> vector<16x8xf32>
    %c0_131 = arith.constant 0 : index
    %c0_132 = arith.constant 0 : index
    %c3_133 = arith.constant 3 : index
    %c2_134 = arith.constant 2 : index
    %c0_135 = arith.constant 0 : index
    %171 = vector.load %arg5[%c0_131, %c0_132, %c3_133, %c2_134, %c0_135] : memref<1x16x8x8x8xf32, #tpu.memory_space<vmem>>, vector<1x16x1x1x8xf32>
    %172 = vector.shape_cast %171 : vector<1x16x1x1x8xf32> to vector<16x8xf32>
    %173 = vector.shape_cast %170 : vector<16x8xf32> to vector<1x16x1x1x8xf32>
    tpu.vector_store %arg5[%c0_131, %c0_132, %c3_133, %c2_134, %c0_135], %173 {strides = array<i32>} : memref<1x16x8x8x8xf32, #tpu.memory_space<vmem>>, vector<1x16x1x1x8xf32>,
    %174 = vector.extract_strided_slice %11 {offsets = [3, 3, 0, 0], sizes = [1, 1, 8, 16], strides = [1, 1, 1, 1]} : vector<8x8x8x16xf32> to vector<1x1x8x16xf32>
    %175 = vector.shape_cast %174 : vector<1x1x8x16xf32> to vector<8x16xf32>
    %176 = tpu.transpose %175, [1, 0] : vector<8x16xf32> -> vector<16x8xf32>
    %c0_136 = arith.constant 0 : index
    %c0_137 = arith.constant 0 : index
    %c3_138 = arith.constant 3 : index
    %c3_139 = arith.constant 3 : index
    %c0_140 = arith.constant 0 : index
    %177 = vector.load %arg5[%c0_136, %c0_137, %c3_138, %c3_139, %c0_140] : memref<1x16x8x8x8xf32, #tpu.memory_space<vmem>>, vector<1x16x1x1x8xf32>
    %178 = vector.shape_cast %177 : vector<1x16x1x1x8xf32> to vector<16x8xf32>
    %179 = vector.shape_cast %176 : vector<16x8xf32> to vector<1x16x1x1x8xf32>
    tpu.vector_store %arg5[%c0_136, %c0_137, %c3_138, %c3_139, %c0_140], %179 {strides = array<i32>} : memref<1x16x8x8x8xf32, #tpu.memory_space<vmem>>, vector<1x16x1x1x8xf32>,
    %180 = vector.extract_strided_slice %11 {offsets = [3, 4, 0, 0], sizes = [1, 1, 8, 16], strides = [1, 1, 1, 1]} : vector<8x8x8x16xf32> to vector<1x1x8x16xf32>
    %181 = vector.shape_cast %180 : vector<1x1x8x16xf32> to vector<8x16xf32>
    %182 = tpu.transpose %181, [1, 0] : vector<8x16xf32> -> vector<16x8xf32>
    %c0_141 = arith.constant 0 : index
    %c0_142 = arith.constant 0 : index
    %c3_143 = arith.constant 3 : index
    %c4_144 = arith.constant 4 : index
    %c0_145 = arith.constant 0 : index
    %183 = vector.load %arg5[%c0_141, %c0_142, %c3_143, %c4_144, %c0_145] : memref<1x16x8x8x8xf32, #tpu.memory_space<vmem>>, vector<1x16x1x1x8xf32>
    %184 = vector.shape_cast %183 : vector<1x16x1x1x8xf32> to vector<16x8xf32>
    %185 = vector.shape_cast %182 : vector<16x8xf32> to vector<1x16x1x1x8xf32>
    tpu.vector_store %arg5[%c0_141, %c0_142, %c3_143, %c4_144, %c0_145], %185 {strides = array<i32>} : memref<1x16x8x8x8xf32, #tpu.memory_space<vmem>>, vector<1x16x1x1x8xf32>,
    %186 = vector.extract_strided_slice %11 {offsets = [3, 5, 0, 0], sizes = [1, 1, 8, 16], strides = [1, 1, 1, 1]} : vector<8x8x8x16xf32> to vector<1x1x8x16xf32>
    %187 = vector.shape_cast %186 : vector<1x1x8x16xf32> to vector<8x16xf32>
    %188 = tpu.transpose %187, [1, 0] : vector<8x16xf32> -> vector<16x8xf32>
    %c0_146 = arith.constant 0 : index
    %c0_147 = arith.constant 0 : index
    %c3_148 = arith.constant 3 : index
    %c5_149 = arith.constant 5 : index
    %c0_150 = arith.constant 0 : index
    %189 = vector.load %arg5[%c0_146, %c0_147, %c3_148, %c5_149, %c0_150] : memref<1x16x8x8x8xf32, #tpu.memory_space<vmem>>, vector<1x16x1x1x8xf32>
    %190 = vector.shape_cast %189 : vector<1x16x1x1x8xf32> to vector<16x8xf32>
    %191 = vector.shape_cast %188 : vector<16x8xf32> to vector<1x16x1x1x8xf32>
    tpu.vector_store %arg5[%c0_146, %c0_147, %c3_148, %c5_149, %c0_150], %191 {strides = array<i32>} : memref<1x16x8x8x8xf32, #tpu.memory_space<vmem>>, vector<1x16x1x1x8xf32>,
    %192 = vector.extract_strided_slice %11 {offsets = [3, 6, 0, 0], sizes = [1, 1, 8, 16], strides = [1, 1, 1, 1]} : vector<8x8x8x16xf32> to vector<1x1x8x16xf32>
    %193 = vector.shape_cast %192 : vector<1x1x8x16xf32> to vector<8x16xf32>
    %194 = tpu.transpose %193, [1, 0] : vector<8x16xf32> -> vector<16x8xf32>
    %c0_151 = arith.constant 0 : index
    %c0_152 = arith.constant 0 : index
    %c3_153 = arith.constant 3 : index
    %c6_154 = arith.constant 6 : index
    %c0_155 = arith.constant 0 : index
    %195 = vector.load %arg5[%c0_151, %c0_152, %c3_153, %c6_154, %c0_155] : memref<1x16x8x8x8xf32, #tpu.memory_space<vmem>>, vector<1x16x1x1x8xf32>
    %196 = vector.shape_cast %195 : vector<1x16x1x1x8xf32> to vector<16x8xf32>
    %197 = vector.shape_cast %194 : vector<16x8xf32> to vector<1x16x1x1x8xf32>
    tpu.vector_store %arg5[%c0_151, %c0_152, %c3_153, %c6_154, %c0_155], %197 {strides = array<i32>} : memref<1x16x8x8x8xf32, #tpu.memory_space<vmem>>, vector<1x16x1x1x8xf32>,
    %198 = vector.extract_strided_slice %11 {offsets = [3, 7, 0, 0], sizes = [1, 1, 8, 16], strides = [1, 1, 1, 1]} : vector<8x8x8x16xf32> to vector<1x1x8x16xf32>
    %199 = vector.shape_cast %198 : vector<1x1x8x16xf32> to vector<8x16xf32>
    %200 = tpu.transpose %199, [1, 0] : vector<8x16xf32> -> vector<16x8xf32>
    %c0_156 = arith.constant 0 : index
    %c0_157 = arith.constant 0 : index
    %c3_158 = arith.constant 3 : index
    %c7_159 = arith.constant 7 : index
    %c0_160 = arith.constant 0 : index
    %201 = vector.load %arg5[%c0_156, %c0_157, %c3_158, %c7_159, %c0_160] : memref<1x16x8x8x8xf32, #tpu.memory_space<vmem>>, vector<1x16x1x1x8xf32>
    %202 = vector.shape_cast %201 : vector<1x16x1x1x8xf32> to vector<16x8xf32>
    %203 = vector.shape_cast %200 : vector<16x8xf32> to vector<1x16x1x1x8xf32>
    tpu.vector_store %arg5[%c0_156, %c0_157, %c3_158, %c7_159, %c0_160], %203 {strides = array<i32>} : memref<1x16x8x8x8xf32, #tpu.memory_space<vmem>>, vector<1x16x1x1x8xf32>,
    %204 = vector.extract_strided_slice %11 {offsets = [4, 0, 0, 0], sizes = [1, 1, 8, 16], strides = [1, 1, 1, 1]} : vector<8x8x8x16xf32> to vector<1x1x8x16xf32>
    %205 = vector.shape_cast %204 : vector<1x1x8x16xf32> to vector<8x16xf32>
    %206 = tpu.transpose %205, [1, 0] : vector<8x16xf32> -> vector<16x8xf32>
    %c0_161 = arith.constant 0 : index
    %c0_162 = arith.constant 0 : index
    %c4_163 = arith.constant 4 : index
    %c0_164 = arith.constant 0 : index
    %c0_165 = arith.constant 0 : index
    %207 = vector.load %arg5[%c0_161, %c0_162, %c4_163, %c0_164, %c0_165] : memref<1x16x8x8x8xf32, #tpu.memory_space<vmem>>, vector<1x16x1x1x8xf32>
    %208 = vector.shape_cast %207 : vector<1x16x1x1x8xf32> to vector<16x8xf32>
    %209 = vector.shape_cast %206 : vector<16x8xf32> to vector<1x16x1x1x8xf32>
    tpu.vector_store %arg5[%c0_161, %c0_162, %c4_163, %c0_164, %c0_165], %209 {strides = array<i32>} : memref<1x16x8x8x8xf32, #tpu.memory_space<vmem>>, vector<1x16x1x1x8xf32>,
    %210 = vector.extract_strided_slice %11 {offsets = [4, 1, 0, 0], sizes = [1, 1, 8, 16], strides = [1, 1, 1, 1]} : vector<8x8x8x16xf32> to vector<1x1x8x16xf32>
    %211 = vector.shape_cast %210 : vector<1x1x8x16xf32> to vector<8x16xf32>
    %212 = tpu.transpose %211, [1, 0] : vector<8x16xf32> -> vector<16x8xf32>
    %c0_166 = arith.constant 0 : index
    %c0_167 = arith.constant 0 : index
    %c4_168 = arith.constant 4 : index
    %c1_169 = arith.constant 1 : index
    %c0_170 = arith.constant 0 : index
    %213 = vector.load %arg5[%c0_166, %c0_167, %c4_168, %c1_169, %c0_170] : memref<1x16x8x8x8xf32, #tpu.memory_space<vmem>>, vector<1x16x1x1x8xf32>
    %214 = vector.shape_cast %213 : vector<1x16x1x1x8xf32> to vector<16x8xf32>
    %215 = vector.shape_cast %212 : vector<16x8xf32> to vector<1x16x1x1x8xf32>
    tpu.vector_store %arg5[%c0_166, %c0_167, %c4_168, %c1_169, %c0_170], %215 {strides = array<i32>} : memref<1x16x8x8x8xf32, #tpu.memory_space<vmem>>, vector<1x16x1x1x8xf32>,
    %216 = vector.extract_strided_slice %11 {offsets = [4, 2, 0, 0], sizes = [1, 1, 8, 16], strides = [1, 1, 1, 1]} : vector<8x8x8x16xf32> to vector<1x1x8x16xf32>
    %217 = vector.shape_cast %216 : vector<1x1x8x16xf32> to vector<8x16xf32>
    %218 = tpu.transpose %217, [1, 0] : vector<8x16xf32> -> vector<16x8xf32>
    %c0_171 = arith.constant 0 : index
    %c0_172 = arith.constant 0 : index
    %c4_173 = arith.constant 4 : index
    %c2_174 = arith.constant 2 : index
    %c0_175 = arith.constant 0 : index
    %219 = vector.load %arg5[%c0_171, %c0_172, %c4_173, %c2_174, %c0_175] : memref<1x16x8x8x8xf32, #tpu.memory_space<vmem>>, vector<1x16x1x1x8xf32>
    %220 = vector.shape_cast %219 : vector<1x16x1x1x8xf32> to vector<16x8xf32>
    %221 = vector.shape_cast %218 : vector<16x8xf32> to vector<1x16x1x1x8xf32>
    tpu.vector_store %arg5[%c0_171, %c0_172, %c4_173, %c2_174, %c0_175], %221 {strides = array<i32>} : memref<1x16x8x8x8xf32, #tpu.memory_space<vmem>>, vector<1x16x1x1x8xf32>,
    %222 = vector.extract_strided_slice %11 {offsets = [4, 3, 0, 0], sizes = [1, 1, 8, 16], strides = [1, 1, 1, 1]} : vector<8x8x8x16xf32> to vector<1x1x8x16xf32>
    %223 = vector.shape_cast %222 : vector<1x1x8x16xf32> to vector<8x16xf32>
    %224 = tpu.transpose %223, [1, 0] : vector<8x16xf32> -> vector<16x8xf32>
    %c0_176 = arith.constant 0 : index
    %c0_177 = arith.constant 0 : index
    %c4_178 = arith.constant 4 : index
    %c3_179 = arith.constant 3 : index
    %c0_180 = arith.constant 0 : index
    %225 = vector.load %arg5[%c0_176, %c0_177, %c4_178, %c3_179, %c0_180] : memref<1x16x8x8x8xf32, #tpu.memory_space<vmem>>, vector<1x16x1x1x8xf32>
    %226 = vector.shape_cast %225 : vector<1x16x1x1x8xf32> to vector<16x8xf32>
    %227 = vector.shape_cast %224 : vector<16x8xf32> to vector<1x16x1x1x8xf32>
    tpu.vector_store %arg5[%c0_176, %c0_177, %c4_178, %c3_179, %c0_180], %227 {strides = array<i32>} : memref<1x16x8x8x8xf32, #tpu.memory_space<vmem>>, vector<1x16x1x1x8xf32>,
    %228 = vector.extract_strided_slice %11 {offsets = [4, 4, 0, 0], sizes = [1, 1, 8, 16], strides = [1, 1, 1, 1]} : vector<8x8x8x16xf32> to vector<1x1x8x16xf32>
    %229 = vector.shape_cast %228 : vector<1x1x8x16xf32> to vector<8x16xf32>
    %230 = tpu.transpose %229, [1, 0] : vector<8x16xf32> -> vector<16x8xf32>
    %c0_181 = arith.constant 0 : index
    %c0_182 = arith.constant 0 : index
    %c4_183 = arith.constant 4 : index
    %c4_184 = arith.constant 4 : index
    %c0_185 = arith.constant 0 : index
    %231 = vector.load %arg5[%c0_181, %c0_182, %c4_183, %c4_184, %c0_185] : memref<1x16x8x8x8xf32, #tpu.memory_space<vmem>>, vector<1x16x1x1x8xf32>
    %232 = vector.shape_cast %231 : vector<1x16x1x1x8xf32> to vector<16x8xf32>
    %233 = vector.shape_cast %230 : vector<16x8xf32> to vector<1x16x1x1x8xf32>
    tpu.vector_store %arg5[%c0_181, %c0_182, %c4_183, %c4_184, %c0_185], %233 {strides = array<i32>} : memref<1x16x8x8x8xf32, #tpu.memory_space<vmem>>, vector<1x16x1x1x8xf32>,
    %234 = vector.extract_strided_slice %11 {offsets = [4, 5, 0, 0], sizes = [1, 1, 8, 16], strides = [1, 1, 1, 1]} : vector<8x8x8x16xf32> to vector<1x1x8x16xf32>
    %235 = vector.shape_cast %234 : vector<1x1x8x16xf32> to vector<8x16xf32>
    %236 = tpu.transpose %235, [1, 0] : vector<8x16xf32> -> vector<16x8xf32>
    %c0_186 = arith.constant 0 : index
    %c0_187 = arith.constant 0 : index
    %c4_188 = arith.constant 4 : index
    %c5_189 = arith.constant 5 : index
    %c0_190 = arith.constant 0 : index
    %237 = vector.load %arg5[%c0_186, %c0_187, %c4_188, %c5_189, %c0_190] : memref<1x16x8x8x8xf32, #tpu.memory_space<vmem>>, vector<1x16x1x1x8xf32>
    %238 = vector.shape_cast %237 : vector<1x16x1x1x8xf32> to vector<16x8xf32>
    %239 = vector.shape_cast %236 : vector<16x8xf32> to vector<1x16x1x1x8xf32>
    tpu.vector_store %arg5[%c0_186, %c0_187, %c4_188, %c5_189, %c0_190], %239 {strides = array<i32>} : memref<1x16x8x8x8xf32, #tpu.memory_space<vmem>>, vector<1x16x1x1x8xf32>,
    %240 = vector.extract_strided_slice %11 {offsets = [4, 6, 0, 0], sizes = [1, 1, 8, 16], strides = [1, 1, 1, 1]} : vector<8x8x8x16xf32> to vector<1x1x8x16xf32>
    %241 = vector.shape_cast %240 : vector<1x1x8x16xf32> to vector<8x16xf32>
    %242 = tpu.transpose %241, [1, 0] : vector<8x16xf32> -> vector<16x8xf32>
    %c0_191 = arith.constant 0 : index
    %c0_192 = arith.constant 0 : index
    %c4_193 = arith.constant 4 : index
    %c6_194 = arith.constant 6 : index
    %c0_195 = arith.constant 0 : index
    %243 = vector.load %arg5[%c0_191, %c0_192, %c4_193, %c6_194, %c0_195] : memref<1x16x8x8x8xf32, #tpu.memory_space<vmem>>, vector<1x16x1x1x8xf32>
    %244 = vector.shape_cast %243 : vector<1x16x1x1x8xf32> to vector<16x8xf32>
    %245 = vector.shape_cast %242 : vector<16x8xf32> to vector<1x16x1x1x8xf32>
    tpu.vector_store %arg5[%c0_191, %c0_192, %c4_193, %c6_194, %c0_195], %245 {strides = array<i32>} : memref<1x16x8x8x8xf32, #tpu.memory_space<vmem>>, vector<1x16x1x1x8xf32>,
    %246 = vector.extract_strided_slice %11 {offsets = [4, 7, 0, 0], sizes = [1, 1, 8, 16], strides = [1, 1, 1, 1]} : vector<8x8x8x16xf32> to vector<1x1x8x16xf32>
    %247 = vector.shape_cast %246 : vector<1x1x8x16xf32> to vector<8x16xf32>
    %248 = tpu.transpose %247, [1, 0] : vector<8x16xf32> -> vector<16x8xf32>
    %c0_196 = arith.constant 0 : index
    %c0_197 = arith.constant 0 : index
    %c4_198 = arith.constant 4 : index
    %c7_199 = arith.constant 7 : index
    %c0_200 = arith.constant 0 : index
    %249 = vector.load %arg5[%c0_196, %c0_197, %c4_198, %c7_199, %c0_200] : memref<1x16x8x8x8xf32, #tpu.memory_space<vmem>>, vector<1x16x1x1x8xf32>
    %250 = vector.shape_cast %249 : vector<1x16x1x1x8xf32> to vector<16x8xf32>
    %251 = vector.shape_cast %248 : vector<16x8xf32> to vector<1x16x1x1x8xf32>
    tpu.vector_store %arg5[%c0_196, %c0_197, %c4_198, %c7_199, %c0_200], %251 {strides = array<i32>} : memref<1x16x8x8x8xf32, #tpu.memory_space<vmem>>, vector<1x16x1x1x8xf32>,
    %252 = vector.extract_strided_slice %11 {offsets = [5, 0, 0, 0], sizes = [1, 1, 8, 16], strides = [1, 1, 1, 1]} : vector<8x8x8x16xf32> to vector<1x1x8x16xf32>
    %253 = vector.shape_cast %252 : vector<1x1x8x16xf32> to vector<8x16xf32>
    %254 = tpu.transpose %253, [1, 0] : vector<8x16xf32> -> vector<16x8xf32>
    %c0_201 = arith.constant 0 : index
    %c0_202 = arith.constant 0 : index
    %c5_203 = arith.constant 5 : index
    %c0_204 = arith.constant 0 : index
    %c0_205 = arith.constant 0 : index
    %255 = vector.load %arg5[%c0_201, %c0_202, %c5_203, %c0_204, %c0_205] : memref<1x16x8x8x8xf32, #tpu.memory_space<vmem>>, vector<1x16x1x1x8xf32>
    %256 = vector.shape_cast %255 : vector<1x16x1x1x8xf32> to vector<16x8xf32>
    %257 = vector.shape_cast %254 : vector<16x8xf32> to vector<1x16x1x1x8xf32>
    tpu.vector_store %arg5[%c0_201, %c0_202, %c5_203, %c0_204, %c0_205], %257 {strides = array<i32>} : memref<1x16x8x8x8xf32, #tpu.memory_space<vmem>>, vector<1x16x1x1x8xf32>,
    %258 = vector.extract_strided_slice %11 {offsets = [5, 1, 0, 0], sizes = [1, 1, 8, 16], strides = [1, 1, 1, 1]} : vector<8x8x8x16xf32> to vector<1x1x8x16xf32>
    %259 = vector.shape_cast %258 : vector<1x1x8x16xf32> to vector<8x16xf32>
    %260 = tpu.transpose %259, [1, 0] : vector<8x16xf32> -> vector<16x8xf32>
    %c0_206 = arith.constant 0 : index
    %c0_207 = arith.constant 0 : index
    %c5_208 = arith.constant 5 : index
    %c1_209 = arith.constant 1 : index
    %c0_210 = arith.constant 0 : index
    %261 = vector.load %arg5[%c0_206, %c0_207, %c5_208, %c1_209, %c0_210] : memref<1x16x8x8x8xf32, #tpu.memory_space<vmem>>, vector<1x16x1x1x8xf32>
    %262 = vector.shape_cast %261 : vector<1x16x1x1x8xf32> to vector<16x8xf32>
    %263 = vector.shape_cast %260 : vector<16x8xf32> to vector<1x16x1x1x8xf32>
    tpu.vector_store %arg5[%c0_206, %c0_207, %c5_208, %c1_209, %c0_210], %263 {strides = array<i32>} : memref<1x16x8x8x8xf32, #tpu.memory_space<vmem>>, vector<1x16x1x1x8xf32>,
    %264 = vector.extract_strided_slice %11 {offsets = [5, 2, 0, 0], sizes = [1, 1, 8, 16], strides = [1, 1, 1, 1]} : vector<8x8x8x16xf32> to vector<1x1x8x16xf32>
    %265 = vector.shape_cast %264 : vector<1x1x8x16xf32> to vector<8x16xf32>
    %266 = tpu.transpose %265, [1, 0] : vector<8x16xf32> -> vector<16x8xf32>
    %c0_211 = arith.constant 0 : index
    %c0_212 = arith.constant 0 : index
    %c5_213 = arith.constant 5 : index
    %c2_214 = arith.constant 2 : index
    %c0_215 = arith.constant 0 : index
    %267 = vector.load %arg5[%c0_211, %c0_212, %c5_213, %c2_214, %c0_215] : memref<1x16x8x8x8xf32, #tpu.memory_space<vmem>>, vector<1x16x1x1x8xf32>
    %268 = vector.shape_cast %267 : vector<1x16x1x1x8xf32> to vector<16x8xf32>
    %269 = vector.shape_cast %266 : vector<16x8xf32> to vector<1x16x1x1x8xf32>
    tpu.vector_store %arg5[%c0_211, %c0_212, %c5_213, %c2_214, %c0_215], %269 {strides = array<i32>} : memref<1x16x8x8x8xf32, #tpu.memory_space<vmem>>, vector<1x16x1x1x8xf32>,
    %270 = vector.extract_strided_slice %11 {offsets = [5, 3, 0, 0], sizes = [1, 1, 8, 16], strides = [1, 1, 1, 1]} : vector<8x8x8x16xf32> to vector<1x1x8x16xf32>
    %271 = vector.shape_cast %270 : vector<1x1x8x16xf32> to vector<8x16xf32>
    %272 = tpu.transpose %271, [1, 0] : vector<8x16xf32> -> vector<16x8xf32>
    %c0_216 = arith.constant 0 : index
    %c0_217 = arith.constant 0 : index
    %c5_218 = arith.constant 5 : index
    %c3_219 = arith.constant 3 : index
    %c0_220 = arith.constant 0 : index
    %273 = vector.load %arg5[%c0_216, %c0_217, %c5_218, %c3_219, %c0_220] : memref<1x16x8x8x8xf32, #tpu.memory_space<vmem>>, vector<1x16x1x1x8xf32>
    %274 = vector.shape_cast %273 : vector<1x16x1x1x8xf32> to vector<16x8xf32>
    %275 = vector.shape_cast %272 : vector<16x8xf32> to vector<1x16x1x1x8xf32>
    tpu.vector_store %arg5[%c0_216, %c0_217, %c5_218, %c3_219, %c0_220], %275 {strides = array<i32>} : memref<1x16x8x8x8xf32, #tpu.memory_space<vmem>>, vector<1x16x1x1x8xf32>,
    %276 = vector.extract_strided_slice %11 {offsets = [5, 4, 0, 0], sizes = [1, 1, 8, 16], strides = [1, 1, 1, 1]} : vector<8x8x8x16xf32> to vector<1x1x8x16xf32>
    %277 = vector.shape_cast %276 : vector<1x1x8x16xf32> to vector<8x16xf32>
    %278 = tpu.transpose %277, [1, 0] : vector<8x16xf32> -> vector<16x8xf32>
    %c0_221 = arith.constant 0 : index
    %c0_222 = arith.constant 0 : index
    %c5_223 = arith.constant 5 : index
    %c4_224 = arith.constant 4 : index
    %c0_225 = arith.constant 0 : index
    %279 = vector.load %arg5[%c0_221, %c0_222, %c5_223, %c4_224, %c0_225] : memref<1x16x8x8x8xf32, #tpu.memory_space<vmem>>, vector<1x16x1x1x8xf32>
    %280 = vector.shape_cast %279 : vector<1x16x1x1x8xf32> to vector<16x8xf32>
    %281 = vector.shape_cast %278 : vector<16x8xf32> to vector<1x16x1x1x8xf32>
    tpu.vector_store %arg5[%c0_221, %c0_222, %c5_223, %c4_224, %c0_225], %281 {strides = array<i32>} : memref<1x16x8x8x8xf32, #tpu.memory_space<vmem>>, vector<1x16x1x1x8xf32>,
    %282 = vector.extract_strided_slice %11 {offsets = [5, 5, 0, 0], sizes = [1, 1, 8, 16], strides = [1, 1, 1, 1]} : vector<8x8x8x16xf32> to vector<1x1x8x16xf32>
    %283 = vector.shape_cast %282 : vector<1x1x8x16xf32> to vector<8x16xf32>
    %284 = tpu.transpose %283, [1, 0] : vector<8x16xf32> -> vector<16x8xf32>
    %c0_226 = arith.constant 0 : index
    %c0_227 = arith.constant 0 : index
    %c5_228 = arith.constant 5 : index
    %c5_229 = arith.constant 5 : index
    %c0_230 = arith.constant 0 : index
    %285 = vector.load %arg5[%c0_226, %c0_227, %c5_228, %c5_229, %c0_230] : memref<1x16x8x8x8xf32, #tpu.memory_space<vmem>>, vector<1x16x1x1x8xf32>
    %286 = vector.shape_cast %285 : vector<1x16x1x1x8xf32> to vector<16x8xf32>
    %287 = vector.shape_cast %284 : vector<16x8xf32> to vector<1x16x1x1x8xf32>
    tpu.vector_store %arg5[%c0_226, %c0_227, %c5_228, %c5_229, %c0_230], %287 {strides = array<i32>} : memref<1x16x8x8x8xf32, #tpu.memory_space<vmem>>, vector<1x16x1x1x8xf32>,
    %288 = vector.extract_strided_slice %11 {offsets = [5, 6, 0, 0], sizes = [1, 1, 8, 16], strides = [1, 1, 1, 1]} : vector<8x8x8x16xf32> to vector<1x1x8x16xf32>
    %289 = vector.shape_cast %288 : vector<1x1x8x16xf32> to vector<8x16xf32>
    %290 = tpu.transpose %289, [1, 0] : vector<8x16xf32> -> vector<16x8xf32>
    %c0_231 = arith.constant 0 : index
    %c0_232 = arith.constant 0 : index
    %c5_233 = arith.constant 5 : index
    %c6_234 = arith.constant 6 : index
    %c0_235 = arith.constant 0 : index
    %291 = vector.load %arg5[%c0_231, %c0_232, %c5_233, %c6_234, %c0_235] : memref<1x16x8x8x8xf32, #tpu.memory_space<vmem>>, vector<1x16x1x1x8xf32>
    %292 = vector.shape_cast %291 : vector<1x16x1x1x8xf32> to vector<16x8xf32>
    %293 = vector.shape_cast %290 : vector<16x8xf32> to vector<1x16x1x1x8xf32>
    tpu.vector_store %arg5[%c0_231, %c0_232, %c5_233, %c6_234, %c0_235], %293 {strides = array<i32>} : memref<1x16x8x8x8xf32, #tpu.memory_space<vmem>>, vector<1x16x1x1x8xf32>,
    %294 = vector.extract_strided_slice %11 {offsets = [5, 7, 0, 0], sizes = [1, 1, 8, 16], strides = [1, 1, 1, 1]} : vector<8x8x8x16xf32> to vector<1x1x8x16xf32>
    %295 = vector.shape_cast %294 : vector<1x1x8x16xf32> to vector<8x16xf32>
    %296 = tpu.transpose %295, [1, 0] : vector<8x16xf32> -> vector<16x8xf32>
    %c0_236 = arith.constant 0 : index
    %c0_237 = arith.constant 0 : index
    %c5_238 = arith.constant 5 : index
    %c7_239 = arith.constant 7 : index
    %c0_240 = arith.constant 0 : index
    %297 = vector.load %arg5[%c0_236, %c0_237, %c5_238, %c7_239, %c0_240] : memref<1x16x8x8x8xf32, #tpu.memory_space<vmem>>, vector<1x16x1x1x8xf32>
    %298 = vector.shape_cast %297 : vector<1x16x1x1x8xf32> to vector<16x8xf32>
    %299 = vector.shape_cast %296 : vector<16x8xf32> to vector<1x16x1x1x8xf32>
    tpu.vector_store %arg5[%c0_236, %c0_237, %c5_238, %c7_239, %c0_240], %299 {strides = array<i32>} : memref<1x16x8x8x8xf32, #tpu.memory_space<vmem>>, vector<1x16x1x1x8xf32>,
    %300 = vector.extract_strided_slice %11 {offsets = [6, 0, 0, 0], sizes = [1, 1, 8, 16], strides = [1, 1, 1, 1]} : vector<8x8x8x16xf32> to vector<1x1x8x16xf32>
    %301 = vector.shape_cast %300 : vector<1x1x8x16xf32> to vector<8x16xf32>
    %302 = tpu.transpose %301, [1, 0] : vector<8x16xf32> -> vector<16x8xf32>
    %c0_241 = arith.constant 0 : index
    %c0_242 = arith.constant 0 : index
    %c6_243 = arith.constant 6 : index
    %c0_244 = arith.constant 0 : index
    %c0_245 = arith.constant 0 : index
    %303 = vector.load %arg5[%c0_241, %c0_242, %c6_243, %c0_244, %c0_245] : memref<1x16x8x8x8xf32, #tpu.memory_space<vmem>>, vector<1x16x1x1x8xf32>
    %304 = vector.shape_cast %303 : vector<1x16x1x1x8xf32> to vector<16x8xf32>
    %305 = vector.shape_cast %302 : vector<16x8xf32> to vector<1x16x1x1x8xf32>
    tpu.vector_store %arg5[%c0_241, %c0_242, %c6_243, %c0_244, %c0_245], %305 {strides = array<i32>} : memref<1x16x8x8x8xf32, #tpu.memory_space<vmem>>, vector<1x16x1x1x8xf32>,
    %306 = vector.extract_strided_slice %11 {offsets = [6, 1, 0, 0], sizes = [1, 1, 8, 16], strides = [1, 1, 1, 1]} : vector<8x8x8x16xf32> to vector<1x1x8x16xf32>
    %307 = vector.shape_cast %306 : vector<1x1x8x16xf32> to vector<8x16xf32>
    %308 = tpu.transpose %307, [1, 0] : vector<8x16xf32> -> vector<16x8xf32>
    %c0_246 = arith.constant 0 : index
    %c0_247 = arith.constant 0 : index
    %c6_248 = arith.constant 6 : index
    %c1_249 = arith.constant 1 : index
    %c0_250 = arith.constant 0 : index
    %309 = vector.load %arg5[%c0_246, %c0_247, %c6_248, %c1_249, %c0_250] : memref<1x16x8x8x8xf32, #tpu.memory_space<vmem>>, vector<1x16x1x1x8xf32>
    %310 = vector.shape_cast %309 : vector<1x16x1x1x8xf32> to vector<16x8xf32>
    %311 = vector.shape_cast %308 : vector<16x8xf32> to vector<1x16x1x1x8xf32>
    tpu.vector_store %arg5[%c0_246, %c0_247, %c6_248, %c1_249, %c0_250], %311 {strides = array<i32>} : memref<1x16x8x8x8xf32, #tpu.memory_space<vmem>>, vector<1x16x1x1x8xf32>,
    %312 = vector.extract_strided_slice %11 {offsets = [6, 2, 0, 0], sizes = [1, 1, 8, 16], strides = [1, 1, 1, 1]} : vector<8x8x8x16xf32> to vector<1x1x8x16xf32>
    %313 = vector.shape_cast %312 : vector<1x1x8x16xf32> to vector<8x16xf32>
    %314 = tpu.transpose %313, [1, 0] : vector<8x16xf32> -> vector<16x8xf32>
    %c0_251 = arith.constant 0 : index
    %c0_252 = arith.constant 0 : index
    %c6_253 = arith.constant 6 : index
    %c2_254 = arith.constant 2 : index
    %c0_255 = arith.constant 0 : index
    %315 = vector.load %arg5[%c0_251, %c0_252, %c6_253, %c2_254, %c0_255] : memref<1x16x8x8x8xf32, #tpu.memory_space<vmem>>, vector<1x16x1x1x8xf32>
    %316 = vector.shape_cast %315 : vector<1x16x1x1x8xf32> to vector<16x8xf32>
    %317 = vector.shape_cast %314 : vector<16x8xf32> to vector<1x16x1x1x8xf32>
    tpu.vector_store %arg5[%c0_251, %c0_252, %c6_253, %c2_254, %c0_255], %317 {strides = array<i32>} : memref<1x16x8x8x8xf32, #tpu.memory_space<vmem>>, vector<1x16x1x1x8xf32>,
    %318 = vector.extract_strided_slice %11 {offsets = [6, 3, 0, 0], sizes = [1, 1, 8, 16], strides = [1, 1, 1, 1]} : vector<8x8x8x16xf32> to vector<1x1x8x16xf32>
    %319 = vector.shape_cast %318 : vector<1x1x8x16xf32> to vector<8x16xf32>
    %320 = tpu.transpose %319, [1, 0] : vector<8x16xf32> -> vector<16x8xf32>
    %c0_256 = arith.constant 0 : index
    %c0_257 = arith.constant 0 : index
    %c6_258 = arith.constant 6 : index
    %c3_259 = arith.constant 3 : index
    %c0_260 = arith.constant 0 : index
    %321 = vector.load %arg5[%c0_256, %c0_257, %c6_258, %c3_259, %c0_260] : memref<1x16x8x8x8xf32, #tpu.memory_space<vmem>>, vector<1x16x1x1x8xf32>
    %322 = vector.shape_cast %321 : vector<1x16x1x1x8xf32> to vector<16x8xf32>
    %323 = vector.shape_cast %320 : vector<16x8xf32> to vector<1x16x1x1x8xf32>
    tpu.vector_store %arg5[%c0_256, %c0_257, %c6_258, %c3_259, %c0_260], %323 {strides = array<i32>} : memref<1x16x8x8x8xf32, #tpu.memory_space<vmem>>, vector<1x16x1x1x8xf32>,
    %324 = vector.extract_strided_slice %11 {offsets = [6, 4, 0, 0], sizes = [1, 1, 8, 16], strides = [1, 1, 1, 1]} : vector<8x8x8x16xf32> to vector<1x1x8x16xf32>
    %325 = vector.shape_cast %324 : vector<1x1x8x16xf32> to vector<8x16xf32>
    %326 = tpu.transpose %325, [1, 0] : vector<8x16xf32> -> vector<16x8xf32>
    %c0_261 = arith.constant 0 : index
    %c0_262 = arith.constant 0 : index
    %c6_263 = arith.constant 6 : index
    %c4_264 = arith.constant 4 : index
    %c0_265 = arith.constant 0 : index
    %327 = vector.load %arg5[%c0_261, %c0_262, %c6_263, %c4_264, %c0_265] : memref<1x16x8x8x8xf32, #tpu.memory_space<vmem>>, vector<1x16x1x1x8xf32>
    %328 = vector.shape_cast %327 : vector<1x16x1x1x8xf32> to vector<16x8xf32>
    %329 = vector.shape_cast %326 : vector<16x8xf32> to vector<1x16x1x1x8xf32>
    tpu.vector_store %arg5[%c0_261, %c0_262, %c6_263, %c4_264, %c0_265], %329 {strides = array<i32>} : memref<1x16x8x8x8xf32, #tpu.memory_space<vmem>>, vector<1x16x1x1x8xf32>,
    %330 = vector.extract_strided_slice %11 {offsets = [6, 5, 0, 0], sizes = [1, 1, 8, 16], strides = [1, 1, 1, 1]} : vector<8x8x8x16xf32> to vector<1x1x8x16xf32>
    %331 = vector.shape_cast %330 : vector<1x1x8x16xf32> to vector<8x16xf32>
    %332 = tpu.transpose %331, [1, 0] : vector<8x16xf32> -> vector<16x8xf32>
    %c0_266 = arith.constant 0 : index
    %c0_267 = arith.constant 0 : index
    %c6_268 = arith.constant 6 : index
    %c5_269 = arith.constant 5 : index
    %c0_270 = arith.constant 0 : index
    %333 = vector.load %arg5[%c0_266, %c0_267, %c6_268, %c5_269, %c0_270] : memref<1x16x8x8x8xf32, #tpu.memory_space<vmem>>, vector<1x16x1x1x8xf32>
    %334 = vector.shape_cast %333 : vector<1x16x1x1x8xf32> to vector<16x8xf32>
    %335 = vector.shape_cast %332 : vector<16x8xf32> to vector<1x16x1x1x8xf32>
    tpu.vector_store %arg5[%c0_266, %c0_267, %c6_268, %c5_269, %c0_270], %335 {strides = array<i32>} : memref<1x16x8x8x8xf32, #tpu.memory_space<vmem>>, vector<1x16x1x1x8xf32>,
    %336 = vector.extract_strided_slice %11 {offsets = [6, 6, 0, 0], sizes = [1, 1, 8, 16], strides = [1, 1, 1, 1]} : vector<8x8x8x16xf32> to vector<1x1x8x16xf32>
    %337 = vector.shape_cast %336 : vector<1x1x8x16xf32> to vector<8x16xf32>
    %338 = tpu.transpose %337, [1, 0] : vector<8x16xf32> -> vector<16x8xf32>
    %c0_271 = arith.constant 0 : index
    %c0_272 = arith.constant 0 : index
    %c6_273 = arith.constant 6 : index
    %c6_274 = arith.constant 6 : index
    %c0_275 = arith.constant 0 : index
    %339 = vector.load %arg5[%c0_271, %c0_272, %c6_273, %c6_274, %c0_275] : memref<1x16x8x8x8xf32, #tpu.memory_space<vmem>>, vector<1x16x1x1x8xf32>
    %340 = vector.shape_cast %339 : vector<1x16x1x1x8xf32> to vector<16x8xf32>
    %341 = vector.shape_cast %338 : vector<16x8xf32> to vector<1x16x1x1x8xf32>
    tpu.vector_store %arg5[%c0_271, %c0_272, %c6_273, %c6_274, %c0_275], %341 {strides = array<i32>} : memref<1x16x8x8x8xf32, #tpu.memory_space<vmem>>, vector<1x16x1x1x8xf32>,
    %342 = vector.extract_strided_slice %11 {offsets = [6, 7, 0, 0], sizes = [1, 1, 8, 16], strides = [1, 1, 1, 1]} : vector<8x8x8x16xf32> to vector<1x1x8x16xf32>
    %343 = vector.shape_cast %342 : vector<1x1x8x16xf32> to vector<8x16xf32>
    %344 = tpu.transpose %343, [1, 0] : vector<8x16xf32> -> vector<16x8xf32>
    %c0_276 = arith.constant 0 : index
    %c0_277 = arith.constant 0 : index
    %c6_278 = arith.constant 6 : index
    %c7_279 = arith.constant 7 : index
    %c0_280 = arith.constant 0 : index
    %345 = vector.load %arg5[%c0_276, %c0_277, %c6_278, %c7_279, %c0_280] : memref<1x16x8x8x8xf32, #tpu.memory_space<vmem>>, vector<1x16x1x1x8xf32>
    %346 = vector.shape_cast %345 : vector<1x16x1x1x8xf32> to vector<16x8xf32>
    %347 = vector.shape_cast %344 : vector<16x8xf32> to vector<1x16x1x1x8xf32>
    tpu.vector_store %arg5[%c0_276, %c0_277, %c6_278, %c7_279, %c0_280], %347 {strides = array<i32>} : memref<1x16x8x8x8xf32, #tpu.memory_space<vmem>>, vector<1x16x1x1x8xf32>,
    %348 = vector.extract_strided_slice %11 {offsets = [7, 0, 0, 0], sizes = [1, 1, 8, 16], strides = [1, 1, 1, 1]} : vector<8x8x8x16xf32> to vector<1x1x8x16xf32>
    %349 = vector.shape_cast %348 : vector<1x1x8x16xf32> to vector<8x16xf32>
    %350 = tpu.transpose %349, [1, 0] : vector<8x16xf32> -> vector<16x8xf32>
    %c0_281 = arith.constant 0 : index
    %c0_282 = arith.constant 0 : index
    %c7_283 = arith.constant 7 : index
    %c0_284 = arith.constant 0 : index
    %c0_285 = arith.constant 0 : index
    %351 = vector.load %arg5[%c0_281, %c0_282, %c7_283, %c0_284, %c0_285] : memref<1x16x8x8x8xf32, #tpu.memory_space<vmem>>, vector<1x16x1x1x8xf32>
    %352 = vector.shape_cast %351 : vector<1x16x1x1x8xf32> to vector<16x8xf32>
    %353 = vector.shape_cast %350 : vector<16x8xf32> to vector<1x16x1x1x8xf32>
    tpu.vector_store %arg5[%c0_281, %c0_282, %c7_283, %c0_284, %c0_285], %353 {strides = array<i32>} : memref<1x16x8x8x8xf32, #tpu.memory_space<vmem>>, vector<1x16x1x1x8xf32>,
    %354 = vector.extract_strided_slice %11 {offsets = [7, 1, 0, 0], sizes = [1, 1, 8, 16], strides = [1, 1, 1, 1]} : vector<8x8x8x16xf32> to vector<1x1x8x16xf32>
    %355 = vector.shape_cast %354 : vector<1x1x8x16xf32> to vector<8x16xf32>
    %356 = tpu.transpose %355, [1, 0] : vector<8x16xf32> -> vector<16x8xf32>
    %c0_286 = arith.constant 0 : index
    %c0_287 = arith.constant 0 : index
    %c7_288 = arith.constant 7 : index
    %c1_289 = arith.constant 1 : index
    %c0_290 = arith.constant 0 : index
    %357 = vector.load %arg5[%c0_286, %c0_287, %c7_288, %c1_289, %c0_290] : memref<1x16x8x8x8xf32, #tpu.memory_space<vmem>>, vector<1x16x1x1x8xf32>
    %358 = vector.shape_cast %357 : vector<1x16x1x1x8xf32> to vector<16x8xf32>
    %359 = vector.shape_cast %356 : vector<16x8xf32> to vector<1x16x1x1x8xf32>
    tpu.vector_store %arg5[%c0_286, %c0_287, %c7_288, %c1_289, %c0_290], %359 {strides = array<i32>} : memref<1x16x8x8x8xf32, #tpu.memory_space<vmem>>, vector<1x16x1x1x8xf32>,
    %360 = vector.extract_strided_slice %11 {offsets = [7, 2, 0, 0], sizes = [1, 1, 8, 16], strides = [1, 1, 1, 1]} : vector<8x8x8x16xf32> to vector<1x1x8x16xf32>
    %361 = vector.shape_cast %360 : vector<1x1x8x16xf32> to vector<8x16xf32>
    %362 = tpu.transpose %361, [1, 0] : vector<8x16xf32> -> vector<16x8xf32>
    %c0_291 = arith.constant 0 : index
    %c0_292 = arith.constant 0 : index
    %c7_293 = arith.constant 7 : index
    %c2_294 = arith.constant 2 : index
    %c0_295 = arith.constant 0 : index
    %363 = vector.load %arg5[%c0_291, %c0_292, %c7_293, %c2_294, %c0_295] : memref<1x16x8x8x8xf32, #tpu.memory_space<vmem>>, vector<1x16x1x1x8xf32>
    %364 = vector.shape_cast %363 : vector<1x16x1x1x8xf32> to vector<16x8xf32>
    %365 = vector.shape_cast %362 : vector<16x8xf32> to vector<1x16x1x1x8xf32>
    tpu.vector_store %arg5[%c0_291, %c0_292, %c7_293, %c2_294, %c0_295], %365 {strides = array<i32>} : memref<1x16x8x8x8xf32, #tpu.memory_space<vmem>>, vector<1x16x1x1x8xf32>,
    %366 = vector.extract_strided_slice %11 {offsets = [7, 3, 0, 0], sizes = [1, 1, 8, 16], strides = [1, 1, 1, 1]} : vector<8x8x8x16xf32> to vector<1x1x8x16xf32>
    %367 = vector.shape_cast %366 : vector<1x1x8x16xf32> to vector<8x16xf32>
    %368 = tpu.transpose %367, [1, 0] : vector<8x16xf32> -> vector<16x8xf32>
    %c0_296 = arith.constant 0 : index
    %c0_297 = arith.constant 0 : index
    %c7_298 = arith.constant 7 : index
    %c3_299 = arith.constant 3 : index
    %c0_300 = arith.constant 0 : index
    %369 = vector.load %arg5[%c0_296, %c0_297, %c7_298, %c3_299, %c0_300] : memref<1x16x8x8x8xf32, #tpu.memory_space<vmem>>, vector<1x16x1x1x8xf32>
    %370 = vector.shape_cast %369 : vector<1x16x1x1x8xf32> to vector<16x8xf32>
    %371 = vector.shape_cast %368 : vector<16x8xf32> to vector<1x16x1x1x8xf32>
    tpu.vector_store %arg5[%c0_296, %c0_297, %c7_298, %c3_299, %c0_300], %371 {strides = array<i32>} : memref<1x16x8x8x8xf32, #tpu.memory_space<vmem>>, vector<1x16x1x1x8xf32>,
    %372 = vector.extract_strided_slice %11 {offsets = [7, 4, 0, 0], sizes = [1, 1, 8, 16], strides = [1, 1, 1, 1]} : vector<8x8x8x16xf32> to vector<1x1x8x16xf32>
    %373 = vector.shape_cast %372 : vector<1x1x8x16xf32> to vector<8x16xf32>
    %374 = tpu.transpose %373, [1, 0] : vector<8x16xf32> -> vector<16x8xf32>
    %c0_301 = arith.constant 0 : index
    %c0_302 = arith.constant 0 : index
    %c7_303 = arith.constant 7 : index
    %c4_304 = arith.constant 4 : index
    %c0_305 = arith.constant 0 : index
    %375 = vector.load %arg5[%c0_301, %c0_302, %c7_303, %c4_304, %c0_305] : memref<1x16x8x8x8xf32, #tpu.memory_space<vmem>>, vector<1x16x1x1x8xf32>
    %376 = vector.shape_cast %375 : vector<1x16x1x1x8xf32> to vector<16x8xf32>
    %377 = vector.shape_cast %374 : vector<16x8xf32> to vector<1x16x1x1x8xf32>
    tpu.vector_store %arg5[%c0_301, %c0_302, %c7_303, %c4_304, %c0_305], %377 {strides = array<i32>} : memref<1x16x8x8x8xf32, #tpu.memory_space<vmem>>, vector<1x16x1x1x8xf32>,
    %378 = vector.extract_strided_slice %11 {offsets = [7, 5, 0, 0], sizes = [1, 1, 8, 16], strides = [1, 1, 1, 1]} : vector<8x8x8x16xf32> to vector<1x1x8x16xf32>
    %379 = vector.shape_cast %378 : vector<1x1x8x16xf32> to vector<8x16xf32>
    %380 = tpu.transpose %379, [1, 0] : vector<8x16xf32> -> vector<16x8xf32>
    %c0_306 = arith.constant 0 : index
    %c0_307 = arith.constant 0 : index
    %c7_308 = arith.constant 7 : index
    %c5_309 = arith.constant 5 : index
    %c0_310 = arith.constant 0 : index
    %381 = vector.load %arg5[%c0_306, %c0_307, %c7_308, %c5_309, %c0_310] : memref<1x16x8x8x8xf32, #tpu.memory_space<vmem>>, vector<1x16x1x1x8xf32>
    %382 = vector.shape_cast %381 : vector<1x16x1x1x8xf32> to vector<16x8xf32>
    %383 = vector.shape_cast %380 : vector<16x8xf32> to vector<1x16x1x1x8xf32>
    tpu.vector_store %arg5[%c0_306, %c0_307, %c7_308, %c5_309, %c0_310], %383 {strides = array<i32>} : memref<1x16x8x8x8xf32, #tpu.memory_space<vmem>>, vector<1x16x1x1x8xf32>,
    %384 = vector.extract_strided_slice %11 {offsets = [7, 6, 0, 0], sizes = [1, 1, 8, 16], strides = [1, 1, 1, 1]} : vector<8x8x8x16xf32> to vector<1x1x8x16xf32>
    %385 = vector.shape_cast %384 : vector<1x1x8x16xf32> to vector<8x16xf32>
    %386 = tpu.transpose %385, [1, 0] : vector<8x16xf32> -> vector<16x8xf32>
    %c0_311 = arith.constant 0 : index
    %c0_312 = arith.constant 0 : index
    %c7_313 = arith.constant 7 : index
    %c6_314 = arith.constant 6 : index
    %c0_315 = arith.constant 0 : index
    %387 = vector.load %arg5[%c0_311, %c0_312, %c7_313, %c6_314, %c0_315] : memref<1x16x8x8x8xf32, #tpu.memory_space<vmem>>, vector<1x16x1x1x8xf32>
    %388 = vector.shape_cast %387 : vector<1x16x1x1x8xf32> to vector<16x8xf32>
    %389 = vector.shape_cast %386 : vector<16x8xf32> to vector<1x16x1x1x8xf32>
    tpu.vector_store %arg5[%c0_311, %c0_312, %c7_313, %c6_314, %c0_315], %389 {strides = array<i32>} : memref<1x16x8x8x8xf32, #tpu.memory_space<vmem>>, vector<1x16x1x1x8xf32>,
    %390 = vector.extract_strided_slice %11 {offsets = [7, 7, 0, 0], sizes = [1, 1, 8, 16], strides = [1, 1, 1, 1]} : vector<8x8x8x16xf32> to vector<1x1x8x16xf32>
    %391 = vector.shape_cast %390 : vector<1x1x8x16xf32> to vector<8x16xf32>
    %392 = tpu.transpose %391, [1, 0] : vector<8x16xf32> -> vector<16x8xf32>
    %c0_316 = arith.constant 0 : index
    %c0_317 = arith.constant 0 : index
    %c7_318 = arith.constant 7 : index
    %c7_319 = arith.constant 7 : index
    %c0_320 = arith.constant 0 : index
    %393 = vector.load %arg5[%c0_316, %c0_317, %c7_318, %c7_319, %c0_320] : memref<1x16x8x8x8xf32, #tpu.memory_space<vmem>>, vector<1x16x1x1x8xf32>
    %394 = vector.shape_cast %393 : vector<1x16x1x1x8xf32> to vector<16x8xf32>
    %395 = vector.shape_cast %392 : vector<16x8xf32> to vector<1x16x1x1x8xf32>
    tpu.vector_store %arg5[%c0_316, %c0_317, %c7_318, %c7_319, %c0_320], %395 {strides = array<i32>} : memref<1x16x8x8x8xf32, #tpu.memory_space<vmem>>, vector<1x16x1x1x8xf32>,
    return
  }
  func.func @transform_0(%arg0: i32, %arg1: i32) -> (i32, i32, i32, i32, i32) {
    %c0_i32 = arith.constant 0 : i32
    %c0_i32_0 = arith.constant 0 : i32
    %c0_i32_1 = arith.constant 0 : i32
    %c0_i32_2 = arith.constant 0 : i32
    return %arg0, %arg1, %c0_i32, %c0_i32_0, %c0_i32_1 : i32, i32, i32, i32, i32
  }
  func.func @transform_1(%arg0: i32, %arg1: i32) -> (i32, i32) {
    %c0_i32 = arith.constant 0 : i32
    %c0_i32_0 = arith.constant 0 : i32
    %c0_i32_1 = arith.constant 0 : i32
    return %c0_i32, %c0_i32_0 : i32, i32
  }
  func.func @transform_2(%arg0: i32, %arg1: i32) -> (i32, i32) {
    %c0_i32 = arith.constant 0 : i32
    %c0_i32_0 = arith.constant 0 : i32
    %c0_i32_1 = arith.constant 0 : i32
    return %c0_i32, %c0_i32_0 : i32, i32
  }
  func.func @transform_3(%arg0: i32, %arg1: i32) -> (i32, i32, i32, i32, i32) {
    %c0_i32 = arith.constant 0 : i32
    %c0_i32_0 = arith.constant 0 : i32
    %c0_i32_1 = arith.constant 0 : i32
    %c0_i32_2 = arith.constant 0 : i32
    return %arg0, %c0_i32, %arg1, %c0_i32_0, %c0_i32_1 : i32, i32, i32, i32, i32
  }
}

</mosaic_0001>

<bundles_post_ra>
// kernel: tile.8
= control target key start
LH: loop header
LB: loop body
LE: loop exit
PB: predicated region body
PF: predicated region fallthrough
CT: control target
= control target key end

     0   :  { %s22_s0 = inlined_call_operand.vmem [shape: f32[16], index: 0, kind: input, shape index: {}]   ;;  %s23_s1 = inlined_call_operand.vmem [shape: f32[8,16], index: 1, kind: output, shape index: {}]  }
   0x1   :  { %v4_v0 = vld [vmem:[%s22_s0] ss:$0 sm:$0xff] }
   0x2   :  { %5 = vst [vmem:[%s23_s1] sm:$0xff] %v4_v0 }

// kernel: tile.9
= control target key start
LH: loop header
LB: loop body
LE: loop exit
PB: predicated region body
PF: predicated region fallthrough
CT: control target
= control target key end

     0   :  { %s67_s10 = smov 112   ;;  %s68_s11 = smov 80   ;;  %vm3_vm0 = vcmask 130048   ;;  %vm9_vm1 = vcmask 1048448   ;;  %vm15_vm2 = vcmask 917248   ;;  %vm21_vm3 = vcmask 786048   ;;  %s111_s0 = inlined_call_operand.vmem [shape: f32[8,16], index: 0, kind: input, shape index: {}]   ;;  %s112_s1 = inlined_call_operand.vmem [shape: f32[1,128], index: 1, kind: output, shape index: {}]  }
   0x1   :  { %v53_v0 = vld [vmem:[%s111_s0 + $0x7] sm:$0x1]   ;;  %v55_v1 = vld [vmem:[%s111_s0 + $0x5] sm:$0x1]   ;;  %v54_v2 = vld [vmem:[%s111_s0 + $0x6] sm:$0x1]  }
   0x2   :  { %7 = vrot.lane.b32.xlu0 %v53_v0, %s67_s10  ;;  %19 = vrot.lane.b32.xlu1 %v55_v1, %s68_s11  ;;  %v56_v3 = vld [vmem:[%s111_s0 + $0x4] sm:$0x1]   ;;  %v2_v4 = vld [vmem:[%s111_s0] sm:$0x1]   ;;  %s69_s18 = smov 96   ;;  %s70_s19 = smov 64  }
   0x3   :  { %4 = vst.msk [vmem:[#allocation0] sm:$0x1] %vm3_vm0, %v2_v4   ;;  %v57_v5 = vld [vmem:[%s111_s0 + $0x3] sm:$0x1]   ;;  %v58_v6 = vld [vmem:[%s111_s0 + $0x2] sm:$0x1]  }
   0x4   :  { %s71_s24 = smov 48   ;;  %s72_s25 = smov 32   ;;  %v59_v7 = vld [vmem:[%s111_s0 + $0x1] sm:$0x1]   ;;  %vm27_vm4 = vcmask 654848   ;;  %vm33_vm5 = vcmask 523648  }
   0x5   :  { %s73_s0 = smov 16   ;;  %vm39_vm6 = vcmask 392448   ;;  %vm45_vm7 = vcmask 261248  }
   0x6   :  { %13 = vrot.lane.b32.xlu0 %v54_v2, %s69_s18  ;;  %25 = vrot.lane.b32.xlu1 %v56_v3, %s70_s19 }
   0xa   :  { %31 = vrot.lane.b32.xlu0 %v57_v5, %s71_s24  ;;  %37 = vrot.lane.b32.xlu1 %v58_v6, %s72_s25 }
   0xe   :  { %43 = vrot.lane.b32.xlu0 %v59_v7, %s73_s0 }
  0x74   :  { %v8_v8 = vpop.permute.xlu0 %7   ;;  %v20_v9 = vpop.permute.xlu1 %19  }
  0x75   :  { %10 = vst.msk [vmem:[#allocation0] sm:$0x1] %vm9_vm1, %v8_v8  }
  0x78   :  { %v14_v10 = vpop.permute.xlu0 %13   ;;  %v26_v11 = vpop.permute.xlu1 %25  }
  0x79   :  { %16 = vst.msk [vmem:[#allocation0] sm:$0x1] %vm15_vm2, %v14_v10  }
  0x7a   :  { %22 = vst.msk [vmem:[#allocation0] sm:$0x1] %vm21_vm3, %v20_v9  }
  0x7b   :  { %28 = vst.msk [vmem:[#allocation0] sm:$0x1] %vm27_vm4, %v26_v11  }
  0x7c   :  { %v32_v12 = vpop.permute.xlu0 %31   ;;  %v38_v13 = vpop.permute.xlu1 %37  }
  0x7d   :  { %34 = vst.msk [vmem:[#allocation0] sm:$0x1] %vm33_vm5, %v32_v12  }
  0x7e   :  { %40 = vst.msk [vmem:[#allocation0] sm:$0x1] %vm39_vm6, %v38_v13  }
  0x80   :  { %v44_v14 = vpop.permute.xlu0 %43  }
  0x81   :  { %46 = vst.msk [vmem:[#allocation0] sm:$0x1] %vm45_vm7, %v44_v14  }
  0x88   :  { %v50_v15 = vld [vmem:[#allocation0] sm:$0x1] }
  0x89   :  { %52 = vst [vmem:[%s112_s1] sm:$0x1] %v50_v15 }

// kernel: deconv3d_block_forward.3
= control target key start
LH: loop header
LB: loop body
LE: loop exit
PB: predicated region body
PF: predicated region fallthrough
CT: control target
= control target key end

     0   :  { %vm104_vm0 = vcmask 1043456   ;;  %vm79_vm1 = vcmask 64512   ;;  %s506_s1 = inlined_call_operand.vmem [shape: bf16[8,128], index: 1, kind: input, shape index: {}]   ;;  %s507_s0 = inlined_call_operand.vmem [shape: bf16[128,8], index: 0, kind: input, shape index: {}]   ;;  %s508_s2 = inlined_call_operand.vmem [shape: f32[1,128], index: 2, kind: input, shape index: {}]   ;;  %s509_s3 = inlined_call_operand.vmem [shape: bf16[128,128], index: 3, kind: output, shape index: {}]  }
   0x1   :  { %v31_v0 = vld [vmem:[%s506_s1] sm:$0xf]  ;;  %v418_v4 = vld [vmem:[%s507_s0 + $0x8] sm:$0xff]   ;;  %v420_v6 = vld [vmem:[%s507_s0 + $0x10] sm:$0xff]  }
   0x2   :  { %414 = vmatprep.subr.msk.bf16.mxu0 %vm104_vm0, %v31_v0  ;;  %415 = vmatprep.subr.msk.bf16.mxu1 %vm104_vm0, %v31_v0  ;;  %v106_v1 = vsel %vm104_vm0, %v31_v0, 0  ;;  %v416_v2 = vld [vmem:[%s507_s0] sm:$0xff]   ;;  %v419_v5 = vld [vmem:[%s507_s0 + $0x28] sm:$0xff]   ;;  %v421_v7 = vld [vmem:[%s507_s0 + $0x30] sm:$0xff]  }
   0x3   :  { %395 = vmatpush3.bf16.msra.mxu0 %v106_v1  ;;  %413 = vmatpush3.bf16.msra.mxu1 %v106_v1  ;;  %v417_v3 = vld [vmem:[%s507_s0 + $0x20] sm:$0xff]   ;;  %v422_v8 = vld [vmem:[%s507_s0 + $0x18] sm:$0xff]  }
   0x4   :  { %396 = vmatprep.mubr.msk.bf16.mxu0 %vm79_vm1, %v416_v2  ;;  %404 = vmatprep.mubr.msk.bf16.mxu1 %vm79_vm1, %v417_v3  ;;  %v423_v9 = vld [vmem:[%s507_s0 + $0x38] sm:$0xff]   ;;  %v289_v11 = vld [vmem:[%s508_s2] ss:$0 sm:$0xff] }
   0x6   :  { %397 = vmatmul.mubr.msk.bf16.vlgmr.msra.gmra.mrb[0].mxu0 %vm79_vm1, %v418_v4  ;;  %405 = vmatmul.mubr.msk.bf16.vlgmr.msra.gmra.mrb[0].mxu1 %vm79_vm1, %v419_v5 }
   0x7   :  { %400 = vmatprep.mubr.msk.bf16.mxu0 %vm79_vm1, %v420_v6  ;;  %408 = vmatprep.mubr.msk.bf16.mxu1 %vm79_vm1, %v421_v7 }
   0xe   :  { %401 = vmatmul.mubr.msk.bf16.gmra.mrb[4].mxu0 %vm79_vm1, %v422_v8  ;;  %409 = vmatmul.mubr.msk.bf16.gmra.mrb[4].mxu1 %vm79_vm1, %v423_v9 }
  0xd9   :  { %v398_v10 = vpop.f32.mrb[0].mxu0  ;;  %v406_v12 = vpop.f32.mrb[0].mxu1 }
  0xda   :  { %v142_v13 = vpop.f32.mrb[1].mxu0  ;;  %v174_v14 = vpop.f32.mrb[1].mxu1  ;;  %v151_v16 = vadd.f32 %v398_v10, %v289_v11  ;;  %v183_v20 = vadd.f32 %v406_v12, %v289_v11 }
  0xdb   :  { %v399_v15 = vpop.f32.mrb[2].mxu0  ;;  %v407_v18 = vpop.f32.mrb[2].mxu1  ;;  %v143_v21 = vadd.f32 %v289_v11, %v142_v13  ;;  %v175_v25 = vadd.f32 %v289_v11, %v174_v14 }
  0xdc   :  { %v154_v17 = vadd.f32 %v399_v15, %v289_v11  ;;  %v145_v19 = vpop.f32.mrb[3].mxu0  ;;  %v186_v22 = vadd.f32 %v407_v18, %v289_v11  ;;  %v177_v24 = vpop.f32.mrb[3].mxu1 }
  0xdd   :  { %v146_v23 = vadd.f32 %v289_v11, %v145_v19  ;;  %v178_v27 = vadd.f32 %v289_v11, %v177_v24 }
  0xde   :  { %v346_v26 = vpack.c.bf16 %v154_v17, %v151_v16  ;;  %v366_v28 = vpack.c.bf16 %v186_v22, %v183_v20 }
  0xdf   :  { %v341_v29 = vpack.c.bf16 %v146_v23, %v143_v21  ;;  %v361_v30 = vpack.c.bf16 %v178_v27, %v175_v25 }
  0xe0   :  { %378 = vst [vmem:[%s509_s3 + $0x8] sm:$0xff] %v346_v26   ;;  %382 = vst [vmem:[%s509_s3 + $0x28] sm:$0xff] %v366_v28  }
  0xe1   :  { %342 = vst [vmem:[%s509_s3] sm:$0xff] %v341_v29   ;;  %v402_v31 = vpop.f32.mrb[4].mxu0  ;;  %381 = vst [vmem:[%s509_s3 + $0x20] sm:$0xff] %v361_v30   ;;  %v410_v32 = vpop.f32.mrb[4].mxu1 }
  0xe2   :  { %v158_v33 = vpop.f32.mrb[5].mxu0  ;;  %v190_v34 = vpop.f32.mrb[5].mxu1  ;;  %v167_v36 = vadd.f32 %v402_v31, %v289_v11  ;;  %v199_v40 = vadd.f32 %v410_v32, %v289_v11 }
  0xe3   :  { %v403_v35 = vpop.f32.mrb[6].mxu0  ;;  %v411_v38 = vpop.f32.mrb[6].mxu1  ;;  %v159_v41 = vadd.f32 %v289_v11, %v158_v33  ;;  %v191_v45 = vadd.f32 %v289_v11, %v190_v34 }
  0xe4   :  { %v170_v37 = vadd.f32 %v403_v35, %v289_v11  ;;  %v161_v39 = vpop.f32.mrb[7].mxu0  ;;  %v202_v42 = vadd.f32 %v411_v38, %v289_v11  ;;  %v193_v44 = vpop.f32.mrb[7].mxu1 }
  0xe5   :  { %v162_v43 = vadd.f32 %v289_v11, %v161_v39  ;;  %v194_v47 = vadd.f32 %v289_v11, %v193_v44 }
  0xe6   :  { %v356_v46 = vpack.c.bf16 %v170_v37, %v167_v36  ;;  %v376_v48 = vpack.c.bf16 %v202_v42, %v199_v40 }
  0xe7   :  { %v351_v49 = vpack.c.bf16 %v162_v43, %v159_v41  ;;  %v371_v50 = vpack.c.bf16 %v194_v47, %v191_v45 }
  0xe8   :  { %380 = vst [vmem:[%s509_s3 + $0x18] sm:$0xff] %v356_v46   ;;  %384 = vst [vmem:[%s509_s3 + $0x38] sm:$0xff] %v376_v48  }
  0xe9   :  { %379 = vst [vmem:[%s509_s3 + $0x10] sm:$0xff] %v351_v49   ;;  %383 = vst [vmem:[%s509_s3 + $0x30] sm:$0xff] %v371_v50  }

// kernel: deconv3d_block_forward.4
= control target key start
LH: loop header
LB: loop body
LE: loop exit
PB: predicated region body
PF: predicated region fallthrough
CT: control target
= control target key end

     0   :  { %s3404_s18 = smov 0   ;;  %s3406_s19 = smov 0   ;;  %s4095_s0 = inlined_call_operand.vmem [shape: bf16[2,10,168,16], index: 0, kind: input, shape index: {}]   ;;  %s4096_s1 = inlined_call_operand.vmem [shape: bf16[27,16,16], index: 1, kind: input, shape index: {}]   ;;  %s4097_s2 = inlined_call_operand.vmem [shape: f32[1,16], index: 2, kind: input, shape index: {}]   ;;  %s4098_s3 = inlined_call_operand.vmem [shape: f32[2,8,8,8,16], index: 3, kind: output, shape index: {0}]   ;;  %s4099_s4 = inlined_call_operand.vmem [shape: f32[2,8,1,16], index: 4, kind: output, shape index: {1}]   ;;  %s4100_s5 = inlined_call_operand.vmem [shape: f32[2,8,1,16], index: 5, kind: output, shape index: {2}]  }
   0x1   :  { %s3408_s20 = smov 0   ;;  %s3410_s21 = smov 0  }
   0x2   :  { %s3412_s22 = smov 0   ;;  %s3414_s23 = smov 0  }
   0x3   :  { %s3416_s24 = smov 0  }
   0x4 LB: > { %s28_s25 = sadd.s32 1, %s3360_s21  ;;  %s31_s26 = sadd.s32 1, %s3364_s22  ;;  %s3372_s24 = sphi %s3416_s24, %s16_s24   ;;  %s3368_s23 = sphi %s3414_s23, %s4106_s23   ;;  %s3364_s22 = sphi %s3412_s22, %s4105_s22   ;;  %s3360_s21 = sphi %s3410_s21, %s4104_s21   ;;  %s3356_s20 = sphi %s3408_s20, %s4103_s20   ;;  %s3352_s19 = sphi %s3406_s19, %s4102_s19   ;;  %s3348_s18 = sphi %s3404_s18, %s4101_s18  }
   0x5   : > { %p29_p0 = scmp.ge.s32.totalorder %s28_s25, 3  ;;  %p2658_p1 = scmp.ge.s32.totalorder %s3372_s24, 1 }
   0x6   : > { %p227_p2 = scmp.lt.s32.totalorder %s3372_s24, 49  ;;  %s35_s27 = sadd.s32 1, %s3368_s23 }
   0x7   : > { %s4108_s25 = smov (%p29_p0, %s28_s25), 0  ;;  %s4110_s26 = smov (!%p29_p0, %s31_s26), %s3364_s22 }
   0x8   : > { %p228_p3 = pnand %p2658_p1, %p227_p2  ;;  %p33_p4 = scmp.ge.s32.totalorder %s4110_s26, 8 }
   0x9   : > { %s2831_s28 = smul.u32 (!%p228_p3), 72, %s3348_s18  ;;  %s278_s29 = sadd.s32 (!%p228_p3), %s3348_s18, %s3352_s19  ;;  %vm385_vm0 = vsmask.f32 (!%p228_p3), 7424  ;;  %vm460_vm1 = vcmask (!%p228_p3), 130048   ;;  %vm711_vm2 = vcmask (!%p228_p3), 1046528  }
   0xa   : > { %s4112_s26 = smov (%p33_p4, %s4110_s26), 0  ;;  %s4114_s27 = smov (!%p33_p4, %s35_s27), %s3368_s23 }
   0xb   : > { %p37_p5 = scmp.ge.s32.totalorder %s4114_s27, 2  ;;  %231 = sbr.rel (%p228_p3) target bundleno = 450 (0x1c2), region = 32 }
   0xc   : > { %p279_p6 = scmp.lt.s32.totalorder (!%p228_p3), %s3356_s20, 1  ;;  %p281_p7 = scmp.lt.s32.totalorder (!%p228_p3), %s278_s29, 9 }
   0xd   : > { %s4116_s27 = smov (%p37_p5, %s4114_s27), 0  ;;  %s3456_s7 = scalar_lea.vmem (!%p228_p3), %s4096_s1, %s2831_s28 }
   0xe   : > { %p291_p8 = scmp.lt.s32.totalorder (!%p228_p3), %s3352_s19, 7  ;;  %v3263_v0 = vld [vmem:[%s3456_s7 + $0x8] sm:$0xff] (!%p228_p3)   ;;  %v3461_v1 = vld [vmem:[%s3456_s7 + $0x20] sm:$0xff] (!%p228_p3)   ;;  %v3534_v35 = vld [vmem:[%s3456_s7 + $0x10] sm:$0xff] (!%p228_p3)   ;;  %p2818_p9 = scmp.ne.s32.totalorder (!%p228_p3), %s3348_s18, 0 }
   0xf   : > { %2913 = vmatprep.subr.bf16.mxu1 (!%p228_p3), %v3263_v0  ;;  %2985 = vmatprep.subr.bf16.mxu0 (!%p228_p3), %v3461_v1  ;;  %v3465_v2 = vld [vmem:[%s3456_s7] sm:$0xff] (!%p228_p3)   ;;  %v3468_v3 = vld [vmem:[%s3456_s7 + $0x28] sm:$0xff] (!%p228_p3)   ;;  %v3542_v41 = vld [vmem:[%s3456_s7 + $0x30] sm:$0xff] (!%p228_p3)  }
  0x10   : > { %2914 = vmatpush3.bf16.msra.mxu1 (!%p228_p3), %v3263_v0  ;;  %2986 = vmatpush3.bf16.msra.mxu0 (!%p228_p3), %v3461_v1 }
  0x11   : > { %2931 = vmatprep.subr.bf16.mxu1 (!%p228_p3), %v3465_v2  ;;  %3003 = vmatprep.subr.bf16.mxu0 (!%p228_p3), %v3468_v3 }
  0x12   : > { %s4118_s20 = smov (!%p279_p6, %s3356_s20), 1  ;;  %s4120_s29 = smov (!%p281_p7, %s278_s29), 9 }
  0x13   : > { %s3206_s8 = smul.u32 210, %s4118_s20  ;;  %s2661_s9 = sshll.u32 %s4118_s20, 6 }
  0x14   : > { %s3205_s10 = smul.u32 21, %s4120_s29  ;;  %s2663_s11 = sshll.u32 %s4118_s20, 3 }
  0x15   : > { %s4122_s19 = smov (!%p291_p8, %s3352_s19), 7 }
  0x16   : > { %s285_s12 = sadd.s32 %s3206_s8, %s3205_s10  ;;  %s2660_s14 = sshll.u32 %s4122_s19, 3 }
  0x17   : > { %s2659_s13 = sshll.u32 %s285_s12, 2  ;;  %s295_s20 = sadd.s32 %s2661_s9, %s2660_s14 }
  0x18   : > { %s3479_s17 = scalar_lea.vmem %s4095_s0, %s2659_s13  ;;  %s2662_s28 = sshll.u32 %s295_s20, 3 }
  0x19   : > { %s3481_s29 = sadd.s32 %s2663_s11, %s4122_s19  ;;  %v313_v4 = vld [vmem:[%s3479_s17] sm:$0xf]  ;;  %v3485_v5 = vld [vmem:[%s3479_s17 + $0x4] sm:$0xf]  ;;  %v3488_v6 = vld [vmem:[%s3479_s17 + $0x8] sm:$0xff]   ;;  %s3493_s8 = scalar_lea.vmem %s4098_s3, %s2662_s28 }
  0x1a   : > { %s304_s12 = scalar_lea.vmem %s4099_s4, %s3481_s29  ;;  %v3500_v7 = vcombine.low %v313_v4, %v3485_v5  ;;  %v1077_v8 = vld [vmem:[%s3479_s17 + $0x8] sm:$0xf]  ;;  %s311_s13 = scalar_lea.vmem %s4100_s5, %s3481_s29  ;;  %v394_v9 = vshll.u32 %v3488_v6, 16  ;;  %v398_v10 = vshrl.u32 %v3488_v6, 16  ;;  %v3510_v11 = vld [vmem:[%s3479_s17 + $0xc] sm:$0xf] }
  0x1b   : > { %v2733_v14 = vcombine.low %v1077_v8, %v3510_v11  ;;  %v3516_v15 = vld [vmem:[%s3479_s17 + $0x10] sm:$0xff]   ;;  %v3522_v18 = vld [vmem:[%s3479_s17 + $0x18] sm:$0xff]   ;;  %v3538_v39 = vld [vmem:[%s3479_s17 + $0x20] sm:$0xff]  }
  0x1c   : > { %v387_v12 = vshrl.u32 %v3500_v7, 16  ;;  %v389_v13 = vshll.u32 %v3500_v7, 16  ;;  %v3519_v16 = vld [vmem:[%s3479_s17 + $0x10] sm:$0xff]   ;;  %v396_v17 = vrot.slane %v394_v9, 1  ;;  %v1151_v22 = vshll.u32 %v3516_v15, 16  ;;  %v3529_v27 = vld [vmem:[%s3479_s17 + $0x18] sm:$0xff]  }
  0x1d   : > { %v1144_v20 = vshrl.u32 %v2733_v14, 16  ;;  %v1146_v21 = vshll.u32 %v2733_v14, 16  ;;  %v1155_v24 = vshrl.u32 %v3516_v15, 16  ;;  %v402_v25 = vshll.u32 %v3519_v16, 16  ;;  %v3547_v45 = vld [vmem:[%s3479_s17 + $0x20] sm:$0xff]   ;;  %v3551_v47 = vld [vmem:[%s3479_s17 + $0x28] sm:$0xff]  }
  0x1e   : > { %v391_v19 = vrot.slane %v389_v13, 1  ;;  %v400_v23 = vor.u32 %v398_v10, %v396_v17  ;;  %v1159_v26 = vshll.u32 %v3522_v18, 16  ;;  %v1153_v30 = vrot.slane %v1151_v22, 1  ;;  %v3558_v52 = vld [vmem:[%s3479_s17 + $0x28] sm:$0xff]   ;;  %v3580_v10 = vld [vmem:[%s3479_s17 + $0x30] sm:$0xff]  }
  0x1f   : > { %v1148_v29 = vrot.slane %v1146_v21, 1  ;;  %v404_v31 = vrot.slane %v402_v25, 1  ;;  %v406_v33 = vshrl.u32 %v3519_v16, 16  ;;  %v410_v34 = vshll.u32 %v3529_v27, 16  ;;  %v1354_v61 = vld [vmem:[%s3479_s17 + $0x8] sm:$0xe] }
  0x20   : > { %v392_v28 = vor.u32 %v391_v19, %v387_v12  ;;  %v1161_v32 = vrot.slane %v1159_v26, 1  ;;  %v1157_v38 = vor.u32 %v1155_v24, %v1153_v30  ;;  %v1163_v40 = vshrl.u32 %v3522_v18, 16  ;;  %v3583_v12 = vld [vmem:[%s3479_s17 + $0x38] sm:$0xff]   ;;  %v3282_v25 = vld [vmem:[%s3479_s17 + $0x40] ss:$0 sps:$4 sm:$0x11]  }
  0x21   : > { %v1149_v37 = vor.u32 %v1148_v29, %v1144_v20  ;;  %v405_v42 = vsel %vm385_vm0, %v400_v23, %v404_v31  ;;  %v408_v43 = vor.u32 %v406_v33, %v404_v31  ;;  %v412_v44 = vrot.slane %v410_v34, 1 }
  0x22   : > { %v397_v36 = vsel %vm385_vm0, %v392_v28, %v396_v17  ;;  %v414_v46 = vshrl.u32 %v3529_v27, 16  ;;  %v1162_v49 = vsel %vm385_vm0, %v1157_v38, %v1161_v32  ;;  %v1165_v50 = vor.u32 %v1163_v40, %v1161_v32  ;;  %v3612_v40 = vld [vmem:[%s3479_s17 + $0x38] sm:$0xff]  }
  0x23   : > { %2915 = vmatprep.mubr.msk.bf16.mxu1 %vm460_vm1, %v397_v36  ;;  %v1154_v48 = vsel %vm385_vm0, %v1149_v37, %v1153_v30  ;;  %v1167_v51 = vshll.u32 %v3538_v39, 16  ;;  %v413_v53 = vsel %vm385_vm0, %v408_v43, %v412_v44  ;;  %v418_v55 = vshll.u32 %v3547_v45, 16  ;;  %v3607_v37 = vld [vmem:[%s3479_s17 + $0x30] sm:$0xff]  }
  0x24   : > { %2916 = vmatmul.mubr.msk.bf16.vlgmr.msra.gmra.mrb[0].mxu1 %vm460_vm1, %v405_v42  ;;  %2987 = vmatprep.mubr.msk.bf16.mxu0 %vm460_vm1, %v1154_v48  ;;  %v416_v54 = vor.u32 %v414_v46, %v412_v44  ;;  %v1171_v56 = vshrl.u32 %v3538_v39, 16  ;;  %v1175_v58 = vshll.u32 %v3551_v47, 16  ;;  %v422_v59 = vshrl.u32 %v3547_v45, 16 }
  0x25   : > { %2932 = vmatpush3.bf16.msra.mxu1 %v3465_v2  ;;  %2988 = vmatmul.mubr.msk.bf16.vlgmr.msra.gmra.mrb[0].mxu0 %vm460_vm1, %v1162_v49  ;;  %v1169_v57 = vrot.slane %v1167_v51, 1  ;;  %v426_v60 = vshll.u32 %v3558_v52, 16  ;;  %v420_v62 = vrot.slane %v418_v55, 1  ;;  %v2754_v63 = vcombine.low %v1354_v61, %v3510_v11 }
  0x26   : > { %2919 = vmatprep.mubr.msk.bf16.mxu1 %vm460_vm1, %v413_v53  ;;  %3004 = vmatpush3.bf16.msra.mxu0 %v3468_v3  ;;  %v1365_v0 = vrot.slane %v3516_v15, 1  ;;  %v3576_v8 = vrot.slane %v1175_v58, 1  ;;  %v430_v14 = vshrl.u32 %v3558_v52, 16  ;;  %v434_v15 = vshll.u32 %v3580_v10, 16  ;;  %v3644_v58 = vld [vmem:[%s3479_s17 + $0x14] sm:$0xf] }
  0x27   : > { %2949 = vmatprep.subr.bf16.mxu1 %v3534_v35  ;;  %v1170_v2 = vsel %vm385_vm0, %v1165_v50, %v1169_v57  ;;  %v1173_v4 = vor.u32 %v1171_v56, %v1169_v57  ;;  %v428_v9 = vrot.slane %v426_v60, 1  ;;  %3021 = vmatprep.subr.bf16.mxu0 %v3542_v41  ;;  %v421_v3 = vsel %vm385_vm0, %v416_v54, %v420_v62  ;;  %v1729_v56 = vld [vmem:[%s3479_s17 + $0x10] sm:$0xf]  ;;  %v3648_v60 = vld [vmem:[%s3479_s17 + $0x18] sm:$0xff]  }
  0x28   : > { %2991 = vmatprep.mubr.msk.bf16.mxu0 %vm460_vm1, %v1170_v2  ;;  %v424_v11 = vor.u32 %v422_v59, %v420_v62  ;;  %v1364_v13 = vrot.slane %v2754_v63, 1  ;;  %v438_v17 = vshrl.u32 %v3580_v10, 16  ;;  %v442_v21 = vshll.u32 %v3583_v12, 16  ;;  %v3657_v2 = vld [vmem:[%s3479_s17 + $0x40] sm:$0xff]  }
  0x29   : > { %v1178_v19 = vsel %vm385_vm0, %v1173_v4, %v3576_v8  ;;  %v436_v23 = vrot.slane %v434_v15, 1  ;;  %v432_v24 = vor.u32 %v430_v14, %v428_v9  ;;  %v1367_v29 = vrot.slane %v3522_v18, 1  ;;  %v3615_v18 = vld [vmem:[%s3456_s7 + $0x38] sm:$0xff]   ;;  %v3663_v14 = vld [vmem:[%s3479_s17 + $0x20] sm:$0xff]   ;;  %v3666_v15 = vld [vmem:[%s3479_s17 + $0x28] sm:$0xff]  }
  0x2a   : > { %v429_v20 = vsel %vm385_vm0, %v424_v11, %v428_v9  ;;  %v1366_v22 = vsel %vm711_vm2, %v1364_v13, %v1365_v0  ;;  %v444_v28 = vrot.slane %v442_v21, 1  ;;  %v1369_v30 = vrot.slane %v3538_v39, 1 }
  0x2b   : > { %v440_v26 = vor.u32 %v438_v17, %v436_v23  ;;  %v437_v31 = vsel %vm385_vm0, %v432_v24, %v436_v23  ;;  %v446_v32 = vshrl.u32 %v3583_v12, 16  ;;  %v450_v33 = vshll.u32 %v3282_v25, 16 }
  0x2c   : > { %2920 = vmatmul.mubr.msk.bf16.gmra.mrb[4].mxu1 %vm460_vm1, %v421_v3  ;;  %v1368_v36 = vsel %vm711_vm2, %v1365_v0, %v1367_v29  ;;  %v1370_v38 = vsel %vm711_vm2, %v1367_v29, %v1369_v30  ;;  %v715_v39 = vrot.slane %v3519_v16, 1  ;;  %v717_v42 = vrot.slane %v3529_v27, 1 }
  0x2d   : > { %2923 = vmatprep.mubr.msk.bf16.mxu1 %vm460_vm1, %v429_v20  ;;  %2992 = vmatmul.mubr.msk.bf16.gmra.mrb[4].mxu0 %vm460_vm1, %v1178_v19  ;;  %v445_v34 = vsel %vm385_vm0, %v440_v26, %v444_v28  ;;  %v448_v43 = vor.u32 %v446_v32, %v444_v28  ;;  %v452_v44 = vrot.slane %v450_v33, 1  ;;  %v719_v46 = vrot.slane %v3547_v45, 1  ;;  %v3690_v32 = vld [vmem:[%s3479_s17 + $0x48] ss:$0 sps:$4 sm:$0x11]   ;;  %v3693_v33 = vld [vmem:[%s3456_s7 + $0x18] sm:$0xff]  }
  0x2e   : > { %3005 = vmatprep.mubr.msk.bf16.mxu0 %vm460_vm1, %v1366_v22  ;;  %v3625_v48 = vsel %vm711_vm2, %v715_v39, %v717_v42  ;;  %v721_v49 = vrot.slane %v3558_v52, 1  ;;  %v1371_v50 = vrot.slane %v3551_v47, 1  ;;  %v1373_v51 = vrot.slane %v3607_v37, 1 }
  0x2f   : > { %v3633_v53 = vsel %vm711_vm2, %v717_v42, %v719_v46  ;;  %v1375_v54 = vrot.slane %v3612_v40, 1  ;;  %v453_v57 = vsel %vm385_vm0, %v448_v43, %v452_v44  ;;  %v2787_v59 = vcombine.low %v1729_v56, %v3644_v58 }
  0x30   : > { %v3638_v55 = vsel %vm711_vm2, %v719_v46, %v721_v49  ;;  %v725_v62 = vrot.slane %v3583_v12, 1  ;;  %v1372_v63 = vsel %vm711_vm2, %v1369_v30, %v1371_v50  ;;  %v1374_v0 = vsel %vm711_vm2, %v1371_v50, %v1373_v51 }
  0x31   : > { %v727_v4 = vrot.slane %v3282_v25, 1  ;;  %v1796_v9 = vshrl.u32 %v2787_v59, 16  ;;  %v1798_v3 = vshll.u32 %v2787_v59, 16  ;;  %v1803_v11 = vshll.u32 %v3648_v60, 16  ;;  %v3683_v25 = vld [vmem:[%s3479_s17 + $0x30] sm:$0xff]  }
  0x32   : > { %v1807_v13 = vshrl.u32 %v3648_v60, 16  ;;  %v1811_v22 = vshll.u32 %v3663_v14, 16  ;;  %v1815_v23 = vshrl.u32 %v3663_v14, 16  ;;  %v1819_v24 = vshll.u32 %v3666_v15, 16 }
  0x33   : > { %v3674_v19 = vsel %vm711_vm2, %v725_v62, %v727_v4  ;;  %v1800_v20 = vrot.slane %v1798_v3, 1  ;;  %v1805_v21 = vrot.slane %v1803_v11, 1  ;;  %v1823_v26 = vshrl.u32 %v3666_v15, 16 }
  0x34   : > { %2924 = vmatmul.mubr.msk.bf16.gmra.mrb[8].mxu1 %vm460_vm1, %v437_v31  ;;  %v1813_v30 = vrot.slane %v1811_v22, 1  ;;  %v3687_v31 = vld [vmem:[%s3479_s17 + $0x38] sm:$0xff]   ;;  %v1376_v50 = vsel %vm711_vm2, %v1373_v51, %v1375_v54 }
  0x35   : > { %2927 = vmatprep.mubr.msk.bf16.mxu1 %vm460_vm1, %v445_v34  ;;  %3006 = vmatmul.mubr.msk.bf16.vlgmr.msra.gmra.mrb[0].mxu0 %vm460_vm1, %v1368_v36  ;;  %v1801_v28 = vor.u32 %v1800_v20, %v1796_v9  ;;  %v1809_v29 = vor.u32 %v1807_v13, %v1805_v21  ;;  %v1821_v34 = vrot.slane %v1819_v24, 1  ;;  %v1827_v36 = vshll.u32 %v3683_v25, 16  ;;  %v3729_v13 = vld [vmem:[%s3479_s17 + $0x48] sm:$0xff]  }
  0x36   : > { %3022 = vmatpush3.bf16.msra.mxu0 %v3542_v41  ;;  %3009 = vmatprep.mubr.msk.bf16.mxu0 %vm460_vm1, %v1370_v38  ;;  %v723_v41 = vrot.slane %v3580_v10, 1  ;;  %v1831_v38 = vshrl.u32 %v3683_v25, 16  ;;  %v1817_v44 = vor.u32 %v1815_v23, %v1813_v30  ;;  %v1835_v46 = vshll.u32 %v3687_v31, 16 }
  0x37   : > { %3039 = vmatprep.subr.bf16.mxu0 %v3615_v18  ;;  %v3698_v42 = vsel %vm385_vm0, %v1801_v28, %v1805_v21  ;;  %v3701_v43 = vsel %vm385_vm0, %v1809_v29, %v1813_v30  ;;  %v1825_v56 = vor.u32 %v1823_v26, %v1821_v34  ;;  %v3312_v21 = vld [vmem:[%s3479_s17 + $0x50] ss:$0 sps:$4 sm:$0x11]   ;;  %v1851_v24 = vshll.u32 %v3729_v13, 16  ;;  %v2006_v29 = vld [vmem:[%s3479_s17 + $0x10] sm:$0xe] }
  0x38   : > { %v3651_v61 = vsel %vm711_vm2, %v721_v49, %v723_v41  ;;  %v3671_v17 = vsel %vm711_vm2, %v723_v41, %v725_v62  ;;  %v3705_v49 = vld [vmem:[%s3479_s17 + $0x40] sm:$0xff]   ;;  %v1829_v41 = vrot.slane %v1827_v36, 1  ;;  %v3713_v62 = vsel %vm385_vm0, %v1817_v44, %v1821_v34 }
  0x39   : > { %v1847_v9 = vshrl.u32 %v3705_v49, 16  ;;  %v1855_v26 = vshrl.u32 %v3729_v13, 16  ;;  %v1859_v28 = vshll.u32 %v3312_v21, 16  ;;  %v2017_v30 = vrot.slane %v3648_v60, 1 }
  0x3a   : > { %v3720_v51 = vsel %vm385_vm0, %v1825_v56, %v1829_v41  ;;  %v1833_v4 = vor.u32 %v1831_v38, %v1829_v41  ;;  %v1853_v34 = vrot.slane %v1851_v24, 1  ;;  %v2808_v36 = vcombine.low %v2006_v29, %v3644_v58  ;;  %v3291_v29 = vld [vmem:[%s3479_s17 + $0x20] sm:$0xff]  }
  0x3b   : > { %v2019_v38 = vrot.slane %v3663_v14, 1  ;;  %v1861_v56 = vrot.slane %v1859_v28, 1  ;;  %v2021_v58 = vrot.slane %v3666_v15, 1  ;;  %v2023_v14 = vrot.slane %v3683_v25, 1 }
  0x3c   : > { %2928 = vmatmul.mubr.msk.bf16.gmra.mrb[12].mxu1 %vm460_vm1, %v453_v57  ;;  %v1839_v57 = vshrl.u32 %v3687_v31, 16  ;;  %v2016_v60 = vrot.slane %v2808_v36, 1  ;;  %v1203_v28 = vshrl.u32 %v3657_v2, 16 }
  0x3d   : > { %2933 = vmatprep.mubr.msk.bf16.mxu1 %vm460_vm1, %v3500_v7  ;;  %3010 = vmatmul.mubr.msk.bf16.gmra.mrb[4].mxu0 %vm460_vm1, %v1372_v63  ;;  %v1377_v7 = vrot.slane %v3657_v2, 1  ;;  %v1837_v63 = vrot.slane %v1835_v46, 1  ;;  %v3288_v46 = vld [vmem:[%s3479_s17 + $0x10] sm:$0xff]   ;;  %v3775_v15 = vsel %vm711_vm2, %v2019_v38, %v2021_v58 }
  0x3e   : > { %3013 = vmatprep.mubr.msk.bf16.mxu0 %vm460_vm1, %v1374_v0  ;;  %v1843_v0 = vshll.u32 %v3705_v49, 16 }
  0x3f   : > { %v1378_v59 = vsel %vm711_vm2, %v1375_v54, %v1377_v7  ;;  %v3725_v54 = vld [vmem:[%s3479_s17] sm:$0xe]  ;;  %v1841_v3 = vor.u32 %v1839_v57, %v1837_v63  ;;  %v3734_v20 = vsel %vm385_vm0, %v1833_v4, %v1837_v63  ;;  %v1857_v57 = vor.u32 %v1855_v26, %v1853_v34 }
  0x40   : > { %v1845_v11 = vrot.slane %v1843_v0, 1  ;;  %v3769_v63 = vsel %vm711_vm2, %v2016_v60, %v2017_v30  ;;  %v1187_v0 = vshrl.u32 %v3607_v37, 16  ;;  %v3295_v60 = vld [vmem:[%s3479_s17 + $0x30] sm:$0xff]  }
  0x42   : > { %v3738_v22 = vsel %vm385_vm0, %v1841_v3, %v1845_v11  ;;  %v1849_v23 = vor.u32 %v1847_v9, %v1845_v11 }
  0x44   : > { %2934 = vmatmul.mubr.msk.bf16.vlgmr.msra.gmra.mrb[0].mxu1 %vm460_vm1, %v3488_v6  ;;  %v3753_v41 = vsel %vm385_vm0, %v1849_v23, %v1853_v34  ;;  %v2029_v23 = vrot.slane %v3729_v13, 1  ;;  %v2031_v34 = vrot.slane %v3312_v21, 1  ;;  %v3301_v13 = vld [vmem:[%s3456_s7 + $0x40] sm:$0xff]  }
  0x45   : > { %2950 = vmatpush3.bf16.msra.mxu1 %v3534_v35  ;;  %2937 = vmatprep.mubr.msk.bf16.mxu1 %vm460_vm1, %v3519_v16  ;;  %v1379_v35 = vrot.slane %v3690_v32, 1  ;;  %v3298_v16 = vld [vmem:[%s3479_s17 + $0x48] sm:$0xff]  }
  0x46   : > { %3014 = vmatmul.mubr.msk.bf16.gmra.mrb[8].mxu0 %vm460_vm1, %v1376_v50  ;;  %2967 = vmatprep.subr.bf16.mxu1 %v3693_v33  ;;  %v2700_v50 = vcombine.low %v3725_v54, %v3485_v5  ;;  %v1179_v5 = vshrl.u32 %v3551_v47, 16  ;;  %v3778_v47 = vsel %vm711_vm2, %v2021_v58, %v2023_v14  ;;  %v1191_v54 = vshll.u32 %v3612_v40, 16 }
  0x47   : > { %3017 = vmatprep.mubr.msk.bf16.mxu0 %vm460_vm1, %v1378_v59  ;;  %v1380_v44 = vsel %vm711_vm2, %v1377_v7, %v1379_v35  ;;  %v3756_v59 = vsel %vm711_vm2, %v2017_v30, %v2019_v38  ;;  %v1183_v7 = vshll.u32 %v3607_v37, 16  ;;  %v2027_v37 = vrot.slane %v3705_v49, 1 }
  0x48   : > { %v1181_v25 = vor.u32 %v1179_v5, %v3576_v8  ;;  %v1199_v35 = vshll.u32 %v3657_v2, 16  ;;  %v3290_v8 = vld [vmem:[%s3479_s17 + $0x18] sm:$0xff]   ;;  %v1193_v24 = vrot.slane %v1191_v54, 1  ;;  %v1207_v49 = vshll.u32 %v3690_v32, 16 }
  0x49   : > { %v1185_v4 = vrot.slane %v1183_v7, 1  ;;  %v3811_v32 = vsel %vm711_vm2, %v2029_v23, %v2031_v34  ;;  %v712_v21 = vrot.slane %v2700_v50, 1  ;;  %v3297_v50 = vld [vmem:[%s3479_s17 + $0x40] sm:$0xff]  }
  0x4a   : > { %v1201_v30 = vrot.slane %v1199_v35, 1 }
  0x4b   : > { %v3788_v3 = vsel %vm385_vm0, %v1181_v25, %v1185_v4  ;;  %v1189_v11 = vor.u32 %v1187_v0, %v1185_v4 }
  0x4c   : > { %2938 = vmatmul.mubr.msk.bf16.gmra.mrb[4].mxu1 %vm460_vm1, %v3529_v27  ;;  %v3766_v27 = vsel %vm385_vm0, %v1857_v57, %v1861_v56  ;;  %v1205_v2 = vor.u32 %v1203_v28, %v1201_v30 }
  0x4d   : > { %2941 = vmatprep.mubr.msk.bf16.mxu1 %vm460_vm1, %v3547_v45  ;;  %v2025_v45 = vrot.slane %v3687_v31, 1  ;;  %v1195_v31 = vshrl.u32 %v3612_v40, 16  ;;  %v3800_v40 = vsel %vm711_vm2, %v2027_v37, %v2029_v23  ;;  %v3806_v36 = vsel %vm385_vm0, %v1189_v11, %v1193_v24 }
  0x4e   : > { %3018 = vmatmul.mubr.msk.bf16.gmra.mrb[12].mxu0 %vm460_vm1, %v1380_v44  ;;  %v1209_v44 = vrot.slane %v1207_v49, 1 }
  0x4f   : > { %3023 = vmatprep.mubr.msk.bf16.mxu0 %vm460_vm1, %v3288_v46  ;;  %v3782_v9 = vsel %vm711_vm2, %v2023_v14, %v2025_v45  ;;  %v3794_v26 = vsel %vm711_vm2, %v2025_v45, %v2027_v37  ;;  %v1197_v38 = vor.u32 %v1195_v31, %v1193_v24 }
  0x50   : > { %v1210_v56 = vsel %vm385_vm0, %v1205_v2, %v1209_v44 }
  0x51   : > { %v1202_v46 = vsel %vm385_vm0, %v1197_v38, %v1201_v30 }
  0x54   : > { %2942 = vmatmul.mubr.msk.bf16.gmra.mrb[8].mxu1 %vm460_vm1, %v3558_v52  ;;  %v713_v52 = vrot.slane %v3488_v6, 1 }
  0x55   : > { %2945 = vmatprep.mubr.msk.bf16.mxu1 %vm460_vm1, %v3580_v10  ;;  %v3292_v10 = vld [vmem:[%s3479_s17 + $0x28] sm:$0xff]  }
  0x56   : > { %3024 = vmatmul.mubr.msk.bf16.vlgmr.msra.gmra.mrb[0].mxu0 %vm460_vm1, %v3290_v8  ;;  %v714_v57 = vsel %vm711_vm2, %v712_v21, %v713_v52  ;;  %v716_v6 = vsel %vm711_vm2, %v713_v52, %v715_v39  ;;  %v3307_v39 = vld [vmem:[%s3479_s17 + $0x10] sm:$0xff]  }
  0x57   : > { %3040 = vmatpush3.bf16.msra.mxu0 %v3615_v18  ;;  %3027 = vmatprep.mubr.msk.bf16.mxu0 %vm460_vm1, %v3291_v29  ;;  %v3296_v18 = vld [vmem:[%s3479_s17 + $0x38] sm:$0xff]  }
  0x58   : > { %3057 = vmatprep.subr.bf16.mxu0 %v3301_v13 }
  0x5c   : > { %2946 = vmatmul.mubr.msk.bf16.gmra.mrb[12].mxu1 %vm460_vm1, %v3583_v12  ;;  %v3305_v12 = vld [vmem:[%s3479_s17 + $0x8] sm:$0xff]  }
  0x5d   : > { %2951 = vmatprep.mubr.msk.bf16.mxu1 %vm460_vm1, %v714_v57 }
  0x5e   : > { %3028 = vmatmul.mubr.msk.bf16.gmra.mrb[4].mxu0 %vm460_vm1, %v3292_v10 }
  0x5f   : > { %3031 = vmatprep.mubr.msk.bf16.mxu0 %vm460_vm1, %v3295_v60 }
  0x64   : > { %2952 = vmatmul.mubr.msk.bf16.vlgmr.msra.gmra.mrb[0].mxu1 %vm460_vm1, %v716_v6 }
  0x65   : > { %2968 = vmatpush3.bf16.msra.mxu1 %v3693_v33  ;;  %2955 = vmatprep.mubr.msk.bf16.mxu1 %vm460_vm1, %v3625_v48  ;;  %v3309_v48 = vld [vmem:[%s3479_s17 + $0x18] sm:$0xff]  }
  0x66   : > { %3032 = vmatmul.mubr.msk.bf16.gmra.mrb[8].mxu0 %vm460_vm1, %v3296_v18  ;;  %3075 = vmatprep.subr.bf16.mxu1 %v3461_v1 }
  0x67   : > { %3035 = vmatprep.mubr.msk.bf16.mxu0 %vm460_vm1, %v3297_v50 }
  0x6c   : > { %2956 = vmatmul.mubr.msk.bf16.gmra.mrb[4].mxu1 %vm460_vm1, %v3633_v53  ;;  %v3311_v53 = vld [vmem:[%s3479_s17 + $0x20] sm:$0xff]  }
  0x6d   : > { %2959 = vmatprep.mubr.msk.bf16.mxu1 %vm460_vm1, %v3638_v55  ;;  %v3313_v55 = vld [vmem:[%s3479_s17 + $0x28] sm:$0xff]  }
  0x6e   : > { %3036 = vmatmul.mubr.msk.bf16.gmra.mrb[12].mxu0 %vm460_vm1, %v3298_v16 }
  0x6f   : > { %3041 = vmatprep.mubr.msk.bf16.mxu0 %vm460_vm1, %v3698_v42 }
  0x74   : > { %2960 = vmatmul.mubr.msk.bf16.gmra.mrb[8].mxu1 %vm460_vm1, %v3651_v61  ;;  %v3316_v61 = vld [vmem:[%s3479_s17 + $0x38] sm:$0xff]  }
  0x75   : > { %2963 = vmatprep.mubr.msk.bf16.mxu1 %vm460_vm1, %v3671_v17  ;;  %v3317_v17 = vld [vmem:[%s3479_s17 + $0x40] sm:$0xff]  }
  0x76   : > { %3042 = vmatmul.mubr.msk.bf16.vlgmr.msra.gmra.mrb[0].mxu0 %vm460_vm1, %v3701_v43 }
  0x77   : > { %3058 = vmatpush3.bf16.msra.mxu0 %v3301_v13  ;;  %3045 = vmatprep.mubr.msk.bf16.mxu0 %vm460_vm1, %v3713_v62 }
  0x7c   : > { %2964 = vmatmul.mubr.msk.bf16.gmra.mrb[12].mxu1 %vm460_vm1, %v3674_v19 }
  0x7d   : > { %2969 = vmatprep.mubr.msk.bf16.mxu1 %vm460_vm1, %v3305_v12 }
  0x7e   : > { %3046 = vmatmul.mubr.msk.bf16.gmra.mrb[4].mxu0 %vm460_vm1, %v3720_v51 }
  0x7f   : > { %3049 = vmatprep.mubr.msk.bf16.mxu0 %vm460_vm1, %v3734_v20 }
  0x84   : > { %2970 = vmatmul.mubr.msk.bf16.vlgmr.msra.gmra.mrb[0].mxu1 %vm460_vm1, %v3307_v39 }
  0x85   : > { %3076 = vmatpush3.bf16.msra.mxu1 %v3461_v1  ;;  %2973 = vmatprep.mubr.msk.bf16.mxu1 %vm460_vm1, %v3309_v48  ;;  %v3315_v1 = vld [vmem:[%s3479_s17 + $0x30] sm:$0xff]  }
  0x86   : > { %3050 = vmatmul.mubr.msk.bf16.gmra.mrb[8].mxu0 %vm460_vm1, %v3738_v22 }
  0x87   : > { %3053 = vmatprep.mubr.msk.bf16.mxu0 %vm460_vm1, %v3753_v41 }
  0x8c   : > { %2974 = vmatmul.mubr.msk.bf16.gmra.mrb[4].mxu1 %vm460_vm1, %v3311_v53 }
  0x8d   : > { %2977 = vmatprep.mubr.msk.bf16.mxu1 %vm460_vm1, %v3313_v55 }
  0x8e   : > { %3054 = vmatmul.mubr.msk.bf16.gmra.mrb[12].mxu0 %vm460_vm1, %v3766_v27 }
  0x8f   : > { %3059 = vmatprep.mubr.msk.bf16.mxu0 %vm460_vm1, %v3769_v63 }
  0x94   : > { %2978 = vmatmul.mubr.msk.bf16.gmra.mrb[8].mxu1 %vm460_vm1, %v3315_v1 }
  0x95   : > { %2981 = vmatprep.mubr.msk.bf16.mxu1 %vm460_vm1, %v3316_v61 }
  0x96   : > { %3060 = vmatmul.mubr.msk.bf16.vlgmr.msra.gmra.mrb[0].mxu0 %vm460_vm1, %v3756_v59 }
  0x97   : > { %3063 = vmatprep.mubr.msk.bf16.mxu0 %vm460_vm1, %v3775_v15 }
  0x9c   : > { %2982 = vmatmul.mubr.msk.bf16.gmra.mrb[12].mxu1 %vm460_vm1, %v3317_v17 }
  0x9d   : > { %2995 = vmatprep.mubr.msk.bf16.mxu1 %vm460_vm1, %v3788_v3 }
  0x9e   : > { %3064 = vmatmul.mubr.msk.bf16.gmra.mrb[4].mxu0 %vm460_vm1, %v3778_v47 }
  0x9f   : > { %3067 = vmatprep.mubr.msk.bf16.mxu0 %vm460_vm1, %v3782_v9 }
  0xa4   : > { %2996 = vmatmul.mubr.msk.bf16.vlgmr.msra.gmra.mrb[8].mxu1 %vm460_vm1, %v3806_v36 }
  0xa5   : > { %2999 = vmatprep.mubr.msk.bf16.mxu1 %vm460_vm1, %v1202_v46 }
  0xa6   : > { %3068 = vmatmul.mubr.msk.bf16.gmra.mrb[8].mxu0 %vm460_vm1, %v3794_v26 }
  0xa7   : > { %3071 = vmatprep.mubr.msk.bf16.mxu0 %vm460_vm1, %v3800_v40 }
  0xac   : > { %3000 = vmatmul.mubr.msk.bf16.gmra.mrb[12].mxu1 %vm460_vm1, %v1210_v56  ;;  %v2819_v56 = vld [vmem:[%s4097_s2] ss:$0 sm:$0xff] (!%p2818_p9) }
  0xae   : > { %3072 = vmatmul.mubr.msk.bf16.gmra.mrb[12].mxu0 %vm460_vm1, %v3811_v32 }
 0x157   : > { %v2971_v19 = vpop.f32.mrb[0].mxu1 }
 0x158   : > { %v998_v33 = vpop.f32.mrb[1].mxu1 }
 0x159   : > { %v2972_v42 = vpop.f32.mrb[2].mxu1 }
 0x15a   : > { %v1001_v43 = vpop.f32.mrb[3].mxu1 }
 0x15f   : > { %v2975_v62 = vpop.f32.mrb[4].mxu1 }
 0x160   : > { %v1014_v51 = vpop.f32.mrb[5].mxu1 }
 0x161   : > { %v2976_v20 = vpop.f32.mrb[6].mxu1 }
 0x162   : > { %v1017_v22 = vpop.f32.mrb[7].mxu1 }
 0x169   : > { %v3061_v41 = vpop.f32.mrb[0].mxu0 }
 0x16a   : > { %v3906_v59 = vadd.f32 %v3061_v41, %v2971_v19  ;;  %v2097_v58 = vpop.f32.mrb[1].mxu0 }
 0x16b   : > { %v3908_v14 = vadd.f32 %v2097_v58, %v998_v33  ;;  %v3062_v5 = vpop.f32.mrb[2].mxu0 }
 0x16c   : > { %v3910_v7 = vadd.f32 %v3062_v5, %v2972_v42  ;;  %v2100_v27 = vpop.f32.mrb[3].mxu0  ;;  %v2189_v60 = vadd.f32 (!%p2818_p9), %v3906_v59, %v2819_v56 }
 0x16d   : > { %v3912_v63 = vadd.f32 %v2100_v27, %v1001_v43  ;;  %v2187_v10 = vadd.f32 (!%p2818_p9), %v3908_v14, %v2819_v56 }
 0x16e   : > { %v2190_v6 = vadd.f32 (!%p2818_p9), %v3910_v7, %v2819_v56  ;;  %2205 = vst.msk [vmem:[#allocation2 + $0x10] sm:$0xff] (!%p2818_p9), %vm460_vm1, %v2189_v60 }
 0x16f   : > { %v2188_v57 = vadd.f32 (!%p2818_p9), %v3912_v63, %v2819_v56  ;;  %2203 = vst.msk [vmem:[#allocation2] sm:$0xff] (!%p2818_p9), %vm460_vm1, %v2187_v10 }
 0x170   : > { %2206 = vst.msk [vmem:[#allocation2 + $0x18] sm:$0xff] (!%p2818_p9), %vm460_vm1, %v2190_v6 }
 0x171   : > { %v3065_v0 = vpop.f32.mrb[4].mxu0  ;;  %2204 = vst.msk [vmem:[#allocation2 + $0x8] sm:$0xff] (!%p2818_p9), %vm460_vm1, %v2188_v57 }
 0x172   : > { %v3914_v45 = vadd.f32 %v3065_v0, %v2975_v62  ;;  %v2113_v15 = vpop.f32.mrb[5].mxu0 }
 0x173   : > { %v3916_v47 = vadd.f32 %v2113_v15, %v1014_v51  ;;  %v3066_v25 = vpop.f32.mrb[6].mxu0 }
 0x174   : > { %v3918_v4 = vadd.f32 %v3066_v25, %v2976_v20  ;;  %v2116_v9 = vpop.f32.mrb[7].mxu0  ;;  %v2193_v16 = vadd.f32 (!%p2818_p9), %v3914_v45, %v2819_v56 }
 0x175   : > { %v3920_v54 = vadd.f32 %v2116_v9, %v1017_v22  ;;  %v2191_v18 = vadd.f32 (!%p2818_p9), %v3916_v47, %v2819_v56 }
 0x176   : > { %v2194_v12 = vadd.f32 (!%p2818_p9), %v3918_v4, %v2819_v56  ;;  %2209 = vst.msk [vmem:[#allocation2 + $0x30] sm:$0xff] (!%p2818_p9), %vm460_vm1, %v2193_v16 }
 0x177   : > { %v2997_v37 = vpop.f32.mrb[8].mxu1  ;;  %v2192_v50 = vadd.f32 (!%p2818_p9), %v3920_v54, %v2819_v56  ;;  %2207 = vst.msk [vmem:[#allocation2 + $0x20] sm:$0xff] (!%p2818_p9), %vm460_vm1, %v2191_v18 }
 0x178   : > { %v1307_v31 = vpop.f32.mrb[9].mxu1  ;;  %2210 = vst.msk [vmem:[#allocation2 + $0x38] sm:$0xff] (!%p2818_p9), %vm460_vm1, %v2194_v12 }
 0x179   : > { %v3069_v3 = vpop.f32.mrb[8].mxu0  ;;  %v2998_v11 = vpop.f32.mrb[10].mxu1  ;;  %2208 = vst.msk [vmem:[#allocation2 + $0x28] sm:$0xff] (!%p2818_p9), %vm460_vm1, %v2192_v50 }
 0x17a   : > { %v3922_v35 = vadd.f32 %v3069_v3, %v2997_v37  ;;  %v2129_v23 = vpop.f32.mrb[9].mxu0  ;;  %v1310_v8 = vpop.f32.mrb[11].mxu1 }
 0x17b   : > { %v3924_v24 = vadd.f32 %v2129_v23, %v1307_v31  ;;  %v3070_v26 = vpop.f32.mrb[10].mxu0 }
 0x17c   : > { %v3926_v28 = vadd.f32 %v3070_v26, %v2998_v11  ;;  %v2132_v49 = vpop.f32.mrb[11].mxu0  ;;  %v2197_v53 = vadd.f32 (!%p2818_p9), %v3922_v35, %v2819_v56 }
 0x17d   : > { %v3928_v29 = vadd.f32 %v2132_v49, %v1310_v8  ;;  %v2195_v39 = vadd.f32 (!%p2818_p9), %v3924_v24, %v2819_v56 }
 0x17e   : > { %v2198_v55 = vadd.f32 (!%p2818_p9), %v3926_v28, %v2819_v56  ;;  %2213 = vst.msk [vmem:[#allocation2 + $0x50] sm:$0xff] (!%p2818_p9), %vm460_vm1, %v2197_v53 }
 0x17f   : > { %v3001_v30 = vpop.f32.mrb[12].mxu1  ;;  %2179 = sbr.rel (%p2818_p9) target bundleno = 394 (0x18a), region = 36  ;;  %v2196_v48 = vadd.f32 (!%p2818_p9), %v3928_v29, %v2819_v56  ;;  %2211 = vst.msk [vmem:[#allocation2 + $0x40] sm:$0xff] (!%p2818_p9), %vm460_vm1, %v2195_v39 }
 0x180   : > { %v1323_v40 = vpop.f32.mrb[13].mxu1  ;;  %2214 = vst.msk [vmem:[#allocation2 + $0x58] sm:$0xff] (!%p2818_p9), %vm460_vm1, %v2198_v55 }
 0x181   : > { %v3073_v34 = vpop.f32.mrb[12].mxu0  ;;  %v3002_v13 = vpop.f32.mrb[14].mxu1  ;;  %2212 = vst.msk [vmem:[#allocation2 + $0x48] sm:$0xff] (!%p2818_p9), %vm460_vm1, %v2196_v48 }
 0x182   : > { %v3930_v36 = vadd.f32 %v3073_v34, %v3001_v30  ;;  %v2145_v38 = vpop.f32.mrb[13].mxu0  ;;  %v1326_v44 = vpop.f32.mrb[15].mxu1 }
 0x183   : > { %v3932_v2 = vadd.f32 %v2145_v38, %v1323_v40  ;;  %v3074_v32 = vpop.f32.mrb[14].mxu0 }
 0x184   : > { %v3934_v21 = vadd.f32 %v3074_v32, %v3002_v13  ;;  %v2148_v52 = vpop.f32.mrb[15].mxu0  ;;  %v2201_v17 = vadd.f32 (!%p2818_p9), %v3930_v36, %v2819_v56 }
 0x185   : > { %v3936_v46 = vadd.f32 %v2148_v52, %v1326_v44  ;;  %v2199_v1 = vadd.f32 (!%p2818_p9), %v3932_v2, %v2819_v56 }
 0x186   : > { %v2202_v19 = vadd.f32 %v3934_v21, %v2819_v56  ;;  %2217 = vst.msk [vmem:[#allocation2 + $0x70] sm:$0xff] %vm460_vm1, %v2201_v17 }
 0x187   : > { %v2200_v61 = vadd.f32 %v3936_v46, %v2819_v56  ;;  %2215 = vst.msk [vmem:[#allocation2 + $0x60] sm:$0xff] %vm460_vm1, %v2199_v1 }
 0x188   : > { %2218 = vst.msk [vmem:[#allocation2 + $0x78] sm:$0xff] %vm460_vm1, %v2202_v19 }
 0x189   : > { %2216 = vst.msk [vmem:[#allocation2 + $0x68] sm:$0xff] %vm460_vm1, %v2200_v61 }
 0x18a PF: > { %p2820_p10 = scmp.le.s32.totalorder %s3348_s18, 0 }
 0x18b   : > { %v2223_v33 = vld [vmem:[#allocation2] sm:$0xff] (!%p2820_p10)  ;;  %v2224_v42 = vld [vmem:[#allocation2 + $0x8] sm:$0xff] (!%p2820_p10)  ;;  %v2225_v43 = vld [vmem:[#allocation2 + $0x10] sm:$0xff] (!%p2820_p10) }
 0x18c   : > { %2222 = sbr.rel (%p2820_p10) target bundleno = 406 (0x196), region = 40  ;;  %v2239_v62 = vadd.f32 (!%p2820_p10), %v3908_v14, %v2223_v33  ;;  %v2240_v51 = vadd.f32 (!%p2820_p10), %v3912_v63, %v2224_v42  ;;  %v2241_v20 = vadd.f32 (!%p2820_p10), %v3906_v59, %v2225_v43  ;;  %v2226_v22 = vld [vmem:[#allocation2 + $0x18] sm:$0xff] (!%p2820_p10)  ;;  %v2227_v41 = vld [vmem:[#allocation2 + $0x20] sm:$0xff] (!%p2820_p10)  ;;  %v2228_v58 = vld [vmem:[#allocation2 + $0x28] sm:$0xff] (!%p2820_p10) }
 0x18d   : > { %v2242_v5 = vadd.f32 (!%p2820_p10), %v3910_v7, %v2226_v22  ;;  %v2243_v27 = vadd.f32 (!%p2820_p10), %v3916_v47, %v2227_v41  ;;  %v2244_v0 = vadd.f32 (!%p2820_p10), %v3920_v54, %v2228_v58  ;;  %v2229_v15 = vld [vmem:[#allocation2 + $0x30] sm:$0xff] (!%p2820_p10)  ;;  %v2230_v25 = vld [vmem:[#allocation2 + $0x38] sm:$0xff] (!%p2820_p10)  ;;  %v2231_v9 = vld [vmem:[#allocation2 + $0x40] sm:$0xff] (!%p2820_p10) }
 0x18e   : > { %2255 = vst.msk [vmem:[#allocation2] sm:$0xff] (!%p2820_p10), %vm460_vm1, %v2239_v62  ;;  %2256 = vst.msk [vmem:[#allocation2 + $0x8] sm:$0xff] (!%p2820_p10), %vm460_vm1, %v2240_v51  ;;  %v2245_v59 = vadd.f32 (!%p2820_p10), %v3914_v45, %v2229_v15  ;;  %v2246_v14 = vadd.f32 (!%p2820_p10), %v3918_v4, %v2230_v25  ;;  %v2247_v63 = vadd.f32 (!%p2820_p10), %v3924_v24, %v2231_v9  ;;  %v2232_v7 = vld [vmem:[#allocation2 + $0x48] sm:$0xff] (!%p2820_p10)  ;;  %v2233_v37 = vld [vmem:[#allocation2 + $0x50] sm:$0xff] (!%p2820_p10) }
 0x18f   : > { %2257 = vst.msk [vmem:[#allocation2 + $0x10] sm:$0xff] (!%p2820_p10), %vm460_vm1, %v2241_v20  ;;  %v2234_v47 = vld [vmem:[#allocation2 + $0x58] sm:$0xff] (!%p2820_p10)  ;;  %2258 = vst.msk [vmem:[#allocation2 + $0x18] sm:$0xff] (!%p2820_p10), %vm460_vm1, %v2242_v5  ;;  %v2248_v54 = vadd.f32 (!%p2820_p10), %v3928_v29, %v2232_v7  ;;  %v2249_v31 = vadd.f32 (!%p2820_p10), %v3922_v35, %v2233_v37  ;;  %v2235_v45 = vld [vmem:[#allocation2 + $0x60] sm:$0xff] (!%p2820_p10) }
 0x190   : > { %2259 = vst.msk [vmem:[#allocation2 + $0x20] sm:$0xff] (!%p2820_p10), %vm460_vm1, %v2243_v27  ;;  %2260 = vst.msk [vmem:[#allocation2 + $0x28] sm:$0xff] (!%p2820_p10), %vm460_vm1, %v2244_v0  ;;  %v2250_v3 = vadd.f32 (!%p2820_p10), %v3926_v28, %v2234_v47  ;;  %v2236_v11 = vld [vmem:[#allocation2 + $0x68] sm:$0xff] (!%p2820_p10)  ;;  %v2237_v4 = vld [vmem:[#allocation2 + $0x70] sm:$0xff] (!%p2820_p10)  ;;  %v2251_v23 = vadd.f32 (!%p2820_p10), %v3932_v2, %v2235_v45 }
 0x191   : > { %2261 = vst.msk [vmem:[#allocation2 + $0x30] sm:$0xff] (!%p2820_p10), %vm460_vm1, %v2245_v59  ;;  %2262 = vst.msk [vmem:[#allocation2 + $0x38] sm:$0xff] (!%p2820_p10), %vm460_vm1, %v2246_v14  ;;  %v2252_v8 = vadd.f32 (!%p2820_p10), %v3936_v46, %v2236_v11  ;;  %v2253_v24 = vadd.f32 (!%p2820_p10), %v3930_v36, %v2237_v4  ;;  %v2238_v26 = vld [vmem:[#allocation2 + $0x78] sm:$0xff] (!%p2820_p10) }
 0x192   : > { %2263 = vst.msk [vmem:[#allocation2 + $0x40] sm:$0xff] (!%p2820_p10), %vm460_vm1, %v2247_v63  ;;  %2264 = vst.msk [vmem:[#allocation2 + $0x48] sm:$0xff] (!%p2820_p10), %vm460_vm1, %v2248_v54  ;;  %v2254_v35 = vadd.f32 (!%p2820_p10), %v3934_v21, %v2238_v26 }
 0x193   : > { %2265 = vst.msk [vmem:[#allocation2 + $0x50] sm:$0xff] %vm460_vm1, %v2249_v31  ;;  %2266 = vst.msk [vmem:[#allocation2 + $0x58] sm:$0xff] %vm460_vm1, %v2250_v3 }
 0x194   : > { %2267 = vst.msk [vmem:[#allocation2 + $0x60] sm:$0xff] %vm460_vm1, %v2251_v23  ;;  %2268 = vst.msk [vmem:[#allocation2 + $0x68] sm:$0xff] %vm460_vm1, %v2252_v8 }
 0x195   : > { %2269 = vst.msk [vmem:[#allocation2 + $0x70] sm:$0xff] %vm460_vm1, %v2253_v24  ;;  %2270 = vst.msk [vmem:[#allocation2 + $0x78] sm:$0xff] %vm460_vm1, %v2254_v35 }
 0x196 PF: > { %p2821_p11 = scmp.ne.s32.totalorder %s3348_s18, 2 }
 0x197   : > { %vm2434_vm3 = vcmask (!%p2821_p11), 122880  }
 0x198   : > { %2274 = sbr.rel (%p2821_p11) target bundleno = 450 (0x1c2), region = 44  ;;  %v2275_v28 = vld [vmem:[#allocation2] sm:$0xff] (!%p2821_p11) }
 0x199   : > { %v2294_v49 = vld [vmem:[#allocation2 + $0x10] sm:$0xff] (!%p2821_p11)  ;;  %2276 = vst.msk [vmem:[%s3493_s8] sm:$0xff] (!%p2821_p11), %vm460_vm1, %v2275_v28  ;;  %v2277_v30 = vsel (!%p2821_p11), %vm460_vm1, %v2275_v28, 0.0  ;;  %v2285_v40 = vmul.f32 (!%p2821_p11), %v2275_v28, %v2275_v28 }
 0x19a   : > { %v2314_v29 = vld [vmem:[#allocation2 + $0x20] sm:$0xff] (!%p2821_p11)  ;;  %2822 = vst.msk [vmem:[%s3493_s8 + $0x8] sm:$0xff] (!%p2821_p11), %vm460_vm1, %v2294_v49  ;;  %v2297_v34 = vsel (!%p2821_p11), %vm460_vm1, %v2294_v49, 0.0  ;;  %v2305_v13 = vmul.f32 (!%p2821_p11), %v2294_v49, %v2294_v49  ;;  %v2278_v2 = vrot.slane (!%p2821_p11), %v2277_v30, 4 }
 0x19b   : > { %2823 = vst.msk [vmem:[%s3493_s8 + $0x10] sm:$0xff] (!%p2821_p11), %vm460_vm1, %v2314_v29  ;;  %v2334_v36 = vld [vmem:[#allocation2 + $0x30] sm:$0xff] (!%p2821_p11)  ;;  %v2298_v32 = vrot.slane (!%p2821_p11), %v2297_v34, 4  ;;  %v2317_v21 = vsel (!%p2821_p11), %vm460_vm1, %v2314_v29, 0.0  ;;  %v2325_v52 = vmul.f32 (!%p2821_p11), %v2314_v29, %v2314_v29  ;;  %v4029_v46 = vld [vmem:[#allocation2 + $0x60] sm:$0xff] (!%p2821_p11)  ;;  %v2286_v10 = vsel (!%p2821_p11), %vm460_vm1, %v2285_v40, 0.0 }
 0x19c   : > { %v4016_v38 = vld [vmem:[#allocation2 + $0x40] sm:$0xff] (!%p2821_p11)  ;;  %2824 = vst.msk [vmem:[%s3493_s8 + $0x18] sm:$0xff] (!%p2821_p11), %vm460_vm1, %v2334_v36  ;;  %v4031_v56 = vld [vmem:[#allocation2 + $0x70] sm:$0xff] (!%p2821_p11)  ;;  %v2306_v57 = vsel (!%p2821_p11), %vm460_vm1, %v2305_v13, 0.0  ;;  %v2318_v60 = vrot.slane (!%p2821_p11), %v2317_v21, 4  ;;  %v2337_v6 = vsel (!%p2821_p11), %vm460_vm1, %v2334_v36, 0.0  ;;  %v2279_v18 = vadd.f32 (!%p2821_p11), %v2278_v2, %v2277_v30 }
 0x19d   : > { %v4018_v44 = vld [vmem:[#allocation2 + $0x50] sm:$0xff] (!%p2821_p11)  ;;  %2825 = vst.msk [vmem:[%s3493_s8 + $0x20] sm:$0xff] (!%p2821_p11), %vm460_vm1, %v4016_v38  ;;  %2827 = vst.msk [vmem:[%s3493_s8 + $0x30] sm:$0xff] (!%p2821_p11), %vm460_vm1, %v4029_v46  ;;  %v2287_v50 = vrot.slane (!%p2821_p11), %v2286_v10, 4  ;;  %v2299_v16 = vadd.f32 (!%p2821_p11), %v2298_v32, %v2297_v34  ;;  %v2307_v12 = vrot.slane (!%p2821_p11), %v2306_v57, 4  ;;  %v2326_v48 = vsel (!%p2821_p11), %vm460_vm1, %v2325_v52, 0.0 }
 0x19e   : > { %2826 = vst.msk [vmem:[%s3493_s8 + $0x28] sm:$0xff] (!%p2821_p11), %vm460_vm1, %v4018_v44  ;;  %2828 = vst.msk [vmem:[%s3493_s8 + $0x38] sm:$0xff] (!%p2821_p11), %vm460_vm1, %v4031_v56  ;;  %v2319_v39 = vadd.f32 (!%p2821_p11), %v2318_v60, %v2317_v21  ;;  %v2338_v53 = vrot.slane (!%p2821_p11), %v2337_v6, 4  ;;  %v2345_v55 = vmul.f32 (!%p2821_p11), %v2334_v36, %v2334_v36  ;;  %v2280_v1 = vrot.slane (!%p2821_p11), %v2279_v18, 2 }
 0x19f   : > { %v2288_v61 = vadd.f32 %v2287_v50, %v2286_v10  ;;  %v2300_v17 = vrot.slane %v2299_v16, 2  ;;  %v2308_v19 = vadd.f32 %v2307_v12, %v2306_v57  ;;  %v2327_v42 = vrot.slane %v2326_v48, 4 }
 0x1a0   : > { %v2320_v33 = vrot.slane %v2319_v39, 2  ;;  %v2339_v43 = vadd.f32 %v2338_v53, %v2337_v6  ;;  %v2346_v62 = vsel %vm460_vm1, %v2345_v55, 0.0  ;;  %v2281_v51 = vadd.f32 %v2280_v1, %v2279_v18 }
 0x1a1   : > { %v2289_v20 = vrot.slane %v2288_v61, 2  ;;  %v2301_v22 = vadd.f32 %v2300_v17, %v2299_v16  ;;  %v2309_v41 = vrot.slane %v2308_v19, 2  ;;  %v2328_v5 = vadd.f32 %v2327_v42, %v2326_v48 }
 0x1a2   : > { %v2321_v58 = vadd.f32 %v2320_v33, %v2319_v39  ;;  %v2340_v27 = vrot.slane %v2339_v43, 2  ;;  %v2347_v0 = vrot.slane %v2346_v62, 4  ;;  %v2282_v15 = vrot.slane %v2281_v51, 1 }
 0x1a3   : > { %v2290_v25 = vadd.f32 %v2289_v20, %v2288_v61  ;;  %v2302_v9 = vrot.slane %v2301_v22, 1  ;;  %v2310_v59 = vadd.f32 %v2309_v41, %v2308_v19  ;;  %v2329_v63 = vrot.slane %v2328_v5, 2 }
 0x1a4   : > { %v2322_v14 = vrot.slane %v2321_v58, 1  ;;  %v2341_v7 = vadd.f32 %v2340_v27, %v2339_v43  ;;  %v2348_v37 = vadd.f32 %v2347_v0, %v2346_v62  ;;  %v2283_v47 = vadd.f32 %v2282_v15, %v2281_v51 }
 0x1a5   : > { %v2291_v54 = vrot.slane %v2290_v25, 1  ;;  %v2303_v31 = vadd.f32 %v2302_v9, %v2301_v22  ;;  %v2311_v3 = vrot.slane %v2310_v59, 1  ;;  %v2330_v11 = vadd.f32 %v2329_v63, %v2328_v5 }
 0x1a6   : > { %v2323_v45 = vadd.f32 %v2322_v14, %v2321_v58  ;;  %v2342_v4 = vrot.slane %v2341_v7, 1  ;;  %v2349_v23 = vrot.slane %v2348_v37, 2  ;;  %v2357_v35 = vsel %vm460_vm1, %v4016_v38, 0.0 }
 0x1a7   : > { %v2292_v8 = vadd.f32 %v2291_v54, %v2290_v25  ;;  %v2304_v24 = vadd.f32 %v2303_v31, %v2283_v47  ;;  %v2312_v26 = vadd.f32 %v2311_v3, %v2310_v59  ;;  %v2331_v28 = vrot.slane %v2330_v11, 1 }
 0x1a8   : > { %v2343_v49 = vadd.f32 %v2342_v4, %v2341_v7  ;;  %v2350_v29 = vadd.f32 %v2349_v23, %v2348_v37  ;;  %v2358_v30 = vrot.slane %v2357_v35, 4  ;;  %v2365_v13 = vmul.f32 %v4016_v38, %v4016_v38 }
 0x1a9   : > { %v2313_v40 = vadd.f32 %v2312_v26, %v2292_v8  ;;  %v2324_v34 = vadd.f32 %v2323_v45, %v2304_v24  ;;  %v2377_v36 = vsel %vm460_vm1, %v4018_v44, 0.0  ;;  %v2332_v2 = vadd.f32 %v2331_v28, %v2330_v11 }
 0x1aa   : > { %v2351_v32 = vrot.slane %v2350_v29, 1  ;;  %v2359_v21 = vadd.f32 %v2358_v30, %v2357_v35  ;;  %v2378_v52 = vrot.slane %v2377_v36, 4  ;;  %v2366_v10 = vsel %vm460_vm1, %v2365_v13, 0.0 }
 0x1ab   : > { %v2385_v57 = vmul.f32 %v4018_v44, %v4018_v44  ;;  %v2397_v60 = vsel %vm460_vm1, %v4029_v46, 0.0  ;;  %v2405_v6 = vmul.f32 %v4029_v46, %v4029_v46  ;;  %v2367_v50 = vrot.slane %v2366_v10, 4 }
 0x1ac   : > { %v2352_v18 = vadd.f32 %v2351_v32, %v2350_v29  ;;  %v2360_v38 = vrot.slane %v2359_v21, 2  ;;  %v2379_v16 = vadd.f32 %v2378_v52, %v2377_v36  ;;  %v2398_v39 = vrot.slane %v2397_v60, 4 }
 0x1ad   : > { %v2386_v12 = vsel %vm460_vm1, %v2385_v57, 0.0  ;;  %v2406_v48 = vsel %vm460_vm1, %v2405_v6, 0.0  ;;  %v2417_v53 = vsel %vm460_vm1, %v4031_v56, 0.0  ;;  %v2368_v44 = vadd.f32 %v2367_v50, %v2366_v10 }
 0x1ae   : > { %v2361_v55 = vadd.f32 %v2360_v38, %v2359_v21  ;;  %v2380_v1 = vrot.slane %v2379_v16, 2  ;;  %v2387_v61 = vrot.slane %v2386_v12, 4  ;;  %v2399_v17 = vadd.f32 %v2398_v39, %v2397_v60 }
 0x1af   : > { %v2407_v19 = vrot.slane %v2406_v48, 4  ;;  %v2418_v33 = vrot.slane %v2417_v53, 4  ;;  %v2425_v46 = vmul.f32 %v4031_v56, %v4031_v56  ;;  %v2369_v43 = vrot.slane %v2368_v44, 2 }
 0x1b0   : > { %v2362_v42 = vrot.slane %v2361_v55, 1  ;;  %v2381_v62 = vadd.f32 %v2380_v1, %v2379_v16  ;;  %v2388_v51 = vadd.f32 %v2387_v61, %v2386_v12  ;;  %v2400_v20 = vrot.slane %v2399_v17, 2 }
 0x1b1   : > { %v2408_v22 = vadd.f32 %v2407_v19, %v2406_v48  ;;  %v2419_v41 = vadd.f32 %v2418_v33, %v2417_v53  ;;  %v2426_v58 = vsel %vm460_vm1, %v2425_v46, 0.0  ;;  %v2370_v27 = vadd.f32 %v2369_v43, %v2368_v44 }
 0x1b2   : > { %v2363_v5 = vadd.f32 %v2362_v42, %v2361_v55  ;;  %v2382_v0 = vrot.slane %v2381_v62, 1  ;;  %v2389_v15 = vrot.slane %v2388_v51, 2  ;;  %v2401_v25 = vadd.f32 %v2400_v20, %v2399_v17 }
 0x1b3   : > { %v2409_v9 = vrot.slane %v2408_v22, 2  ;;  %v2420_v59 = vrot.slane %v2419_v41, 2  ;;  %v2427_v14 = vrot.slane %v2426_v58, 4  ;;  %v2371_v63 = vrot.slane %v2370_v27, 1 }
 0x1b4   : > { %v2390_v7 = vadd.f32 %v2389_v15, %v2388_v51  ;;  %v2344_v56 = vadd.f32 %v2343_v49, %v2324_v34  ;;  %v2383_v37 = vadd.f32 %v2382_v0, %v2381_v62  ;;  %v2402_v54 = vrot.slane %v2401_v25, 1 }
 0x1b5   : > { %v2428_v47 = vadd.f32 %v2427_v14, %v2426_v58  ;;  %v2421_v31 = vadd.f32 %v2420_v59, %v2419_v41  ;;  %v2333_v3 = vadd.f32 %v2332_v2, %v2313_v40  ;;  %v2372_v11 = vadd.f32 %v2371_v63, %v2370_v27 }
 0x1b6   : > { %v2364_v45 = vadd.f32 %v2363_v5, %v2344_v56  ;;  %v2391_v4 = vrot.slane %v2390_v7, 1  ;;  %v2410_v23 = vadd.f32 %v2409_v9, %v2408_v22  ;;  %v2403_v8 = vadd.f32 %v2402_v54, %v2401_v25 }
 0x1b7   : > { %v2422_v24 = vrot.slane %v2421_v31, 1  ;;  %v2353_v26 = vadd.f32 %v2352_v18, %v2333_v3  ;;  %v2429_v35 = vrot.slane %v2428_v47, 2 }
 0x1b8   : > { %v2384_v28 = vadd.f32 %v2383_v37, %v2364_v45  ;;  %v2392_v29 = vadd.f32 %v2391_v4, %v2390_v7  ;;  %v2411_v30 = vrot.slane %v2410_v23, 1 }
 0x1b9   : > { %v2423_v13 = vadd.f32 %v2422_v24, %v2421_v31  ;;  %v2373_v49 = vadd.f32 %v2372_v11, %v2353_v26  ;;  %v2430_v34 = vadd.f32 %v2429_v35, %v2428_v47 }
 0x1ba   : > { %v2404_v36 = vadd.f32 %v2403_v8, %v2384_v28  ;;  %v2412_v32 = vadd.f32 %v2411_v30, %v2410_v23 }
 0x1bb   : > { %v2393_v40 = vadd.f32 %v2392_v29, %v2373_v49  ;;  %v2431_v2 = vrot.slane %v2430_v34, 1 }
 0x1bc   : > { %v2424_v21 = vadd.f32 %v2423_v13, %v2404_v36 }
 0x1bd   : > { %v2413_v52 = vadd.f32 %v2412_v32, %v2393_v40  ;;  %v2432_v10 = vadd.f32 %v2431_v2, %v2430_v34 }
 0x1be   : > { %2435 = vst.msk [vmem:[%s304_s12] sm:$0x1] %vm2434_vm3, %v2424_v21 }
 0x1bf   : > { %v2433_v57 = vadd.f32 %v2432_v10, %v2413_v52 }
 0x1c1   : > { %2436 = vst.msk [vmem:[%s311_s13] sm:$0x1] %vm2434_vm3, %v2433_v57 }
 0x1c2 PF: > { %s16_s24 = sadd.s32 1, %s3372_s24   ;;  %s4101_s18 = smov %s3360_s21 }
 0x1c3   : > { %p13_p12 = scmp.ge.s32.totalorder %s16_s24, 50   ;;  %s4102_s19 = smov %s3364_s22 }
 0x1c4   : > { %s4103_s20 = smov %s3368_s23  ;;  %s4104_s21 = smov %s4108_s25 }
 0x1c5   : > { %s4105_s22 = smov %s4112_s26  ;;  %s4106_s23 = smov %s4116_s27 }
 0x1c6   :  { %15 = sbr.rel (!%p13_p12) target bundleno = 4 (0x4), region = 114 }

// kernel: deconv3d_block_forward.5
= control target key start
LH: loop header
LB: loop body
LE: loop exit
PB: predicated region body
PF: predicated region fallthrough
CT: control target
= control target key end

     0   :  { %s12061_s12 = smov 0   ;;  %s12063_s13 = smov 0   ;;  %s15167_s0 = inlined_call_operand.vmem [shape: f32[2,8,8,8,16], index: 0, kind: input, shape index: {}]   ;;  %s15168_s1 = inlined_call_operand.vmem [shape: f32[1,16], index: 1, kind: input, shape index: {}]   ;;  %s15169_s2 = inlined_call_operand.vmem [shape: f32[1,16], index: 2, kind: input, shape index: {}]   ;;  %s15170_s3 = inlined_call_operand.vmem [shape: f32[2,16,8,8,8], index: 3, kind: output, shape index: {}]  }
   0x1   :  { %s12065_s14 = smov 0  }
   0x2 LB: > { %s25_s15 = sadd.s32 1, %s12034_s13  ;;  %p11081_p0 = scmp.ge.s32.totalorder %s12038_s14, 1  ;;  %s12038_s14 = sphi %s12065_s14, %s13_s14   ;;  %s12034_s13 = sphi %s12063_s13, %s15172_s13   ;;  %s12030_s12 = sphi %s12061_s12, %s15171_s12  }
   0x3   : > { %p27_p1 = scmp.ge.s32.totalorder %s25_s15, 2  ;;  %p159_p2 = scmp.lt.s32.totalorder %s12038_s14, 3 }
   0x5   : > { %s15174_s15 = smov (%p27_p1, %s25_s15), 0  ;;  %p160_p3 = pnand %p11081_p0, %p159_p2 }
   0x6   : > { %p193_p4 = scmp.lt.s32.totalorder (!%p160_p3), %s12030_s12, 1  ;;  %v12085_v0 = vld [vmem:[%s15168_s1] ss:$0 sm:$0xff] (!%p160_p3)  ;;  %vm631_vm0 = vcmask (!%p160_p3), 57344  }
   0x7   : > { %163 = sbr.rel (%p160_p3) target bundleno = 700 (0x2bc), region = 32  ;;  %v12095_v1 = vld [vmem:[%s15169_s2] ss:$0 sm:$0xff] (!%p160_p3) }
   0xe   : > { %s15176_s12 = smov (!%p193_p4, %s12030_s12), 1 }
   0xf   : > { %s11986_s16 = sshll.u32 %s15176_s12, 9  ;;  %s11987_s24 = sshll.u32 %s15176_s12, 10 }
  0x10   : > { %s12090_s21 = scalar_lea.vmem %s15167_s0, %s11986_s16  ;;  %s12271_s27 = scalar_lea.vmem %s15170_s3, %s11987_s24 }
  0x11   : > { %v215_v2 = vld [vmem:[%s12090_s21 + $0x10] sm:$0xff]  ;;  %v213_v3 = vld [vmem:[%s12090_s21] sm:$0xff]  ;;  %v216_v4 = vld [vmem:[%s12090_s21 + $0x18] sm:$0xff] }
  0x12   : > { %v286_v5 = vmul.f32 %v12085_v0, %v215_v2  ;;  %v284_v6 = vmul.f32 %v12085_v0, %v213_v3  ;;  %v287_v7 = vmul.f32 %v12085_v0, %v216_v4  ;;  %v214_v8 = vld [vmem:[%s12090_s21 + $0x8] sm:$0xff]  ;;  %v217_v11 = vld [vmem:[%s12090_s21 + $0x20] sm:$0xff]  ;;  %v220_v20 = vld [vmem:[%s12090_s21 + $0x38] sm:$0xff] }
  0x13   : > { %v285_v9 = vmul.f32 %v12085_v0, %v214_v8  ;;  %v218_v10 = vld [vmem:[%s12090_s21 + $0x28] sm:$0xff]  ;;  %v288_v19 = vmul.f32 %v12085_v0, %v217_v11  ;;  %v219_v21 = vld [vmem:[%s12090_s21 + $0x30] sm:$0xff]  ;;  %v291_v26 = vmul.f32 %v12085_v0, %v220_v20  ;;  %v221_v29 = vld [vmem:[%s12090_s21 + $0x40] sm:$0xff] }
  0x14   : > { %v357_v12 = vadd.f32 %v12095_v1, %v286_v5  ;;  %v355_v13 = vadd.f32 %v12095_v1, %v284_v6  ;;  %v358_v14 = vadd.f32 %v12095_v1, %v287_v7  ;;  %v289_v18 = vmul.f32 %v12085_v0, %v218_v10  ;;  %v222_v28 = vld [vmem:[%s12090_s21 + $0x48] sm:$0xff]  ;;  %v224_v36 = vld [vmem:[%s12090_s21 + $0x58] sm:$0xff]  ;;  %v223_v37 = vld [vmem:[%s12090_s21 + $0x50] sm:$0xff] }
  0x15   : > { %v356_v15 = vadd.f32 %v12095_v1, %v285_v9  ;;  %v359_v25 = vadd.f32 %v12095_v1, %v288_v19  ;;  %v290_v27 = vmul.f32 %v12085_v0, %v219_v21  ;;  %v362_v32 = vadd.f32 %v12095_v1, %v291_v26  ;;  %v226_v44 = vld [vmem:[%s12090_s21 + $0x68] sm:$0xff]  ;;  %v225_v45 = vld [vmem:[%s12090_s21 + $0x60] sm:$0xff]  ;;  %v228_v52 = vld [vmem:[%s12090_s21 + $0x78] sm:$0xff] }
  0x16   : > { %v421_v16 = vmax.f32 %v357_v12, 0.0  ;;  %v419_v17 = vmax.f32 %v355_v13, 0.0  ;;  %v422_v22 = vmax.f32 %v358_v14, 0.0  ;;  %v360_v24 = vadd.f32 %v12095_v1, %v289_v18  ;;  %v227_v53 = vld [vmem:[%s12090_s21 + $0x70] sm:$0xff]  ;;  %v230_v60 = vld [vmem:[%s12090_s21 + $0x88] sm:$0xff]  ;;  %v229_v61 = vld [vmem:[%s12090_s21 + $0x80] sm:$0xff] }
  0x17   : > { %v420_v23 = vmax.f32 %v356_v15, 0.0  ;;  %v423_v31 = vmax.f32 %v359_v25, 0.0  ;;  %v361_v33 = vadd.f32 %v12095_v1, %v290_v27  ;;  %v293_v34 = vmul.f32 %v12085_v0, %v222_v28  ;;  %v232_v6 = vld [vmem:[%s12090_s21 + $0x98] sm:$0xff]  ;;  %v231_v7 = vld [vmem:[%s12090_s21 + $0x90] sm:$0xff]  ;;  %v234_v14 = vld [vmem:[%s12090_s21 + $0xa8] sm:$0xff] }
  0x18   : > { %812 = vxpose.xlu1.b32.start.end [1/1] (short) (narrow) %v421_v16, 16  ;;  %483 = vxpose.xlu0.b32.start.end [1/1] (short) (narrow) %v419_v17, 16  ;;  %v424_v30 = vmax.f32 %v360_v24, 0.0  ;;  %v292_v35 = vmul.f32 %v12085_v0, %v221_v29  ;;  %v426_v38 = vmax.f32 %v362_v32, 0.0  ;;  %v295_v42 = vmul.f32 %v12085_v0, %v224_v36  ;;  %v233_v15 = vld [vmem:[%s12090_s21 + $0xa0] sm:$0xff] }
  0x19   : > { %v425_v39 = vmax.f32 %v361_v33, 0.0  ;;  %v364_v40 = vadd.f32 %v12095_v1, %v293_v34  ;;  %v294_v43 = vmul.f32 %v12085_v0, %v223_v37  ;;  %v297_v50 = vmul.f32 %v12085_v0, %v226_v44 }
  0x1a   : > { %v363_v41 = vadd.f32 %v12095_v1, %v292_v35  ;;  %v366_v48 = vadd.f32 %v12095_v1, %v295_v42  ;;  %v296_v51 = vmul.f32 %v12085_v0, %v225_v45  ;;  %v299_v58 = vmul.f32 %v12085_v0, %v228_v52 }
  0x1b   : > { %v428_v46 = vmax.f32 %v364_v40, 0.0  ;;  %v365_v49 = vadd.f32 %v12095_v1, %v294_v43  ;;  %v368_v56 = vadd.f32 %v12095_v1, %v297_v50  ;;  %v298_v59 = vmul.f32 %v12085_v0, %v227_v53 }
  0x1c   : > { %v427_v47 = vmax.f32 %v363_v41, 0.0  ;;  %v430_v54 = vmax.f32 %v366_v48, 0.0  ;;  %v367_v57 = vadd.f32 %v12095_v1, %v296_v51  ;;  %v370_v2 = vadd.f32 %v12095_v1, %v299_v58 }
  0x1d   : > { %976 = vxpose.xlu1.b32.start.end [1/1] (short) (narrow) %v422_v22, 16  ;;  %648 = vxpose.xlu0.b32.start.end [1/1] (short) (narrow) %v420_v23, 16  ;;  %v429_v55 = vmax.f32 %v365_v49, 0.0  ;;  %v432_v62 = vmax.f32 %v368_v56, 0.0  ;;  %v369_v3 = vadd.f32 %v12095_v1, %v298_v59  ;;  %v301_v4 = vmul.f32 %v12085_v0, %v230_v60  ;;  %v236_v22 = vld [vmem:[%s12090_s21 + $0xb8] sm:$0xff]  ;;  %v235_v23 = vld [vmem:[%s12090_s21 + $0xb0] sm:$0xff] }
  0x1e   : > { %v431_v63 = vmax.f32 %v367_v57, 0.0  ;;  %v300_v5 = vmul.f32 %v12085_v0, %v229_v61  ;;  %v434_v8 = vmax.f32 %v370_v2, 0.0  ;;  %v303_v12 = vmul.f32 %v12085_v0, %v232_v6 }
  0x1f   : > { %v433_v9 = vmax.f32 %v369_v3, 0.0  ;;  %v372_v10 = vadd.f32 %v12095_v1, %v301_v4  ;;  %v302_v13 = vmul.f32 %v12085_v0, %v231_v7  ;;  %v305_v20 = vmul.f32 %v12085_v0, %v234_v14 }
  0x20   : > { %v371_v11 = vadd.f32 %v12095_v1, %v300_v5  ;;  %v374_v18 = vadd.f32 %v12095_v1, %v303_v12  ;;  %v304_v21 = vmul.f32 %v12085_v0, %v233_v15  ;;  %v307_v28 = vmul.f32 %v12085_v0, %v236_v22 }
  0x21   : > { %v436_v16 = vmax.f32 %v372_v10, 0.0  ;;  %v373_v19 = vadd.f32 %v12095_v1, %v302_v13  ;;  %v376_v26 = vadd.f32 %v12095_v1, %v305_v20  ;;  %v306_v29 = vmul.f32 %v12085_v0, %v235_v23 }
  0x22   : > { %1304 = vxpose.xlu1.b32.start.end [1/1] (short) (narrow) %v424_v30, 16  ;;  %1140 = vxpose.xlu0.b32.start.end [1/1] (short) (narrow) %v423_v31, 16  ;;  %v435_v17 = vmax.f32 %v371_v11, 0.0  ;;  %v438_v24 = vmax.f32 %v374_v18, 0.0  ;;  %v375_v27 = vadd.f32 %v12095_v1, %v304_v21  ;;  %v238_v30 = vld [vmem:[%s12090_s21 + $0xc8] sm:$0xff]  ;;  %v237_v31 = vld [vmem:[%s12090_s21 + $0xc0] sm:$0xff]  ;;  %v378_v34 = vadd.f32 %v12095_v1, %v307_v28 }
  0x23   : > { %v437_v25 = vmax.f32 %v373_v19, 0.0  ;;  %v440_v32 = vmax.f32 %v376_v26, 0.0  ;;  %v377_v35 = vadd.f32 %v12095_v1, %v306_v29  ;;  %v309_v36 = vmul.f32 %v12085_v0, %v238_v30 }
  0x24   : > { %v439_v33 = vmax.f32 %v375_v27, 0.0  ;;  %v308_v37 = vmul.f32 %v12085_v0, %v237_v31  ;;  %v442_v40 = vmax.f32 %v378_v34, 0.0 }
  0x25   : > { %v441_v41 = vmax.f32 %v377_v35, 0.0  ;;  %v380_v42 = vadd.f32 %v12095_v1, %v309_v36 }
  0x26   : > { %v379_v43 = vadd.f32 %v12095_v1, %v308_v37 }
  0x27   : > { %1632 = vxpose.xlu1.b32.start.end [1/1] (short) (narrow) %v426_v38, 16  ;;  %1468 = vxpose.xlu0.b32.start.end [1/1] (short) (narrow) %v425_v39, 16  ;;  %v240_v38 = vld [vmem:[%s12090_s21 + $0xd8] sm:$0xff]  ;;  %v239_v39 = vld [vmem:[%s12090_s21 + $0xd0] sm:$0xff]  ;;  %v444_v48 = vmax.f32 %v380_v42, 0.0 }
  0x28   : > { %v311_v44 = vmul.f32 %v12085_v0, %v240_v38  ;;  %v310_v45 = vmul.f32 %v12085_v0, %v239_v39  ;;  %v443_v49 = vmax.f32 %v379_v43, 0.0 }
  0x2a   : > { %v382_v50 = vadd.f32 %v12095_v1, %v311_v44  ;;  %v381_v51 = vadd.f32 %v12095_v1, %v310_v45 }
  0x2c   : > { %1961 = vxpose.xlu1.b32.start.end [1/1] (short) (narrow) %v428_v46, 16  ;;  %1796 = vxpose.xlu0.b32.start.end [1/1] (short) (narrow) %v427_v47, 16  ;;  %v242_v46 = vld [vmem:[%s12090_s21 + $0xe8] sm:$0xff]  ;;  %v241_v47 = vld [vmem:[%s12090_s21 + $0xe0] sm:$0xff]  ;;  %v446_v56 = vmax.f32 %v382_v50, 0.0  ;;  %v445_v57 = vmax.f32 %v381_v51, 0.0 }
  0x2d   : > { %v313_v52 = vmul.f32 %v12085_v0, %v242_v46  ;;  %v312_v53 = vmul.f32 %v12085_v0, %v241_v47 }
  0x2f   : > { %v384_v58 = vadd.f32 %v12095_v1, %v313_v52  ;;  %v383_v59 = vadd.f32 %v12095_v1, %v312_v53 }
  0x31   : > { %2289 = vxpose.xlu1.b32.start.end [1/1] (short) (narrow) %v430_v54, 16  ;;  %2125 = vxpose.xlu0.b32.start.end [1/1] (short) (narrow) %v429_v55, 16  ;;  %v244_v54 = vld [vmem:[%s12090_s21 + $0xf8] sm:$0xff]  ;;  %v243_v55 = vld [vmem:[%s12090_s21 + $0xf0] sm:$0xff]  ;;  %v448_v2 = vmax.f32 %v384_v58, 0.0  ;;  %v447_v3 = vmax.f32 %v383_v59, 0.0 }
  0x32   : > { %v315_v60 = vmul.f32 %v12085_v0, %v244_v54  ;;  %v314_v61 = vmul.f32 %v12085_v0, %v243_v55 }
  0x34   : > { %v386_v4 = vadd.f32 %v12095_v1, %v315_v60  ;;  %v385_v5 = vadd.f32 %v12095_v1, %v314_v61 }
  0x36   : > { %2617 = vxpose.xlu1.b32.start.end [1/1] (short) (narrow) %v432_v62, 16  ;;  %2453 = vxpose.xlu0.b32.start.end [1/1] (short) (narrow) %v431_v63, 16  ;;  %v246_v62 = vld [vmem:[%s12090_s21 + $0x108] sm:$0xff]  ;;  %v245_v63 = vld [vmem:[%s12090_s21 + $0x100] sm:$0xff]  ;;  %v450_v10 = vmax.f32 %v386_v4, 0.0  ;;  %v449_v11 = vmax.f32 %v385_v5, 0.0 }
  0x37   : > { %v317_v6 = vmul.f32 %v12085_v0, %v246_v62  ;;  %v316_v7 = vmul.f32 %v12085_v0, %v245_v63 }
  0x39   : > { %v388_v12 = vadd.f32 %v12095_v1, %v317_v6  ;;  %v387_v13 = vadd.f32 %v12095_v1, %v316_v7 }
  0x3b   : > { %2945 = vxpose.xlu1.b32.start.end [1/1] (short) (narrow) %v434_v8, 16  ;;  %2781 = vxpose.xlu0.b32.start.end [1/1] (short) (narrow) %v433_v9, 16  ;;  %v248_v8 = vld [vmem:[%s12090_s21 + $0x118] sm:$0xff]  ;;  %v247_v9 = vld [vmem:[%s12090_s21 + $0x110] sm:$0xff]  ;;  %v452_v18 = vmax.f32 %v388_v12, 0.0  ;;  %v451_v19 = vmax.f32 %v387_v13, 0.0 }
  0x3c   : > { %v319_v14 = vmul.f32 %v12085_v0, %v248_v8  ;;  %v318_v15 = vmul.f32 %v12085_v0, %v247_v9  ;;  %v262_v8 = vld [vmem:[%s12090_s21 + $0x188] sm:$0xff]  ;;  %v261_v9 = vld [vmem:[%s12090_s21 + $0x180] sm:$0xff]  ;;  %v12040_v12 = vmov 1966171168  }
  0x3d   : > { %v519_v13 = vunpack.c.l.s4 %v12040_v12 }
  0x3e   : > { %v390_v20 = vadd.f32 %v12095_v1, %v319_v14  ;;  %v389_v21 = vadd.f32 %v12095_v1, %v318_v15  ;;  %v521_v14 = vlaneseq  ;;  %v264_v15 = vld [vmem:[%s12090_s21 + $0x198] sm:$0xff] }
  0x40   : > { %3274 = vxpose.xlu1.b32.start.end [1/1] (short) (narrow) %v436_v16, 16  ;;  %3109 = vxpose.xlu0.b32.start.end [1/1] (short) (narrow) %v435_v17, 16  ;;  %v250_v16 = vld [vmem:[%s12090_s21 + $0x128] sm:$0xff]  ;;  %v249_v17 = vld [vmem:[%s12090_s21 + $0x120] sm:$0xff]  ;;  %v454_v26 = vmax.f32 %v390_v20, 0.0  ;;  %v453_v27 = vmax.f32 %v389_v21, 0.0  ;;  %v335_v21 = vmul.f32 %v12085_v0, %v264_v15 }
  0x41   : > { %v321_v22 = vmul.f32 %v12085_v0, %v250_v16  ;;  %v320_v23 = vmul.f32 %v12085_v0, %v249_v17  ;;  %v263_v16 = vld [vmem:[%s12090_s21 + $0x190] sm:$0xff]  ;;  %v522_v20 = vshrl.u32 %v521_v14, 7 }
  0x43   : > { %v392_v28 = vadd.f32 %v12095_v1, %v321_v22  ;;  %v391_v29 = vadd.f32 %v12095_v1, %v320_v23  ;;  %v334_v22 = vmul.f32 %v12085_v0, %v263_v16  ;;  %v266_v23 = vld [vmem:[%s12090_s21 + $0x1a8] sm:$0xff] }
  0x45   : > { %3602 = vxpose.xlu1.b32.start.end [1/1] (short) (narrow) %v438_v24, 16  ;;  %3438 = vxpose.xlu0.b32.start.end [1/1] (short) (narrow) %v437_v25, 16  ;;  %v252_v24 = vld [vmem:[%s12090_s21 + $0x138] sm:$0xff]  ;;  %v251_v25 = vld [vmem:[%s12090_s21 + $0x130] sm:$0xff]  ;;  %v456_v34 = vmax.f32 %v392_v28, 0.0  ;;  %v455_v35 = vmax.f32 %v391_v29, 0.0 }
  0x46   : > { %v323_v30 = vmul.f32 %v12085_v0, %v252_v24  ;;  %v322_v31 = vmul.f32 %v12085_v0, %v251_v25  ;;  %v265_v24 = vld [vmem:[%s12090_s21 + $0x1a0] sm:$0xff] }
  0x47   : > { %v336_v28 = vmul.f32 %v12085_v0, %v265_v24 }
  0x48   : > { %v394_v36 = vadd.f32 %v12095_v1, %v323_v30  ;;  %v393_v37 = vadd.f32 %v12095_v1, %v322_v31  ;;  %v406_v30 = vadd.f32 %v12095_v1, %v335_v21  ;;  %v405_v31 = vadd.f32 %v12095_v1, %v334_v22 }
  0x4a   : > { %3930 = vxpose.xlu1.b32.start.end [1/1] (short) (narrow) %v440_v32, 16  ;;  %3766 = vxpose.xlu0.b32.start.end [1/1] (short) (narrow) %v439_v33, 16  ;;  %v254_v32 = vld [vmem:[%s12090_s21 + $0x148] sm:$0xff]  ;;  %v253_v33 = vld [vmem:[%s12090_s21 + $0x140] sm:$0xff]  ;;  %v458_v42 = vmax.f32 %v394_v36, 0.0  ;;  %v457_v43 = vmax.f32 %v393_v37, 0.0 }
  0x4b   : > { %v325_v38 = vmul.f32 %v12085_v0, %v254_v32  ;;  %v324_v39 = vmul.f32 %v12085_v0, %v253_v33 }
  0x4d   : > { %v396_v44 = vadd.f32 %v12095_v1, %v325_v38  ;;  %v395_v45 = vadd.f32 %v12095_v1, %v324_v39  ;;  %v470_v39 = vmax.f32 %v406_v30, 0.0 }
  0x4f   : > { %4258 = vxpose.xlu1.b32.start.end [1/1] (short) (narrow) %v442_v40, 16  ;;  %4094 = vxpose.xlu0.b32.start.end [1/1] (short) (narrow) %v441_v41, 16  ;;  %v256_v40 = vld [vmem:[%s12090_s21 + $0x158] sm:$0xff]  ;;  %v255_v41 = vld [vmem:[%s12090_s21 + $0x150] sm:$0xff]  ;;  %v460_v50 = vmax.f32 %v396_v44, 0.0  ;;  %v459_v51 = vmax.f32 %v395_v45, 0.0 }
  0x50   : > { %v327_v46 = vmul.f32 %v12085_v0, %v256_v40  ;;  %v326_v47 = vmul.f32 %v12085_v0, %v255_v41  ;;  %v469_v40 = vmax.f32 %v405_v31, 0.0 }
  0x52   : > { %v398_v52 = vadd.f32 %v12095_v1, %v327_v46  ;;  %v397_v53 = vadd.f32 %v12095_v1, %v326_v47 }
  0x54   : > { %4587 = vxpose.xlu1.b32.start.end [1/1] (short) (narrow) %v444_v48, 16  ;;  %4422 = vxpose.xlu0.b32.start.end [1/1] (short) (narrow) %v443_v49, 16  ;;  %v258_v48 = vld [vmem:[%s12090_s21 + $0x168] sm:$0xff]  ;;  %v257_v49 = vld [vmem:[%s12090_s21 + $0x160] sm:$0xff]  ;;  %v462_v58 = vmax.f32 %v398_v52, 0.0  ;;  %v461_v59 = vmax.f32 %v397_v53, 0.0 }
  0x55   : > { %v329_v54 = vmul.f32 %v12085_v0, %v258_v48  ;;  %v328_v55 = vmul.f32 %v12085_v0, %v257_v49 }
  0x57   : > { %v400_v60 = vadd.f32 %v12095_v1, %v329_v54  ;;  %v399_v61 = vadd.f32 %v12095_v1, %v328_v55 }
  0x59   : > { %4915 = vxpose.xlu1.b32.start.end [1/1] (short) (narrow) %v446_v56, 16  ;;  %4751 = vxpose.xlu0.b32.start.end [1/1] (short) (narrow) %v445_v57, 16  ;;  %v260_v56 = vld [vmem:[%s12090_s21 + $0x178] sm:$0xff]  ;;  %v259_v57 = vld [vmem:[%s12090_s21 + $0x170] sm:$0xff] }
  0x5a   : > { %v331_v62 = vmul.f32 %v12085_v0, %v260_v56  ;;  %v330_v63 = vmul.f32 %v12085_v0, %v259_v57 }
  0x5c   : > { %v402_v4 = vadd.f32 %v12095_v1, %v331_v62  ;;  %v401_v5 = vadd.f32 %v12095_v1, %v330_v63 }
  0x5e   : > { %5243 = vxpose.xlu1.b32.start.end [1/1] (short) (narrow) %v448_v2, 16  ;;  %5079 = vxpose.xlu0.b32.start.end [1/1] (short) (narrow) %v447_v3, 16  ;;  %v464_v2 = vmax.f32 %v400_v60, 0.0  ;;  %v463_v3 = vmax.f32 %v399_v61, 0.0  ;;  %v466_v6 = vmax.f32 %v402_v4, 0.0  ;;  %v465_v7 = vmax.f32 %v401_v5, 0.0 }
  0x63   : > { %5571 = vxpose.xlu1.b32.start.end [1/1] (short) (narrow) %v450_v10, 16  ;;  %5407 = vxpose.xlu0.b32.start.end [1/1] (short) (narrow) %v449_v11, 16  ;;  %v333_v10 = vmul.f32 %v12085_v0, %v262_v8  ;;  %v332_v11 = vmul.f32 %v12085_v0, %v261_v9 }
  0x65   : > { %v404_v17 = vadd.f32 %v12095_v1, %v333_v10 }
  0x67   : > { %v468_v25 = vmax.f32 %v404_v17, 0.0 }
  0x68   : > { %5900 = vxpose.xlu1.b32.start.end [1/1] (short) (narrow) %v452_v18, 16  ;;  %5735 = vxpose.xlu0.b32.start.end [1/1] (short) (narrow) %v451_v19, 16  ;;  %v403_v18 = vadd.f32 %v12095_v1, %v332_v11  ;;  %v520_v19 = vunpack.c.0.s8 %v519_v13 }
  0x6a   : > { %v12255_v29 = vsub.s32 %v520_v19, %v522_v20 }
  0x6d   : > { %6228 = vxpose.xlu1.b32.start.end [1/1] (short) (narrow) %v454_v26, 16  ;;  %6064 = vxpose.xlu0.b32.start.end [1/1] (short) (narrow) %v453_v27, 16  ;;  %v467_v26 = vmax.f32 %v403_v18, 0.0  ;;  %v337_v27 = vmul.f32 %v12085_v0, %v266_v23 }
  0x72   : > { %6556 = vxpose.xlu1.b32.start.end [1/1] (short) (narrow) %v456_v34, 16  ;;  %6392 = vxpose.xlu0.b32.start.end [1/1] (short) (narrow) %v455_v35, 16  ;;  %v12261_v34 = vadd.f32 %v12095_v1, %v337_v27  ;;  %v12264_v35 = vadd.f32 %v12095_v1, %v336_v28 }
  0x74   : > { %v472_v48 = vmax.f32 %v12261_v34, 0.0  ;;  %v471_v49 = vmax.f32 %v12264_v35, 0.0 }
  0x77   : > { %6884 = vxpose.xlu1.b32.start.end [1/1] (short) (narrow) %v458_v42, 16  ;;  %6720 = vxpose.xlu0.b32.start.end [1/1] (short) (narrow) %v457_v43, 16 }
  0x7c   : > { %7213 = vxpose.xlu1.b32.start.end [1/1] (short) (narrow) %v460_v50, 16  ;;  %7048 = vxpose.xlu0.b32.start.end [1/1] (short) (narrow) %v459_v51, 16 }
  0x81   : > { %7541 = vxpose.xlu1.b32.start.end [1/1] (short) (narrow) %v462_v58, 16  ;;  %7377 = vxpose.xlu0.b32.start.end [1/1] (short) (narrow) %v461_v59, 16 }
  0x86   : > { %7869 = vxpose.xlu1.b32.start.end [1/1] (short) (narrow) %v464_v2, 16  ;;  %7705 = vxpose.xlu0.b32.start.end [1/1] (short) (narrow) %v463_v3, 16 }
  0x8b   : > { %8197 = vxpose.xlu1.b32.start.end [1/1] (short) (narrow) %v466_v6, 16  ;;  %8033 = vxpose.xlu0.b32.start.end [1/1] (short) (narrow) %v465_v7, 16 }
  0x98   : > { %v828_v32 = vpop.trf.xlu1  ;;  %v499_v33 = vpop.trf.xlu0  ;;  %8526 = vxpose.xlu1.b32.start.end [1/1] (short) (narrow) %v468_v25, 16  ;;  %8361 = vxpose.xlu0.b32.start.end [1/1] (short) (narrow) %v467_v26, 16 }
  0x99   : > { %v846_v36 = vcombine.high %v828_v32, %v828_v32  ;;  %v853_v0 = vrot.slane %v828_v32, %v12255_v29  ;;  %v517_v37 = vcombine.high %v499_v33, %v499_v33  ;;  %v524_v38 = vrot.slane %v499_v33, %v12255_v29 }
  0x9b   : > { %v860_v41 = vrot.slane %v846_v36, %v12255_v29  ;;  %v861_v42 = vcombine.high %v853_v0, %v853_v0  ;;  %v869_v1 = vrot.slane %v853_v0, %v12255_v29  ;;  %v531_v43 = vrot.slane %v517_v37, %v12255_v29 }
  0x9c   : > { %v532_v44 = vcombine.high %v524_v38, %v524_v38  ;;  %v540_v45 = vrot.slane %v524_v38, %v12255_v29  ;;  %v829_v46 = vpop.trf.xlu1  ;;  %v500_v47 = vpop.trf.xlu0 }
  0x9d   : > { %v862_v50 = vcombine.high %v860_v41, %v860_v41  ;;  %v876_v51 = vrot.slane %v860_v41, %v12255_v29  ;;  %v883_v52 = vrot.slane %v861_v42, %v12255_v29  ;;  %v891_v53 = vcombine.high %v869_v1, %v869_v1  ;;  %960 = vst.msk [vmem:[%s12271_s27 + $0x2] sm:$0x1] %vm631_vm0, %v869_v1 }
  0x9e   : > { %v533_v54 = vcombine.high %v531_v43, %v531_v43  ;;  %v547_v55 = vrot.slane %v531_v43, %v12255_v29  ;;  %v554_v56 = vrot.slane %v532_v44, %v12255_v29  ;;  %v562_v57 = vcombine.high %v540_v45, %v540_v45  ;;  %632 = vst.msk [vmem:[%s12271_s27] sm:$0x1] %vm631_vm0, %v540_v45 }
  0x9f   : > { %v890_v58 = vrot.slane %v862_v50, %v12255_v29  ;;  %v892_v59 = vcombine.high %v876_v51, %v876_v51  ;;  %v893_v60 = vcombine.high %v883_v52, %v883_v52  ;;  %961 = vst.msk [vmem:[%s12271_s27 + $0x42] sm:$0x1] %vm631_vm0, %v883_v52  ;;  %962 = vst.msk [vmem:[%s12271_s27 + $0x82] sm:$0x1] %vm631_vm0, %v891_v53 }
  0xa0   : > { %964 = vst.msk [vmem:[%s12271_s27 + $0x102] sm:$0x1] %vm631_vm0, %v876_v51  ;;  %v895_v61 = vcombine.high %v829_v46, %v829_v46  ;;  %v561_v62 = vrot.slane %v533_v54, %v12255_v29  ;;  %v563_v63 = vcombine.high %v547_v55, %v547_v55  ;;  %v564_v2 = vcombine.high %v554_v56, %v554_v56  ;;  %v992_v4 = vpop.trf.xlu1  ;;  %v12302_v5 = vpop.trf.xlu0 }
  0xa1   : > { %633 = vst.msk [vmem:[%s12271_s27 + $0x40] sm:$0x1] %vm631_vm0, %v554_v56  ;;  %634 = vst.msk [vmem:[%s12271_s27 + $0x80] sm:$0x1] %vm631_vm0, %v562_v57  ;;  %v902_v3 = vrot.slane %v829_v46, %v12255_v29  ;;  %8854 = vxpose.xlu1.b32.start.end [1/1] (short) (narrow) %v470_v39, 16  ;;  %v894_v6 = vcombine.high %v890_v58, %v890_v58  ;;  %v566_v8 = vcombine.high %v500_v47, %v500_v47 }
  0xa2   : > { %636 = vst.msk [vmem:[%s12271_s27 + $0x100] sm:$0x1] %vm631_vm0, %v547_v55  ;;  %963 = vst.msk [vmem:[%s12271_s27 + $0xc2] sm:$0x1] %vm631_vm0, %v893_v60  ;;  %v909_v7 = vrot.slane %v895_v61, %v12255_v29  ;;  %v573_v9 = vrot.slane %v500_v47, %v12255_v29  ;;  %8690 = vxpose.xlu0.b32.start.end [1/1] (short) (narrow) %v469_v40, 16  ;;  %v565_v10 = vcombine.high %v561_v62, %v561_v62 }
  0xa3   : > { %965 = vst.msk [vmem:[%s12271_s27 + $0x142] sm:$0x1] %vm631_vm0, %v890_v58  ;;  %966 = vst.msk [vmem:[%s12271_s27 + $0x182] sm:$0x1] %vm631_vm0, %v892_v59  ;;  %v910_v11 = vcombine.high %v902_v3, %v902_v3  ;;  %v918_v12 = vrot.slane %v902_v3, %v12255_v29  ;;  %v1010_v13 = vcombine.high %v992_v4, %v992_v4 }
  0xa4   : > { %635 = vst.msk [vmem:[%s12271_s27 + $0xc0] sm:$0x1] %vm631_vm0, %v564_v2  ;;  %637 = vst.msk [vmem:[%s12271_s27 + $0x140] sm:$0x1] %vm631_vm0, %v561_v62  ;;  %v911_v14 = vcombine.high %v909_v7, %v909_v7  ;;  %v925_v15 = vrot.slane %v909_v7, %v12255_v29  ;;  %v580_v16 = vrot.slane %v566_v8, %v12255_v29  ;;  %v993_v22 = vpop.trf.xlu1  ;;  %v12330_v23 = vpop.trf.xlu0 }
  0xa5   : > { %638 = vst.msk [vmem:[%s12271_s27 + $0x180] sm:$0x1] %vm631_vm0, %v563_v63  ;;  %967 = vst.msk [vmem:[%s12271_s27 + $0x1c2] sm:$0x1] %vm631_vm0, %v894_v6  ;;  %v581_v17 = vcombine.high %v573_v9, %v573_v9  ;;  %v932_v18 = vrot.slane %v910_v11, %v12255_v29  ;;  %v940_v19 = vcombine.high %v918_v12, %v918_v12 }
  0xa6   : > { %639 = vst.msk [vmem:[%s12271_s27 + $0x1c0] sm:$0x1] %vm631_vm0, %v565_v10  ;;  %968 = vst.msk [vmem:[%s12271_s27 + $0x202] sm:$0x1] %vm631_vm0, %v918_v12  ;;  %v589_v20 = vrot.slane %v573_v9, %v12255_v29  ;;  %v1017_v21 = vrot.slane %v992_v4, %v12255_v29  ;;  %v939_v24 = vrot.slane %v911_v14, %v12255_v29 }
  0xa7   : > { %v941_v25 = vcombine.high %v925_v15, %v925_v15  ;;  %972 = vst.msk [vmem:[%s12271_s27 + $0x302] sm:$0x1] %vm631_vm0, %v925_v15  ;;  %v582_v26 = vcombine.high %v580_v16, %v580_v16  ;;  %v596_v27 = vrot.slane %v580_v16, %v12255_v29  ;;  %v942_v28 = vcombine.high %v932_v18, %v932_v18 }
  0xa8   : > { %969 = vst.msk [vmem:[%s12271_s27 + $0x242] sm:$0x1] %vm631_vm0, %v932_v18  ;;  %970 = vst.msk [vmem:[%s12271_s27 + $0x282] sm:$0x1] %vm631_vm0, %v940_v19  ;;  %v603_v30 = vrot.slane %v581_v17, %v12255_v29  ;;  %v611_v31 = vcombine.high %v589_v20, %v589_v20  ;;  %v1024_v32 = vrot.slane %v1010_v13, %v12255_v29  ;;  %v12359_v42 = vpop.trf.xlu1  ;;  %9182 = vxpose.xlu1.b32.start.end [1/1] (short) (narrow) %v472_v48, 16  ;;  %v12374_v34 = vpop.trf.xlu0 }
  0xa9   : > { %640 = vst.msk [vmem:[%s12271_s27 + $0x200] sm:$0x1] %vm631_vm0, %v589_v20  ;;  %v943_v33 = vcombine.high %v939_v24, %v939_v24  ;;  %973 = vst.msk [vmem:[%s12271_s27 + $0x342] sm:$0x1] %vm631_vm0, %v939_v24  ;;  %v610_v36 = vrot.slane %v582_v26, %v12255_v29  ;;  %v612_v0 = vcombine.high %v596_v27, %v596_v27  ;;  %9018 = vxpose.xlu0.b32.start.end [1/1] (short) (narrow) %v471_v49, 16 }
  0xaa   : > { %974 = vst.msk [vmem:[%s12271_s27 + $0x382] sm:$0x1] %vm631_vm0, %v941_v25  ;;  %644 = vst.msk [vmem:[%s12271_s27 + $0x300] sm:$0x1] %vm631_vm0, %v596_v27  ;;  %v1025_v37 = vcombine.high %v1017_v21, %v1017_v21  ;;  %v613_v38 = vcombine.high %v603_v30, %v603_v30  ;;  %v1026_v39 = vcombine.high %v1024_v32, %v1024_v32 }
  0xab   : > { %971 = vst.msk [vmem:[%s12271_s27 + $0x2c2] sm:$0x1] %vm631_vm0, %v942_v28  ;;  %641 = vst.msk [vmem:[%s12271_s27 + $0x240] sm:$0x1] %vm631_vm0, %v603_v30  ;;  %v1033_v40 = vrot.slane %v1017_v21, %v12255_v29  ;;  %v1040_v41 = vrot.slane %v1024_v32, %v12255_v29  ;;  %v614_v1 = vcombine.high %v610_v36, %v610_v36 }
  0xac   : > { %642 = vst.msk [vmem:[%s12271_s27 + $0x280] sm:$0x1] %vm631_vm0, %v611_v31  ;;  %975 = vst.msk [vmem:[%s12271_s27 + $0x3c2] sm:$0x1] %vm631_vm0, %v943_v33  ;;  %v1047_v43 = vrot.slane %v1025_v37, %v12255_v29  ;;  %v682_v44 = vcombine.high %v12302_v5, %v12302_v5  ;;  %v689_v45 = vrot.slane %v12302_v5, %v12255_v29  ;;  %v1321_v27 = vpop.trf.xlu1 }
  0xad   : > { %645 = vst.msk [vmem:[%s12271_s27 + $0x340] sm:$0x1] %vm631_vm0, %v610_v36  ;;  %646 = vst.msk [vmem:[%s12271_s27 + $0x380] sm:$0x1] %vm631_vm0, %v612_v0  ;;  %v1054_v46 = vrot.slane %v1026_v39, %v12255_v29  ;;  %v1055_v47 = vcombine.high %v1033_v40, %v1033_v40  ;;  %v1056_v48 = vcombine.high %v1040_v41, %v1040_v41 }
  0xae   : > { %643 = vst.msk [vmem:[%s12271_s27 + $0x2c0] sm:$0x1] %vm631_vm0, %v613_v38  ;;  %1124 = vst.msk [vmem:[%s12271_s27 + $0x3] sm:$0x1] %vm631_vm0, %v1033_v40  ;;  %v1059_v50 = vcombine.high %v993_v22, %v993_v22  ;;  %v1057_v51 = vcombine.high %v1047_v43, %v1047_v43  ;;  %v696_v35 = vrot.slane %v682_v44, %v12255_v29 }
  0xaf   : > { %1128 = vst.msk [vmem:[%s12271_s27 + $0x103] sm:$0x1] %vm631_vm0, %v1040_v41  ;;  %647 = vst.msk [vmem:[%s12271_s27 + $0x3c0] sm:$0x1] %vm631_vm0, %v614_v1  ;;  %v697_v49 = vcombine.high %v689_v45, %v689_v45  ;;  %v705_v52 = vrot.slane %v689_v45, %v12255_v29  ;;  %v1058_v53 = vcombine.high %v1054_v46, %v1054_v46 }
  0xb0   : > { %1125 = vst.msk [vmem:[%s12271_s27 + $0x43] sm:$0x1] %vm631_vm0, %v1047_v43  ;;  %1126 = vst.msk [vmem:[%s12271_s27 + $0x83] sm:$0x1] %vm631_vm0, %v1055_v47  ;;  %v1066_v54 = vrot.slane %v993_v22, %v12255_v29  ;;  %v1073_v55 = vrot.slane %v1059_v50, %v12255_v29  ;;  %v731_v56 = vcombine.high %v12330_v23, %v12330_v23 }
  0xb1   : > { %1129 = vst.msk [vmem:[%s12271_s27 + $0x143] sm:$0x1] %vm631_vm0, %v1054_v46  ;;  %1130 = vst.msk [vmem:[%s12271_s27 + $0x183] sm:$0x1] %vm631_vm0, %v1056_v48  ;;  %v698_v57 = vcombine.high %v696_v35, %v696_v35  ;;  %v712_v58 = vrot.slane %v696_v35, %v12255_v29  ;;  %v719_v59 = vrot.slane %v697_v49, %v12255_v29 }
  0xb2   : > { %1127 = vst.msk [vmem:[%s12271_s27 + $0xc3] sm:$0x1] %vm631_vm0, %v1057_v51  ;;  %v727_v60 = vcombine.high %v705_v52, %v705_v52  ;;  %796 = vst.msk [vmem:[%s12271_s27 + $0x1] sm:$0x1] %vm631_vm0, %v705_v52  ;;  %v1074_v61 = vcombine.high %v1066_v54, %v1066_v54  ;;  %v1075_v62 = vcombine.high %v1073_v55, %v1073_v55  ;;  %v1648_v52 = vpop.trf.xlu1 }
  0xb3   : > { %1131 = vst.msk [vmem:[%s12271_s27 + $0x1c3] sm:$0x1] %vm631_vm0, %v1058_v53  ;;  %v1082_v63 = vrot.slane %v1066_v54, %v12255_v29  ;;  %v1089_v2 = vrot.slane %v1073_v55, %v12255_v29  ;;  %v726_v3 = vrot.slane %v698_v57, %v12255_v29  ;;  %v728_v4 = vcombine.high %v712_v58, %v712_v58 }
  0xb4   : > { %v729_v5 = vcombine.high %v719_v59, %v719_v59  ;;  %797 = vst.msk [vmem:[%s12271_s27 + $0x41] sm:$0x1] %vm631_vm0, %v719_v59  ;;  %798 = vst.msk [vmem:[%s12271_s27 + $0x81] sm:$0x1] %vm631_vm0, %v727_v60  ;;  %v738_v6 = vrot.slane %v12330_v23, %v12255_v29  ;;  %v1096_v7 = vrot.slane %v1074_v61, %v12255_v29 }
  0xb5   : > { %800 = vst.msk [vmem:[%s12271_s27 + $0x101] sm:$0x1] %vm631_vm0, %v712_v58  ;;  %v1103_v8 = vrot.slane %v1075_v62, %v12255_v29  ;;  %v1104_v9 = vcombine.high %v1082_v63, %v1082_v63  ;;  %v1105_v10 = vcombine.high %v1089_v2, %v1089_v2  ;;  %1132 = vst.msk [vmem:[%s12271_s27 + $0x203] sm:$0x1] %vm631_vm0, %v1082_v63 }
  0xb6   : > { %1136 = vst.msk [vmem:[%s12271_s27 + $0x303] sm:$0x1] %vm631_vm0, %v1089_v2  ;;  %v730_v11 = vcombine.high %v726_v3, %v726_v3  ;;  %799 = vst.msk [vmem:[%s12271_s27 + $0xc1] sm:$0x1] %vm631_vm0, %v729_v5  ;;  %v745_v12 = vrot.slane %v731_v56, %v12255_v29  ;;  %v746_v13 = vcombine.high %v738_v6, %v738_v6 }
  0xb7   : > { %801 = vst.msk [vmem:[%s12271_s27 + $0x141] sm:$0x1] %vm631_vm0, %v726_v3  ;;  %802 = vst.msk [vmem:[%s12271_s27 + $0x181] sm:$0x1] %vm631_vm0, %v728_v4  ;;  %v754_v14 = vrot.slane %v738_v6, %v12255_v29  ;;  %v1106_v15 = vcombine.high %v1096_v7, %v1096_v7  ;;  %v1107_v16 = vcombine.high %v1103_v8, %v1103_v8 }
  0xb8   : > { %1133 = vst.msk [vmem:[%s12271_s27 + $0x243] sm:$0x1] %vm631_vm0, %v1096_v7  ;;  %1134 = vst.msk [vmem:[%s12271_s27 + $0x283] sm:$0x1] %vm631_vm0, %v1104_v9  ;;  %v1338_v17 = vcombine.high %v12359_v42, %v12359_v42  ;;  %v1345_v18 = vrot.slane %v12359_v42, %v12255_v29  ;;  %v747_v19 = vcombine.high %v745_v12, %v745_v12  ;;  %v1157_v42 = vpop.trf.xlu0 }
  0xb9   : > { %1137 = vst.msk [vmem:[%s12271_s27 + $0x343] sm:$0x1] %vm631_vm0, %v1103_v8  ;;  %1138 = vst.msk [vmem:[%s12271_s27 + $0x383] sm:$0x1] %vm631_vm0, %v1105_v10  ;;  %v761_v20 = vrot.slane %v745_v12, %v12255_v29  ;;  %v768_v21 = vrot.slane %v746_v13, %v12255_v29  ;;  %v776_v22 = vcombine.high %v754_v14, %v754_v14 }
  0xba   : > { %803 = vst.msk [vmem:[%s12271_s27 + $0x1c1] sm:$0x1] %vm631_vm0, %v730_v11  ;;  %804 = vst.msk [vmem:[%s12271_s27 + $0x201] sm:$0x1] %vm631_vm0, %v754_v14  ;;  %v1352_v23 = vrot.slane %v1338_v17, %v12255_v29  ;;  %v1353_v24 = vcombine.high %v1345_v18, %v1345_v18  ;;  %v1361_v25 = vrot.slane %v1345_v18, %v12255_v29 }
  0xbb   : > { %1135 = vst.msk [vmem:[%s12271_s27 + $0x2c3] sm:$0x1] %vm631_vm0, %v1106_v15  ;;  %1139 = vst.msk [vmem:[%s12271_s27 + $0x3c3] sm:$0x1] %vm631_vm0, %v1107_v16  ;;  %v1174_v26 = vcombine.high %v12374_v34, %v12374_v34  ;;  %v775_v28 = vrot.slane %v747_v19, %v12255_v29  ;;  %v777_v30 = vcombine.high %v761_v20, %v761_v20  ;;  %v1649_v16 = vpop.trf.xlu1 }
  0xbc   : > { %v778_v31 = vcombine.high %v768_v21, %v768_v21  ;;  %805 = vst.msk [vmem:[%s12271_s27 + $0x241] sm:$0x1] %vm631_vm0, %v768_v21  ;;  %806 = vst.msk [vmem:[%s12271_s27 + $0x281] sm:$0x1] %vm631_vm0, %v776_v22  ;;  %v1181_v32 = vrot.slane %v12374_v34, %v12255_v29  ;;  %v1354_v33 = vcombine.high %v1352_v23, %v1352_v23  ;;  %v1484_v7 = vpop.trf.xlu0 }
  0xbd   : > { %808 = vst.msk [vmem:[%s12271_s27 + $0x301] sm:$0x1] %vm631_vm0, %v761_v20  ;;  %v1368_v36 = vrot.slane %v1352_v23, %v12255_v29  ;;  %v1375_v0 = vrot.slane %v1353_v24, %v12255_v29  ;;  %v1383_v37 = vcombine.high %v1361_v25, %v1361_v25  ;;  %1452 = vst.msk [vmem:[%s12271_s27 + $0x5] sm:$0x1] %vm631_vm0, %v1361_v25 }
  0xbe   : > { %v779_v38 = vcombine.high %v775_v28, %v775_v28  ;;  %807 = vst.msk [vmem:[%s12271_s27 + $0x2c1] sm:$0x1] %vm631_vm0, %v778_v31  ;;  %809 = vst.msk [vmem:[%s12271_s27 + $0x341] sm:$0x1] %vm631_vm0, %v775_v28  ;;  %v1188_v39 = vrot.slane %v1174_v26, %v12255_v29  ;;  %v1189_v40 = vcombine.high %v1181_v32, %v1181_v32 }
  0xbf   : > { %810 = vst.msk [vmem:[%s12271_s27 + $0x381] sm:$0x1] %vm631_vm0, %v777_v30  ;;  %v1197_v41 = vrot.slane %v1181_v32, %v12255_v29  ;;  %v1382_v1 = vrot.slane %v1354_v33, %v12255_v29  ;;  %v1384_v43 = vcombine.high %v1368_v36, %v1368_v36  ;;  %v1385_v44 = vcombine.high %v1375_v0, %v1375_v0 }
  0xc0   : > { %1453 = vst.msk [vmem:[%s12271_s27 + $0x45] sm:$0x1] %vm631_vm0, %v1375_v0  ;;  %1454 = vst.msk [vmem:[%s12271_s27 + $0x85] sm:$0x1] %vm631_vm0, %v1383_v37  ;;  %v1387_v45 = vcombine.high %v1321_v27, %v1321_v27  ;;  %v1190_v34 = vcombine.high %v1188_v39, %v1188_v39  ;;  %v1204_v46 = vrot.slane %v1188_v39, %v12255_v29  ;;  %v1485_v39 = vpop.trf.xlu0 }
  0xc1   : > { %1456 = vst.msk [vmem:[%s12271_s27 + $0x105] sm:$0x1] %vm631_vm0, %v1368_v36  ;;  %811 = vst.msk [vmem:[%s12271_s27 + $0x3c1] sm:$0x1] %vm631_vm0, %v779_v38  ;;  %v1211_v47 = vrot.slane %v1189_v40, %v12255_v29  ;;  %v1219_v48 = vcombine.high %v1197_v41, %v1197_v41  ;;  %v1386_v50 = vcombine.high %v1382_v1, %v1382_v1 }
  0xc2   : > { %1288 = vst.msk [vmem:[%s12271_s27 + $0x4] sm:$0x1] %vm631_vm0, %v1197_v41  ;;  %1455 = vst.msk [vmem:[%s12271_s27 + $0xc5] sm:$0x1] %vm631_vm0, %v1385_v44  ;;  %v1394_v51 = vrot.slane %v1321_v27, %v12255_v29  ;;  %v1401_v35 = vrot.slane %v1387_v45, %v12255_v29  ;;  %v1223_v49 = vcombine.high %v1157_v42, %v1157_v42 }
  0xc3   : > { %1457 = vst.msk [vmem:[%s12271_s27 + $0x145] sm:$0x1] %vm631_vm0, %v1382_v1  ;;  %1458 = vst.msk [vmem:[%s12271_s27 + $0x185] sm:$0x1] %vm631_vm0, %v1384_v43  ;;  %v1218_v53 = vrot.slane %v1190_v34, %v12255_v29  ;;  %v1220_v54 = vcombine.high %v1204_v46, %v1204_v46  ;;  %v1221_v55 = vcombine.high %v1211_v47, %v1211_v47 }
  0xc4   : > { %1289 = vst.msk [vmem:[%s12271_s27 + $0x44] sm:$0x1] %vm631_vm0, %v1211_v47  ;;  %1290 = vst.msk [vmem:[%s12271_s27 + $0x84] sm:$0x1] %vm631_vm0, %v1219_v48  ;;  %v1230_v56 = vrot.slane %v1157_v42, %v12255_v29  ;;  %v1402_v57 = vcombine.high %v1394_v51, %v1394_v51  ;;  %v1403_v58 = vcombine.high %v1401_v35, %v1401_v35 }
  0xc5   : > { %1292 = vst.msk [vmem:[%s12271_s27 + $0x104] sm:$0x1] %vm631_vm0, %v1204_v46  ;;  %1459 = vst.msk [vmem:[%s12271_s27 + $0x1c5] sm:$0x1] %vm631_vm0, %v1386_v50  ;;  %v1410_v59 = vrot.slane %v1394_v51, %v12255_v29  ;;  %v1417_v60 = vrot.slane %v1401_v35, %v12255_v29  ;;  %v1222_v61 = vcombine.high %v1218_v53, %v1218_v53  ;;  %v1977_v51 = vpop.trf.xlu1 }
  0xc6   : > { %1291 = vst.msk [vmem:[%s12271_s27 + $0xc4] sm:$0x1] %vm631_vm0, %v1221_v55  ;;  %1293 = vst.msk [vmem:[%s12271_s27 + $0x144] sm:$0x1] %vm631_vm0, %v1218_v53  ;;  %v1237_v62 = vrot.slane %v1223_v49, %v12255_v29  ;;  %v1238_v63 = vcombine.high %v1230_v56, %v1230_v56  ;;  %v1246_v2 = vrot.slane %v1230_v56, %v12255_v29 }
  0xc7   : > { %1294 = vst.msk [vmem:[%s12271_s27 + $0x184] sm:$0x1] %vm631_vm0, %v1220_v54  ;;  %v1424_v3 = vrot.slane %v1402_v57, %v12255_v29  ;;  %v1431_v4 = vrot.slane %v1403_v58, %v12255_v29  ;;  %v1432_v5 = vcombine.high %v1410_v59, %v1410_v59  ;;  %v1433_v6 = vcombine.high %v1417_v60, %v1417_v60 }
  0xc8   : > { %1460 = vst.msk [vmem:[%s12271_s27 + $0x205] sm:$0x1] %vm631_vm0, %v1410_v59  ;;  %1464 = vst.msk [vmem:[%s12271_s27 + $0x305] sm:$0x1] %vm631_vm0, %v1417_v60  ;;  %v1239_v8 = vcombine.high %v1237_v62, %v1237_v62  ;;  %v1253_v9 = vrot.slane %v1237_v62, %v12255_v29  ;;  %v1260_v10 = vrot.slane %v1238_v63, %v12255_v29  ;;  %v1812_v62 = vpop.trf.xlu0 }
  0xc9   : > { %1295 = vst.msk [vmem:[%s12271_s27 + $0x1c4] sm:$0x1] %vm631_vm0, %v1222_v61  ;;  %v1268_v11 = vcombine.high %v1246_v2, %v1246_v2  ;;  %1296 = vst.msk [vmem:[%s12271_s27 + $0x204] sm:$0x1] %vm631_vm0, %v1246_v2  ;;  %v1434_v12 = vcombine.high %v1424_v3, %v1424_v3  ;;  %v1435_v13 = vcombine.high %v1431_v4, %v1431_v4 }
  0xca   : > { %1461 = vst.msk [vmem:[%s12271_s27 + $0x245] sm:$0x1] %vm631_vm0, %v1424_v3  ;;  %1462 = vst.msk [vmem:[%s12271_s27 + $0x285] sm:$0x1] %vm631_vm0, %v1432_v5  ;;  %v1666_v14 = vcombine.high %v1648_v52, %v1648_v52  ;;  %v1673_v15 = vrot.slane %v1648_v52, %v12255_v29  ;;  %v1267_v17 = vrot.slane %v1239_v8, %v12255_v29 }
  0xcb   : > { %1465 = vst.msk [vmem:[%s12271_s27 + $0x345] sm:$0x1] %vm631_vm0, %v1431_v4  ;;  %1466 = vst.msk [vmem:[%s12271_s27 + $0x385] sm:$0x1] %vm631_vm0, %v1433_v6  ;;  %v1269_v18 = vcombine.high %v1253_v9, %v1253_v9  ;;  %v1270_v19 = vcombine.high %v1260_v10, %v1260_v10  ;;  %v1502_v20 = vcombine.high %v1484_v7, %v1484_v7 }
  0xcc   : > { %1297 = vst.msk [vmem:[%s12271_s27 + $0x244] sm:$0x1] %vm631_vm0, %v1260_v10  ;;  %1298 = vst.msk [vmem:[%s12271_s27 + $0x284] sm:$0x1] %vm631_vm0, %v1268_v11  ;;  %v1680_v21 = vrot.slane %v1666_v14, %v12255_v29  ;;  %v1681_v22 = vcombine.high %v1673_v15, %v1673_v15  ;;  %v1689_v23 = vrot.slane %v1673_v15, %v12255_v29 }
  0xcd   : > { %1300 = vst.msk [vmem:[%s12271_s27 + $0x304] sm:$0x1] %vm631_vm0, %v1253_v9  ;;  %1463 = vst.msk [vmem:[%s12271_s27 + $0x2c5] sm:$0x1] %vm631_vm0, %v1434_v12  ;;  %v1509_v24 = vrot.slane %v1484_v7, %v12255_v29  ;;  %v1271_v25 = vcombine.high %v1267_v17, %v1267_v17  ;;  %v1516_v26 = vrot.slane %v1502_v20, %v12255_v29 }
  0xce   : > { %1467 = vst.msk [vmem:[%s12271_s27 + $0x3c5] sm:$0x1] %vm631_vm0, %v1435_v13  ;;  %1299 = vst.msk [vmem:[%s12271_s27 + $0x2c4] sm:$0x1] %vm631_vm0, %v1270_v19  ;;  %v1715_v27 = vcombine.high %v1649_v16, %v1649_v16  ;;  %v1722_v28 = vrot.slane %v1649_v16, %v12255_v29  ;;  %v1682_v30 = vcombine.high %v1680_v21, %v1680_v21  ;;  %v1978_v13 = vpop.trf.xlu1 }
  0xcf   : > { %1301 = vst.msk [vmem:[%s12271_s27 + $0x344] sm:$0x1] %vm631_vm0, %v1267_v17  ;;  %1302 = vst.msk [vmem:[%s12271_s27 + $0x384] sm:$0x1] %vm631_vm0, %v1269_v18  ;;  %v1696_v31 = vrot.slane %v1680_v21, %v12255_v29  ;;  %v1703_v32 = vrot.slane %v1681_v22, %v12255_v29  ;;  %v1711_v33 = vcombine.high %v1689_v23, %v1689_v23 }
  0xd0   : > { %1780 = vst.msk [vmem:[%s12271_s27 + $0x7] sm:$0x1] %vm631_vm0, %v1689_v23  ;;  %1303 = vst.msk [vmem:[%s12271_s27 + $0x3c4] sm:$0x1] %vm631_vm0, %v1271_v25  ;;  %v1517_v36 = vcombine.high %v1509_v24, %v1509_v24  ;;  %v1518_v0 = vcombine.high %v1516_v26, %v1516_v26  ;;  %v1525_v37 = vrot.slane %v1509_v24, %v12255_v29 }
  0xd1   : > { %v1532_v38 = vrot.slane %v1516_v26, %v12255_v29  ;;  %v1710_v40 = vrot.slane %v1682_v30, %v12255_v29  ;;  %v1712_v41 = vcombine.high %v1696_v31, %v1696_v31  ;;  %v1713_v42 = vcombine.high %v1703_v32, %v1703_v32  ;;  %1781 = vst.msk [vmem:[%s12271_s27 + $0x47] sm:$0x1] %vm631_vm0, %v1703_v32  ;;  %v1813_v26 = vpop.trf.xlu0 }
  0xd2   : > { %1782 = vst.msk [vmem:[%s12271_s27 + $0x87] sm:$0x1] %vm631_vm0, %v1711_v33  ;;  %1784 = vst.msk [vmem:[%s12271_s27 + $0x107] sm:$0x1] %vm631_vm0, %v1696_v31  ;;  %v1729_v1 = vrot.slane %v1715_v27, %v12255_v29  ;;  %v1539_v43 = vrot.slane %v1517_v36, %v12255_v29  ;;  %v1546_v44 = vrot.slane %v1518_v0, %v12255_v29 }
  0xd3   : > { %v1547_v45 = vcombine.high %v1525_v37, %v1525_v37  ;;  %v1548_v34 = vcombine.high %v1532_v38, %v1532_v38  ;;  %1616 = vst.msk [vmem:[%s12271_s27 + $0x6] sm:$0x1] %vm631_vm0, %v1525_v37  ;;  %1620 = vst.msk [vmem:[%s12271_s27 + $0x106] sm:$0x1] %vm631_vm0, %v1532_v38  ;;  %v1714_v46 = vcombine.high %v1710_v40, %v1710_v40 }
  0xd4   : > { %1783 = vst.msk [vmem:[%s12271_s27 + $0xc7] sm:$0x1] %vm631_vm0, %v1713_v42  ;;  %1785 = vst.msk [vmem:[%s12271_s27 + $0x147] sm:$0x1] %vm631_vm0, %v1710_v40  ;;  %v1730_v47 = vcombine.high %v1722_v28, %v1722_v28  ;;  %v1731_v48 = vcombine.high %v1729_v1, %v1729_v1  ;;  %v1738_v50 = vrot.slane %v1722_v28, %v12255_v29 }
  0xd5   : > { %1786 = vst.msk [vmem:[%s12271_s27 + $0x187] sm:$0x1] %vm631_vm0, %v1712_v41  ;;  %v1549_v35 = vcombine.high %v1539_v43, %v1539_v43  ;;  %v1550_v49 = vcombine.high %v1546_v44, %v1546_v44  ;;  %1617 = vst.msk [vmem:[%s12271_s27 + $0x46] sm:$0x1] %vm631_vm0, %v1539_v43  ;;  %v1745_v52 = vrot.slane %v1729_v1, %v12255_v29  ;;  %v2305_v41 = vpop.trf.xlu1 }
  0xd6   : > { %1618 = vst.msk [vmem:[%s12271_s27 + $0x86] sm:$0x1] %vm631_vm0, %v1547_v45  ;;  %1621 = vst.msk [vmem:[%s12271_s27 + $0x146] sm:$0x1] %vm631_vm0, %v1546_v44  ;;  %v1551_v53 = vcombine.high %v1485_v39, %v1485_v39  ;;  %v1752_v54 = vrot.slane %v1730_v47, %v12255_v29  ;;  %v1759_v55 = vrot.slane %v1731_v48, %v12255_v29 }
  0xd7   : > { %1622 = vst.msk [vmem:[%s12271_s27 + $0x186] sm:$0x1] %vm631_vm0, %v1548_v34  ;;  %1787 = vst.msk [vmem:[%s12271_s27 + $0x1c7] sm:$0x1] %vm631_vm0, %v1714_v46  ;;  %v1760_v56 = vcombine.high %v1738_v50, %v1738_v50  ;;  %v1558_v57 = vrot.slane %v1485_v39, %v12255_v29  ;;  %v1761_v58 = vcombine.high %v1745_v52, %v1745_v52 }
  0xd8   : > { %1788 = vst.msk [vmem:[%s12271_s27 + $0x207] sm:$0x1] %vm631_vm0, %v1738_v50  ;;  %1619 = vst.msk [vmem:[%s12271_s27 + $0xc6] sm:$0x1] %vm631_vm0, %v1549_v35  ;;  %v1565_v59 = vrot.slane %v1551_v53, %v12255_v29  ;;  %v1995_v60 = vcombine.high %v1977_v51, %v1977_v51  ;;  %v2002_v61 = vrot.slane %v1977_v51, %v12255_v29 }
  0xd9   : > { %1623 = vst.msk [vmem:[%s12271_s27 + $0x1c6] sm:$0x1] %vm631_vm0, %v1550_v49  ;;  %1792 = vst.msk [vmem:[%s12271_s27 + $0x307] sm:$0x1] %vm631_vm0, %v1745_v52  ;;  %v1762_v63 = vcombine.high %v1752_v54, %v1752_v54  ;;  %v1763_v2 = vcombine.high %v1759_v55, %v1759_v55  ;;  %v1566_v3 = vcombine.high %v1558_v57, %v1558_v57 }
  0xda   : > { %1789 = vst.msk [vmem:[%s12271_s27 + $0x247] sm:$0x1] %vm631_vm0, %v1752_v54  ;;  %1790 = vst.msk [vmem:[%s12271_s27 + $0x287] sm:$0x1] %vm631_vm0, %v1760_v56  ;;  %v1574_v4 = vrot.slane %v1558_v57, %v12255_v29  ;;  %v1567_v5 = vcombine.high %v1565_v59, %v1565_v59  ;;  %v1581_v6 = vrot.slane %v1565_v59, %v12255_v29 }
  0xdb   : > { %1793 = vst.msk [vmem:[%s12271_s27 + $0x347] sm:$0x1] %vm631_vm0, %v1759_v55  ;;  %1794 = vst.msk [vmem:[%s12271_s27 + $0x387] sm:$0x1] %vm631_vm0, %v1761_v58  ;;  %v2009_v7 = vrot.slane %v1995_v60, %v12255_v29  ;;  %v2010_v8 = vcombine.high %v2002_v61, %v2002_v61  ;;  %v1588_v9 = vrot.slane %v1566_v3, %v12255_v29  ;;  %v2141_v55 = vpop.trf.xlu0 }
  0xdc   : > { %1791 = vst.msk [vmem:[%s12271_s27 + $0x2c7] sm:$0x1] %vm631_vm0, %v1762_v63  ;;  %1795 = vst.msk [vmem:[%s12271_s27 + $0x3c7] sm:$0x1] %vm631_vm0, %v1763_v2  ;;  %v1596_v10 = vcombine.high %v1574_v4, %v1574_v4  ;;  %v2018_v11 = vrot.slane %v2002_v61, %v12255_v29  ;;  %v1830_v12 = vcombine.high %v1812_v62, %v1812_v62  ;;  %v2306_v2 = vpop.trf.xlu1 }
  0xdd   : > { %1624 = vst.msk [vmem:[%s12271_s27 + $0x206] sm:$0x1] %vm631_vm0, %v1574_v4  ;;  %v1595_v14 = vrot.slane %v1567_v5, %v12255_v29  ;;  %v1597_v15 = vcombine.high %v1581_v6, %v1581_v6  ;;  %1628 = vst.msk [vmem:[%s12271_s27 + $0x306] sm:$0x1] %vm631_vm0, %v1581_v6  ;;  %v2011_v16 = vcombine.high %v2009_v7, %v2009_v7 }
  0xde   : > { %v2025_v17 = vrot.slane %v2009_v7, %v12255_v29  ;;  %v1598_v18 = vcombine.high %v1588_v9, %v1588_v9  ;;  %1625 = vst.msk [vmem:[%s12271_s27 + $0x246] sm:$0x1] %vm631_vm0, %v1588_v9  ;;  %1626 = vst.msk [vmem:[%s12271_s27 + $0x286] sm:$0x1] %vm631_vm0, %v1596_v10  ;;  %v2032_v19 = vrot.slane %v2010_v8, %v12255_v29 }
  0xdf   : > { %v2040_v20 = vcombine.high %v2018_v11, %v2018_v11  ;;  %11104 = vst.msk [vmem:[%s12271_s27 + $0x9] sm:$0x1] %vm631_vm0, %v2018_v11  ;;  %v1837_v21 = vrot.slane %v1812_v62, %v12255_v29  ;;  %v1599_v22 = vcombine.high %v1595_v14, %v1595_v14  ;;  %1629 = vst.msk [vmem:[%s12271_s27 + $0x346] sm:$0x1] %vm631_vm0, %v1595_v14 }
  0xe0   : > { %1630 = vst.msk [vmem:[%s12271_s27 + $0x386] sm:$0x1] %vm631_vm0, %v1597_v15  ;;  %v2039_v23 = vrot.slane %v2011_v16, %v12255_v29  ;;  %v2041_v24 = vcombine.high %v2025_v17, %v2025_v17  ;;  %11108 = vst.msk [vmem:[%s12271_s27 + $0x109] sm:$0x1] %vm631_vm0, %v2025_v17  ;;  %v1844_v25 = vrot.slane %v1830_v12, %v12255_v29 }
  0xe1   : > { %1627 = vst.msk [vmem:[%s12271_s27 + $0x2c6] sm:$0x1] %vm631_vm0, %v1598_v18  ;;  %v2042_v27 = vcombine.high %v2032_v19, %v2032_v19  ;;  %11105 = vst.msk [vmem:[%s12271_s27 + $0x49] sm:$0x1] %vm631_vm0, %v2032_v19  ;;  %v1845_v28 = vcombine.high %v1837_v21, %v1837_v21  ;;  %v1853_v30 = vrot.slane %v1837_v21, %v12255_v29  ;;  %v2142_v19 = vpop.trf.xlu0 }
  0xe2   : > { %11106 = vst.msk [vmem:[%s12271_s27 + $0x89] sm:$0x1] %vm631_vm0, %v2040_v20  ;;  %v2044_v31 = vcombine.high %v1978_v13, %v1978_v13  ;;  %1631 = vst.msk [vmem:[%s12271_s27 + $0x3c6] sm:$0x1] %vm631_vm0, %v1599_v22  ;;  %v2043_v32 = vcombine.high %v2039_v23, %v2039_v23  ;;  %v1846_v33 = vcombine.high %v1844_v25, %v1844_v25 }
  0xe3   : > { %11109 = vst.msk [vmem:[%s12271_s27 + $0x149] sm:$0x1] %vm631_vm0, %v2039_v23  ;;  %11110 = vst.msk [vmem:[%s12271_s27 + $0x189] sm:$0x1] %vm631_vm0, %v2041_v24  ;;  %v1860_v36 = vrot.slane %v1844_v25, %v12255_v29  ;;  %v2051_v0 = vrot.slane %v1978_v13, %v12255_v29  ;;  %v1867_v37 = vrot.slane %v1845_v28, %v12255_v29  ;;  %v2633_v28 = vpop.trf.xlu1 }
  0xe4   : > { %11107 = vst.msk [vmem:[%s12271_s27 + $0xc9] sm:$0x1] %vm631_vm0, %v2042_v27  ;;  %v1875_v38 = vcombine.high %v1853_v30, %v1853_v30  ;;  %11088 = vst.msk [vmem:[%s12271_s27 + $0x8] sm:$0x1] %vm631_vm0, %v1853_v30  ;;  %v2058_v39 = vrot.slane %v2044_v31, %v12255_v29  ;;  %v1879_v40 = vcombine.high %v1813_v26, %v1813_v26 }
  0xe5   : > { %11111 = vst.msk [vmem:[%s12271_s27 + $0x1c9] sm:$0x1] %vm631_vm0, %v2043_v32  ;;  %v1874_v42 = vrot.slane %v1846_v33, %v12255_v29  ;;  %v1876_v1 = vcombine.high %v1860_v36, %v1860_v36  ;;  %11092 = vst.msk [vmem:[%s12271_s27 + $0x108] sm:$0x1] %vm631_vm0, %v1860_v36  ;;  %v2059_v43 = vcombine.high %v2051_v0, %v2051_v0 }
  0xe6   : > { %v2067_v44 = vrot.slane %v2051_v0, %v12255_v29  ;;  %v1877_v45 = vcombine.high %v1867_v37, %v1867_v37  ;;  %11089 = vst.msk [vmem:[%s12271_s27 + $0x48] sm:$0x1] %vm631_vm0, %v1867_v37  ;;  %11090 = vst.msk [vmem:[%s12271_s27 + $0x88] sm:$0x1] %vm631_vm0, %v1875_v38  ;;  %v2060_v34 = vcombine.high %v2058_v39, %v2058_v39 }
  0xe7   : > { %v2074_v46 = vrot.slane %v2058_v39, %v12255_v29  ;;  %v1886_v47 = vrot.slane %v1813_v26, %v12255_v29  ;;  %v1878_v48 = vcombine.high %v1874_v42, %v1874_v42  ;;  %11093 = vst.msk [vmem:[%s12271_s27 + $0x148] sm:$0x1] %vm631_vm0, %v1874_v42  ;;  %11094 = vst.msk [vmem:[%s12271_s27 + $0x188] sm:$0x1] %vm631_vm0, %v1876_v1 }
  0xe8   : > { %v2081_v50 = vrot.slane %v2059_v43, %v12255_v29  ;;  %v2089_v51 = vcombine.high %v2067_v44, %v2067_v44  ;;  %11112 = vst.msk [vmem:[%s12271_s27 + $0x209] sm:$0x1] %vm631_vm0, %v2067_v44  ;;  %v1893_v35 = vrot.slane %v1879_v40, %v12255_v29  ;;  %11091 = vst.msk [vmem:[%s12271_s27 + $0xc8] sm:$0x1] %vm631_vm0, %v1877_v45 }
  0xe9   : > { %v2088_v49 = vrot.slane %v2060_v34, %v12255_v29  ;;  %v2090_v52 = vcombine.high %v2074_v46, %v2074_v46  ;;  %11116 = vst.msk [vmem:[%s12271_s27 + $0x309] sm:$0x1] %vm631_vm0, %v2074_v46  ;;  %v1894_v53 = vcombine.high %v1886_v47, %v1886_v47  ;;  %v1902_v54 = vrot.slane %v1886_v47, %v12255_v29  ;;  %v2469_v34 = vpop.trf.xlu0 }
  0xea   : > { %11095 = vst.msk [vmem:[%s12271_s27 + $0x1c8] sm:$0x1] %vm631_vm0, %v1878_v48  ;;  %v2091_v56 = vcombine.high %v2081_v50, %v2081_v50  ;;  %11113 = vst.msk [vmem:[%s12271_s27 + $0x249] sm:$0x1] %vm631_vm0, %v2081_v50  ;;  %v1895_v57 = vcombine.high %v1893_v35, %v1893_v35  ;;  %v1909_v58 = vrot.slane %v1893_v35, %v12255_v29 }
  0xeb   : > { %11114 = vst.msk [vmem:[%s12271_s27 + $0x289] sm:$0x1] %vm631_vm0, %v2089_v51  ;;  %v2323_v59 = vcombine.high %v2305_v41, %v2305_v41  ;;  %v2092_v60 = vcombine.high %v2088_v49, %v2088_v49  ;;  %11117 = vst.msk [vmem:[%s12271_s27 + $0x349] sm:$0x1] %vm631_vm0, %v2088_v49  ;;  %v1916_v61 = vrot.slane %v1894_v53, %v12255_v29 }
  0xec   : > { %11118 = vst.msk [vmem:[%s12271_s27 + $0x389] sm:$0x1] %vm631_vm0, %v2090_v52  ;;  %v1924_v62 = vcombine.high %v1902_v54, %v1902_v54  ;;  %11096 = vst.msk [vmem:[%s12271_s27 + $0x208] sm:$0x1] %vm631_vm0, %v1902_v54  ;;  %v2330_v63 = vrot.slane %v2305_v41, %v12255_v29  ;;  %v1923_v3 = vrot.slane %v1895_v57, %v12255_v29 }
  0xed   : > { %11115 = vst.msk [vmem:[%s12271_s27 + $0x2c9] sm:$0x1] %vm631_vm0, %v2091_v56  ;;  %v1925_v4 = vcombine.high %v1909_v58, %v1909_v58  ;;  %11100 = vst.msk [vmem:[%s12271_s27 + $0x308] sm:$0x1] %vm631_vm0, %v1909_v58  ;;  %v2337_v5 = vrot.slane %v2323_v59, %v12255_v29  ;;  %v2159_v6 = vcombine.high %v2141_v55, %v2141_v55 }
  0xee   : > { %11119 = vst.msk [vmem:[%s12271_s27 + $0x3c9] sm:$0x1] %vm631_vm0, %v2092_v60  ;;  %v1926_v7 = vcombine.high %v1916_v61, %v1916_v61  ;;  %11097 = vst.msk [vmem:[%s12271_s27 + $0x248] sm:$0x1] %vm631_vm0, %v1916_v61  ;;  %v2338_v8 = vcombine.high %v2330_v63, %v2330_v63  ;;  %v2346_v9 = vrot.slane %v2330_v63, %v12255_v29  ;;  %v2634_v61 = vpop.trf.xlu1 }
  0xef   : > { %11098 = vst.msk [vmem:[%s12271_s27 + $0x288] sm:$0x1] %vm631_vm0, %v1924_v62  ;;  %v2166_v10 = vrot.slane %v2141_v55, %v12255_v29  ;;  %v1927_v11 = vcombine.high %v1923_v3, %v1923_v3  ;;  %11101 = vst.msk [vmem:[%s12271_s27 + $0x348] sm:$0x1] %vm631_vm0, %v1923_v3  ;;  %v2339_v12 = vcombine.high %v2337_v5, %v2337_v5 }
  0xf0   : > { %11102 = vst.msk [vmem:[%s12271_s27 + $0x388] sm:$0x1] %vm631_vm0, %v1925_v4  ;;  %v2353_v13 = vrot.slane %v2337_v5, %v12255_v29  ;;  %v2173_v14 = vrot.slane %v2159_v6, %v12255_v29  ;;  %11099 = vst.msk [vmem:[%s12271_s27 + $0x2c8] sm:$0x1] %vm631_vm0, %v1926_v7  ;;  %v2360_v15 = vrot.slane %v2338_v8, %v12255_v29  ;;  %v2470_v8 = vpop.trf.xlu0 }
  0xf1   : > { %v2368_v16 = vcombine.high %v2346_v9, %v2346_v9  ;;  %11136 = vst.msk [vmem:[%s12271_s27 + $0xb] sm:$0x1] %vm631_vm0, %v2346_v9  ;;  %v2174_v17 = vcombine.high %v2166_v10, %v2166_v10  ;;  %v2182_v18 = vrot.slane %v2166_v10, %v12255_v29  ;;  %11103 = vst.msk [vmem:[%s12271_s27 + $0x3c8] sm:$0x1] %vm631_vm0, %v1927_v11 }
  0xf2   : > { %v2367_v20 = vrot.slane %v2339_v12, %v12255_v29  ;;  %v2369_v21 = vcombine.high %v2353_v13, %v2353_v13  ;;  %11140 = vst.msk [vmem:[%s12271_s27 + $0x10b] sm:$0x1] %vm631_vm0, %v2353_v13  ;;  %v2175_v22 = vcombine.high %v2173_v14, %v2173_v14  ;;  %v2189_v23 = vrot.slane %v2173_v14, %v12255_v29 }
  0xf3   : > { %v2370_v24 = vcombine.high %v2360_v15, %v2360_v15  ;;  %11137 = vst.msk [vmem:[%s12271_s27 + $0x4b] sm:$0x1] %vm631_vm0, %v2360_v15  ;;  %11138 = vst.msk [vmem:[%s12271_s27 + $0x8b] sm:$0x1] %vm631_vm0, %v2368_v16  ;;  %v2196_v25 = vrot.slane %v2174_v17, %v12255_v29  ;;  %v2204_v26 = vcombine.high %v2182_v18, %v2182_v18 }
  0xf4   : > { %11120 = vst.msk [vmem:[%s12271_s27 + $0xa] sm:$0x1] %vm631_vm0, %v2182_v18  ;;  %v2372_v27 = vcombine.high %v2306_v2, %v2306_v2  ;;  %v2371_v30 = vcombine.high %v2367_v20, %v2367_v20  ;;  %11141 = vst.msk [vmem:[%s12271_s27 + $0x14b] sm:$0x1] %vm631_vm0, %v2367_v20  ;;  %v2203_v31 = vrot.slane %v2175_v22, %v12255_v29 }
  0xf5   : > { %11142 = vst.msk [vmem:[%s12271_s27 + $0x18b] sm:$0x1] %vm631_vm0, %v2369_v21  ;;  %v2205_v32 = vcombine.high %v2189_v23, %v2189_v23  ;;  %11124 = vst.msk [vmem:[%s12271_s27 + $0x10a] sm:$0x1] %vm631_vm0, %v2189_v23  ;;  %v2379_v33 = vrot.slane %v2306_v2, %v12255_v29  ;;  %v2206_v36 = vcombine.high %v2196_v25, %v2196_v25 }
  0xf6   : > { %11139 = vst.msk [vmem:[%s12271_s27 + $0xcb] sm:$0x1] %vm631_vm0, %v2370_v24  ;;  %11121 = vst.msk [vmem:[%s12271_s27 + $0x4a] sm:$0x1] %vm631_vm0, %v2196_v25  ;;  %v2386_v0 = vrot.slane %v2372_v27, %v12255_v29  ;;  %v2208_v37 = vcombine.high %v2142_v19, %v2142_v19  ;;  %v2215_v38 = vrot.slane %v2142_v19, %v12255_v29 }
  0xf7   : > { %11122 = vst.msk [vmem:[%s12271_s27 + $0x8a] sm:$0x1] %vm631_vm0, %v2204_v26  ;;  %11143 = vst.msk [vmem:[%s12271_s27 + $0x1cb] sm:$0x1] %vm631_vm0, %v2371_v30  ;;  %v2207_v39 = vcombine.high %v2203_v31, %v2203_v31  ;;  %v2387_v40 = vcombine.high %v2379_v33, %v2379_v33  ;;  %v2395_v41 = vrot.slane %v2379_v33, %v12255_v29  ;;  %v2961_v30 = vpop.trf.xlu1 }
  0xf8   : > { %11125 = vst.msk [vmem:[%s12271_s27 + $0x14a] sm:$0x1] %vm631_vm0, %v2203_v31  ;;  %11126 = vst.msk [vmem:[%s12271_s27 + $0x18a] sm:$0x1] %vm631_vm0, %v2205_v32  ;;  %v2651_v42 = vcombine.high %v2633_v28, %v2633_v28  ;;  %v2388_v1 = vcombine.high %v2386_v0, %v2386_v0  ;;  %v2402_v43 = vrot.slane %v2386_v0, %v12255_v29 }
  0xf9   : > { %11123 = vst.msk [vmem:[%s12271_s27 + $0xca] sm:$0x1] %vm631_vm0, %v2206_v36  ;;  %v2222_v44 = vrot.slane %v2208_v37, %v12255_v29  ;;  %v2223_v45 = vcombine.high %v2215_v38, %v2215_v38  ;;  %11127 = vst.msk [vmem:[%s12271_s27 + $0x1ca] sm:$0x1] %vm631_vm0, %v2207_v39  ;;  %v2409_v46 = vrot.slane %v2387_v40, %v12255_v29 }
  0xfa   : > { %v2417_v47 = vcombine.high %v2395_v41, %v2395_v41  ;;  %11144 = vst.msk [vmem:[%s12271_s27 + $0x20b] sm:$0x1] %vm631_vm0, %v2395_v41  ;;  %v2231_v48 = vrot.slane %v2215_v38, %v12255_v29  ;;  %v2658_v50 = vrot.slane %v2633_v28, %v12255_v29  ;;  %v2416_v51 = vrot.slane %v2388_v1, %v12255_v29 }
  0xfb   : > { %v2418_v35 = vcombine.high %v2402_v43, %v2402_v43  ;;  %11148 = vst.msk [vmem:[%s12271_s27 + $0x30b] sm:$0x1] %vm631_vm0, %v2402_v43  ;;  %v2224_v49 = vcombine.high %v2222_v44, %v2222_v44  ;;  %v2238_v52 = vrot.slane %v2222_v44, %v12255_v29  ;;  %v2419_v53 = vcombine.high %v2409_v46, %v2409_v46  ;;  %v2797_v43 = vpop.trf.xlu0 }
  0xfc   : > { %11145 = vst.msk [vmem:[%s12271_s27 + $0x24b] sm:$0x1] %vm631_vm0, %v2409_v46  ;;  %11146 = vst.msk [vmem:[%s12271_s27 + $0x28b] sm:$0x1] %vm631_vm0, %v2417_v47  ;;  %v2245_v54 = vrot.slane %v2223_v45, %v12255_v29  ;;  %v2253_v55 = vcombine.high %v2231_v48, %v2231_v48  ;;  %v2665_v56 = vrot.slane %v2651_v42, %v12255_v29 }
  0xfd   : > { %11128 = vst.msk [vmem:[%s12271_s27 + $0x20a] sm:$0x1] %vm631_vm0, %v2231_v48  ;;  %v2420_v57 = vcombine.high %v2416_v51, %v2416_v51  ;;  %11149 = vst.msk [vmem:[%s12271_s27 + $0x34b] sm:$0x1] %vm631_vm0, %v2416_v51  ;;  %v2252_v58 = vrot.slane %v2224_v49, %v12255_v29  ;;  %v2254_v59 = vcombine.high %v2238_v52, %v2238_v52 }
  0xfe   : > { %11150 = vst.msk [vmem:[%s12271_s27 + $0x38b] sm:$0x1] %vm631_vm0, %v2418_v35  ;;  %11132 = vst.msk [vmem:[%s12271_s27 + $0x30a] sm:$0x1] %vm631_vm0, %v2238_v52  ;;  %v2666_v60 = vcombine.high %v2658_v50, %v2658_v50  ;;  %v2255_v62 = vcombine.high %v2245_v54, %v2245_v54  ;;  %v2667_v63 = vcombine.high %v2665_v56, %v2665_v56 }
  0xff   : > { %11147 = vst.msk [vmem:[%s12271_s27 + $0x2cb] sm:$0x1] %vm631_vm0, %v2419_v53  ;;  %11129 = vst.msk [vmem:[%s12271_s27 + $0x24a] sm:$0x1] %vm631_vm0, %v2245_v54  ;;  %v2674_v2 = vrot.slane %v2658_v50, %v12255_v29  ;;  %v2681_v3 = vrot.slane %v2665_v56, %v12255_v29  ;;  %v2256_v4 = vcombine.high %v2252_v58, %v2252_v58  ;;  %v2962_v54 = vpop.trf.xlu1 }
 0x100   : > { %11130 = vst.msk [vmem:[%s12271_s27 + $0x28a] sm:$0x1] %vm631_vm0, %v2253_v55  ;;  %11151 = vst.msk [vmem:[%s12271_s27 + $0x3cb] sm:$0x1] %vm631_vm0, %v2420_v57  ;;  %v2688_v5 = vrot.slane %v2666_v60, %v12255_v29  ;;  %v2487_v6 = vcombine.high %v2469_v34, %v2469_v34  ;;  %v2494_v7 = vrot.slane %v2469_v34, %v12255_v29 }
 0x101   : > { %11133 = vst.msk [vmem:[%s12271_s27 + $0x34a] sm:$0x1] %vm631_vm0, %v2252_v58  ;;  %11134 = vst.msk [vmem:[%s12271_s27 + $0x38a] sm:$0x1] %vm631_vm0, %v2254_v59  ;;  %v2695_v9 = vrot.slane %v2667_v63, %v12255_v29  ;;  %v2696_v10 = vcombine.high %v2674_v2, %v2674_v2  ;;  %v2697_v11 = vcombine.high %v2681_v3, %v2681_v3 }
 0x102   : > { %11131 = vst.msk [vmem:[%s12271_s27 + $0x2ca] sm:$0x1] %vm631_vm0, %v2255_v62  ;;  %11168 = vst.msk [vmem:[%s12271_s27 + $0xd] sm:$0x1] %vm631_vm0, %v2674_v2  ;;  %v2700_v12 = vcombine.high %v2634_v61, %v2634_v61  ;;  %v2698_v13 = vcombine.high %v2688_v5, %v2688_v5  ;;  %v2501_v14 = vrot.slane %v2487_v6, %v12255_v29 }
 0x103   : > { %11172 = vst.msk [vmem:[%s12271_s27 + $0x10d] sm:$0x1] %vm631_vm0, %v2681_v3  ;;  %11135 = vst.msk [vmem:[%s12271_s27 + $0x3ca] sm:$0x1] %vm631_vm0, %v2256_v4  ;;  %v2502_v15 = vcombine.high %v2494_v7, %v2494_v7  ;;  %v2510_v16 = vrot.slane %v2494_v7, %v12255_v29  ;;  %v2699_v17 = vcombine.high %v2695_v9, %v2695_v9 }
 0x104   : > { %11169 = vst.msk [vmem:[%s12271_s27 + $0x4d] sm:$0x1] %vm631_vm0, %v2688_v5  ;;  %11170 = vst.msk [vmem:[%s12271_s27 + $0x8d] sm:$0x1] %vm631_vm0, %v2696_v10  ;;  %v2707_v18 = vrot.slane %v2634_v61, %v12255_v29  ;;  %v2714_v19 = vrot.slane %v2700_v12, %v12255_v29  ;;  %v2536_v20 = vcombine.high %v2470_v8, %v2470_v8  ;;  %v2798_v5 = vpop.trf.xlu0 }
 0x105   : > { %11173 = vst.msk [vmem:[%s12271_s27 + $0x14d] sm:$0x1] %vm631_vm0, %v2695_v9  ;;  %11174 = vst.msk [vmem:[%s12271_s27 + $0x18d] sm:$0x1] %vm631_vm0, %v2697_v11  ;;  %v2503_v21 = vcombine.high %v2501_v14, %v2501_v14  ;;  %v2517_v22 = vrot.slane %v2501_v14, %v12255_v29  ;;  %v2524_v23 = vrot.slane %v2502_v15, %v12255_v29 }
 0x106   : > { %11171 = vst.msk [vmem:[%s12271_s27 + $0xcd] sm:$0x1] %vm631_vm0, %v2698_v13  ;;  %v2532_v24 = vcombine.high %v2510_v16, %v2510_v16  ;;  %11152 = vst.msk [vmem:[%s12271_s27 + $0xc] sm:$0x1] %vm631_vm0, %v2510_v16  ;;  %v2715_v25 = vcombine.high %v2707_v18, %v2707_v18  ;;  %v2716_v26 = vcombine.high %v2714_v19, %v2714_v19 }
 0x107   : > { %11175 = vst.msk [vmem:[%s12271_s27 + $0x1cd] sm:$0x1] %vm631_vm0, %v2699_v17  ;;  %v2723_v27 = vrot.slane %v2707_v18, %v12255_v29  ;;  %v2730_v28 = vrot.slane %v2714_v19, %v12255_v29  ;;  %v2531_v31 = vrot.slane %v2503_v21, %v12255_v29  ;;  %v2533_v32 = vcombine.high %v2517_v22, %v2517_v22  ;;  %v3290_v18 = vpop.trf.xlu1 }
 0x108   : > { %v2534_v33 = vcombine.high %v2524_v23, %v2524_v23  ;;  %11153 = vst.msk [vmem:[%s12271_s27 + $0x4c] sm:$0x1] %vm631_vm0, %v2524_v23  ;;  %11154 = vst.msk [vmem:[%s12271_s27 + $0x8c] sm:$0x1] %vm631_vm0, %v2532_v24  ;;  %v2543_v36 = vrot.slane %v2470_v8, %v12255_v29  ;;  %v2737_v0 = vrot.slane %v2715_v25, %v12255_v29 }
 0x109   : > { %11156 = vst.msk [vmem:[%s12271_s27 + $0x10c] sm:$0x1] %vm631_vm0, %v2517_v22  ;;  %v2744_v37 = vrot.slane %v2716_v26, %v12255_v29  ;;  %v2745_v38 = vcombine.high %v2723_v27, %v2723_v27  ;;  %v2746_v39 = vcombine.high %v2730_v28, %v2730_v28  ;;  %11176 = vst.msk [vmem:[%s12271_s27 + $0x20d] sm:$0x1] %vm631_vm0, %v2723_v27 }
 0x10a   : > { %11180 = vst.msk [vmem:[%s12271_s27 + $0x30d] sm:$0x1] %vm631_vm0, %v2730_v28  ;;  %v2535_v40 = vcombine.high %v2531_v31, %v2531_v31  ;;  %11155 = vst.msk [vmem:[%s12271_s27 + $0xcc] sm:$0x1] %vm631_vm0, %v2534_v33  ;;  %v2550_v41 = vrot.slane %v2536_v20, %v12255_v29  ;;  %v2551_v42 = vcombine.high %v2543_v36, %v2543_v36 }
 0x10b   : > { %11157 = vst.msk [vmem:[%s12271_s27 + $0x14c] sm:$0x1] %vm631_vm0, %v2531_v31  ;;  %11158 = vst.msk [vmem:[%s12271_s27 + $0x18c] sm:$0x1] %vm631_vm0, %v2533_v32  ;;  %v2559_v1 = vrot.slane %v2543_v36, %v12255_v29  ;;  %v2747_v44 = vcombine.high %v2737_v0, %v2737_v0  ;;  %v2748_v45 = vcombine.high %v2744_v37, %v2744_v37 }
 0x10c   : > { %11177 = vst.msk [vmem:[%s12271_s27 + $0x24d] sm:$0x1] %vm631_vm0, %v2737_v0  ;;  %11178 = vst.msk [vmem:[%s12271_s27 + $0x28d] sm:$0x1] %vm631_vm0, %v2745_v38  ;;  %v2979_v34 = vcombine.high %v2961_v30, %v2961_v30  ;;  %v2986_v46 = vrot.slane %v2961_v30, %v12255_v29  ;;  %v2552_v47 = vcombine.high %v2550_v41, %v2550_v41 }
 0x10d   : > { %11181 = vst.msk [vmem:[%s12271_s27 + $0x34d] sm:$0x1] %vm631_vm0, %v2744_v37  ;;  %11182 = vst.msk [vmem:[%s12271_s27 + $0x38d] sm:$0x1] %vm631_vm0, %v2746_v39  ;;  %v2566_v48 = vrot.slane %v2550_v41, %v12255_v29  ;;  %v2573_v50 = vrot.slane %v2551_v42, %v12255_v29  ;;  %v2581_v51 = vcombine.high %v2559_v1, %v2559_v1  ;;  %v3125_v37 = vpop.trf.xlu0 }
 0x10e   : > { %11159 = vst.msk [vmem:[%s12271_s27 + $0x1cc] sm:$0x1] %vm631_vm0, %v2535_v40  ;;  %11160 = vst.msk [vmem:[%s12271_s27 + $0x20c] sm:$0x1] %vm631_vm0, %v2559_v1  ;;  %v2993_v35 = vrot.slane %v2979_v34, %v12255_v29  ;;  %v2994_v49 = vcombine.high %v2986_v46, %v2986_v46  ;;  %v3002_v52 = vrot.slane %v2986_v46, %v12255_v29 }
 0x10f   : > { %11179 = vst.msk [vmem:[%s12271_s27 + $0x2cd] sm:$0x1] %vm631_vm0, %v2747_v44  ;;  %11183 = vst.msk [vmem:[%s12271_s27 + $0x3cd] sm:$0x1] %vm631_vm0, %v2748_v45  ;;  %v2815_v53 = vcombine.high %v2797_v43, %v2797_v43  ;;  %v2580_v55 = vrot.slane %v2552_v47, %v12255_v29  ;;  %v2582_v56 = vcombine.high %v2566_v48, %v2566_v48  ;;  %v3291_v45 = vpop.trf.xlu1 }
 0x110   : > { %v2583_v57 = vcombine.high %v2573_v50, %v2573_v50  ;;  %11161 = vst.msk [vmem:[%s12271_s27 + $0x24c] sm:$0x1] %vm631_vm0, %v2573_v50  ;;  %11162 = vst.msk [vmem:[%s12271_s27 + $0x28c] sm:$0x1] %vm631_vm0, %v2581_v51  ;;  %v2822_v58 = vrot.slane %v2797_v43, %v12255_v29  ;;  %v2995_v59 = vcombine.high %v2993_v35, %v2993_v35 }
 0x111   : > { %11164 = vst.msk [vmem:[%s12271_s27 + $0x30c] sm:$0x1] %vm631_vm0, %v2566_v48  ;;  %v3009_v60 = vrot.slane %v2993_v35, %v12255_v29  ;;  %v3016_v61 = vrot.slane %v2994_v49, %v12255_v29  ;;  %v3024_v62 = vcombine.high %v3002_v52, %v3002_v52  ;;  %11200 = vst.msk [vmem:[%s12271_s27 + $0xf] sm:$0x1] %vm631_vm0, %v3002_v52 }
 0x112   : > { %v2584_v63 = vcombine.high %v2580_v55, %v2580_v55  ;;  %11163 = vst.msk [vmem:[%s12271_s27 + $0x2cc] sm:$0x1] %vm631_vm0, %v2583_v57  ;;  %11165 = vst.msk [vmem:[%s12271_s27 + $0x34c] sm:$0x1] %vm631_vm0, %v2580_v55  ;;  %v2829_v2 = vrot.slane %v2815_v53, %v12255_v29  ;;  %v2830_v3 = vcombine.high %v2822_v58, %v2822_v58 }
 0x113   : > { %11166 = vst.msk [vmem:[%s12271_s27 + $0x38c] sm:$0x1] %vm631_vm0, %v2582_v56  ;;  %v2838_v4 = vrot.slane %v2822_v58, %v12255_v29  ;;  %v3023_v6 = vrot.slane %v2995_v59, %v12255_v29  ;;  %v3025_v7 = vcombine.high %v3009_v60, %v3009_v60  ;;  %v3026_v8 = vcombine.high %v3016_v61, %v3016_v61 }
 0x114   : > { %11201 = vst.msk [vmem:[%s12271_s27 + $0x4f] sm:$0x1] %vm631_vm0, %v3016_v61  ;;  %11202 = vst.msk [vmem:[%s12271_s27 + $0x8f] sm:$0x1] %vm631_vm0, %v3024_v62  ;;  %v3028_v9 = vcombine.high %v2962_v54, %v2962_v54  ;;  %v2831_v10 = vcombine.high %v2829_v2, %v2829_v2  ;;  %v2845_v11 = vrot.slane %v2829_v2, %v12255_v29  ;;  %v3126_v2 = vpop.trf.xlu0 }
 0x115   : > { %11204 = vst.msk [vmem:[%s12271_s27 + $0x10f] sm:$0x1] %vm631_vm0, %v3009_v60  ;;  %11167 = vst.msk [vmem:[%s12271_s27 + $0x3cc] sm:$0x1] %vm631_vm0, %v2584_v63  ;;  %v2852_v12 = vrot.slane %v2830_v3, %v12255_v29  ;;  %v2860_v13 = vcombine.high %v2838_v4, %v2838_v4  ;;  %v3027_v14 = vcombine.high %v3023_v6, %v3023_v6 }
 0x116   : > { %11184 = vst.msk [vmem:[%s12271_s27 + $0xe] sm:$0x1] %vm631_vm0, %v2838_v4  ;;  %11203 = vst.msk [vmem:[%s12271_s27 + $0xcf] sm:$0x1] %vm631_vm0, %v3026_v8  ;;  %v3035_v15 = vrot.slane %v2962_v54, %v12255_v29  ;;  %v3042_v16 = vrot.slane %v3028_v9, %v12255_v29  ;;  %v2864_v17 = vcombine.high %v2798_v5, %v2798_v5 }
 0x117   : > { %11205 = vst.msk [vmem:[%s12271_s27 + $0x14f] sm:$0x1] %vm631_vm0, %v3023_v6  ;;  %11206 = vst.msk [vmem:[%s12271_s27 + $0x18f] sm:$0x1] %vm631_vm0, %v3025_v7  ;;  %v2859_v19 = vrot.slane %v2831_v10, %v12255_v29  ;;  %v2861_v20 = vcombine.high %v2845_v11, %v2845_v11  ;;  %v2862_v21 = vcombine.high %v2852_v12, %v2852_v12 }
 0x118   : > { %11185 = vst.msk [vmem:[%s12271_s27 + $0x4e] sm:$0x1] %vm631_vm0, %v2852_v12  ;;  %11186 = vst.msk [vmem:[%s12271_s27 + $0x8e] sm:$0x1] %vm631_vm0, %v2860_v13  ;;  %v2871_v22 = vrot.slane %v2798_v5, %v12255_v29  ;;  %v3043_v23 = vcombine.high %v3035_v15, %v3035_v15  ;;  %v3044_v24 = vcombine.high %v3042_v16, %v3042_v16 }
 0x119   : > { %11188 = vst.msk [vmem:[%s12271_s27 + $0x10e] sm:$0x1] %vm631_vm0, %v2845_v11  ;;  %11207 = vst.msk [vmem:[%s12271_s27 + $0x1cf] sm:$0x1] %vm631_vm0, %v3027_v14  ;;  %v3051_v25 = vrot.slane %v3035_v15, %v12255_v29  ;;  %v3058_v26 = vrot.slane %v3042_v16, %v12255_v29  ;;  %v2863_v27 = vcombine.high %v2859_v19, %v2859_v19  ;;  %v3618_v15 = vpop.trf.xlu1 }
 0x11a   : > { %11187 = vst.msk [vmem:[%s12271_s27 + $0xce] sm:$0x1] %vm631_vm0, %v2862_v21  ;;  %11189 = vst.msk [vmem:[%s12271_s27 + $0x14e] sm:$0x1] %vm631_vm0, %v2859_v19  ;;  %v2878_v28 = vrot.slane %v2864_v17, %v12255_v29  ;;  %v2879_v30 = vcombine.high %v2871_v22, %v2871_v22  ;;  %v2887_v31 = vrot.slane %v2871_v22, %v12255_v29 }
 0x11b   : > { %11190 = vst.msk [vmem:[%s12271_s27 + $0x18e] sm:$0x1] %vm631_vm0, %v2861_v20  ;;  %v3065_v32 = vrot.slane %v3043_v23, %v12255_v29  ;;  %v3072_v33 = vrot.slane %v3044_v24, %v12255_v29  ;;  %v3073_v36 = vcombine.high %v3051_v25, %v3051_v25  ;;  %v3074_v0 = vcombine.high %v3058_v26, %v3058_v26 }
 0x11c   : > { %11208 = vst.msk [vmem:[%s12271_s27 + $0x20f] sm:$0x1] %vm631_vm0, %v3051_v25  ;;  %11212 = vst.msk [vmem:[%s12271_s27 + $0x30f] sm:$0x1] %vm631_vm0, %v3058_v26  ;;  %v2880_v38 = vcombine.high %v2878_v28, %v2878_v28  ;;  %v2894_v39 = vrot.slane %v2878_v28, %v12255_v29  ;;  %v2901_v40 = vrot.slane %v2879_v30, %v12255_v29  ;;  %v3454_v28 = vpop.trf.xlu0 }
 0x11d   : > { %11191 = vst.msk [vmem:[%s12271_s27 + $0x1ce] sm:$0x1] %vm631_vm0, %v2863_v27  ;;  %v2909_v41 = vcombine.high %v2887_v31, %v2887_v31  ;;  %11192 = vst.msk [vmem:[%s12271_s27 + $0x20e] sm:$0x1] %vm631_vm0, %v2887_v31  ;;  %v3075_v42 = vcombine.high %v3065_v32, %v3065_v32  ;;  %v3076_v1 = vcombine.high %v3072_v33, %v3072_v33 }
 0x11e   : > { %11209 = vst.msk [vmem:[%s12271_s27 + $0x24f] sm:$0x1] %vm631_vm0, %v3065_v32  ;;  %11210 = vst.msk [vmem:[%s12271_s27 + $0x28f] sm:$0x1] %vm631_vm0, %v3073_v36  ;;  %v3308_v43 = vcombine.high %v3290_v18, %v3290_v18  ;;  %v3315_v44 = vrot.slane %v3290_v18, %v12255_v29  ;;  %v2908_v34 = vrot.slane %v2880_v38, %v12255_v29 }
 0x11f   : > { %11213 = vst.msk [vmem:[%s12271_s27 + $0x34f] sm:$0x1] %vm631_vm0, %v3072_v33  ;;  %11214 = vst.msk [vmem:[%s12271_s27 + $0x38f] sm:$0x1] %vm631_vm0, %v3074_v0  ;;  %v2910_v46 = vcombine.high %v2894_v39, %v2894_v39  ;;  %v2911_v47 = vcombine.high %v2901_v40, %v2901_v40  ;;  %v3143_v48 = vcombine.high %v3125_v37, %v3125_v37 }
 0x120   : > { %11193 = vst.msk [vmem:[%s12271_s27 + $0x24e] sm:$0x1] %vm631_vm0, %v2901_v40  ;;  %11194 = vst.msk [vmem:[%s12271_s27 + $0x28e] sm:$0x1] %vm631_vm0, %v2909_v41  ;;  %v3322_v50 = vrot.slane %v3308_v43, %v12255_v29  ;;  %v3323_v51 = vcombine.high %v3315_v44, %v3315_v44  ;;  %v3331_v35 = vrot.slane %v3315_v44, %v12255_v29 }
 0x121   : > { %11196 = vst.msk [vmem:[%s12271_s27 + $0x30e] sm:$0x1] %vm631_vm0, %v2894_v39  ;;  %11211 = vst.msk [vmem:[%s12271_s27 + $0x2cf] sm:$0x1] %vm631_vm0, %v3075_v42  ;;  %v3150_v49 = vrot.slane %v3125_v37, %v12255_v29  ;;  %v2912_v52 = vcombine.high %v2908_v34, %v2908_v34  ;;  %v3157_v53 = vrot.slane %v3143_v48, %v12255_v29 }
 0x122   : > { %11215 = vst.msk [vmem:[%s12271_s27 + $0x3cf] sm:$0x1] %vm631_vm0, %v3076_v1  ;;  %11195 = vst.msk [vmem:[%s12271_s27 + $0x2ce] sm:$0x1] %vm631_vm0, %v2911_v47  ;;  %v3357_v54 = vcombine.high %v3291_v45, %v3291_v45  ;;  %v3364_v55 = vrot.slane %v3291_v45, %v12255_v29  ;;  %v3324_v56 = vcombine.high %v3322_v50, %v3322_v50 }
 0x123   : > { %11197 = vst.msk [vmem:[%s12271_s27 + $0x34e] sm:$0x1] %vm631_vm0, %v2908_v34  ;;  %11198 = vst.msk [vmem:[%s12271_s27 + $0x38e] sm:$0x1] %vm631_vm0, %v2910_v46  ;;  %v3338_v57 = vrot.slane %v3322_v50, %v12255_v29  ;;  %v3345_v58 = vrot.slane %v3323_v51, %v12255_v29  ;;  %v3353_v59 = vcombine.high %v3331_v35, %v3331_v35  ;;  %v3619_v34 = vpop.trf.xlu1 }
 0x124   : > { %11232 = vst.msk [vmem:[%s12271_s27 + $0x11] sm:$0x1] %vm631_vm0, %v3331_v35  ;;  %11199 = vst.msk [vmem:[%s12271_s27 + $0x3ce] sm:$0x1] %vm631_vm0, %v2912_v52  ;;  %v3158_v60 = vcombine.high %v3150_v49, %v3150_v49  ;;  %v3159_v61 = vcombine.high %v3157_v53, %v3157_v53  ;;  %v3166_v62 = vrot.slane %v3150_v49, %v12255_v29 }
 0x125   : > { %v3173_v63 = vrot.slane %v3157_v53, %v12255_v29  ;;  %v3352_v3 = vrot.slane %v3324_v56, %v12255_v29  ;;  %v3354_v4 = vcombine.high %v3338_v57, %v3338_v57  ;;  %v3355_v5 = vcombine.high %v3345_v58, %v3345_v58  ;;  %11233 = vst.msk [vmem:[%s12271_s27 + $0x51] sm:$0x1] %vm631_vm0, %v3345_v58  ;;  %v3455_v53 = vpop.trf.xlu0 }
 0x126   : > { %11234 = vst.msk [vmem:[%s12271_s27 + $0x91] sm:$0x1] %vm631_vm0, %v3353_v59  ;;  %11236 = vst.msk [vmem:[%s12271_s27 + $0x111] sm:$0x1] %vm631_vm0, %v3338_v57  ;;  %v3371_v6 = vrot.slane %v3357_v54, %v12255_v29  ;;  %v3180_v7 = vrot.slane %v3158_v60, %v12255_v29  ;;  %v3187_v8 = vrot.slane %v3159_v61, %v12255_v29 }
 0x127   : > { %v3188_v9 = vcombine.high %v3166_v62, %v3166_v62  ;;  %v3189_v10 = vcombine.high %v3173_v63, %v3173_v63  ;;  %11216 = vst.msk [vmem:[%s12271_s27 + $0x10] sm:$0x1] %vm631_vm0, %v3166_v62  ;;  %11220 = vst.msk [vmem:[%s12271_s27 + $0x110] sm:$0x1] %vm631_vm0, %v3173_v63  ;;  %v3356_v11 = vcombine.high %v3352_v3, %v3352_v3 }
 0x128   : > { %11235 = vst.msk [vmem:[%s12271_s27 + $0xd1] sm:$0x1] %vm631_vm0, %v3355_v5  ;;  %11237 = vst.msk [vmem:[%s12271_s27 + $0x151] sm:$0x1] %vm631_vm0, %v3352_v3  ;;  %v3372_v12 = vcombine.high %v3364_v55, %v3364_v55  ;;  %v3373_v13 = vcombine.high %v3371_v6, %v3371_v6  ;;  %v3380_v14 = vrot.slane %v3364_v55, %v12255_v29 }
 0x129   : > { %11238 = vst.msk [vmem:[%s12271_s27 + $0x191] sm:$0x1] %vm631_vm0, %v3354_v4  ;;  %v3190_v16 = vcombine.high %v3180_v7, %v3180_v7  ;;  %v3191_v17 = vcombine.high %v3187_v8, %v3187_v8  ;;  %11217 = vst.msk [vmem:[%s12271_s27 + $0x50] sm:$0x1] %vm631_vm0, %v3180_v7  ;;  %v3387_v18 = vrot.slane %v3371_v6, %v12255_v29 }
 0x12a   : > { %11218 = vst.msk [vmem:[%s12271_s27 + $0x90] sm:$0x1] %vm631_vm0, %v3188_v9  ;;  %11221 = vst.msk [vmem:[%s12271_s27 + $0x150] sm:$0x1] %vm631_vm0, %v3187_v8  ;;  %v3192_v19 = vcombine.high %v3126_v2, %v3126_v2  ;;  %v3394_v20 = vrot.slane %v3372_v12, %v12255_v29  ;;  %v3401_v21 = vrot.slane %v3373_v13, %v12255_v29  ;;  %v3946_v8 = vpop.trf.xlu1 }
 0x12b   : > { %11222 = vst.msk [vmem:[%s12271_s27 + $0x190] sm:$0x1] %vm631_vm0, %v3189_v10  ;;  %11239 = vst.msk [vmem:[%s12271_s27 + $0x1d1] sm:$0x1] %vm631_vm0, %v3356_v11  ;;  %v3402_v22 = vcombine.high %v3380_v14, %v3380_v14  ;;  %v3199_v23 = vrot.slane %v3126_v2, %v12255_v29  ;;  %v3403_v24 = vcombine.high %v3387_v18, %v3387_v18 }
 0x12c   : > { %11240 = vst.msk [vmem:[%s12271_s27 + $0x211] sm:$0x1] %vm631_vm0, %v3380_v14  ;;  %11219 = vst.msk [vmem:[%s12271_s27 + $0xd0] sm:$0x1] %vm631_vm0, %v3190_v16  ;;  %v3206_v25 = vrot.slane %v3192_v19, %v12255_v29  ;;  %v3636_v26 = vcombine.high %v3618_v15, %v3618_v15  ;;  %v3643_v27 = vrot.slane %v3618_v15, %v12255_v29 }
 0x12d   : > { %11223 = vst.msk [vmem:[%s12271_s27 + $0x1d0] sm:$0x1] %vm631_vm0, %v3191_v17  ;;  %11244 = vst.msk [vmem:[%s12271_s27 + $0x311] sm:$0x1] %vm631_vm0, %v3387_v18  ;;  %v3404_v30 = vcombine.high %v3394_v20, %v3394_v20  ;;  %v3405_v31 = vcombine.high %v3401_v21, %v3401_v21  ;;  %v3207_v32 = vcombine.high %v3199_v23, %v3199_v23 }
 0x12e   : > { %11241 = vst.msk [vmem:[%s12271_s27 + $0x251] sm:$0x1] %vm631_vm0, %v3394_v20  ;;  %11242 = vst.msk [vmem:[%s12271_s27 + $0x291] sm:$0x1] %vm631_vm0, %v3402_v22  ;;  %v3215_v33 = vrot.slane %v3199_v23, %v12255_v29  ;;  %v3208_v36 = vcombine.high %v3206_v25, %v3206_v25  ;;  %v3222_v0 = vrot.slane %v3206_v25, %v12255_v29 }
 0x12f   : > { %11245 = vst.msk [vmem:[%s12271_s27 + $0x351] sm:$0x1] %vm631_vm0, %v3401_v21  ;;  %11246 = vst.msk [vmem:[%s12271_s27 + $0x391] sm:$0x1] %vm631_vm0, %v3403_v24  ;;  %v3650_v37 = vrot.slane %v3636_v26, %v12255_v29  ;;  %v3651_v38 = vcombine.high %v3643_v27, %v3643_v27  ;;  %v3229_v39 = vrot.slane %v3207_v32, %v12255_v29  ;;  %v3782_v21 = vpop.trf.xlu0 }
 0x130   : > { %11243 = vst.msk [vmem:[%s12271_s27 + $0x2d1] sm:$0x1] %vm631_vm0, %v3404_v30  ;;  %11247 = vst.msk [vmem:[%s12271_s27 + $0x3d1] sm:$0x1] %vm631_vm0, %v3405_v31  ;;  %v3237_v40 = vcombine.high %v3215_v33, %v3215_v33  ;;  %v3659_v41 = vrot.slane %v3643_v27, %v12255_v29  ;;  %v3472_v42 = vcombine.high %v3454_v28, %v3454_v28 }
 0x131   : > { %11224 = vst.msk [vmem:[%s12271_s27 + $0x210] sm:$0x1] %vm631_vm0, %v3215_v33  ;;  %v3236_v1 = vrot.slane %v3208_v36, %v12255_v29  ;;  %v3238_v43 = vcombine.high %v3222_v0, %v3222_v0  ;;  %11228 = vst.msk [vmem:[%s12271_s27 + $0x310] sm:$0x1] %vm631_vm0, %v3222_v0  ;;  %v3652_v44 = vcombine.high %v3650_v37, %v3650_v37  ;;  %v3947_v0 = vpop.trf.xlu1 }
 0x132   : > { %v3666_v45 = vrot.slane %v3650_v37, %v12255_v29  ;;  %v3239_v46 = vcombine.high %v3229_v39, %v3229_v39  ;;  %11225 = vst.msk [vmem:[%s12271_s27 + $0x250] sm:$0x1] %vm631_vm0, %v3229_v39  ;;  %11226 = vst.msk [vmem:[%s12271_s27 + $0x290] sm:$0x1] %vm631_vm0, %v3237_v40  ;;  %v3673_v47 = vrot.slane %v3651_v38, %v12255_v29 }
 0x133   : > { %v3681_v48 = vcombine.high %v3659_v41, %v3659_v41  ;;  %11264 = vst.msk [vmem:[%s12271_s27 + $0x13] sm:$0x1] %vm631_vm0, %v3659_v41  ;;  %v3479_v50 = vrot.slane %v3454_v28, %v12255_v29  ;;  %v3240_v51 = vcombine.high %v3236_v1, %v3236_v1  ;;  %11229 = vst.msk [vmem:[%s12271_s27 + $0x350] sm:$0x1] %vm631_vm0, %v3236_v1 }
 0x134   : > { %11230 = vst.msk [vmem:[%s12271_s27 + $0x390] sm:$0x1] %vm631_vm0, %v3238_v43  ;;  %v3680_v35 = vrot.slane %v3652_v44, %v12255_v29  ;;  %v3682_v49 = vcombine.high %v3666_v45, %v3666_v45  ;;  %11268 = vst.msk [vmem:[%s12271_s27 + $0x113] sm:$0x1] %vm631_vm0, %v3666_v45  ;;  %v3486_v52 = vrot.slane %v3472_v42, %v12255_v29 }
 0x135   : > { %11227 = vst.msk [vmem:[%s12271_s27 + $0x2d0] sm:$0x1] %vm631_vm0, %v3239_v46  ;;  %v3683_v54 = vcombine.high %v3673_v47, %v3673_v47  ;;  %11265 = vst.msk [vmem:[%s12271_s27 + $0x53] sm:$0x1] %vm631_vm0, %v3673_v47  ;;  %v3487_v55 = vcombine.high %v3479_v50, %v3479_v50  ;;  %v3495_v56 = vrot.slane %v3479_v50, %v12255_v29 }
 0x136   : > { %11266 = vst.msk [vmem:[%s12271_s27 + $0x93] sm:$0x1] %vm631_vm0, %v3681_v48  ;;  %v3685_v57 = vcombine.high %v3619_v34, %v3619_v34  ;;  %11231 = vst.msk [vmem:[%s12271_s27 + $0x3d0] sm:$0x1] %vm631_vm0, %v3240_v51  ;;  %v3684_v58 = vcombine.high %v3680_v35, %v3680_v35  ;;  %v3488_v59 = vcombine.high %v3486_v52, %v3486_v52 }
 0x137   : > { %11269 = vst.msk [vmem:[%s12271_s27 + $0x153] sm:$0x1] %vm631_vm0, %v3680_v35  ;;  %11270 = vst.msk [vmem:[%s12271_s27 + $0x193] sm:$0x1] %vm631_vm0, %v3682_v49  ;;  %v3502_v60 = vrot.slane %v3486_v52, %v12255_v29  ;;  %v3692_v61 = vrot.slane %v3619_v34, %v12255_v29  ;;  %v3509_v62 = vrot.slane %v3487_v55, %v12255_v29  ;;  %v3783_v35 = vpop.trf.xlu0  ;;  %v268_v55 = vld [vmem:[%s12090_s21 + $0x1b8] sm:$0xff] }
 0x138   : > { %11267 = vst.msk [vmem:[%s12271_s27 + $0xd3] sm:$0x1] %vm631_vm0, %v3683_v54  ;;  %v3517_v63 = vcombine.high %v3495_v56, %v3495_v56  ;;  %11248 = vst.msk [vmem:[%s12271_s27 + $0x12] sm:$0x1] %vm631_vm0, %v3495_v56  ;;  %v3699_v2 = vrot.slane %v3685_v57, %v12255_v29  ;;  %v3521_v3 = vcombine.high %v3455_v53, %v3455_v53 }
 0x139   : > { %11271 = vst.msk [vmem:[%s12271_s27 + $0x1d3] sm:$0x1] %vm631_vm0, %v3684_v58  ;;  %v3516_v4 = vrot.slane %v3488_v59, %v12255_v29  ;;  %v3518_v5 = vcombine.high %v3502_v60, %v3502_v60  ;;  %11252 = vst.msk [vmem:[%s12271_s27 + $0x112] sm:$0x1] %vm631_vm0, %v3502_v60  ;;  %v3700_v6 = vcombine.high %v3692_v61, %v3692_v61  ;;  %v13207_v60 = vpop.trf.xlu1 }
 0x13a   : > { %v3708_v7 = vrot.slane %v3692_v61, %v12255_v29  ;;  %v3519_v9 = vcombine.high %v3509_v62, %v3509_v62  ;;  %11249 = vst.msk [vmem:[%s12271_s27 + $0x52] sm:$0x1] %vm631_vm0, %v3509_v62  ;;  %11250 = vst.msk [vmem:[%s12271_s27 + $0x92] sm:$0x1] %vm631_vm0, %v3517_v63  ;;  %v3701_v10 = vcombine.high %v3699_v2, %v3699_v2 }
 0x13b   : > { %v3715_v11 = vrot.slane %v3699_v2, %v12255_v29  ;;  %v3528_v12 = vrot.slane %v3455_v53, %v12255_v29  ;;  %v3520_v13 = vcombine.high %v3516_v4, %v3516_v4  ;;  %11253 = vst.msk [vmem:[%s12271_s27 + $0x152] sm:$0x1] %vm631_vm0, %v3516_v4  ;;  %11254 = vst.msk [vmem:[%s12271_s27 + $0x192] sm:$0x1] %vm631_vm0, %v3518_v5 }
 0x13c   : > { %v3722_v14 = vrot.slane %v3700_v6, %v12255_v29  ;;  %v3730_v15 = vcombine.high %v3708_v7, %v3708_v7  ;;  %11272 = vst.msk [vmem:[%s12271_s27 + $0x213] sm:$0x1] %vm631_vm0, %v3708_v7  ;;  %v3535_v16 = vrot.slane %v3521_v3, %v12255_v29  ;;  %11251 = vst.msk [vmem:[%s12271_s27 + $0xd2] sm:$0x1] %vm631_vm0, %v3519_v9  ;;  %v13227_v6 = vld [vmem:[%s15168_s1] ss:$0 sm:$0xff] }
 0x13d   : > { %v3729_v17 = vrot.slane %v3701_v10, %v12255_v29  ;;  %v3731_v18 = vcombine.high %v3715_v11, %v3715_v11  ;;  %11276 = vst.msk [vmem:[%s12271_s27 + $0x313] sm:$0x1] %vm631_vm0, %v3715_v11  ;;  %v3536_v19 = vcombine.high %v3528_v12, %v3528_v12  ;;  %v3544_v20 = vrot.slane %v3528_v12, %v12255_v29 }
 0x13e   : > { %11255 = vst.msk [vmem:[%s12271_s27 + $0x1d2] sm:$0x1] %vm631_vm0, %v3520_v13  ;;  %v3732_v22 = vcombine.high %v3722_v14, %v3722_v14  ;;  %11273 = vst.msk [vmem:[%s12271_s27 + $0x253] sm:$0x1] %vm631_vm0, %v3722_v14  ;;  %v3537_v23 = vcombine.high %v3535_v16, %v3535_v16  ;;  %v3551_v24 = vrot.slane %v3535_v16, %v12255_v29 }
 0x13f   : > { %11274 = vst.msk [vmem:[%s12271_s27 + $0x293] sm:$0x1] %vm631_vm0, %v3730_v15  ;;  %v3964_v25 = vcombine.high %v3946_v8, %v3946_v8  ;;  %v3733_v26 = vcombine.high %v3729_v17, %v3729_v17  ;;  %11277 = vst.msk [vmem:[%s12271_s27 + $0x353] sm:$0x1] %vm631_vm0, %v3729_v17  ;;  %v3558_v27 = vrot.slane %v3536_v19, %v12255_v29  ;;  %v13243_v15 = vld [vmem:[%s15169_s2] ss:$0 sm:$0xff] }
 0x140   : > { %11278 = vst.msk [vmem:[%s12271_s27 + $0x393] sm:$0x1] %vm631_vm0, %v3731_v18  ;;  %v3566_v28 = vcombine.high %v3544_v20, %v3544_v20  ;;  %11256 = vst.msk [vmem:[%s12271_s27 + $0x212] sm:$0x1] %vm631_vm0, %v3544_v20  ;;  %v3971_v30 = vrot.slane %v3946_v8, %v12255_v29  ;;  %v3565_v31 = vrot.slane %v3537_v23, %v12255_v29 }
 0x141   : > { %11275 = vst.msk [vmem:[%s12271_s27 + $0x2d3] sm:$0x1] %vm631_vm0, %v3732_v22  ;;  %v3567_v32 = vcombine.high %v3551_v24, %v3551_v24  ;;  %11260 = vst.msk [vmem:[%s12271_s27 + $0x312] sm:$0x1] %vm631_vm0, %v3551_v24  ;;  %v3978_v33 = vrot.slane %v3964_v25, %v12255_v29  ;;  %v3800_v36 = vcombine.high %v3782_v21, %v3782_v21  ;;  %v4110_v22 = vpop.trf.xlu0 }
 0x142   : > { %11279 = vst.msk [vmem:[%s12271_s27 + $0x3d3] sm:$0x1] %vm631_vm0, %v3733_v26  ;;  %v3568_v37 = vcombine.high %v3558_v27, %v3558_v27  ;;  %11257 = vst.msk [vmem:[%s12271_s27 + $0x252] sm:$0x1] %vm631_vm0, %v3558_v27  ;;  %v3979_v38 = vcombine.high %v3971_v30, %v3971_v30  ;;  %v3987_v39 = vrot.slane %v3971_v30, %v12255_v29  ;;  %v4275_v27 = vpop.trf.xlu1 }
 0x143   : > { %11258 = vst.msk [vmem:[%s12271_s27 + $0x292] sm:$0x1] %vm631_vm0, %v3566_v28  ;;  %v3807_v40 = vrot.slane %v3782_v21, %v12255_v29  ;;  %v3569_v41 = vcombine.high %v3565_v31, %v3565_v31  ;;  %11261 = vst.msk [vmem:[%s12271_s27 + $0x352] sm:$0x1] %vm631_vm0, %v3565_v31  ;;  %v3980_v42 = vcombine.high %v3978_v33, %v3978_v33  ;;  %v267_v21 = vld [vmem:[%s12090_s21 + $0x1b0] sm:$0xff] }
 0x144   : > { %11262 = vst.msk [vmem:[%s12271_s27 + $0x392] sm:$0x1] %vm631_vm0, %v3567_v32  ;;  %v3994_v1 = vrot.slane %v3978_v33, %v12255_v29  ;;  %v3814_v43 = vrot.slane %v3800_v36, %v12255_v29  ;;  %11259 = vst.msk [vmem:[%s12271_s27 + $0x2d2] sm:$0x1] %vm631_vm0, %v3568_v37  ;;  %v4001_v44 = vrot.slane %v3979_v38, %v12255_v29 }
 0x145   : > { %v4009_v45 = vcombine.high %v3987_v39, %v3987_v39  ;;  %11296 = vst.msk [vmem:[%s12271_s27 + $0x15] sm:$0x1] %vm631_vm0, %v3987_v39  ;;  %v3815_v34 = vcombine.high %v3807_v40, %v3807_v40  ;;  %v3823_v46 = vrot.slane %v3807_v40, %v12255_v29  ;;  %11263 = vst.msk [vmem:[%s12271_s27 + $0x3d2] sm:$0x1] %vm631_vm0, %v3569_v41 }
 0x146   : > { %v4008_v47 = vrot.slane %v3980_v42, %v12255_v29  ;;  %v4010_v48 = vcombine.high %v3994_v1, %v3994_v1  ;;  %11300 = vst.msk [vmem:[%s12271_s27 + $0x115] sm:$0x1] %vm631_vm0, %v3994_v1  ;;  %v3816_v50 = vcombine.high %v3814_v43, %v3814_v43  ;;  %v3830_v51 = vrot.slane %v3814_v43, %v12255_v29 }
 0x147   : > { %v4011_v49 = vcombine.high %v4001_v44, %v4001_v44  ;;  %11297 = vst.msk [vmem:[%s12271_s27 + $0x55] sm:$0x1] %vm631_vm0, %v4001_v44  ;;  %11298 = vst.msk [vmem:[%s12271_s27 + $0x95] sm:$0x1] %vm631_vm0, %v4009_v45  ;;  %v3837_v52 = vrot.slane %v3815_v34, %v12255_v29  ;;  %v3845_v53 = vcombine.high %v3823_v46, %v3823_v46 }
 0x148   : > { %11280 = vst.msk [vmem:[%s12271_s27 + $0x14] sm:$0x1] %vm631_vm0, %v3823_v46  ;;  %v4013_v54 = vcombine.high %v3947_v0, %v3947_v0  ;;  %v4012_v56 = vcombine.high %v4008_v47, %v4008_v47  ;;  %11301 = vst.msk [vmem:[%s12271_s27 + $0x155] sm:$0x1] %vm631_vm0, %v4008_v47  ;;  %v3844_v57 = vrot.slane %v3816_v50, %v12255_v29 }
 0x149   : > { %11302 = vst.msk [vmem:[%s12271_s27 + $0x195] sm:$0x1] %vm631_vm0, %v4010_v48  ;;  %v3846_v58 = vcombine.high %v3830_v51, %v3830_v51  ;;  %11284 = vst.msk [vmem:[%s12271_s27 + $0x114] sm:$0x1] %vm631_vm0, %v3830_v51  ;;  %v4020_v59 = vrot.slane %v3947_v0, %v12255_v29  ;;  %v3847_v61 = vcombine.high %v3837_v52, %v3837_v52 }
 0x14a   : > { %11299 = vst.msk [vmem:[%s12271_s27 + $0xd5] sm:$0x1] %vm631_vm0, %v4011_v49  ;;  %11281 = vst.msk [vmem:[%s12271_s27 + $0x54] sm:$0x1] %vm631_vm0, %v3837_v52  ;;  %v4027_v62 = vrot.slane %v4013_v54, %v12255_v29  ;;  %v3849_v63 = vcombine.high %v3783_v35, %v3783_v35  ;;  %v3856_v2 = vrot.slane %v3783_v35, %v12255_v29 }
 0x14b   : > { %11282 = vst.msk [vmem:[%s12271_s27 + $0x94] sm:$0x1] %vm631_vm0, %v3845_v53  ;;  %11303 = vst.msk [vmem:[%s12271_s27 + $0x1d5] sm:$0x1] %vm631_vm0, %v4012_v56  ;;  %v3848_v3 = vcombine.high %v3844_v57, %v3844_v57  ;;  %v4028_v4 = vcombine.high %v4020_v59, %v4020_v59  ;;  %v4036_v5 = vrot.slane %v4020_v59, %v12255_v29 }
 0x14c   : > { %11285 = vst.msk [vmem:[%s12271_s27 + $0x154] sm:$0x1] %vm631_vm0, %v3844_v57  ;;  %11286 = vst.msk [vmem:[%s12271_s27 + $0x194] sm:$0x1] %vm631_vm0, %v3846_v58  ;;  %v339_v7 = vmul.f32 %v13227_v6, %v268_v55  ;;  %v4029_v8 = vcombine.high %v4027_v62, %v4027_v62  ;;  %v4043_v9 = vrot.slane %v4027_v62, %v12255_v29  ;;  %v4111_v55 = vpop.trf.xlu0 }
 0x14d   : > { %11283 = vst.msk [vmem:[%s12271_s27 + $0xd4] sm:$0x1] %vm631_vm0, %v3847_v61  ;;  %v3863_v10 = vrot.slane %v3849_v63, %v12255_v29  ;;  %v3864_v11 = vcombine.high %v3856_v2, %v3856_v2  ;;  %11287 = vst.msk [vmem:[%s12271_s27 + $0x1d4] sm:$0x1] %vm631_vm0, %v3848_v3  ;;  %v4050_v12 = vrot.slane %v4028_v4, %v12255_v29  ;;  %v4603_v3 = vpop.trf.xlu1 }
 0x14e   : > { %v4058_v13 = vcombine.high %v4036_v5, %v4036_v5  ;;  %11304 = vst.msk [vmem:[%s12271_s27 + $0x215] sm:$0x1] %vm631_vm0, %v4036_v5  ;;  %v3872_v14 = vrot.slane %v3856_v2, %v12255_v29  ;;  %v410_v16 = vadd.f32 %v13243_v15, %v339_v7  ;;  %v4057_v17 = vrot.slane %v4029_v8, %v12255_v29 }
 0x14f   : > { %v4059_v18 = vcombine.high %v4043_v9, %v4043_v9  ;;  %11308 = vst.msk [vmem:[%s12271_s27 + $0x315] sm:$0x1] %vm631_vm0, %v4043_v9  ;;  %v3865_v19 = vcombine.high %v3863_v10, %v3863_v10  ;;  %v3879_v20 = vrot.slane %v3863_v10, %v12255_v29  ;;  %v4060_v23 = vcombine.high %v4050_v12, %v4050_v12 }
 0x150   : > { %11305 = vst.msk [vmem:[%s12271_s27 + $0x255] sm:$0x1] %vm631_vm0, %v4050_v12  ;;  %11306 = vst.msk [vmem:[%s12271_s27 + $0x295] sm:$0x1] %vm631_vm0, %v4058_v13  ;;  %v3886_v24 = vrot.slane %v3864_v11, %v12255_v29  ;;  %v3894_v25 = vcombine.high %v3872_v14, %v3872_v14  ;;  %v474_v26 = vmax.f32 %v410_v16, 0.0  ;;  %v4061_v28 = vcombine.high %v4057_v17, %v4057_v17 }
 0x151   : > { %11288 = vst.msk [vmem:[%s12271_s27 + $0x214] sm:$0x1] %vm631_vm0, %v3872_v14  ;;  %11309 = vst.msk [vmem:[%s12271_s27 + $0x355] sm:$0x1] %vm631_vm0, %v4057_v17  ;;  %v3893_v30 = vrot.slane %v3865_v19, %v12255_v29  ;;  %v3895_v31 = vcombine.high %v3879_v20, %v3879_v20  ;;  %v4292_v32 = vcombine.high %v13207_v60, %v13207_v60 }
 0x152   : > { %11310 = vst.msk [vmem:[%s12271_s27 + $0x395] sm:$0x1] %vm631_vm0, %v4059_v18  ;;  %11292 = vst.msk [vmem:[%s12271_s27 + $0x314] sm:$0x1] %vm631_vm0, %v3879_v20  ;;  %v3896_v33 = vcombine.high %v3886_v24, %v3886_v24  ;;  %9510 = vxpose.xlu1.b32.start.end [1/1] (short) (narrow) %v474_v26, 16  ;;  %v4299_v36 = vrot.slane %v13207_v60, %v12255_v29  ;;  %v338_v0 = vmul.f32 %v13227_v6, %v267_v21  ;;  %v270_v60 = vld [vmem:[%s12090_s21 + $0x1c8] sm:$0xff] }
 0x153   : > { %11307 = vst.msk [vmem:[%s12271_s27 + $0x2d5] sm:$0x1] %vm631_vm0, %v4060_v23  ;;  %11289 = vst.msk [vmem:[%s12271_s27 + $0x254] sm:$0x1] %vm631_vm0, %v3886_v24  ;;  %v4128_v37 = vcombine.high %v4110_v22, %v4110_v22  ;;  %v3897_v38 = vcombine.high %v3893_v30, %v3893_v30  ;;  %v4306_v39 = vrot.slane %v4292_v32, %v12255_v29  ;;  %v269_v26 = vld [vmem:[%s12090_s21 + $0x1c0] sm:$0xff] }
 0x154   : > { %11290 = vst.msk [vmem:[%s12271_s27 + $0x294] sm:$0x1] %vm631_vm0, %v3894_v25  ;;  %11311 = vst.msk [vmem:[%s12271_s27 + $0x3d5] sm:$0x1] %vm631_vm0, %v4061_v28  ;;  %v4135_v40 = vrot.slane %v4110_v22, %v12255_v29  ;;  %v4341_v41 = vcombine.high %v4275_v27, %v4275_v27  ;;  %v4307_v42 = vcombine.high %v4299_v36, %v4299_v36 }
 0x155   : > { %11293 = vst.msk [vmem:[%s12271_s27 + $0x354] sm:$0x1] %vm631_vm0, %v3893_v30  ;;  %11294 = vst.msk [vmem:[%s12271_s27 + $0x394] sm:$0x1] %vm631_vm0, %v3895_v31  ;;  %v4315_v1 = vrot.slane %v4299_v36, %v12255_v29  ;;  %v409_v43 = vadd.f32 %v13243_v15, %v338_v0  ;;  %v4142_v44 = vrot.slane %v4128_v37, %v12255_v29 }
 0x156   : > { %11291 = vst.msk [vmem:[%s12271_s27 + $0x2d4] sm:$0x1] %vm631_vm0, %v3896_v33  ;;  %11295 = vst.msk [vmem:[%s12271_s27 + $0x3d4] sm:$0x1] %vm631_vm0, %v3897_v38  ;;  %v4308_v45 = vcombine.high %v4306_v39, %v4306_v39  ;;  %v4322_v34 = vrot.slane %v4306_v39, %v12255_v29  ;;  %v4143_v46 = vcombine.high %v4135_v40, %v4135_v40 }
 0x157   : > { %v4151_v47 = vrot.slane %v4135_v40, %v12255_v29  ;;  %v4329_v48 = vrot.slane %v4307_v42, %v12255_v29  ;;  %v4337_v50 = vcombine.high %v4315_v1, %v4315_v1  ;;  %11328 = vst.msk [vmem:[%s12271_s27 + $0x17] sm:$0x1] %vm631_vm0, %v4315_v1  ;;  %v473_v51 = vmax.f32 %v409_v43, 0.0  ;;  %v4604_v42 = vpop.trf.xlu1 }
 0x158   : > { %v4144_v35 = vcombine.high %v4142_v44, %v4142_v44  ;;  %v4336_v49 = vrot.slane %v4308_v45, %v12255_v29  ;;  %v4338_v52 = vcombine.high %v4322_v34, %v4322_v34  ;;  %11332 = vst.msk [vmem:[%s12271_s27 + $0x117] sm:$0x1] %vm631_vm0, %v4322_v34  ;;  %v4158_v53 = vrot.slane %v4142_v44, %v12255_v29 }
 0x159   : > { %v4165_v54 = vrot.slane %v4143_v46, %v12255_v29  ;;  %11312 = vst.msk [vmem:[%s12271_s27 + $0x16] sm:$0x1] %vm631_vm0, %v4151_v47  ;;  %v4339_v56 = vcombine.high %v4329_v48, %v4329_v48  ;;  %11329 = vst.msk [vmem:[%s12271_s27 + $0x57] sm:$0x1] %vm631_vm0, %v4329_v48  ;;  %9346 = vxpose.xlu0.b32.start.end [1/1] (short) (narrow) %v473_v51, 16  ;;  %v4173_v58 = vcombine.high %v4151_v47, %v4151_v47 }
 0x15a   : > { %11330 = vst.msk [vmem:[%s12271_s27 + $0x97] sm:$0x1] %vm631_vm0, %v4337_v50  ;;  %v4172_v57 = vrot.slane %v4144_v35, %v12255_v29  ;;  %v4348_v59 = vrot.slane %v4275_v27, %v12255_v29  ;;  %v4340_v61 = vcombine.high %v4336_v49, %v4336_v49  ;;  %11333 = vst.msk [vmem:[%s12271_s27 + $0x157] sm:$0x1] %vm631_vm0, %v4336_v49  ;;  %v4438_v27 = vpop.trf.xlu0 }
 0x15b   : > { %11334 = vst.msk [vmem:[%s12271_s27 + $0x197] sm:$0x1] %vm631_vm0, %v4338_v52  ;;  %v4174_v62 = vcombine.high %v4158_v53, %v4158_v53  ;;  %v4175_v63 = vcombine.high %v4165_v54, %v4165_v54  ;;  %11313 = vst.msk [vmem:[%s12271_s27 + $0x56] sm:$0x1] %vm631_vm0, %v4165_v54  ;;  %v4355_v2 = vrot.slane %v4341_v41, %v12255_v29 }
 0x15c   : > { %11316 = vst.msk [vmem:[%s12271_s27 + $0x116] sm:$0x1] %vm631_vm0, %v4158_v53  ;;  %11331 = vst.msk [vmem:[%s12271_s27 + $0xd7] sm:$0x1] %vm631_vm0, %v4339_v56  ;;  %v4176_v4 = vcombine.high %v4172_v57, %v4172_v57  ;;  %v4356_v5 = vcombine.high %v4348_v59, %v4348_v59  ;;  %v4364_v7 = vrot.slane %v4348_v59, %v12255_v29 }
 0x15d   : > { %11314 = vst.msk [vmem:[%s12271_s27 + $0x96] sm:$0x1] %vm631_vm0, %v4173_v58  ;;  %11317 = vst.msk [vmem:[%s12271_s27 + $0x156] sm:$0x1] %vm631_vm0, %v4172_v57  ;;  %v4177_v8 = vcombine.high %v4111_v55, %v4111_v55  ;;  %v4357_v9 = vcombine.high %v4355_v2, %v4355_v2  ;;  %v4371_v10 = vrot.slane %v4355_v2, %v12255_v29 }
 0x15e   : > { %11335 = vst.msk [vmem:[%s12271_s27 + $0x1d7] sm:$0x1] %vm631_vm0, %v4340_v61  ;;  %11315 = vst.msk [vmem:[%s12271_s27 + $0xd6] sm:$0x1] %vm631_vm0, %v4175_v63  ;;  %v4184_v11 = vrot.slane %v4111_v55, %v12255_v29  ;;  %v341_v12 = vmul.f32 %v13227_v6, %v270_v60  ;;  %v4378_v13 = vrot.slane %v4356_v5, %v12255_v29  ;;  %v4439_v52 = vpop.trf.xlu0 }
 0x15f   : > { %11318 = vst.msk [vmem:[%s12271_s27 + $0x196] sm:$0x1] %vm631_vm0, %v4174_v62  ;;  %11319 = vst.msk [vmem:[%s12271_s27 + $0x1d6] sm:$0x1] %vm631_vm0, %v4176_v4  ;;  %v4386_v14 = vcombine.high %v4364_v7, %v4364_v7  ;;  %v4191_v16 = vrot.slane %v4177_v8, %v12255_v29  ;;  %v4621_v17 = vcombine.high %v4603_v3, %v4603_v3 }
 0x160   : > { %11336 = vst.msk [vmem:[%s12271_s27 + $0x217] sm:$0x1] %vm631_vm0, %v4364_v7  ;;  %v4385_v18 = vrot.slane %v4357_v9, %v12255_v29  ;;  %v4387_v19 = vcombine.high %v4371_v10, %v4371_v10  ;;  %11340 = vst.msk [vmem:[%s12271_s27 + $0x317] sm:$0x1] %vm631_vm0, %v4371_v10  ;;  %v4192_v20 = vcombine.high %v4184_v11, %v4184_v11 }
 0x161   : > { %v4200_v21 = vrot.slane %v4184_v11, %v12255_v29  ;;  %v4388_v22 = vcombine.high %v4378_v13, %v4378_v13  ;;  %11337 = vst.msk [vmem:[%s12271_s27 + $0x257] sm:$0x1] %vm631_vm0, %v4378_v13  ;;  %11338 = vst.msk [vmem:[%s12271_s27 + $0x297] sm:$0x1] %vm631_vm0, %v4386_v14  ;;  %v4193_v23 = vcombine.high %v4191_v16, %v4191_v16  ;;  %v4931_v13 = vpop.trf.xlu1 }
 0x162   : > { %v4207_v24 = vrot.slane %v4191_v16, %v12255_v29  ;;  %v412_v25 = vadd.f32 %v13243_v15, %v341_v12  ;;  %v4389_v28 = vcombine.high %v4385_v18, %v4385_v18  ;;  %11341 = vst.msk [vmem:[%s12271_s27 + $0x357] sm:$0x1] %vm631_vm0, %v4385_v18  ;;  %11342 = vst.msk [vmem:[%s12271_s27 + $0x397] sm:$0x1] %vm631_vm0, %v4387_v19  ;;  %v272_v12 = vld [vmem:[%s12090_s21 + $0x1d8] sm:$0xff] }
 0x163   : > { %v4214_v30 = vrot.slane %v4192_v20, %v12255_v29  ;;  %v4222_v31 = vcombine.high %v4200_v21, %v4200_v21  ;;  %11320 = vst.msk [vmem:[%s12271_s27 + $0x216] sm:$0x1] %vm631_vm0, %v4200_v21  ;;  %v4628_v32 = vrot.slane %v4603_v3, %v12255_v29  ;;  %11339 = vst.msk [vmem:[%s12271_s27 + $0x2d7] sm:$0x1] %vm631_vm0, %v4388_v22 }
 0x164   : > { %v4221_v33 = vrot.slane %v4193_v23, %v12255_v29  ;;  %v4223_v36 = vcombine.high %v4207_v24, %v4207_v24  ;;  %11324 = vst.msk [vmem:[%s12271_s27 + $0x316] sm:$0x1] %vm631_vm0, %v4207_v24  ;;  %v476_v0 = vmax.f32 %v412_v25, 0.0  ;;  %v4635_v37 = vrot.slane %v4621_v17, %v12255_v29  ;;  %11343 = vst.msk [vmem:[%s12271_s27 + $0x3d7] sm:$0x1] %vm631_vm0, %v4389_v28  ;;  %v4767_v28 = vpop.trf.xlu0 }
 0x165   : > { %v4224_v38 = vcombine.high %v4214_v30, %v4214_v30  ;;  %11321 = vst.msk [vmem:[%s12271_s27 + $0x256] sm:$0x1] %vm631_vm0, %v4214_v30  ;;  %11322 = vst.msk [vmem:[%s12271_s27 + $0x296] sm:$0x1] %vm631_vm0, %v4222_v31  ;;  %v4636_v39 = vcombine.high %v4628_v32, %v4628_v32  ;;  %v4644_v40 = vrot.slane %v4628_v32, %v12255_v29 }
 0x166   : > { %v340_v41 = vmul.f32 %v13227_v6, %v269_v26  ;;  %v4225_v1 = vcombine.high %v4221_v33, %v4221_v33  ;;  %11325 = vst.msk [vmem:[%s12271_s27 + $0x356] sm:$0x1] %vm631_vm0, %v4221_v33  ;;  %11326 = vst.msk [vmem:[%s12271_s27 + $0x396] sm:$0x1] %vm631_vm0, %v4223_v36  ;;  %9839 = vxpose.xlu1.b32.start.end [1/1] (short) (narrow) %v476_v0, 16  ;;  %v4637_v43 = vcombine.high %v4635_v37, %v4635_v37 }
 0x167   : > { %v4651_v44 = vrot.slane %v4635_v37, %v12255_v29  ;;  %v4456_v45 = vcombine.high %v4438_v27, %v4438_v27  ;;  %11323 = vst.msk [vmem:[%s12271_s27 + $0x2d6] sm:$0x1] %vm631_vm0, %v4224_v38  ;;  %v4658_v34 = vrot.slane %v4636_v39, %v12255_v29  ;;  %v4666_v46 = vcombine.high %v4644_v40, %v4644_v40 }
 0x168   : > { %11360 = vst.msk [vmem:[%s12271_s27 + $0x19] sm:$0x1] %vm631_vm0, %v4644_v40  ;;  %v411_v47 = vadd.f32 %v13243_v15, %v340_v41  ;;  %v4463_v48 = vrot.slane %v4438_v27, %v12255_v29  ;;  %11327 = vst.msk [vmem:[%s12271_s27 + $0x3d6] sm:$0x1] %vm631_vm0, %v4225_v1  ;;  %v4665_v50 = vrot.slane %v4637_v43, %v12255_v29  ;;  %v271_v27 = vld [vmem:[%s12090_s21 + $0x1d0] sm:$0xff]  ;;  %v4932_v1 = vpop.trf.xlu1 }
 0x169   : > { %v4667_v51 = vcombine.high %v4651_v44, %v4651_v44  ;;  %11364 = vst.msk [vmem:[%s12271_s27 + $0x119] sm:$0x1] %vm631_vm0, %v4651_v44  ;;  %v4470_v35 = vrot.slane %v4456_v45, %v12255_v29  ;;  %v4670_v49 = vcombine.high %v4604_v42, %v4604_v42  ;;  %v4668_v53 = vcombine.high %v4658_v34, %v4658_v34 }
 0x16a   : > { %11361 = vst.msk [vmem:[%s12271_s27 + $0x59] sm:$0x1] %vm631_vm0, %v4658_v34  ;;  %11362 = vst.msk [vmem:[%s12271_s27 + $0x99] sm:$0x1] %vm631_vm0, %v4666_v46  ;;  %v475_v54 = vmax.f32 %v411_v47, 0.0  ;;  %v4471_v55 = vcombine.high %v4463_v48, %v4463_v48  ;;  %v4479_v56 = vrot.slane %v4463_v48, %v12255_v29  ;;  %v4669_v57 = vcombine.high %v4665_v50, %v4665_v50 }
 0x16b   : > { %11365 = vst.msk [vmem:[%s12271_s27 + $0x159] sm:$0x1] %vm631_vm0, %v4665_v50  ;;  %11366 = vst.msk [vmem:[%s12271_s27 + $0x199] sm:$0x1] %vm631_vm0, %v4667_v51  ;;  %v4472_v58 = vcombine.high %v4470_v35, %v4470_v35  ;;  %v4486_v59 = vrot.slane %v4470_v35, %v12255_v29  ;;  %v4677_v60 = vrot.slane %v4604_v42, %v12255_v29 }
 0x16c   : > { %11363 = vst.msk [vmem:[%s12271_s27 + $0xd9] sm:$0x1] %vm631_vm0, %v4668_v53  ;;  %9674 = vxpose.xlu0.b32.start.end [1/1] (short) (narrow) %v475_v54, 16  ;;  %v4493_v61 = vrot.slane %v4471_v55, %v12255_v29  ;;  %v4501_v62 = vcombine.high %v4479_v56, %v4479_v56  ;;  %11344 = vst.msk [vmem:[%s12271_s27 + $0x18] sm:$0x1] %vm631_vm0, %v4479_v56  ;;  %v4684_v63 = vrot.slane %v4670_v49, %v12255_v29 }
 0x16d   : > { %v4505_v2 = vcombine.high %v4439_v52, %v4439_v52  ;;  %11367 = vst.msk [vmem:[%s12271_s27 + $0x1d9] sm:$0x1] %vm631_vm0, %v4669_v57  ;;  %v4500_v3 = vrot.slane %v4472_v58, %v12255_v29  ;;  %v4502_v4 = vcombine.high %v4486_v59, %v4486_v59  ;;  %11348 = vst.msk [vmem:[%s12271_s27 + $0x118] sm:$0x1] %vm631_vm0, %v4486_v59  ;;  %v4768_v57 = vpop.trf.xlu0 }
 0x16e   : > { %v4685_v5 = vcombine.high %v4677_v60, %v4677_v60  ;;  %v4693_v7 = vrot.slane %v4677_v60, %v12255_v29  ;;  %v4503_v8 = vcombine.high %v4493_v61, %v4493_v61  ;;  %11345 = vst.msk [vmem:[%s12271_s27 + $0x58] sm:$0x1] %vm631_vm0, %v4493_v61  ;;  %11346 = vst.msk [vmem:[%s12271_s27 + $0x98] sm:$0x1] %vm631_vm0, %v4501_v62 }
 0x16f   : > { %v4686_v9 = vcombine.high %v4684_v63, %v4684_v63  ;;  %v4700_v10 = vrot.slane %v4684_v63, %v12255_v29  ;;  %v4512_v11 = vrot.slane %v4439_v52, %v12255_v29  ;;  %v4504_v14 = vcombine.high %v4500_v3, %v4500_v3  ;;  %11349 = vst.msk [vmem:[%s12271_s27 + $0x158] sm:$0x1] %vm631_vm0, %v4500_v3 }
 0x170   : > { %11350 = vst.msk [vmem:[%s12271_s27 + $0x198] sm:$0x1] %vm631_vm0, %v4502_v4  ;;  %v4707_v16 = vrot.slane %v4685_v5, %v12255_v29  ;;  %v4715_v17 = vcombine.high %v4693_v7, %v4693_v7  ;;  %11368 = vst.msk [vmem:[%s12271_s27 + $0x219] sm:$0x1] %vm631_vm0, %v4693_v7  ;;  %v4519_v18 = vrot.slane %v4505_v2, %v12255_v29 }
 0x171   : > { %11347 = vst.msk [vmem:[%s12271_s27 + $0xd8] sm:$0x1] %vm631_vm0, %v4503_v8  ;;  %v4714_v19 = vrot.slane %v4686_v9, %v12255_v29  ;;  %v4716_v20 = vcombine.high %v4700_v10, %v4700_v10  ;;  %11372 = vst.msk [vmem:[%s12271_s27 + $0x319] sm:$0x1] %vm631_vm0, %v4700_v10  ;;  %v4520_v21 = vcombine.high %v4512_v11, %v4512_v11  ;;  %v274_v9 = vld [vmem:[%s12090_s21 + $0x1e8] sm:$0xff] }
 0x172   : > { %v4528_v22 = vrot.slane %v4512_v11, %v12255_v29  ;;  %11351 = vst.msk [vmem:[%s12271_s27 + $0x1d8] sm:$0x1] %vm631_vm0, %v4504_v14  ;;  %v4717_v23 = vcombine.high %v4707_v16, %v4707_v16  ;;  %11369 = vst.msk [vmem:[%s12271_s27 + $0x259] sm:$0x1] %vm631_vm0, %v4707_v16  ;;  %v4521_v24 = vcombine.high %v4519_v18, %v4519_v18  ;;  %v5259_v14 = vpop.trf.xlu1 }
 0x173   : > { %11370 = vst.msk [vmem:[%s12271_s27 + $0x299] sm:$0x1] %vm631_vm0, %v4715_v17  ;;  %v4535_v25 = vrot.slane %v4519_v18, %v12255_v29  ;;  %v343_v26 = vmul.f32 %v13227_v6, %v272_v12  ;;  %v4718_v30 = vcombine.high %v4714_v19, %v4714_v19  ;;  %11373 = vst.msk [vmem:[%s12271_s27 + $0x359] sm:$0x1] %vm631_vm0, %v4714_v19 }
 0x174   : > { %11374 = vst.msk [vmem:[%s12271_s27 + $0x399] sm:$0x1] %vm631_vm0, %v4716_v20  ;;  %v4542_v31 = vrot.slane %v4520_v21, %v12255_v29  ;;  %v4550_v32 = vcombine.high %v4528_v22, %v4528_v22  ;;  %11352 = vst.msk [vmem:[%s12271_s27 + $0x218] sm:$0x1] %vm631_vm0, %v4528_v22  ;;  %v4949_v33 = vcombine.high %v4931_v13, %v4931_v13 }
 0x175   : > { %11371 = vst.msk [vmem:[%s12271_s27 + $0x2d9] sm:$0x1] %vm631_vm0, %v4717_v23  ;;  %v4549_v36 = vrot.slane %v4521_v24, %v12255_v29  ;;  %v4551_v0 = vcombine.high %v4535_v25, %v4535_v25  ;;  %11356 = vst.msk [vmem:[%s12271_s27 + $0x318] sm:$0x1] %vm631_vm0, %v4535_v25  ;;  %v414_v37 = vadd.f32 %v13243_v15, %v343_v26 }
 0x176   : > { %v4956_v38 = vrot.slane %v4931_v13, %v12255_v29  ;;  %11375 = vst.msk [vmem:[%s12271_s27 + $0x3d9] sm:$0x1] %vm631_vm0, %v4718_v30  ;;  %v4552_v39 = vcombine.high %v4542_v31, %v4542_v31  ;;  %11353 = vst.msk [vmem:[%s12271_s27 + $0x258] sm:$0x1] %vm631_vm0, %v4542_v31  ;;  %v4963_v40 = vrot.slane %v4949_v33, %v12255_v29 }
 0x177   : > { %11354 = vst.msk [vmem:[%s12271_s27 + $0x298] sm:$0x1] %vm631_vm0, %v4550_v32  ;;  %v342_v41 = vmul.f32 %v13227_v6, %v271_v27  ;;  %v4785_v42 = vcombine.high %v4767_v28, %v4767_v28  ;;  %v4553_v43 = vcombine.high %v4549_v36, %v4549_v36  ;;  %11357 = vst.msk [vmem:[%s12271_s27 + $0x358] sm:$0x1] %vm631_vm0, %v4549_v36  ;;  %v478_v44 = vmax.f32 %v414_v37, 0.0  ;;  %v5095_v36 = vpop.trf.xlu0 }
 0x178   : > { %11358 = vst.msk [vmem:[%s12271_s27 + $0x398] sm:$0x1] %vm631_vm0, %v4551_v0  ;;  %v4964_v45 = vcombine.high %v4956_v38, %v4956_v38  ;;  %v4972_v34 = vrot.slane %v4956_v38, %v12255_v29  ;;  %11355 = vst.msk [vmem:[%s12271_s27 + $0x2d8] sm:$0x1] %vm631_vm0, %v4552_v39  ;;  %v4965_v46 = vcombine.high %v4963_v40, %v4963_v40 }
 0x179   : > { %v4979_v47 = vrot.slane %v4963_v40, %v12255_v29  ;;  %v413_v48 = vadd.f32 %v13243_v15, %v342_v41  ;;  %v4792_v50 = vrot.slane %v4767_v28, %v12255_v29  ;;  %11359 = vst.msk [vmem:[%s12271_s27 + $0x3d8] sm:$0x1] %vm631_vm0, %v4553_v43  ;;  %10167 = vxpose.xlu1.b32.start.end [1/1] (short) (narrow) %v478_v44, 16  ;;  %v273_v28 = vld [vmem:[%s12090_s21 + $0x1e0] sm:$0xff]  ;;  %v5260_v43 = vpop.trf.xlu1 }
 0x17a   : > { %v4986_v51 = vrot.slane %v4964_v45, %v12255_v29  ;;  %v4994_v35 = vcombine.high %v4972_v34, %v4972_v34  ;;  %11392 = vst.msk [vmem:[%s12271_s27 + $0x1b] sm:$0x1] %vm631_vm0, %v4972_v34  ;;  %v4799_v49 = vrot.slane %v4785_v42, %v12255_v29  ;;  %v4998_v52 = vcombine.high %v4932_v1, %v4932_v1 }
 0x17b   : > { %v4993_v53 = vrot.slane %v4965_v46, %v12255_v29  ;;  %v4995_v54 = vcombine.high %v4979_v47, %v4979_v47  ;;  %11396 = vst.msk [vmem:[%s12271_s27 + $0x11b] sm:$0x1] %vm631_vm0, %v4979_v47  ;;  %v477_v55 = vmax.f32 %v413_v48, 0.0  ;;  %v4800_v56 = vcombine.high %v4792_v50, %v4792_v50 }
 0x17c   : > { %v4996_v58 = vcombine.high %v4986_v51, %v4986_v51  ;;  %11393 = vst.msk [vmem:[%s12271_s27 + $0x5b] sm:$0x1] %vm631_vm0, %v4986_v51  ;;  %11394 = vst.msk [vmem:[%s12271_s27 + $0x9b] sm:$0x1] %vm631_vm0, %v4994_v35  ;;  %v4801_v59 = vcombine.high %v4799_v49, %v4799_v49  ;;  %v4808_v60 = vrot.slane %v4792_v50, %v12255_v29 }
 0x17d   : > { %v4815_v61 = vrot.slane %v4799_v49, %v12255_v29  ;;  %v4997_v62 = vcombine.high %v4993_v53, %v4993_v53  ;;  %11397 = vst.msk [vmem:[%s12271_s27 + $0x15b] sm:$0x1] %vm631_vm0, %v4993_v53  ;;  %11398 = vst.msk [vmem:[%s12271_s27 + $0x19b] sm:$0x1] %vm631_vm0, %v4995_v54  ;;  %10003 = vxpose.xlu0.b32.start.end [1/1] (short) (narrow) %v477_v55, 16  ;;  %v4822_v63 = vrot.slane %v4800_v56, %v12255_v29 }
 0x17e   : > { %v5005_v2 = vrot.slane %v4932_v1, %v12255_v29  ;;  %v5012_v3 = vrot.slane %v4998_v52, %v12255_v29  ;;  %11395 = vst.msk [vmem:[%s12271_s27 + $0xdb] sm:$0x1] %vm631_vm0, %v4996_v58  ;;  %v4829_v4 = vrot.slane %v4801_v59, %v12255_v29  ;;  %v4830_v5 = vcombine.high %v4808_v60, %v4808_v60 }
 0x17f   : > { %v4831_v7 = vcombine.high %v4815_v61, %v4815_v61  ;;  %11376 = vst.msk [vmem:[%s12271_s27 + $0x1a] sm:$0x1] %vm631_vm0, %v4808_v60  ;;  %11380 = vst.msk [vmem:[%s12271_s27 + $0x11a] sm:$0x1] %vm631_vm0, %v4815_v61  ;;  %v4834_v8 = vcombine.high %v4768_v57, %v4768_v57  ;;  %v4832_v10 = vcombine.high %v4822_v63, %v4822_v63 }
 0x180   : > { %11399 = vst.msk [vmem:[%s12271_s27 + $0x1db] sm:$0x1] %vm631_vm0, %v4997_v62  ;;  %11377 = vst.msk [vmem:[%s12271_s27 + $0x5a] sm:$0x1] %vm631_vm0, %v4822_v63  ;;  %v5013_v11 = vcombine.high %v5005_v2, %v5005_v2  ;;  %v5014_v12 = vcombine.high %v5012_v3, %v5012_v3  ;;  %v5021_v13 = vrot.slane %v5005_v2, %v12255_v29 }
 0x181   : > { %v4833_v16 = vcombine.high %v4829_v4, %v4829_v4  ;;  %11378 = vst.msk [vmem:[%s12271_s27 + $0x9a] sm:$0x1] %vm631_vm0, %v4830_v5  ;;  %11381 = vst.msk [vmem:[%s12271_s27 + $0x15a] sm:$0x1] %vm631_vm0, %v4829_v4  ;;  %v5028_v17 = vrot.slane %v5012_v3, %v12255_v29  ;;  %v4841_v18 = vrot.slane %v4768_v57, %v12255_v29  ;;  %v5096_v4 = vpop.trf.xlu0 }
 0x182   : > { %11382 = vst.msk [vmem:[%s12271_s27 + $0x19a] sm:$0x1] %vm631_vm0, %v4831_v7  ;;  %v4848_v19 = vrot.slane %v4834_v8, %v12255_v29  ;;  %11379 = vst.msk [vmem:[%s12271_s27 + $0xda] sm:$0x1] %vm631_vm0, %v4832_v10  ;;  %v5035_v20 = vrot.slane %v5013_v11, %v12255_v29  ;;  %v5042_v21 = vrot.slane %v5014_v12, %v12255_v29  ;;  %v276_v10 = vld [vmem:[%s12090_s21 + $0x1f8] sm:$0xff] }
 0x183   : > { %v5043_v22 = vcombine.high %v5021_v13, %v5021_v13  ;;  %11400 = vst.msk [vmem:[%s12271_s27 + $0x21b] sm:$0x1] %vm631_vm0, %v5021_v13  ;;  %v345_v23 = vmul.f32 %v13227_v6, %v274_v9  ;;  %11383 = vst.msk [vmem:[%s12271_s27 + $0x1da] sm:$0x1] %vm631_vm0, %v4833_v16  ;;  %v5044_v24 = vcombine.high %v5028_v17, %v5028_v17  ;;  %v5587_v16 = vpop.trf.xlu1 }
 0x184   : > { %11404 = vst.msk [vmem:[%s12271_s27 + $0x31b] sm:$0x1] %vm631_vm0, %v5028_v17  ;;  %v4849_v25 = vcombine.high %v4841_v18, %v4841_v18  ;;  %v4850_v26 = vcombine.high %v4848_v19, %v4848_v19  ;;  %v4857_v27 = vrot.slane %v4841_v18, %v12255_v29  ;;  %v5045_v30 = vcombine.high %v5035_v20, %v5035_v20 }
 0x185   : > { %v5046_v31 = vcombine.high %v5042_v21, %v5042_v21  ;;  %11401 = vst.msk [vmem:[%s12271_s27 + $0x25b] sm:$0x1] %vm631_vm0, %v5035_v20  ;;  %11402 = vst.msk [vmem:[%s12271_s27 + $0x29b] sm:$0x1] %vm631_vm0, %v5043_v22  ;;  %v4864_v32 = vrot.slane %v4848_v19, %v12255_v29  ;;  %v416_v33 = vadd.f32 %v13243_v15, %v345_v23 }
 0x186   : > { %11405 = vst.msk [vmem:[%s12271_s27 + $0x35b] sm:$0x1] %vm631_vm0, %v5042_v21  ;;  %11406 = vst.msk [vmem:[%s12271_s27 + $0x39b] sm:$0x1] %vm631_vm0, %v5044_v24  ;;  %v4871_v0 = vrot.slane %v4849_v25, %v12255_v29  ;;  %v4878_v37 = vrot.slane %v4850_v26, %v12255_v29  ;;  %v4879_v38 = vcombine.high %v4857_v27, %v4857_v27 }
 0x187   : > { %11384 = vst.msk [vmem:[%s12271_s27 + $0x21a] sm:$0x1] %vm631_vm0, %v4857_v27  ;;  %v5277_v39 = vcombine.high %v5259_v14, %v5259_v14  ;;  %11403 = vst.msk [vmem:[%s12271_s27 + $0x2db] sm:$0x1] %vm631_vm0, %v5045_v30  ;;  %v4880_v40 = vcombine.high %v4864_v32, %v4864_v32  ;;  %v480_v41 = vmax.f32 %v416_v33, 0.0  ;;  %v5284_v42 = vrot.slane %v5259_v14, %v12255_v29 }
 0x188   : > { %11407 = vst.msk [vmem:[%s12271_s27 + $0x3db] sm:$0x1] %vm631_vm0, %v5046_v31  ;;  %11388 = vst.msk [vmem:[%s12271_s27 + $0x31a] sm:$0x1] %vm631_vm0, %v4864_v32  ;;  %v344_v1 = vmul.f32 %v13227_v6, %v273_v28  ;;  %v4881_v44 = vcombine.high %v4871_v0, %v4871_v0  ;;  %v4882_v45 = vcombine.high %v4878_v37, %v4878_v37 }
 0x189   : > { %11385 = vst.msk [vmem:[%s12271_s27 + $0x25a] sm:$0x1] %vm631_vm0, %v4871_v0  ;;  %11386 = vst.msk [vmem:[%s12271_s27 + $0x29a] sm:$0x1] %vm631_vm0, %v4879_v38  ;;  %v5291_v34 = vrot.slane %v5277_v39, %v12255_v29  ;;  %v5113_v46 = vcombine.high %v5095_v36, %v5095_v36  ;;  %10495 = vxpose.xlu1.b32.start.end [1/1] (short) (narrow) %v480_v41, 16  ;;  %v5292_v47 = vcombine.high %v5284_v42, %v5284_v42  ;;  %v275_v39 = vld [vmem:[%s12090_s21 + $0x1f0] sm:$0xff] }
 0x18a   : > { %11389 = vst.msk [vmem:[%s12271_s27 + $0x35a] sm:$0x1] %vm631_vm0, %v4878_v37  ;;  %11390 = vst.msk [vmem:[%s12271_s27 + $0x39a] sm:$0x1] %vm631_vm0, %v4880_v40  ;;  %v5300_v48 = vrot.slane %v5284_v42, %v12255_v29  ;;  %v415_v50 = vadd.f32 %v13243_v15, %v344_v1  ;;  %v5120_v51 = vrot.slane %v5095_v36, %v12255_v29  ;;  %v5423_v40 = vpop.trf.xlu0 }
 0x18b   : > { %11387 = vst.msk [vmem:[%s12271_s27 + $0x2da] sm:$0x1] %vm631_vm0, %v4881_v44  ;;  %11391 = vst.msk [vmem:[%s12271_s27 + $0x3da] sm:$0x1] %vm631_vm0, %v4882_v45  ;;  %v5293_v35 = vcombine.high %v5291_v34, %v5291_v34  ;;  %v5307_v49 = vrot.slane %v5291_v34, %v12255_v29  ;;  %v5127_v52 = vrot.slane %v5113_v46, %v12255_v29 }
 0x18c   : > { %v5326_v53 = vcombine.high %v5260_v43, %v5260_v43  ;;  %v5314_v54 = vrot.slane %v5292_v47, %v12255_v29  ;;  %v5322_v55 = vcombine.high %v5300_v48, %v5300_v48  ;;  %11424 = vst.msk [vmem:[%s12271_s27 + $0x1d] sm:$0x1] %vm631_vm0, %v5300_v48  ;;  %v479_v56 = vmax.f32 %v415_v50, 0.0 }
 0x18d   : > { %v5128_v57 = vcombine.high %v5120_v51, %v5120_v51  ;;  %v5321_v58 = vrot.slane %v5293_v35, %v12255_v29  ;;  %v5323_v59 = vcombine.high %v5307_v49, %v5307_v49  ;;  %11428 = vst.msk [vmem:[%s12271_s27 + $0x11d] sm:$0x1] %vm631_vm0, %v5307_v49  ;;  %v5129_v60 = vcombine.high %v5127_v52, %v5127_v52  ;;  %v5588_v35 = vpop.trf.xlu1 }
 0x18e   : > { %v5136_v61 = vrot.slane %v5120_v51, %v12255_v29  ;;  %v5324_v62 = vcombine.high %v5314_v54, %v5314_v54  ;;  %11425 = vst.msk [vmem:[%s12271_s27 + $0x5d] sm:$0x1] %vm631_vm0, %v5314_v54  ;;  %11426 = vst.msk [vmem:[%s12271_s27 + $0x9d] sm:$0x1] %vm631_vm0, %v5322_v55  ;;  %10331 = vxpose.xlu0.b32.start.end [1/1] (short) (narrow) %v479_v56, 16  ;;  %v5143_v63 = vrot.slane %v5127_v52, %v12255_v29 }
 0x18f   : > { %v5150_v2 = vrot.slane %v5128_v57, %v12255_v29  ;;  %v5333_v3 = vrot.slane %v5260_v43, %v12255_v29  ;;  %v5325_v5 = vcombine.high %v5321_v58, %v5321_v58  ;;  %11429 = vst.msk [vmem:[%s12271_s27 + $0x15d] sm:$0x1] %vm631_vm0, %v5321_v58  ;;  %11430 = vst.msk [vmem:[%s12271_s27 + $0x19d] sm:$0x1] %vm631_vm0, %v5323_v59 }
 0x190   : > { %v5157_v7 = vrot.slane %v5129_v60, %v12255_v29  ;;  %v5158_v8 = vcombine.high %v5136_v61, %v5136_v61  ;;  %11408 = vst.msk [vmem:[%s12271_s27 + $0x1c] sm:$0x1] %vm631_vm0, %v5136_v61  ;;  %v5340_v9 = vrot.slane %v5326_v53, %v12255_v29  ;;  %11427 = vst.msk [vmem:[%s12271_s27 + $0xdd] sm:$0x1] %vm631_vm0, %v5324_v62  ;;  %v5424_v62 = vpop.trf.xlu0 }
 0x191   : > { %v5159_v11 = vcombine.high %v5143_v63, %v5143_v63  ;;  %v5160_v12 = vcombine.high %v5150_v2, %v5150_v2  ;;  %11409 = vst.msk [vmem:[%s12271_s27 + $0x5c] sm:$0x1] %vm631_vm0, %v5150_v2  ;;  %11412 = vst.msk [vmem:[%s12271_s27 + $0x11c] sm:$0x1] %vm631_vm0, %v5143_v63  ;;  %v5341_v13 = vcombine.high %v5333_v3, %v5333_v3 }
 0x192   : > { %v5349_v14 = vrot.slane %v5333_v3, %v12255_v29  ;;  %11431 = vst.msk [vmem:[%s12271_s27 + $0x1dd] sm:$0x1] %vm631_vm0, %v5325_v5  ;;  %v5161_v17 = vcombine.high %v5157_v7, %v5157_v7  ;;  %11410 = vst.msk [vmem:[%s12271_s27 + $0x9c] sm:$0x1] %vm631_vm0, %v5158_v8  ;;  %v5342_v18 = vcombine.high %v5340_v9, %v5340_v9 }
 0x193   : > { %11413 = vst.msk [vmem:[%s12271_s27 + $0x15c] sm:$0x1] %vm631_vm0, %v5157_v7  ;;  %v5356_v19 = vrot.slane %v5340_v9, %v12255_v29  ;;  %v5162_v20 = vcombine.high %v5096_v4, %v5096_v4  ;;  %11411 = vst.msk [vmem:[%s12271_s27 + $0xdc] sm:$0x1] %vm631_vm0, %v5160_v12  ;;  %v5363_v21 = vrot.slane %v5341_v13, %v12255_v29  ;;  %v5916_v13 = vpop.trf.xlu1 }
 0x194   : > { %11414 = vst.msk [vmem:[%s12271_s27 + $0x19c] sm:$0x1] %vm631_vm0, %v5159_v11  ;;  %v5371_v22 = vcombine.high %v5349_v14, %v5349_v14  ;;  %11432 = vst.msk [vmem:[%s12271_s27 + $0x21d] sm:$0x1] %vm631_vm0, %v5349_v14  ;;  %v5169_v23 = vrot.slane %v5096_v4, %v12255_v29  ;;  %v347_v24 = vmul.f32 %v13227_v6, %v276_v10 }
 0x195   : > { %11415 = vst.msk [vmem:[%s12271_s27 + $0x1dc] sm:$0x1] %vm631_vm0, %v5161_v17  ;;  %v5370_v25 = vrot.slane %v5342_v18, %v12255_v29  ;;  %v5372_v26 = vcombine.high %v5356_v19, %v5356_v19  ;;  %11436 = vst.msk [vmem:[%s12271_s27 + $0x31d] sm:$0x1] %vm631_vm0, %v5356_v19  ;;  %v5176_v27 = vrot.slane %v5162_v20, %v12255_v29 }
 0x196   : > { %v5605_v28 = vcombine.high %v5587_v16, %v5587_v16  ;;  %v5373_v30 = vcombine.high %v5363_v21, %v5363_v21  ;;  %11433 = vst.msk [vmem:[%s12271_s27 + $0x25d] sm:$0x1] %vm631_vm0, %v5363_v21  ;;  %11434 = vst.msk [vmem:[%s12271_s27 + $0x29d] sm:$0x1] %vm631_vm0, %v5371_v22  ;;  %v5177_v31 = vcombine.high %v5169_v23, %v5169_v23 }
 0x197   : > { %v5185_v32 = vrot.slane %v5169_v23, %v12255_v29  ;;  %v418_v33 = vadd.f32 %v13243_v15, %v347_v24  ;;  %v5374_v36 = vcombine.high %v5370_v25, %v5370_v25  ;;  %11437 = vst.msk [vmem:[%s12271_s27 + $0x35d] sm:$0x1] %vm631_vm0, %v5370_v25  ;;  %11438 = vst.msk [vmem:[%s12271_s27 + $0x39d] sm:$0x1] %vm631_vm0, %v5372_v26 }
 0x198   : > { %v5178_v0 = vcombine.high %v5176_v27, %v5176_v27  ;;  %v5192_v37 = vrot.slane %v5176_v27, %v12255_v29  ;;  %v5612_v38 = vrot.slane %v5587_v16, %v12255_v29  ;;  %11435 = vst.msk [vmem:[%s12271_s27 + $0x2dd] sm:$0x1] %vm631_vm0, %v5373_v30  ;;  %v5199_v41 = vrot.slane %v5177_v31, %v12255_v29  ;;  %v5751_v27 = vpop.trf.xlu0 }
 0x199   : > { %v5207_v42 = vcombine.high %v5185_v32, %v5185_v32  ;;  %11416 = vst.msk [vmem:[%s12271_s27 + $0x21c] sm:$0x1] %vm631_vm0, %v5185_v32  ;;  %v482_v1 = vmax.f32 %v418_v33, 0.0  ;;  %v5619_v43 = vrot.slane %v5605_v28, %v12255_v29  ;;  %11439 = vst.msk [vmem:[%s12271_s27 + $0x3dd] sm:$0x1] %vm631_vm0, %v5374_v36  ;;  %v346_v51 = vmul.f32 %v13227_v6, %v275_v39 }
 0x19a   : > { %v5206_v44 = vrot.slane %v5178_v0, %v12255_v29  ;;  %v5208_v45 = vcombine.high %v5192_v37, %v5192_v37  ;;  %11420 = vst.msk [vmem:[%s12271_s27 + $0x31c] sm:$0x1] %vm631_vm0, %v5192_v37  ;;  %v5620_v34 = vcombine.high %v5612_v38, %v5612_v38  ;;  %v5628_v46 = vrot.slane %v5612_v38, %v12255_v29 }
 0x19b   : > { %v5209_v47 = vcombine.high %v5199_v41, %v5199_v41  ;;  %11417 = vst.msk [vmem:[%s12271_s27 + $0x25c] sm:$0x1] %vm631_vm0, %v5199_v41  ;;  %11418 = vst.msk [vmem:[%s12271_s27 + $0x29c] sm:$0x1] %vm631_vm0, %v5207_v42  ;;  %10823 = vxpose.xlu1.b32.start.end [1/1] (short) (narrow) %v482_v1, 16  ;;  %v5621_v48 = vcombine.high %v5619_v43, %v5619_v43  ;;  %v5635_v50 = vrot.slane %v5619_v43, %v12255_v29  ;;  %v5917_v42 = vpop.trf.xlu1 }
 0x19c   : > { %v5210_v49 = vcombine.high %v5206_v44, %v5206_v44  ;;  %11421 = vst.msk [vmem:[%s12271_s27 + $0x35c] sm:$0x1] %vm631_vm0, %v5206_v44  ;;  %11422 = vst.msk [vmem:[%s12271_s27 + $0x39c] sm:$0x1] %vm631_vm0, %v5208_v45  ;;  %v5642_v52 = vrot.slane %v5620_v34, %v12255_v29  ;;  %v5650_v53 = vcombine.high %v5628_v46, %v5628_v46 }
 0x19d   : > { %11456 = vst.msk [vmem:[%s12271_s27 + $0x1f] sm:$0x1] %vm631_vm0, %v5628_v46  ;;  %v5441_v54 = vcombine.high %v5423_v40, %v5423_v40  ;;  %11419 = vst.msk [vmem:[%s12271_s27 + $0x2dc] sm:$0x1] %vm631_vm0, %v5209_v47  ;;  %v5649_v6 = vrot.slane %v5621_v48, %v12255_v29  ;;  %v5651_v55 = vcombine.high %v5635_v50, %v5635_v50 }
 0x19e   : > { %11460 = vst.msk [vmem:[%s12271_s27 + $0x11f] sm:$0x1] %vm631_vm0, %v5635_v50  ;;  %v417_v56 = vadd.f32 %v13243_v15, %v346_v51  ;;  %v5448_v57 = vrot.slane %v5423_v40, %v12255_v29  ;;  %11423 = vst.msk [vmem:[%s12271_s27 + $0x3dc] sm:$0x1] %vm631_vm0, %v5210_v49  ;;  %v5652_v58 = vcombine.high %v5642_v52, %v5642_v52 }
 0x19f   : > { %11457 = vst.msk [vmem:[%s12271_s27 + $0x5f] sm:$0x1] %vm631_vm0, %v5642_v52  ;;  %11458 = vst.msk [vmem:[%s12271_s27 + $0x9f] sm:$0x1] %vm631_vm0, %v5650_v53  ;;  %v5455_v59 = vrot.slane %v5441_v54, %v12255_v29  ;;  %v5654_v60 = vcombine.high %v5588_v35, %v5588_v35  ;;  %v5661_v61 = vrot.slane %v5588_v35, %v12255_v29 }
 0x1a0   : > { %v5653_v63 = vcombine.high %v5649_v6, %v5649_v6  ;;  %11461 = vst.msk [vmem:[%s12271_s27 + $0x15f] sm:$0x1] %vm631_vm0, %v5649_v6  ;;  %11462 = vst.msk [vmem:[%s12271_s27 + $0x19f] sm:$0x1] %vm631_vm0, %v5651_v55  ;;  %v481_v15 = vmax.f32 %v417_v56, 0.0  ;;  %v5456_v2 = vcombine.high %v5448_v57, %v5448_v57  ;;  %v5464_v3 = vrot.slane %v5448_v57, %v12255_v29  ;;  %v5752_v55 = vpop.trf.xlu0 }
 0x1a1   : > { %11459 = vst.msk [vmem:[%s12271_s27 + $0xdf] sm:$0x1] %vm631_vm0, %v5652_v58  ;;  %v5457_v4 = vcombine.high %v5455_v59, %v5455_v59  ;;  %v5471_v5 = vrot.slane %v5455_v59, %v12255_v29  ;;  %v5668_v7 = vrot.slane %v5654_v60, %v12255_v29  ;;  %v5669_v8 = vcombine.high %v5661_v61, %v5661_v61 }
 0x1a2   : > { %11463 = vst.msk [vmem:[%s12271_s27 + $0x1df] sm:$0x1] %vm631_vm0, %v5653_v63  ;;  %10659 = vxpose.xlu0.b32.start.end [1/1] (short) (narrow) %v481_v15, 16  ;;  %v5478_v9 = vrot.slane %v5456_v2, %v12255_v29  ;;  %v5486_v10 = vcombine.high %v5464_v3, %v5464_v3  ;;  %11440 = vst.msk [vmem:[%s12271_s27 + $0x1e] sm:$0x1] %vm631_vm0, %v5464_v3  ;;  %v5677_v11 = vrot.slane %v5661_v61, %v12255_v29  ;;  %v6244_v15 = vpop.trf.xlu1 }
 0x1a3   : > { %v5490_v12 = vcombine.high %v5424_v62, %v5424_v62  ;;  %v5485_v14 = vrot.slane %v5457_v4, %v12255_v29  ;;  %v5487_v16 = vcombine.high %v5471_v5, %v5471_v5  ;;  %11444 = vst.msk [vmem:[%s12271_s27 + $0x11e] sm:$0x1] %vm631_vm0, %v5471_v5  ;;  %v5670_v17 = vcombine.high %v5668_v7, %v5668_v7 }
 0x1a4   : > { %v5684_v18 = vrot.slane %v5668_v7, %v12255_v29  ;;  %v5488_v19 = vcombine.high %v5478_v9, %v5478_v9  ;;  %11441 = vst.msk [vmem:[%s12271_s27 + $0x5e] sm:$0x1] %vm631_vm0, %v5478_v9  ;;  %11442 = vst.msk [vmem:[%s12271_s27 + $0x9e] sm:$0x1] %vm631_vm0, %v5486_v10  ;;  %v5691_v20 = vrot.slane %v5669_v8, %v12255_v29 }
 0x1a5   : > { %v5699_v21 = vcombine.high %v5677_v11, %v5677_v11  ;;  %11464 = vst.msk [vmem:[%s12271_s27 + $0x21f] sm:$0x1] %vm631_vm0, %v5677_v11  ;;  %v5497_v22 = vrot.slane %v5424_v62, %v12255_v29  ;;  %v5489_v23 = vcombine.high %v5485_v14, %v5485_v14  ;;  %11445 = vst.msk [vmem:[%s12271_s27 + $0x15e] sm:$0x1] %vm631_vm0, %v5485_v14 }
 0x1a6   : > { %11446 = vst.msk [vmem:[%s12271_s27 + $0x19e] sm:$0x1] %vm631_vm0, %v5487_v16  ;;  %v5698_v24 = vrot.slane %v5670_v17, %v12255_v29  ;;  %v5700_v25 = vcombine.high %v5684_v18, %v5684_v18  ;;  %11468 = vst.msk [vmem:[%s12271_s27 + $0x31f] sm:$0x1] %vm631_vm0, %v5684_v18  ;;  %v5504_v26 = vrot.slane %v5490_v12, %v12255_v29 }
 0x1a7   : > { %11443 = vst.msk [vmem:[%s12271_s27 + $0xde] sm:$0x1] %vm631_vm0, %v5488_v19  ;;  %v5701_v28 = vcombine.high %v5691_v20, %v5691_v20  ;;  %11465 = vst.msk [vmem:[%s12271_s27 + $0x25f] sm:$0x1] %vm631_vm0, %v5691_v20  ;;  %v5505_v30 = vcombine.high %v5497_v22, %v5497_v22  ;;  %v5513_v31 = vrot.slane %v5497_v22, %v12255_v29  ;;  %v6080_v20 = vpop.trf.xlu0 }
 0x1a8   : > { %11466 = vst.msk [vmem:[%s12271_s27 + $0x29f] sm:$0x1] %vm631_vm0, %v5699_v21  ;;  %v5934_v32 = vcombine.high %v5916_v13, %v5916_v13  ;;  %11447 = vst.msk [vmem:[%s12271_s27 + $0x1de] sm:$0x1] %vm631_vm0, %v5489_v23  ;;  %v5702_v33 = vcombine.high %v5698_v24, %v5698_v24  ;;  %v5506_v36 = vcombine.high %v5504_v26, %v5504_v26 }
 0x1a9   : > { %11469 = vst.msk [vmem:[%s12271_s27 + $0x35f] sm:$0x1] %vm631_vm0, %v5698_v24  ;;  %11470 = vst.msk [vmem:[%s12271_s27 + $0x39f] sm:$0x1] %vm631_vm0, %v5700_v25  ;;  %v5520_v0 = vrot.slane %v5504_v26, %v12255_v29  ;;  %v5941_v37 = vrot.slane %v5916_v13, %v12255_v29  ;;  %v5527_v38 = vrot.slane %v5505_v30, %v12255_v29  ;;  %v6245_v30 = vpop.trf.xlu1 }
 0x1aa   : > { %11467 = vst.msk [vmem:[%s12271_s27 + $0x2df] sm:$0x1] %vm631_vm0, %v5701_v28  ;;  %v5535_v39 = vcombine.high %v5513_v31, %v5513_v31  ;;  %11448 = vst.msk [vmem:[%s12271_s27 + $0x21e] sm:$0x1] %vm631_vm0, %v5513_v31  ;;  %v5948_v40 = vrot.slane %v5934_v32, %v12255_v29  ;;  %v5769_v41 = vcombine.high %v5751_v27, %v5751_v27 }
 0x1ab   : > { %11471 = vst.msk [vmem:[%s12271_s27 + $0x3df] sm:$0x1] %vm631_vm0, %v5702_v33  ;;  %v5534_v1 = vrot.slane %v5506_v36, %v12255_v29  ;;  %v5536_v43 = vcombine.high %v5520_v0, %v5520_v0  ;;  %11452 = vst.msk [vmem:[%s12271_s27 + $0x31e] sm:$0x1] %vm631_vm0, %v5520_v0  ;;  %v5949_v44 = vcombine.high %v5941_v37, %v5941_v37 }
 0x1ac   : > { %v5957_v45 = vrot.slane %v5941_v37, %v12255_v29  ;;  %v5537_v34 = vcombine.high %v5527_v38, %v5527_v38  ;;  %11449 = vst.msk [vmem:[%s12271_s27 + $0x25e] sm:$0x1] %vm631_vm0, %v5527_v38  ;;  %11450 = vst.msk [vmem:[%s12271_s27 + $0x29e] sm:$0x1] %vm631_vm0, %v5535_v39  ;;  %v5950_v46 = vcombine.high %v5948_v40, %v5948_v40 }
 0x1ad   : > { %v5964_v47 = vrot.slane %v5948_v40, %v12255_v29  ;;  %v5776_v48 = vrot.slane %v5751_v27, %v12255_v29  ;;  %v5538_v50 = vcombine.high %v5534_v1, %v5534_v1  ;;  %11453 = vst.msk [vmem:[%s12271_s27 + $0x35e] sm:$0x1] %vm631_vm0, %v5534_v1  ;;  %11454 = vst.msk [vmem:[%s12271_s27 + $0x39e] sm:$0x1] %vm631_vm0, %v5536_v43 }
 0x1ae   : > { %v5971_v51 = vrot.slane %v5949_v44, %v12255_v29  ;;  %v5979_v35 = vcombine.high %v5957_v45, %v5957_v45  ;;  %11488 = vst.msk [vmem:[%s12271_s27 + $0x21] sm:$0x1] %vm631_vm0, %v5957_v45  ;;  %v5783_v49 = vrot.slane %v5769_v41, %v12255_v29  ;;  %11451 = vst.msk [vmem:[%s12271_s27 + $0x2de] sm:$0x1] %vm631_vm0, %v5537_v34 }
 0x1af   : > { %v5978_v52 = vrot.slane %v5950_v46, %v12255_v29  ;;  %v5980_v53 = vcombine.high %v5964_v47, %v5964_v47  ;;  %11492 = vst.msk [vmem:[%s12271_s27 + $0x121] sm:$0x1] %vm631_vm0, %v5964_v47  ;;  %v5784_v54 = vcombine.high %v5776_v48, %v5776_v48  ;;  %v5792_v6 = vrot.slane %v5776_v48, %v12255_v29  ;;  %v6081_v46 = vpop.trf.xlu0 }
 0x1b0   : > { %11455 = vst.msk [vmem:[%s12271_s27 + $0x3de] sm:$0x1] %vm631_vm0, %v5538_v50  ;;  %v5981_v56 = vcombine.high %v5971_v51, %v5971_v51  ;;  %11489 = vst.msk [vmem:[%s12271_s27 + $0x61] sm:$0x1] %vm631_vm0, %v5971_v51  ;;  %v5785_v57 = vcombine.high %v5783_v49, %v5783_v49  ;;  %v5799_v58 = vrot.slane %v5783_v49, %v12255_v29 }
 0x1b1   : > { %11490 = vst.msk [vmem:[%s12271_s27 + $0xa1] sm:$0x1] %vm631_vm0, %v5979_v35  ;;  %v5983_v59 = vcombine.high %v5917_v42, %v5917_v42  ;;  %v5982_v60 = vcombine.high %v5978_v52, %v5978_v52  ;;  %11493 = vst.msk [vmem:[%s12271_s27 + $0x161] sm:$0x1] %vm631_vm0, %v5978_v52  ;;  %v5806_v61 = vrot.slane %v5784_v54, %v12255_v29 }
 0x1b2   : > { %11494 = vst.msk [vmem:[%s12271_s27 + $0x1a1] sm:$0x1] %vm631_vm0, %v5980_v53  ;;  %v5814_v62 = vcombine.high %v5792_v6, %v5792_v6  ;;  %11472 = vst.msk [vmem:[%s12271_s27 + $0x20] sm:$0x1] %vm631_vm0, %v5792_v6  ;;  %v5990_v63 = vrot.slane %v5917_v42, %v12255_v29  ;;  %v5813_v2 = vrot.slane %v5785_v57, %v12255_v29 }
 0x1b3   : > { %11491 = vst.msk [vmem:[%s12271_s27 + $0xe1] sm:$0x1] %vm631_vm0, %v5981_v56  ;;  %v5815_v3 = vcombine.high %v5799_v58, %v5799_v58  ;;  %11476 = vst.msk [vmem:[%s12271_s27 + $0x120] sm:$0x1] %vm631_vm0, %v5799_v58  ;;  %v5997_v4 = vrot.slane %v5983_v59, %v12255_v29  ;;  %v5818_v5 = vcombine.high %v5752_v55, %v5752_v55 }
 0x1b4   : > { %11495 = vst.msk [vmem:[%s12271_s27 + $0x1e1] sm:$0x1] %vm631_vm0, %v5982_v60  ;;  %v5816_v7 = vcombine.high %v5806_v61, %v5806_v61  ;;  %11473 = vst.msk [vmem:[%s12271_s27 + $0x60] sm:$0x1] %vm631_vm0, %v5806_v61  ;;  %v5998_v8 = vcombine.high %v5990_v63, %v5990_v63  ;;  %v6006_v9 = vrot.slane %v5990_v63, %v12255_v29  ;;  %v6572_v61 = vpop.trf.xlu1 }
 0x1b5   : > { %11474 = vst.msk [vmem:[%s12271_s27 + $0xa0] sm:$0x1] %vm631_vm0, %v5814_v62  ;;  %v5825_v10 = vrot.slane %v5752_v55, %v12255_v29  ;;  %v5817_v11 = vcombine.high %v5813_v2, %v5813_v2  ;;  %11477 = vst.msk [vmem:[%s12271_s27 + $0x160] sm:$0x1] %vm631_vm0, %v5813_v2  ;;  %v5999_v12 = vcombine.high %v5997_v4, %v5997_v4 }
 0x1b6   : > { %11478 = vst.msk [vmem:[%s12271_s27 + $0x1a0] sm:$0x1] %vm631_vm0, %v5815_v3  ;;  %v6013_v13 = vrot.slane %v5997_v4, %v12255_v29  ;;  %v5832_v14 = vrot.slane %v5818_v5, %v12255_v29  ;;  %11475 = vst.msk [vmem:[%s12271_s27 + $0xe0] sm:$0x1] %vm631_vm0, %v5816_v7  ;;  %v6020_v16 = vrot.slane %v5998_v8, %v12255_v29  ;;  %v6408_v8 = vpop.trf.xlu0 }
 0x1b7   : > { %v6028_v17 = vcombine.high %v6006_v9, %v6006_v9  ;;  %11496 = vst.msk [vmem:[%s12271_s27 + $0x221] sm:$0x1] %vm631_vm0, %v6006_v9  ;;  %v5833_v18 = vcombine.high %v5825_v10, %v5825_v10  ;;  %v5841_v19 = vrot.slane %v5825_v10, %v12255_v29  ;;  %11479 = vst.msk [vmem:[%s12271_s27 + $0x1e0] sm:$0x1] %vm631_vm0, %v5817_v11 }
 0x1b8   : > { %v6027_v21 = vrot.slane %v5999_v12, %v12255_v29  ;;  %v6029_v22 = vcombine.high %v6013_v13, %v6013_v13  ;;  %11500 = vst.msk [vmem:[%s12271_s27 + $0x321] sm:$0x1] %vm631_vm0, %v6013_v13  ;;  %v5834_v23 = vcombine.high %v5832_v14, %v5832_v14  ;;  %v5848_v24 = vrot.slane %v5832_v14, %v12255_v29 }
 0x1b9   : > { %v6030_v25 = vcombine.high %v6020_v16, %v6020_v16  ;;  %11497 = vst.msk [vmem:[%s12271_s27 + $0x261] sm:$0x1] %vm631_vm0, %v6020_v16  ;;  %11498 = vst.msk [vmem:[%s12271_s27 + $0x2a1] sm:$0x1] %vm631_vm0, %v6028_v17  ;;  %v5855_v26 = vrot.slane %v5833_v18, %v12255_v29  ;;  %v5863_v27 = vcombine.high %v5841_v19, %v5841_v19 }
 0x1ba   : > { %11480 = vst.msk [vmem:[%s12271_s27 + $0x220] sm:$0x1] %vm631_vm0, %v5841_v19  ;;  %v6262_v28 = vcombine.high %v6244_v15, %v6244_v15  ;;  %v6031_v31 = vcombine.high %v6027_v21, %v6027_v21  ;;  %11501 = vst.msk [vmem:[%s12271_s27 + $0x361] sm:$0x1] %vm631_vm0, %v6027_v21  ;;  %v5862_v32 = vrot.slane %v5834_v23, %v12255_v29 }
 0x1bb   : > { %11502 = vst.msk [vmem:[%s12271_s27 + $0x3a1] sm:$0x1] %vm631_vm0, %v6029_v22  ;;  %v5864_v33 = vcombine.high %v5848_v24, %v5848_v24  ;;  %11484 = vst.msk [vmem:[%s12271_s27 + $0x320] sm:$0x1] %vm631_vm0, %v5848_v24  ;;  %v6269_v36 = vrot.slane %v6244_v15, %v12255_v29  ;;  %v5865_v0 = vcombine.high %v5855_v26, %v5855_v26 }
 0x1bc   : > { %11499 = vst.msk [vmem:[%s12271_s27 + $0x2e1] sm:$0x1] %vm631_vm0, %v6030_v25  ;;  %11481 = vst.msk [vmem:[%s12271_s27 + $0x260] sm:$0x1] %vm631_vm0, %v5855_v26  ;;  %v6276_v37 = vrot.slane %v6262_v28, %v12255_v29  ;;  %v6098_v38 = vcombine.high %v6080_v20, %v6080_v20  ;;  %v6105_v39 = vrot.slane %v6080_v20, %v12255_v29 }
 0x1bd   : > { %11482 = vst.msk [vmem:[%s12271_s27 + $0x2a0] sm:$0x1] %vm631_vm0, %v5863_v27  ;;  %11503 = vst.msk [vmem:[%s12271_s27 + $0x3e1] sm:$0x1] %vm631_vm0, %v6031_v31  ;;  %v5866_v40 = vcombine.high %v5862_v32, %v5862_v32  ;;  %v6277_v41 = vcombine.high %v6269_v36, %v6269_v36  ;;  %v6285_v42 = vrot.slane %v6269_v36, %v12255_v29  ;;  %v6573_v31 = vpop.trf.xlu1 }
 0x1be   : > { %11485 = vst.msk [vmem:[%s12271_s27 + $0x360] sm:$0x1] %vm631_vm0, %v5862_v32  ;;  %11486 = vst.msk [vmem:[%s12271_s27 + $0x3a0] sm:$0x1] %vm631_vm0, %v5864_v33  ;;  %v6311_v1 = vcombine.high %v6245_v30, %v6245_v30  ;;  %v6278_v43 = vcombine.high %v6276_v37, %v6276_v37  ;;  %v6292_v44 = vrot.slane %v6276_v37, %v12255_v29 }
 0x1bf   : > { %11483 = vst.msk [vmem:[%s12271_s27 + $0x2e0] sm:$0x1] %vm631_vm0, %v5865_v0  ;;  %v6112_v45 = vrot.slane %v6098_v38, %v12255_v29  ;;  %v6113_v34 = vcombine.high %v6105_v39, %v6105_v39  ;;  %11487 = vst.msk [vmem:[%s12271_s27 + $0x3e0] sm:$0x1] %vm631_vm0, %v5866_v40  ;;  %v6299_v47 = vrot.slane %v6277_v41, %v12255_v29 }
 0x1c0   : > { %v6307_v48 = vcombine.high %v6285_v42, %v6285_v42  ;;  %11520 = vst.msk [vmem:[%s12271_s27 + $0x23] sm:$0x1] %vm631_vm0, %v6285_v42  ;;  %v6121_v50 = vrot.slane %v6105_v39, %v12255_v29  ;;  %v6318_v51 = vrot.slane %v6245_v30, %v12255_v29  ;;  %v6306_v35 = vrot.slane %v6278_v43, %v12255_v29 }
 0x1c1   : > { %v6308_v49 = vcombine.high %v6292_v44, %v6292_v44  ;;  %11524 = vst.msk [vmem:[%s12271_s27 + $0x123] sm:$0x1] %vm631_vm0, %v6292_v44  ;;  %v6114_v52 = vcombine.high %v6112_v45, %v6112_v45  ;;  %v6128_v53 = vrot.slane %v6112_v45, %v12255_v29  ;;  %v6309_v54 = vcombine.high %v6299_v47, %v6299_v47  ;;  %v6409_v44 = vpop.trf.xlu0 }
 0x1c2   : > { %11521 = vst.msk [vmem:[%s12271_s27 + $0x63] sm:$0x1] %vm631_vm0, %v6299_v47  ;;  %11522 = vst.msk [vmem:[%s12271_s27 + $0xa3] sm:$0x1] %vm631_vm0, %v6307_v48  ;;  %v6135_v6 = vrot.slane %v6113_v34, %v12255_v29  ;;  %v6143_v55 = vcombine.high %v6121_v50, %v6121_v50  ;;  %v6325_v56 = vrot.slane %v6311_v1, %v12255_v29 }
 0x1c3   : > { %11504 = vst.msk [vmem:[%s12271_s27 + $0x22] sm:$0x1] %vm631_vm0, %v6121_v50  ;;  %v6310_v57 = vcombine.high %v6306_v35, %v6306_v35  ;;  %11525 = vst.msk [vmem:[%s12271_s27 + $0x163] sm:$0x1] %vm631_vm0, %v6306_v35  ;;  %v6142_v58 = vrot.slane %v6114_v52, %v12255_v29  ;;  %v6144_v59 = vcombine.high %v6128_v53, %v6128_v53 }
 0x1c4   : > { %11526 = vst.msk [vmem:[%s12271_s27 + $0x1a3] sm:$0x1] %vm631_vm0, %v6308_v49  ;;  %11508 = vst.msk [vmem:[%s12271_s27 + $0x122] sm:$0x1] %vm631_vm0, %v6128_v53  ;;  %v6326_v60 = vcombine.high %v6318_v51, %v6318_v51  ;;  %v6145_v62 = vcombine.high %v6135_v6, %v6135_v6  ;;  %v6327_v63 = vcombine.high %v6325_v56, %v6325_v56 }
 0x1c5   : > { %11523 = vst.msk [vmem:[%s12271_s27 + $0xe3] sm:$0x1] %vm631_vm0, %v6309_v54  ;;  %11505 = vst.msk [vmem:[%s12271_s27 + $0x62] sm:$0x1] %vm631_vm0, %v6135_v6  ;;  %v6334_v15 = vrot.slane %v6318_v51, %v12255_v29  ;;  %v6341_v2 = vrot.slane %v6325_v56, %v12255_v29  ;;  %v6146_v3 = vcombine.high %v6142_v58, %v6142_v58  ;;  %v6900_v6 = vpop.trf.xlu1 }
 0x1c6   : > { %11506 = vst.msk [vmem:[%s12271_s27 + $0xa2] sm:$0x1] %vm631_vm0, %v6143_v55  ;;  %11527 = vst.msk [vmem:[%s12271_s27 + $0x1e3] sm:$0x1] %vm631_vm0, %v6310_v57  ;;  %v6348_v4 = vrot.slane %v6326_v60, %v12255_v29  ;;  %v6147_v5 = vcombine.high %v6081_v46, %v6081_v46  ;;  %v6154_v7 = vrot.slane %v6081_v46, %v12255_v29 }
 0x1c7   : > { %11509 = vst.msk [vmem:[%s12271_s27 + $0x162] sm:$0x1] %vm631_vm0, %v6142_v58  ;;  %11510 = vst.msk [vmem:[%s12271_s27 + $0x1a2] sm:$0x1] %vm631_vm0, %v6144_v59  ;;  %v6355_v9 = vrot.slane %v6327_v63, %v12255_v29  ;;  %v6356_v10 = vcombine.high %v6334_v15, %v6334_v15  ;;  %v6357_v11 = vcombine.high %v6341_v2, %v6341_v2 }
 0x1c8   : > { %11507 = vst.msk [vmem:[%s12271_s27 + $0xe2] sm:$0x1] %vm631_vm0, %v6145_v62  ;;  %11528 = vst.msk [vmem:[%s12271_s27 + $0x223] sm:$0x1] %vm631_vm0, %v6334_v15  ;;  %v6590_v12 = vcombine.high %v6572_v61, %v6572_v61  ;;  %v6358_v13 = vcombine.high %v6348_v4, %v6348_v4  ;;  %v6161_v14 = vrot.slane %v6147_v5, %v12255_v29 }
 0x1c9   : > { %11532 = vst.msk [vmem:[%s12271_s27 + $0x323] sm:$0x1] %vm631_vm0, %v6341_v2  ;;  %11511 = vst.msk [vmem:[%s12271_s27 + $0x1e2] sm:$0x1] %vm631_vm0, %v6146_v3  ;;  %v6162_v16 = vcombine.high %v6154_v7, %v6154_v7  ;;  %v6170_v17 = vrot.slane %v6154_v7, %v12255_v29  ;;  %v6359_v18 = vcombine.high %v6355_v9, %v6355_v9 }
 0x1ca   : > { %11529 = vst.msk [vmem:[%s12271_s27 + $0x263] sm:$0x1] %vm631_vm0, %v6348_v4  ;;  %11530 = vst.msk [vmem:[%s12271_s27 + $0x2a3] sm:$0x1] %vm631_vm0, %v6356_v10  ;;  %v6597_v19 = vrot.slane %v6572_v61, %v12255_v29  ;;  %v6604_v20 = vrot.slane %v6590_v12, %v12255_v29  ;;  %v6426_v21 = vcombine.high %v6408_v8, %v6408_v8  ;;  %v6736_v4 = vpop.trf.xlu0 }
 0x1cb   : > { %11533 = vst.msk [vmem:[%s12271_s27 + $0x363] sm:$0x1] %vm631_vm0, %v6355_v9  ;;  %11534 = vst.msk [vmem:[%s12271_s27 + $0x3a3] sm:$0x1] %vm631_vm0, %v6357_v11  ;;  %v6163_v22 = vcombine.high %v6161_v14, %v6161_v14  ;;  %v6177_v23 = vrot.slane %v6161_v14, %v12255_v29  ;;  %v6184_v24 = vrot.slane %v6162_v16, %v12255_v29 }
 0x1cc   : > { %11531 = vst.msk [vmem:[%s12271_s27 + $0x2e3] sm:$0x1] %vm631_vm0, %v6358_v13  ;;  %v6192_v25 = vcombine.high %v6170_v17, %v6170_v17  ;;  %11512 = vst.msk [vmem:[%s12271_s27 + $0x222] sm:$0x1] %vm631_vm0, %v6170_v17  ;;  %v6605_v26 = vcombine.high %v6597_v19, %v6597_v19  ;;  %v6606_v27 = vcombine.high %v6604_v20, %v6604_v20 }
 0x1cd   : > { %11535 = vst.msk [vmem:[%s12271_s27 + $0x3e3] sm:$0x1] %vm631_vm0, %v6359_v18  ;;  %v6613_v28 = vrot.slane %v6597_v19, %v12255_v29  ;;  %v6620_v30 = vrot.slane %v6604_v20, %v12255_v29  ;;  %v6191_v32 = vrot.slane %v6163_v22, %v12255_v29  ;;  %v6193_v33 = vcombine.high %v6177_v23, %v6177_v23  ;;  %v6901_v19 = vpop.trf.xlu1 }
 0x1ce   : > { %v6194_v36 = vcombine.high %v6184_v24, %v6184_v24  ;;  %11513 = vst.msk [vmem:[%s12271_s27 + $0x262] sm:$0x1] %vm631_vm0, %v6184_v24  ;;  %11514 = vst.msk [vmem:[%s12271_s27 + $0x2a2] sm:$0x1] %vm631_vm0, %v6192_v25  ;;  %v6433_v0 = vrot.slane %v6408_v8, %v12255_v29  ;;  %v6627_v37 = vrot.slane %v6605_v26, %v12255_v29 }
 0x1cf   : > { %11516 = vst.msk [vmem:[%s12271_s27 + $0x322] sm:$0x1] %vm631_vm0, %v6177_v23  ;;  %v6634_v38 = vrot.slane %v6606_v27, %v12255_v29  ;;  %v6635_v39 = vcombine.high %v6613_v28, %v6613_v28  ;;  %v6636_v40 = vcombine.high %v6620_v30, %v6620_v30  ;;  %11552 = vst.msk [vmem:[%s12271_s27 + $0x25] sm:$0x1] %vm631_vm0, %v6613_v28 }
 0x1d0   : > { %11556 = vst.msk [vmem:[%s12271_s27 + $0x125] sm:$0x1] %vm631_vm0, %v6620_v30  ;;  %v6195_v41 = vcombine.high %v6191_v32, %v6191_v32  ;;  %11515 = vst.msk [vmem:[%s12271_s27 + $0x2e2] sm:$0x1] %vm631_vm0, %v6194_v36  ;;  %v6440_v42 = vrot.slane %v6426_v21, %v12255_v29  ;;  %v6441_v1 = vcombine.high %v6433_v0, %v6433_v0 }
 0x1d1   : > { %11517 = vst.msk [vmem:[%s12271_s27 + $0x362] sm:$0x1] %vm631_vm0, %v6191_v32  ;;  %11518 = vst.msk [vmem:[%s12271_s27 + $0x3a2] sm:$0x1] %vm631_vm0, %v6193_v33  ;;  %v6449_v43 = vrot.slane %v6433_v0, %v12255_v29  ;;  %v6637_v45 = vcombine.high %v6627_v37, %v6627_v37  ;;  %v6638_v34 = vcombine.high %v6634_v38, %v6634_v38 }
 0x1d2   : > { %11553 = vst.msk [vmem:[%s12271_s27 + $0x65] sm:$0x1] %vm631_vm0, %v6627_v37  ;;  %11554 = vst.msk [vmem:[%s12271_s27 + $0xa5] sm:$0x1] %vm631_vm0, %v6635_v39  ;;  %v6639_v46 = vcombine.high %v6573_v31, %v6573_v31  ;;  %v6646_v47 = vrot.slane %v6573_v31, %v12255_v29  ;;  %v6442_v48 = vcombine.high %v6440_v42, %v6440_v42 }
 0x1d3   : > { %11557 = vst.msk [vmem:[%s12271_s27 + $0x165] sm:$0x1] %vm631_vm0, %v6634_v38  ;;  %11558 = vst.msk [vmem:[%s12271_s27 + $0x1a5] sm:$0x1] %vm631_vm0, %v6636_v40  ;;  %v6456_v50 = vrot.slane %v6440_v42, %v12255_v29  ;;  %v6463_v51 = vrot.slane %v6441_v1, %v12255_v29  ;;  %v6471_v35 = vcombine.high %v6449_v43, %v6449_v43  ;;  %v6737_v38 = vpop.trf.xlu0 }
 0x1d4   : > { %11519 = vst.msk [vmem:[%s12271_s27 + $0x3e2] sm:$0x1] %vm631_vm0, %v6195_v41  ;;  %11536 = vst.msk [vmem:[%s12271_s27 + $0x24] sm:$0x1] %vm631_vm0, %v6449_v43  ;;  %v6653_v49 = vrot.slane %v6639_v46, %v12255_v29  ;;  %v6654_v52 = vcombine.high %v6646_v47, %v6646_v47  ;;  %v6662_v53 = vrot.slane %v6646_v47, %v12255_v29 }
 0x1d5   : > { %11555 = vst.msk [vmem:[%s12271_s27 + $0xe5] sm:$0x1] %vm631_vm0, %v6637_v45  ;;  %11559 = vst.msk [vmem:[%s12271_s27 + $0x1e5] sm:$0x1] %vm631_vm0, %v6638_v34  ;;  %v6475_v54 = vcombine.high %v6409_v44, %v6409_v44  ;;  %v6470_v55 = vrot.slane %v6442_v48, %v12255_v29  ;;  %v6472_v56 = vcombine.high %v6456_v50, %v6456_v50  ;;  %v7229_v34 = vpop.trf.xlu1 }
 0x1d6   : > { %v6473_v57 = vcombine.high %v6463_v51, %v6463_v51  ;;  %11537 = vst.msk [vmem:[%s12271_s27 + $0x64] sm:$0x1] %vm631_vm0, %v6463_v51  ;;  %11538 = vst.msk [vmem:[%s12271_s27 + $0xa4] sm:$0x1] %vm631_vm0, %v6471_v35  ;;  %v6482_v58 = vrot.slane %v6409_v44, %v12255_v29  ;;  %v6655_v59 = vcombine.high %v6653_v49, %v6653_v49 }
 0x1d7   : > { %11540 = vst.msk [vmem:[%s12271_s27 + $0x124] sm:$0x1] %vm631_vm0, %v6456_v50  ;;  %v6669_v60 = vrot.slane %v6653_v49, %v12255_v29  ;;  %v6676_v61 = vrot.slane %v6654_v52, %v12255_v29  ;;  %v6684_v62 = vcombine.high %v6662_v53, %v6662_v53  ;;  %11560 = vst.msk [vmem:[%s12271_s27 + $0x225] sm:$0x1] %vm631_vm0, %v6662_v53 }
 0x1d8   : > { %v6474_v63 = vcombine.high %v6470_v55, %v6470_v55  ;;  %11539 = vst.msk [vmem:[%s12271_s27 + $0xe4] sm:$0x1] %vm631_vm0, %v6473_v57  ;;  %11541 = vst.msk [vmem:[%s12271_s27 + $0x164] sm:$0x1] %vm631_vm0, %v6470_v55  ;;  %v6489_v15 = vrot.slane %v6475_v54, %v12255_v29  ;;  %v6490_v2 = vcombine.high %v6482_v58, %v6482_v58 }
 0x1d9   : > { %11542 = vst.msk [vmem:[%s12271_s27 + $0x1a4] sm:$0x1] %vm631_vm0, %v6472_v56  ;;  %v6498_v3 = vrot.slane %v6482_v58, %v12255_v29  ;;  %v6683_v5 = vrot.slane %v6655_v59, %v12255_v29  ;;  %v6685_v7 = vcombine.high %v6669_v60, %v6669_v60  ;;  %v6686_v8 = vcombine.high %v6676_v61, %v6676_v61 }
 0x1da   : > { %11561 = vst.msk [vmem:[%s12271_s27 + $0x265] sm:$0x1] %vm631_vm0, %v6676_v61  ;;  %11562 = vst.msk [vmem:[%s12271_s27 + $0x2a5] sm:$0x1] %vm631_vm0, %v6684_v62  ;;  %v6918_v9 = vcombine.high %v6900_v6, %v6900_v6  ;;  %v6491_v10 = vcombine.high %v6489_v15, %v6489_v15  ;;  %v6505_v11 = vrot.slane %v6489_v15, %v12255_v29  ;;  %v7064_v15 = vpop.trf.xlu0 }
 0x1db   : > { %11564 = vst.msk [vmem:[%s12271_s27 + $0x325] sm:$0x1] %vm631_vm0, %v6669_v60  ;;  %11543 = vst.msk [vmem:[%s12271_s27 + $0x1e4] sm:$0x1] %vm631_vm0, %v6474_v63  ;;  %v6512_v12 = vrot.slane %v6490_v2, %v12255_v29  ;;  %v6520_v13 = vcombine.high %v6498_v3, %v6498_v3  ;;  %v6687_v14 = vcombine.high %v6683_v5, %v6683_v5 }
 0x1dc   : > { %11544 = vst.msk [vmem:[%s12271_s27 + $0x224] sm:$0x1] %vm631_vm0, %v6498_v3  ;;  %11563 = vst.msk [vmem:[%s12271_s27 + $0x2e5] sm:$0x1] %vm631_vm0, %v6686_v8  ;;  %v6925_v16 = vrot.slane %v6900_v6, %v12255_v29  ;;  %v6932_v17 = vrot.slane %v6918_v9, %v12255_v29  ;;  %v6754_v18 = vcombine.high %v6736_v4, %v6736_v4 }
 0x1dd   : > { %11565 = vst.msk [vmem:[%s12271_s27 + $0x365] sm:$0x1] %vm631_vm0, %v6683_v5  ;;  %11566 = vst.msk [vmem:[%s12271_s27 + $0x3a5] sm:$0x1] %vm631_vm0, %v6685_v7  ;;  %v6519_v20 = vrot.slane %v6491_v10, %v12255_v29  ;;  %v6521_v21 = vcombine.high %v6505_v11, %v6505_v11  ;;  %v6522_v22 = vcombine.high %v6512_v12, %v6512_v12 }
 0x1de   : > { %11545 = vst.msk [vmem:[%s12271_s27 + $0x264] sm:$0x1] %vm631_vm0, %v6512_v12  ;;  %11546 = vst.msk [vmem:[%s12271_s27 + $0x2a4] sm:$0x1] %vm631_vm0, %v6520_v13  ;;  %v6761_v23 = vrot.slane %v6736_v4, %v12255_v29  ;;  %v6933_v24 = vcombine.high %v6925_v16, %v6925_v16  ;;  %v6934_v25 = vcombine.high %v6932_v17, %v6932_v17 }
 0x1df   : > { %11548 = vst.msk [vmem:[%s12271_s27 + $0x324] sm:$0x1] %vm631_vm0, %v6505_v11  ;;  %11567 = vst.msk [vmem:[%s12271_s27 + $0x3e5] sm:$0x1] %vm631_vm0, %v6687_v14  ;;  %v6941_v26 = vrot.slane %v6925_v16, %v12255_v29  ;;  %v6948_v27 = vrot.slane %v6932_v17, %v12255_v29  ;;  %v6523_v28 = vcombine.high %v6519_v20, %v6519_v20  ;;  %v7230_v16 = vpop.trf.xlu1 }
 0x1e0   : > { %11547 = vst.msk [vmem:[%s12271_s27 + $0x2e4] sm:$0x1] %vm631_vm0, %v6522_v22  ;;  %11549 = vst.msk [vmem:[%s12271_s27 + $0x364] sm:$0x1] %vm631_vm0, %v6519_v20  ;;  %v6768_v30 = vrot.slane %v6754_v18, %v12255_v29  ;;  %v6769_v31 = vcombine.high %v6761_v23, %v6761_v23  ;;  %v6777_v32 = vrot.slane %v6761_v23, %v12255_v29 }
 0x1e1   : > { %11550 = vst.msk [vmem:[%s12271_s27 + $0x3a4] sm:$0x1] %vm631_vm0, %v6521_v21  ;;  %v6955_v33 = vrot.slane %v6933_v24, %v12255_v29  ;;  %v6962_v36 = vrot.slane %v6934_v25, %v12255_v29  ;;  %v6963_v0 = vcombine.high %v6941_v26, %v6941_v26  ;;  %v6964_v37 = vcombine.high %v6948_v27, %v6948_v27 }
 0x1e2   : > { %11584 = vst.msk [vmem:[%s12271_s27 + $0x27] sm:$0x1] %vm631_vm0, %v6941_v26  ;;  %11588 = vst.msk [vmem:[%s12271_s27 + $0x127] sm:$0x1] %vm631_vm0, %v6948_v27  ;;  %v6770_v39 = vcombine.high %v6768_v30, %v6768_v30  ;;  %v6784_v40 = vrot.slane %v6768_v30, %v12255_v29  ;;  %v6791_v41 = vrot.slane %v6769_v31, %v12255_v29  ;;  %v7065_v30 = vpop.trf.xlu0 }
 0x1e3   : > { %11551 = vst.msk [vmem:[%s12271_s27 + $0x3e4] sm:$0x1] %vm631_vm0, %v6523_v28  ;;  %v6799_v42 = vcombine.high %v6777_v32, %v6777_v32  ;;  %11568 = vst.msk [vmem:[%s12271_s27 + $0x26] sm:$0x1] %vm631_vm0, %v6777_v32  ;;  %v6965_v1 = vcombine.high %v6955_v33, %v6955_v33  ;;  %v6966_v43 = vcombine.high %v6962_v36, %v6962_v36 }
 0x1e4   : > { %11585 = vst.msk [vmem:[%s12271_s27 + $0x67] sm:$0x1] %vm631_vm0, %v6955_v33  ;;  %11586 = vst.msk [vmem:[%s12271_s27 + $0xa7] sm:$0x1] %vm631_vm0, %v6963_v0  ;;  %v6967_v44 = vcombine.high %v6901_v19, %v6901_v19  ;;  %v6974_v45 = vrot.slane %v6901_v19, %v12255_v29  ;;  %v6798_v46 = vrot.slane %v6770_v39, %v12255_v29 }
 0x1e5   : > { %11589 = vst.msk [vmem:[%s12271_s27 + $0x167] sm:$0x1] %vm631_vm0, %v6962_v36  ;;  %11590 = vst.msk [vmem:[%s12271_s27 + $0x1a7] sm:$0x1] %vm631_vm0, %v6964_v37  ;;  %v6800_v47 = vcombine.high %v6784_v40, %v6784_v40  ;;  %v6801_v48 = vcombine.high %v6791_v41, %v6791_v41  ;;  %v6803_v50 = vcombine.high %v6737_v38, %v6737_v38 }
 0x1e6   : > { %11569 = vst.msk [vmem:[%s12271_s27 + $0x66] sm:$0x1] %vm631_vm0, %v6791_v41  ;;  %11570 = vst.msk [vmem:[%s12271_s27 + $0xa6] sm:$0x1] %vm631_vm0, %v6799_v42  ;;  %v6981_v51 = vrot.slane %v6967_v44, %v12255_v29  ;;  %v6982_v35 = vcombine.high %v6974_v45, %v6974_v45  ;;  %v6990_v49 = vrot.slane %v6974_v45, %v12255_v29 }
 0x1e7   : > { %11572 = vst.msk [vmem:[%s12271_s27 + $0x126] sm:$0x1] %vm631_vm0, %v6784_v40  ;;  %11587 = vst.msk [vmem:[%s12271_s27 + $0xe7] sm:$0x1] %vm631_vm0, %v6965_v1  ;;  %v6810_v52 = vrot.slane %v6737_v38, %v12255_v29  ;;  %v6802_v53 = vcombine.high %v6798_v46, %v6798_v46  ;;  %v6817_v54 = vrot.slane %v6803_v50, %v12255_v29 }
 0x1e8   : > { %11591 = vst.msk [vmem:[%s12271_s27 + $0x1e7] sm:$0x1] %vm631_vm0, %v6966_v43  ;;  %11571 = vst.msk [vmem:[%s12271_s27 + $0xe6] sm:$0x1] %vm631_vm0, %v6801_v48  ;;  %v7247_v6 = vcombine.high %v7229_v34, %v7229_v34  ;;  %v7254_v55 = vrot.slane %v7229_v34, %v12255_v29  ;;  %v6983_v56 = vcombine.high %v6981_v51, %v6981_v51  ;;  %v7557_v43 = vpop.trf.xlu1 }
 0x1e9   : > { %11573 = vst.msk [vmem:[%s12271_s27 + $0x166] sm:$0x1] %vm631_vm0, %v6798_v46  ;;  %11574 = vst.msk [vmem:[%s12271_s27 + $0x1a6] sm:$0x1] %vm631_vm0, %v6800_v47  ;;  %v6997_v57 = vrot.slane %v6981_v51, %v12255_v29  ;;  %v7004_v58 = vrot.slane %v6982_v35, %v12255_v29  ;;  %v7012_v59 = vcombine.high %v6990_v49, %v6990_v49 }
 0x1ea   : > { %11592 = vst.msk [vmem:[%s12271_s27 + $0x227] sm:$0x1] %vm631_vm0, %v6990_v49  ;;  %11575 = vst.msk [vmem:[%s12271_s27 + $0x1e6] sm:$0x1] %vm631_vm0, %v6802_v53  ;;  %v6818_v60 = vcombine.high %v6810_v52, %v6810_v52  ;;  %v6819_v61 = vcombine.high %v6817_v54, %v6817_v54  ;;  %v6826_v62 = vrot.slane %v6810_v52, %v12255_v29 }
 0x1eb   : > { %v6833_v63 = vrot.slane %v6817_v54, %v12255_v29  ;;  %v7011_v2 = vrot.slane %v6983_v56, %v12255_v29  ;;  %v7013_v3 = vcombine.high %v6997_v57, %v6997_v57  ;;  %v7014_v4 = vcombine.high %v7004_v58, %v7004_v58  ;;  %11593 = vst.msk [vmem:[%s12271_s27 + $0x267] sm:$0x1] %vm631_vm0, %v7004_v58  ;;  %v7393_v54 = vpop.trf.xlu0 }
 0x1ec   : > { %11594 = vst.msk [vmem:[%s12271_s27 + $0x2a7] sm:$0x1] %vm631_vm0, %v7012_v59  ;;  %11596 = vst.msk [vmem:[%s12271_s27 + $0x327] sm:$0x1] %vm631_vm0, %v6997_v57  ;;  %v7261_v5 = vrot.slane %v7247_v6, %v12255_v29  ;;  %v6840_v7 = vrot.slane %v6818_v60, %v12255_v29  ;;  %v6847_v8 = vrot.slane %v6819_v61, %v12255_v29 }
 0x1ed   : > { %v6848_v9 = vcombine.high %v6826_v62, %v6826_v62  ;;  %v6849_v10 = vcombine.high %v6833_v63, %v6833_v63  ;;  %11576 = vst.msk [vmem:[%s12271_s27 + $0x226] sm:$0x1] %vm631_vm0, %v6826_v62  ;;  %11580 = vst.msk [vmem:[%s12271_s27 + $0x326] sm:$0x1] %vm631_vm0, %v6833_v63  ;;  %v7015_v11 = vcombine.high %v7011_v2, %v7011_v2 }
 0x1ee   : > { %11595 = vst.msk [vmem:[%s12271_s27 + $0x2e7] sm:$0x1] %vm631_vm0, %v7014_v4  ;;  %11597 = vst.msk [vmem:[%s12271_s27 + $0x367] sm:$0x1] %vm631_vm0, %v7011_v2  ;;  %v7262_v12 = vcombine.high %v7254_v55, %v7254_v55  ;;  %v7263_v13 = vcombine.high %v7261_v5, %v7261_v5  ;;  %v7270_v14 = vrot.slane %v7254_v55, %v12255_v29 }
 0x1ef   : > { %11598 = vst.msk [vmem:[%s12271_s27 + $0x3a7] sm:$0x1] %vm631_vm0, %v7013_v3  ;;  %v6850_v17 = vcombine.high %v6840_v7, %v6840_v7  ;;  %v6851_v18 = vcombine.high %v6847_v8, %v6847_v8  ;;  %11577 = vst.msk [vmem:[%s12271_s27 + $0x266] sm:$0x1] %vm631_vm0, %v6840_v7  ;;  %v7277_v19 = vrot.slane %v7261_v5, %v12255_v29  ;;  %v7558_v3 = vpop.trf.xlu1 }
 0x1f0   : > { %11578 = vst.msk [vmem:[%s12271_s27 + $0x2a6] sm:$0x1] %vm631_vm0, %v6848_v9  ;;  %11581 = vst.msk [vmem:[%s12271_s27 + $0x366] sm:$0x1] %vm631_vm0, %v6847_v8  ;;  %v7082_v20 = vcombine.high %v7064_v15, %v7064_v15  ;;  %v7284_v21 = vrot.slane %v7262_v12, %v12255_v29  ;;  %v7291_v22 = vrot.slane %v7263_v13, %v12255_v29 }
 0x1f1   : > { %11582 = vst.msk [vmem:[%s12271_s27 + $0x3a6] sm:$0x1] %vm631_vm0, %v6849_v10  ;;  %11599 = vst.msk [vmem:[%s12271_s27 + $0x3e7] sm:$0x1] %vm631_vm0, %v7015_v11  ;;  %v7292_v23 = vcombine.high %v7270_v14, %v7270_v14  ;;  %v7089_v24 = vrot.slane %v7064_v15, %v12255_v29  ;;  %v7293_v25 = vcombine.high %v7277_v19, %v7277_v19 }
 0x1f2   : > { %11616 = vst.msk [vmem:[%s12271_s27 + $0x29] sm:$0x1] %vm631_vm0, %v7270_v14  ;;  %11579 = vst.msk [vmem:[%s12271_s27 + $0x2e6] sm:$0x1] %vm631_vm0, %v6850_v17  ;;  %v7096_v26 = vrot.slane %v7082_v20, %v12255_v29  ;;  %v7296_v27 = vcombine.high %v7230_v16, %v7230_v16  ;;  %v7303_v28 = vrot.slane %v7230_v16, %v12255_v29 }
 0x1f3   : > { %11583 = vst.msk [vmem:[%s12271_s27 + $0x3e6] sm:$0x1] %vm631_vm0, %v6851_v18  ;;  %11620 = vst.msk [vmem:[%s12271_s27 + $0x129] sm:$0x1] %vm631_vm0, %v7277_v19  ;;  %v7294_v31 = vcombine.high %v7284_v21, %v7284_v21  ;;  %v7295_v32 = vcombine.high %v7291_v22, %v7291_v22  ;;  %v7097_v33 = vcombine.high %v7089_v24, %v7089_v24 }
 0x1f4   : > { %11617 = vst.msk [vmem:[%s12271_s27 + $0x69] sm:$0x1] %vm631_vm0, %v7284_v21  ;;  %11618 = vst.msk [vmem:[%s12271_s27 + $0xa9] sm:$0x1] %vm631_vm0, %v7292_v23  ;;  %v7105_v36 = vrot.slane %v7089_v24, %v12255_v29  ;;  %v7098_v0 = vcombine.high %v7096_v26, %v7096_v26  ;;  %v7112_v37 = vrot.slane %v7096_v26, %v12255_v29 }
 0x1f5   : > { %11621 = vst.msk [vmem:[%s12271_s27 + $0x169] sm:$0x1] %vm631_vm0, %v7291_v22  ;;  %11622 = vst.msk [vmem:[%s12271_s27 + $0x1a9] sm:$0x1] %vm631_vm0, %v7293_v25  ;;  %v7310_v38 = vrot.slane %v7296_v27, %v12255_v29  ;;  %v7311_v39 = vcombine.high %v7303_v28, %v7303_v28  ;;  %v7119_v40 = vrot.slane %v7097_v33, %v12255_v29  ;;  %v7394_v22 = vpop.trf.xlu0 }
 0x1f6   : > { %11619 = vst.msk [vmem:[%s12271_s27 + $0xe9] sm:$0x1] %vm631_vm0, %v7294_v31  ;;  %11623 = vst.msk [vmem:[%s12271_s27 + $0x1e9] sm:$0x1] %vm631_vm0, %v7295_v32  ;;  %v7127_v41 = vcombine.high %v7105_v36, %v7105_v36  ;;  %v7319_v42 = vrot.slane %v7303_v28, %v12255_v29  ;;  %v7131_v1 = vcombine.high %v7065_v30, %v7065_v30  ;;  %v7885_v32 = vpop.trf.xlu1 }
 0x1f7   : > { %11600 = vst.msk [vmem:[%s12271_s27 + $0x28] sm:$0x1] %vm631_vm0, %v7105_v36  ;;  %v7126_v44 = vrot.slane %v7098_v0, %v12255_v29  ;;  %v7128_v45 = vcombine.high %v7112_v37, %v7112_v37  ;;  %11604 = vst.msk [vmem:[%s12271_s27 + $0x128] sm:$0x1] %vm631_vm0, %v7112_v37  ;;  %v7312_v34 = vcombine.high %v7310_v38, %v7310_v38 }
 0x1f8   : > { %v7326_v46 = vrot.slane %v7310_v38, %v12255_v29  ;;  %v7129_v47 = vcombine.high %v7119_v40, %v7119_v40  ;;  %11601 = vst.msk [vmem:[%s12271_s27 + $0x68] sm:$0x1] %vm631_vm0, %v7119_v40  ;;  %11602 = vst.msk [vmem:[%s12271_s27 + $0xa8] sm:$0x1] %vm631_vm0, %v7127_v41  ;;  %v7333_v48 = vrot.slane %v7311_v39, %v12255_v29 }
 0x1f9   : > { %v7341_v50 = vcombine.high %v7319_v42, %v7319_v42  ;;  %11624 = vst.msk [vmem:[%s12271_s27 + $0x229] sm:$0x1] %vm631_vm0, %v7319_v42  ;;  %v7138_v51 = vrot.slane %v7065_v30, %v12255_v29  ;;  %v7130_v35 = vcombine.high %v7126_v44, %v7126_v44  ;;  %11605 = vst.msk [vmem:[%s12271_s27 + $0x168] sm:$0x1] %vm631_vm0, %v7126_v44 }
 0x1fa   : > { %11606 = vst.msk [vmem:[%s12271_s27 + $0x1a8] sm:$0x1] %vm631_vm0, %v7128_v45  ;;  %v7340_v49 = vrot.slane %v7312_v34, %v12255_v29  ;;  %v7342_v52 = vcombine.high %v7326_v46, %v7326_v46  ;;  %11628 = vst.msk [vmem:[%s12271_s27 + $0x329] sm:$0x1] %vm631_vm0, %v7326_v46  ;;  %v7145_v53 = vrot.slane %v7131_v1, %v12255_v29 }
 0x1fb   : > { %11603 = vst.msk [vmem:[%s12271_s27 + $0xe8] sm:$0x1] %vm631_vm0, %v7129_v47  ;;  %v7343_v6 = vcombine.high %v7333_v48, %v7333_v48  ;;  %11625 = vst.msk [vmem:[%s12271_s27 + $0x269] sm:$0x1] %vm631_vm0, %v7333_v48  ;;  %v7146_v55 = vcombine.high %v7138_v51, %v7138_v51  ;;  %v7154_v56 = vrot.slane %v7138_v51, %v12255_v29  ;;  %v7721_v48 = vpop.trf.xlu0 }
 0x1fc   : > { %11626 = vst.msk [vmem:[%s12271_s27 + $0x2a9] sm:$0x1] %vm631_vm0, %v7341_v50  ;;  %v7575_v57 = vcombine.high %v7557_v43, %v7557_v43  ;;  %11607 = vst.msk [vmem:[%s12271_s27 + $0x1e8] sm:$0x1] %vm631_vm0, %v7130_v35  ;;  %v7344_v58 = vcombine.high %v7340_v49, %v7340_v49  ;;  %v7147_v59 = vcombine.high %v7145_v53, %v7145_v53 }
 0x1fd   : > { %11629 = vst.msk [vmem:[%s12271_s27 + $0x369] sm:$0x1] %vm631_vm0, %v7340_v49  ;;  %11630 = vst.msk [vmem:[%s12271_s27 + $0x3a9] sm:$0x1] %vm631_vm0, %v7342_v52  ;;  %v7161_v60 = vrot.slane %v7145_v53, %v12255_v29  ;;  %v7582_v61 = vrot.slane %v7557_v43, %v12255_v29  ;;  %v7168_v62 = vrot.slane %v7146_v55, %v12255_v29  ;;  %v7886_v55 = vpop.trf.xlu1 }
 0x1fe   : > { %11627 = vst.msk [vmem:[%s12271_s27 + $0x2e9] sm:$0x1] %vm631_vm0, %v7343_v6  ;;  %v7176_v63 = vcombine.high %v7154_v56, %v7154_v56  ;;  %11608 = vst.msk [vmem:[%s12271_s27 + $0x228] sm:$0x1] %vm631_vm0, %v7154_v56  ;;  %v7589_v15 = vrot.slane %v7575_v57, %v12255_v29  ;;  %v7411_v2 = vcombine.high %v7393_v54, %v7393_v54 }
 0x1ff   : > { %11631 = vst.msk [vmem:[%s12271_s27 + $0x3e9] sm:$0x1] %vm631_vm0, %v7344_v58  ;;  %v7175_v4 = vrot.slane %v7147_v59, %v12255_v29  ;;  %v7177_v5 = vcombine.high %v7161_v60, %v7161_v60  ;;  %11612 = vst.msk [vmem:[%s12271_s27 + $0x328] sm:$0x1] %vm631_vm0, %v7161_v60  ;;  %v7590_v7 = vcombine.high %v7582_v61, %v7582_v61 }
 0x200   : > { %v7598_v8 = vrot.slane %v7582_v61, %v12255_v29  ;;  %v7178_v9 = vcombine.high %v7168_v62, %v7168_v62  ;;  %11609 = vst.msk [vmem:[%s12271_s27 + $0x268] sm:$0x1] %vm631_vm0, %v7168_v62  ;;  %11610 = vst.msk [vmem:[%s12271_s27 + $0x2a8] sm:$0x1] %vm631_vm0, %v7176_v63  ;;  %v7591_v10 = vcombine.high %v7589_v15, %v7589_v15 }
 0x201   : > { %v7605_v11 = vrot.slane %v7589_v15, %v12255_v29  ;;  %v7418_v12 = vrot.slane %v7393_v54, %v12255_v29  ;;  %v7179_v13 = vcombine.high %v7175_v4, %v7175_v4  ;;  %11613 = vst.msk [vmem:[%s12271_s27 + $0x368] sm:$0x1] %vm631_vm0, %v7175_v4  ;;  %11614 = vst.msk [vmem:[%s12271_s27 + $0x3a8] sm:$0x1] %vm631_vm0, %v7177_v5 }
 0x202   : > { %v7612_v14 = vrot.slane %v7590_v7, %v12255_v29  ;;  %v7620_v16 = vcombine.high %v7598_v8, %v7598_v8  ;;  %11648 = vst.msk [vmem:[%s12271_s27 + $0x2b] sm:$0x1] %vm631_vm0, %v7598_v8  ;;  %v7425_v17 = vrot.slane %v7411_v2, %v12255_v29  ;;  %11611 = vst.msk [vmem:[%s12271_s27 + $0x2e8] sm:$0x1] %vm631_vm0, %v7178_v9 }
 0x203   : > { %v7619_v18 = vrot.slane %v7591_v10, %v12255_v29  ;;  %v7621_v19 = vcombine.high %v7605_v11, %v7605_v11  ;;  %11652 = vst.msk [vmem:[%s12271_s27 + $0x12b] sm:$0x1] %vm631_vm0, %v7605_v11  ;;  %v7426_v20 = vcombine.high %v7418_v12, %v7418_v12  ;;  %v7434_v21 = vrot.slane %v7418_v12, %v12255_v29  ;;  %v7722_v10 = vpop.trf.xlu0 }
 0x204   : > { %11615 = vst.msk [vmem:[%s12271_s27 + $0x3e8] sm:$0x1] %vm631_vm0, %v7179_v13  ;;  %v7622_v23 = vcombine.high %v7612_v14, %v7612_v14  ;;  %11649 = vst.msk [vmem:[%s12271_s27 + $0x6b] sm:$0x1] %vm631_vm0, %v7612_v14  ;;  %v7427_v24 = vcombine.high %v7425_v17, %v7425_v17  ;;  %v7441_v25 = vrot.slane %v7425_v17, %v12255_v29 }
 0x205   : > { %11650 = vst.msk [vmem:[%s12271_s27 + $0xab] sm:$0x1] %vm631_vm0, %v7620_v16  ;;  %v7624_v26 = vcombine.high %v7558_v3, %v7558_v3  ;;  %v7623_v27 = vcombine.high %v7619_v18, %v7619_v18  ;;  %11653 = vst.msk [vmem:[%s12271_s27 + $0x16b] sm:$0x1] %vm631_vm0, %v7619_v18  ;;  %v7448_v28 = vrot.slane %v7426_v20, %v12255_v29 }
 0x206   : > { %11654 = vst.msk [vmem:[%s12271_s27 + $0x1ab] sm:$0x1] %vm631_vm0, %v7621_v19  ;;  %v7456_v30 = vcombine.high %v7434_v21, %v7434_v21  ;;  %11632 = vst.msk [vmem:[%s12271_s27 + $0x2a] sm:$0x1] %vm631_vm0, %v7434_v21  ;;  %v7631_v31 = vrot.slane %v7558_v3, %v12255_v29  ;;  %v7455_v33 = vrot.slane %v7427_v24, %v12255_v29 }
 0x207   : > { %11651 = vst.msk [vmem:[%s12271_s27 + $0xeb] sm:$0x1] %vm631_vm0, %v7622_v23  ;;  %v7457_v36 = vcombine.high %v7441_v25, %v7441_v25  ;;  %11636 = vst.msk [vmem:[%s12271_s27 + $0x12a] sm:$0x1] %vm631_vm0, %v7441_v25  ;;  %v7638_v0 = vrot.slane %v7624_v26, %v12255_v29  ;;  %v7460_v37 = vcombine.high %v7394_v22, %v7394_v22 }
 0x208   : > { %11655 = vst.msk [vmem:[%s12271_s27 + $0x1eb] sm:$0x1] %vm631_vm0, %v7623_v27  ;;  %v7458_v38 = vcombine.high %v7448_v28, %v7448_v28  ;;  %11633 = vst.msk [vmem:[%s12271_s27 + $0x6a] sm:$0x1] %vm631_vm0, %v7448_v28  ;;  %v7639_v39 = vcombine.high %v7631_v31, %v7631_v31  ;;  %v7647_v40 = vrot.slane %v7631_v31, %v12255_v29  ;;  %v8213_v28 = vpop.trf.xlu1 }
 0x209   : > { %11634 = vst.msk [vmem:[%s12271_s27 + $0xaa] sm:$0x1] %vm631_vm0, %v7456_v30  ;;  %v7467_v41 = vrot.slane %v7394_v22, %v12255_v29  ;;  %v7459_v42 = vcombine.high %v7455_v33, %v7455_v33  ;;  %11637 = vst.msk [vmem:[%s12271_s27 + $0x16a] sm:$0x1] %vm631_vm0, %v7455_v33  ;;  %v7640_v1 = vcombine.high %v7638_v0, %v7638_v0 }
 0x20a   : > { %11638 = vst.msk [vmem:[%s12271_s27 + $0x1aa] sm:$0x1] %vm631_vm0, %v7457_v36  ;;  %v7654_v43 = vrot.slane %v7638_v0, %v12255_v29  ;;  %v7474_v44 = vrot.slane %v7460_v37, %v12255_v29  ;;  %11635 = vst.msk [vmem:[%s12271_s27 + $0xea] sm:$0x1] %vm631_vm0, %v7458_v38  ;;  %v7661_v45 = vrot.slane %v7639_v39, %v12255_v29  ;;  %v8049_v39 = vpop.trf.xlu0 }
 0x20b   : > { %v7669_v34 = vcombine.high %v7647_v40, %v7647_v40  ;;  %11656 = vst.msk [vmem:[%s12271_s27 + $0x22b] sm:$0x1] %vm631_vm0, %v7647_v40  ;;  %v7475_v46 = vcombine.high %v7467_v41, %v7467_v41  ;;  %v7483_v47 = vrot.slane %v7467_v41, %v12255_v29  ;;  %11639 = vst.msk [vmem:[%s12271_s27 + $0x1ea] sm:$0x1] %vm631_vm0, %v7459_v42 }
 0x20c   : > { %v7668_v50 = vrot.slane %v7640_v1, %v12255_v29  ;;  %v7670_v51 = vcombine.high %v7654_v43, %v7654_v43  ;;  %11660 = vst.msk [vmem:[%s12271_s27 + $0x32b] sm:$0x1] %vm631_vm0, %v7654_v43  ;;  %v7476_v35 = vcombine.high %v7474_v44, %v7474_v44  ;;  %v7490_v49 = vrot.slane %v7474_v44, %v12255_v29 }
 0x20d   : > { %v7671_v52 = vcombine.high %v7661_v45, %v7661_v45  ;;  %11657 = vst.msk [vmem:[%s12271_s27 + $0x26b] sm:$0x1] %vm631_vm0, %v7661_v45  ;;  %11658 = vst.msk [vmem:[%s12271_s27 + $0x2ab] sm:$0x1] %vm631_vm0, %v7669_v34  ;;  %v7497_v53 = vrot.slane %v7475_v46, %v12255_v29  ;;  %v7505_v54 = vcombine.high %v7483_v47, %v7483_v47 }
 0x20e   : > { %11640 = vst.msk [vmem:[%s12271_s27 + $0x22a] sm:$0x1] %vm631_vm0, %v7483_v47  ;;  %v7903_v6 = vcombine.high %v7885_v32, %v7885_v32  ;;  %v7672_v56 = vcombine.high %v7668_v50, %v7668_v50  ;;  %11661 = vst.msk [vmem:[%s12271_s27 + $0x36b] sm:$0x1] %vm631_vm0, %v7668_v50  ;;  %v7504_v57 = vrot.slane %v7476_v35, %v12255_v29 }
 0x20f   : > { %11662 = vst.msk [vmem:[%s12271_s27 + $0x3ab] sm:$0x1] %vm631_vm0, %v7670_v51  ;;  %v7506_v58 = vcombine.high %v7490_v49, %v7490_v49  ;;  %11644 = vst.msk [vmem:[%s12271_s27 + $0x32a] sm:$0x1] %vm631_vm0, %v7490_v49  ;;  %v7910_v59 = vrot.slane %v7885_v32, %v12255_v29  ;;  %v7507_v60 = vcombine.high %v7497_v53, %v7497_v53 }
 0x210   : > { %11659 = vst.msk [vmem:[%s12271_s27 + $0x2eb] sm:$0x1] %vm631_vm0, %v7671_v52  ;;  %11641 = vst.msk [vmem:[%s12271_s27 + $0x26a] sm:$0x1] %vm631_vm0, %v7497_v53  ;;  %v7917_v61 = vrot.slane %v7903_v6, %v12255_v29  ;;  %v7739_v62 = vcombine.high %v7721_v48, %v7721_v48  ;;  %v7746_v63 = vrot.slane %v7721_v48, %v12255_v29 }
 0x211   : > { %11642 = vst.msk [vmem:[%s12271_s27 + $0x2aa] sm:$0x1] %vm631_vm0, %v7505_v54  ;;  %11663 = vst.msk [vmem:[%s12271_s27 + $0x3eb] sm:$0x1] %vm631_vm0, %v7672_v56  ;;  %v7508_v15 = vcombine.high %v7504_v57, %v7504_v57  ;;  %v7918_v2 = vcombine.high %v7910_v59, %v7910_v59  ;;  %v7926_v3 = vrot.slane %v7910_v59, %v12255_v29  ;;  %v8214_v56 = vpop.trf.xlu1 }
 0x212   : > { %11645 = vst.msk [vmem:[%s12271_s27 + $0x36a] sm:$0x1] %vm631_vm0, %v7504_v57  ;;  %11646 = vst.msk [vmem:[%s12271_s27 + $0x3aa] sm:$0x1] %vm631_vm0, %v7506_v58  ;;  %v7952_v4 = vcombine.high %v7886_v55, %v7886_v55  ;;  %v7919_v5 = vcombine.high %v7917_v61, %v7917_v61  ;;  %v7933_v7 = vrot.slane %v7917_v61, %v12255_v29 }
 0x213   : > { %11643 = vst.msk [vmem:[%s12271_s27 + $0x2ea] sm:$0x1] %vm631_vm0, %v7507_v60  ;;  %v7753_v8 = vrot.slane %v7739_v62, %v12255_v29  ;;  %v7754_v9 = vcombine.high %v7746_v63, %v7746_v63  ;;  %11647 = vst.msk [vmem:[%s12271_s27 + $0x3ea] sm:$0x1] %vm631_vm0, %v7508_v15  ;;  %v7940_v11 = vrot.slane %v7918_v2, %v12255_v29 }
 0x214   : > { %v7948_v12 = vcombine.high %v7926_v3, %v7926_v3  ;;  %11680 = vst.msk [vmem:[%s12271_s27 + $0x2d] sm:$0x1] %vm631_vm0, %v7926_v3  ;;  %v7762_v13 = vrot.slane %v7746_v63, %v12255_v29  ;;  %v7959_v14 = vrot.slane %v7886_v55, %v12255_v29  ;;  %v7947_v16 = vrot.slane %v7919_v5, %v12255_v29 }
 0x215   : > { %v7949_v17 = vcombine.high %v7933_v7, %v7933_v7  ;;  %11684 = vst.msk [vmem:[%s12271_s27 + $0x12d] sm:$0x1] %vm631_vm0, %v7933_v7  ;;  %v7755_v18 = vcombine.high %v7753_v8, %v7753_v8  ;;  %v7769_v19 = vrot.slane %v7753_v8, %v12255_v29  ;;  %v7950_v20 = vcombine.high %v7940_v11, %v7940_v11  ;;  %v8050_v7 = vpop.trf.xlu0 }
 0x216   : > { %11681 = vst.msk [vmem:[%s12271_s27 + $0x6d] sm:$0x1] %vm631_vm0, %v7940_v11  ;;  %11682 = vst.msk [vmem:[%s12271_s27 + $0xad] sm:$0x1] %vm631_vm0, %v7948_v12  ;;  %v7776_v21 = vrot.slane %v7754_v9, %v12255_v29  ;;  %v7784_v22 = vcombine.high %v7762_v13, %v7762_v13  ;;  %v7966_v23 = vrot.slane %v7952_v4, %v12255_v29 }
 0x217   : > { %11664 = vst.msk [vmem:[%s12271_s27 + $0x2c] sm:$0x1] %vm631_vm0, %v7762_v13  ;;  %v7951_v24 = vcombine.high %v7947_v16, %v7947_v16  ;;  %11685 = vst.msk [vmem:[%s12271_s27 + $0x16d] sm:$0x1] %vm631_vm0, %v7947_v16  ;;  %v7783_v25 = vrot.slane %v7755_v18, %v12255_v29  ;;  %v7785_v26 = vcombine.high %v7769_v19, %v7769_v19 }
 0x218   : > { %11686 = vst.msk [vmem:[%s12271_s27 + $0x1ad] sm:$0x1] %vm631_vm0, %v7949_v17  ;;  %11668 = vst.msk [vmem:[%s12271_s27 + $0x12c] sm:$0x1] %vm631_vm0, %v7769_v19  ;;  %v7967_v27 = vcombine.high %v7959_v14, %v7959_v14  ;;  %v7786_v30 = vcombine.high %v7776_v21, %v7776_v21  ;;  %v7968_v31 = vcombine.high %v7966_v23, %v7966_v23 }
 0x219   : > { %11683 = vst.msk [vmem:[%s12271_s27 + $0xed] sm:$0x1] %vm631_vm0, %v7950_v20  ;;  %11665 = vst.msk [vmem:[%s12271_s27 + $0x6c] sm:$0x1] %vm631_vm0, %v7776_v21  ;;  %v7975_v32 = vrot.slane %v7959_v14, %v12255_v29  ;;  %v7982_v33 = vrot.slane %v7966_v23, %v12255_v29  ;;  %v7787_v36 = vcombine.high %v7783_v25, %v7783_v25  ;;  %v8542_v21 = vpop.trf.xlu1 }
 0x21a   : > { %11666 = vst.msk [vmem:[%s12271_s27 + $0xac] sm:$0x1] %vm631_vm0, %v7784_v22  ;;  %11687 = vst.msk [vmem:[%s12271_s27 + $0x1ed] sm:$0x1] %vm631_vm0, %v7951_v24  ;;  %v7989_v0 = vrot.slane %v7967_v27, %v12255_v29  ;;  %v7788_v37 = vcombine.high %v7722_v10, %v7722_v10  ;;  %v7795_v38 = vrot.slane %v7722_v10, %v12255_v29 }
 0x21b   : > { %11669 = vst.msk [vmem:[%s12271_s27 + $0x16c] sm:$0x1] %vm631_vm0, %v7783_v25  ;;  %11670 = vst.msk [vmem:[%s12271_s27 + $0x1ac] sm:$0x1] %vm631_vm0, %v7785_v26  ;;  %v7996_v40 = vrot.slane %v7968_v31, %v12255_v29  ;;  %v7997_v41 = vcombine.high %v7975_v32, %v7975_v32  ;;  %v7998_v42 = vcombine.high %v7982_v33, %v7982_v33 }
 0x21c   : > { %11667 = vst.msk [vmem:[%s12271_s27 + $0xec] sm:$0x1] %vm631_vm0, %v7786_v30  ;;  %11688 = vst.msk [vmem:[%s12271_s27 + $0x22d] sm:$0x1] %vm631_vm0, %v7975_v32  ;;  %v8231_v1 = vcombine.high %v8213_v28, %v8213_v28  ;;  %v7999_v43 = vcombine.high %v7989_v0, %v7989_v0  ;;  %v7802_v44 = vrot.slane %v7788_v37, %v12255_v29 }
 0x21d   : > { %11692 = vst.msk [vmem:[%s12271_s27 + $0x32d] sm:$0x1] %vm631_vm0, %v7982_v33  ;;  %11671 = vst.msk [vmem:[%s12271_s27 + $0x1ec] sm:$0x1] %vm631_vm0, %v7787_v36  ;;  %v7803_v45 = vcombine.high %v7795_v38, %v7795_v38  ;;  %v7811_v34 = vrot.slane %v7795_v38, %v12255_v29  ;;  %v8000_v46 = vcombine.high %v7996_v40, %v7996_v40 }
 0x21e   : > { %11689 = vst.msk [vmem:[%s12271_s27 + $0x26d] sm:$0x1] %vm631_vm0, %v7989_v0  ;;  %11690 = vst.msk [vmem:[%s12271_s27 + $0x2ad] sm:$0x1] %vm631_vm0, %v7997_v41  ;;  %v8238_v47 = vrot.slane %v8213_v28, %v12255_v29  ;;  %v8245_v48 = vrot.slane %v8231_v1, %v12255_v29  ;;  %v8067_v50 = vcombine.high %v8049_v39, %v8049_v39  ;;  %v8377_v0 = vpop.trf.xlu0 }
 0x21f   : > { %11693 = vst.msk [vmem:[%s12271_s27 + $0x36d] sm:$0x1] %vm631_vm0, %v7996_v40  ;;  %11694 = vst.msk [vmem:[%s12271_s27 + $0x3ad] sm:$0x1] %vm631_vm0, %v7998_v42  ;;  %v7804_v51 = vcombine.high %v7802_v44, %v7802_v44  ;;  %v7818_v35 = vrot.slane %v7802_v44, %v12255_v29  ;;  %v7825_v49 = vrot.slane %v7803_v45, %v12255_v29 }
 0x220   : > { %11691 = vst.msk [vmem:[%s12271_s27 + $0x2ed] sm:$0x1] %vm631_vm0, %v7999_v43  ;;  %v7833_v52 = vcombine.high %v7811_v34, %v7811_v34  ;;  %11672 = vst.msk [vmem:[%s12271_s27 + $0x22c] sm:$0x1] %vm631_vm0, %v7811_v34  ;;  %v8246_v53 = vcombine.high %v8238_v47, %v8238_v47  ;;  %v8247_v54 = vcombine.high %v8245_v48, %v8245_v48 }
 0x221   : > { %11695 = vst.msk [vmem:[%s12271_s27 + $0x3ed] sm:$0x1] %vm631_vm0, %v8000_v46  ;;  %v8254_v6 = vrot.slane %v8238_v47, %v12255_v29  ;;  %v8261_v55 = vrot.slane %v8245_v48, %v12255_v29  ;;  %v7832_v57 = vrot.slane %v7804_v51, %v12255_v29  ;;  %v7834_v58 = vcombine.high %v7818_v35, %v7818_v35  ;;  %v8543_v47 = vpop.trf.xlu1 }
 0x222   : > { %v7835_v59 = vcombine.high %v7825_v49, %v7825_v49  ;;  %11673 = vst.msk [vmem:[%s12271_s27 + $0x26c] sm:$0x1] %vm631_vm0, %v7825_v49  ;;  %11674 = vst.msk [vmem:[%s12271_s27 + $0x2ac] sm:$0x1] %vm631_vm0, %v7833_v52  ;;  %v8074_v60 = vrot.slane %v8049_v39, %v12255_v29  ;;  %v8268_v61 = vrot.slane %v8246_v53, %v12255_v29 }
 0x223   : > { %11676 = vst.msk [vmem:[%s12271_s27 + $0x32c] sm:$0x1] %vm631_vm0, %v7818_v35  ;;  %v8275_v62 = vrot.slane %v8247_v54, %v12255_v29  ;;  %v8276_v63 = vcombine.high %v8254_v6, %v8254_v6  ;;  %v8277_v15 = vcombine.high %v8261_v55, %v8261_v55  ;;  %11712 = vst.msk [vmem:[%s12271_s27 + $0x2f] sm:$0x1] %vm631_vm0, %v8254_v6 }
 0x224   : > { %11716 = vst.msk [vmem:[%s12271_s27 + $0x12f] sm:$0x1] %vm631_vm0, %v8261_v55  ;;  %v7836_v2 = vcombine.high %v7832_v57, %v7832_v57  ;;  %11675 = vst.msk [vmem:[%s12271_s27 + $0x2ec] sm:$0x1] %vm631_vm0, %v7835_v59  ;;  %v8081_v3 = vrot.slane %v8067_v50, %v12255_v29  ;;  %v8082_v4 = vcombine.high %v8074_v60, %v8074_v60 }
 0x225   : > { %11677 = vst.msk [vmem:[%s12271_s27 + $0x36c] sm:$0x1] %vm631_vm0, %v7832_v57  ;;  %11678 = vst.msk [vmem:[%s12271_s27 + $0x3ac] sm:$0x1] %vm631_vm0, %v7834_v58  ;;  %v8090_v5 = vrot.slane %v8074_v60, %v12255_v29  ;;  %v8278_v8 = vcombine.high %v8268_v61, %v8268_v61  ;;  %v8279_v9 = vcombine.high %v8275_v62, %v8275_v62 }
 0x226   : > { %11713 = vst.msk [vmem:[%s12271_s27 + $0x6f] sm:$0x1] %vm631_vm0, %v8268_v61  ;;  %11714 = vst.msk [vmem:[%s12271_s27 + $0xaf] sm:$0x1] %vm631_vm0, %v8276_v63  ;;  %v8280_v10 = vcombine.high %v8214_v56, %v8214_v56  ;;  %v8287_v11 = vrot.slane %v8214_v56, %v12255_v29  ;;  %v8083_v12 = vcombine.high %v8081_v3, %v8081_v3 }
 0x227   : > { %11717 = vst.msk [vmem:[%s12271_s27 + $0x16f] sm:$0x1] %vm631_vm0, %v8275_v62  ;;  %11718 = vst.msk [vmem:[%s12271_s27 + $0x1af] sm:$0x1] %vm631_vm0, %v8277_v15  ;;  %v8097_v13 = vrot.slane %v8081_v3, %v12255_v29  ;;  %v8104_v14 = vrot.slane %v8082_v4, %v12255_v29  ;;  %v8112_v16 = vcombine.high %v8090_v5, %v8090_v5  ;;  %v8378_v62 = vpop.trf.xlu0 }
 0x228   : > { %11679 = vst.msk [vmem:[%s12271_s27 + $0x3ec] sm:$0x1] %vm631_vm0, %v7836_v2  ;;  %11696 = vst.msk [vmem:[%s12271_s27 + $0x2e] sm:$0x1] %vm631_vm0, %v8090_v5  ;;  %v8294_v17 = vrot.slane %v8280_v10, %v12255_v29  ;;  %v8295_v18 = vcombine.high %v8287_v11, %v8287_v11  ;;  %v8303_v19 = vrot.slane %v8287_v11, %v12255_v29 }
 0x229   : > { %11715 = vst.msk [vmem:[%s12271_s27 + $0xef] sm:$0x1] %vm631_vm0, %v8278_v8  ;;  %11719 = vst.msk [vmem:[%s12271_s27 + $0x1ef] sm:$0x1] %vm631_vm0, %v8279_v9  ;;  %v8116_v20 = vcombine.high %v8050_v7, %v8050_v7  ;;  %v8111_v22 = vrot.slane %v8083_v12, %v12255_v29  ;;  %v8113_v23 = vcombine.high %v8097_v13, %v8097_v13  ;;  %v8870_v9 = vpop.trf.xlu1 }
 0x22a   : > { %v8114_v24 = vcombine.high %v8104_v14, %v8104_v14  ;;  %11697 = vst.msk [vmem:[%s12271_s27 + $0x6e] sm:$0x1] %vm631_vm0, %v8104_v14  ;;  %11698 = vst.msk [vmem:[%s12271_s27 + $0xae] sm:$0x1] %vm631_vm0, %v8112_v16  ;;  %v8123_v25 = vrot.slane %v8050_v7, %v12255_v29  ;;  %v8296_v26 = vcombine.high %v8294_v17, %v8294_v17 }
 0x22b   : > { %11700 = vst.msk [vmem:[%s12271_s27 + $0x12e] sm:$0x1] %vm631_vm0, %v8097_v13  ;;  %v8310_v27 = vrot.slane %v8294_v17, %v12255_v29  ;;  %v8317_v28 = vrot.slane %v8295_v18, %v12255_v29  ;;  %v8325_v30 = vcombine.high %v8303_v19, %v8303_v19  ;;  %11720 = vst.msk [vmem:[%s12271_s27 + $0x22f] sm:$0x1] %vm631_vm0, %v8303_v19 }
 0x22c   : > { %v8115_v31 = vcombine.high %v8111_v22, %v8111_v22  ;;  %11699 = vst.msk [vmem:[%s12271_s27 + $0xee] sm:$0x1] %vm631_vm0, %v8114_v24  ;;  %11701 = vst.msk [vmem:[%s12271_s27 + $0x16e] sm:$0x1] %vm631_vm0, %v8111_v22  ;;  %v8130_v32 = vrot.slane %v8116_v20, %v12255_v29  ;;  %v8131_v33 = vcombine.high %v8123_v25, %v8123_v25 }
 0x22d   : > { %11702 = vst.msk [vmem:[%s12271_s27 + $0x1ae] sm:$0x1] %vm631_vm0, %v8113_v23  ;;  %v8139_v36 = vrot.slane %v8123_v25, %v12255_v29  ;;  %v8324_v37 = vrot.slane %v8296_v26, %v12255_v29  ;;  %v8326_v38 = vcombine.high %v8310_v27, %v8310_v27  ;;  %v8327_v39 = vcombine.high %v8317_v28, %v8317_v28 }
 0x22e   : > { %11721 = vst.msk [vmem:[%s12271_s27 + $0x26f] sm:$0x1] %vm631_vm0, %v8317_v28  ;;  %11722 = vst.msk [vmem:[%s12271_s27 + $0x2af] sm:$0x1] %vm631_vm0, %v8325_v30  ;;  %v8560_v40 = vcombine.high %v8542_v21, %v8542_v21  ;;  %v8132_v41 = vcombine.high %v8130_v32, %v8130_v32  ;;  %v8146_v42 = vrot.slane %v8130_v32, %v12255_v29  ;;  %v8706_v32 = vpop.trf.xlu0 }
 0x22f   : > { %11724 = vst.msk [vmem:[%s12271_s27 + $0x32f] sm:$0x1] %vm631_vm0, %v8310_v27  ;;  %11703 = vst.msk [vmem:[%s12271_s27 + $0x1ee] sm:$0x1] %vm631_vm0, %v8115_v31  ;;  %v8153_v1 = vrot.slane %v8131_v33, %v12255_v29  ;;  %v8161_v43 = vcombine.high %v8139_v36, %v8139_v36  ;;  %v8328_v44 = vcombine.high %v8324_v37, %v8324_v37 }
 0x230   : > { %11704 = vst.msk [vmem:[%s12271_s27 + $0x22e] sm:$0x1] %vm631_vm0, %v8139_v36  ;;  %11723 = vst.msk [vmem:[%s12271_s27 + $0x2ef] sm:$0x1] %vm631_vm0, %v8327_v39  ;;  %v8567_v45 = vrot.slane %v8542_v21, %v12255_v29  ;;  %v8574_v34 = vrot.slane %v8560_v40, %v12255_v29  ;;  %v8395_v46 = vcombine.high %v8377_v0, %v8377_v0 }
 0x231   : > { %11725 = vst.msk [vmem:[%s12271_s27 + $0x36f] sm:$0x1] %vm631_vm0, %v8324_v37  ;;  %11726 = vst.msk [vmem:[%s12271_s27 + $0x3af] sm:$0x1] %vm631_vm0, %v8326_v38  ;;  %v8160_v48 = vrot.slane %v8132_v41, %v12255_v29  ;;  %v8162_v50 = vcombine.high %v8146_v42, %v8146_v42  ;;  %v8163_v51 = vcombine.high %v8153_v1, %v8153_v1 }
 0x232   : > { %11705 = vst.msk [vmem:[%s12271_s27 + $0x26e] sm:$0x1] %vm631_vm0, %v8153_v1  ;;  %11706 = vst.msk [vmem:[%s12271_s27 + $0x2ae] sm:$0x1] %vm631_vm0, %v8161_v43  ;;  %v8402_v35 = vrot.slane %v8377_v0, %v12255_v29  ;;  %v8575_v49 = vcombine.high %v8567_v45, %v8567_v45  ;;  %v8576_v52 = vcombine.high %v8574_v34, %v8574_v34 }
 0x233   : > { %11708 = vst.msk [vmem:[%s12271_s27 + $0x32e] sm:$0x1] %vm631_vm0, %v8146_v42  ;;  %11727 = vst.msk [vmem:[%s12271_s27 + $0x3ef] sm:$0x1] %vm631_vm0, %v8328_v44  ;;  %v8583_v53 = vrot.slane %v8567_v45, %v12255_v29  ;;  %v8590_v54 = vrot.slane %v8574_v34, %v12255_v29  ;;  %v8164_v6 = vcombine.high %v8160_v48, %v8160_v48  ;;  %v8871_v45 = vpop.trf.xlu1 }
 0x234   : > { %11707 = vst.msk [vmem:[%s12271_s27 + $0x2ee] sm:$0x1] %vm631_vm0, %v8163_v51  ;;  %11709 = vst.msk [vmem:[%s12271_s27 + $0x36e] sm:$0x1] %vm631_vm0, %v8160_v48  ;;  %v8409_v55 = vrot.slane %v8395_v46, %v12255_v29  ;;  %v8410_v56 = vcombine.high %v8402_v35, %v8402_v35  ;;  %v8418_v57 = vrot.slane %v8402_v35, %v12255_v29 }
 0x235   : > { %11710 = vst.msk [vmem:[%s12271_s27 + $0x3ae] sm:$0x1] %vm631_vm0, %v8162_v50  ;;  %v8597_v58 = vrot.slane %v8575_v49, %v12255_v29  ;;  %v8604_v59 = vrot.slane %v8576_v52, %v12255_v29  ;;  %v8605_v60 = vcombine.high %v8583_v53, %v8583_v53  ;;  %v8606_v61 = vcombine.high %v8590_v54, %v8590_v54 }
 0x236   : > { %11744 = vst.msk [vmem:[%s12271_s27 + $0x31] sm:$0x1] %vm631_vm0, %v8583_v53  ;;  %11748 = vst.msk [vmem:[%s12271_s27 + $0x131] sm:$0x1] %vm631_vm0, %v8590_v54  ;;  %v8411_v63 = vcombine.high %v8409_v55, %v8409_v55  ;;  %v8425_v15 = vrot.slane %v8409_v55, %v12255_v29  ;;  %v8432_v2 = vrot.slane %v8410_v56, %v12255_v29  ;;  %v8707_v55 = vpop.trf.xlu0 }
 0x237   : > { %11711 = vst.msk [vmem:[%s12271_s27 + $0x3ee] sm:$0x1] %vm631_vm0, %v8164_v6  ;;  %v8440_v3 = vcombine.high %v8418_v57, %v8418_v57  ;;  %11728 = vst.msk [vmem:[%s12271_s27 + $0x30] sm:$0x1] %vm631_vm0, %v8418_v57  ;;  %v8607_v4 = vcombine.high %v8597_v58, %v8597_v58  ;;  %v8608_v5 = vcombine.high %v8604_v59, %v8604_v59 }
 0x238   : > { %11745 = vst.msk [vmem:[%s12271_s27 + $0x71] sm:$0x1] %vm631_vm0, %v8597_v58  ;;  %11746 = vst.msk [vmem:[%s12271_s27 + $0xb1] sm:$0x1] %vm631_vm0, %v8605_v60  ;;  %v8609_v7 = vcombine.high %v8543_v47, %v8543_v47  ;;  %v8616_v8 = vrot.slane %v8543_v47, %v12255_v29  ;;  %v8439_v10 = vrot.slane %v8411_v63, %v12255_v29 }
 0x239   : > { %11749 = vst.msk [vmem:[%s12271_s27 + $0x171] sm:$0x1] %vm631_vm0, %v8604_v59  ;;  %11750 = vst.msk [vmem:[%s12271_s27 + $0x1b1] sm:$0x1] %vm631_vm0, %v8606_v61  ;;  %v8441_v11 = vcombine.high %v8425_v15, %v8425_v15  ;;  %v8442_v12 = vcombine.high %v8432_v2, %v8432_v2  ;;  %v8444_v13 = vcombine.high %v8378_v62, %v8378_v62 }
 0x23a   : > { %11729 = vst.msk [vmem:[%s12271_s27 + $0x70] sm:$0x1] %vm631_vm0, %v8432_v2  ;;  %11730 = vst.msk [vmem:[%s12271_s27 + $0xb0] sm:$0x1] %vm631_vm0, %v8440_v3  ;;  %v8623_v14 = vrot.slane %v8609_v7, %v12255_v29  ;;  %v8624_v16 = vcombine.high %v8616_v8, %v8616_v8  ;;  %v8632_v17 = vrot.slane %v8616_v8, %v12255_v29 }
 0x23b   : > { %11732 = vst.msk [vmem:[%s12271_s27 + $0x130] sm:$0x1] %vm631_vm0, %v8425_v15  ;;  %11747 = vst.msk [vmem:[%s12271_s27 + $0xf1] sm:$0x1] %vm631_vm0, %v8607_v4  ;;  %v8451_v18 = vrot.slane %v8378_v62, %v12255_v29  ;;  %v8443_v19 = vcombine.high %v8439_v10, %v8439_v10  ;;  %v8458_v20 = vrot.slane %v8444_v13, %v12255_v29 }
 0x23c   : > { %11751 = vst.msk [vmem:[%s12271_s27 + $0x1f1] sm:$0x1] %vm631_vm0, %v8608_v5  ;;  %11731 = vst.msk [vmem:[%s12271_s27 + $0xf0] sm:$0x1] %vm631_vm0, %v8442_v12  ;;  %v8888_v21 = vcombine.high %v8870_v9, %v8870_v9  ;;  %v8895_v22 = vrot.slane %v8870_v9, %v12255_v29  ;;  %v8625_v23 = vcombine.high %v8623_v14, %v8623_v14  ;;  %v9198_v5 = vpop.trf.xlu1 }
 0x23d   : > { %11733 = vst.msk [vmem:[%s12271_s27 + $0x170] sm:$0x1] %vm631_vm0, %v8439_v10  ;;  %11734 = vst.msk [vmem:[%s12271_s27 + $0x1b0] sm:$0x1] %vm631_vm0, %v8441_v11  ;;  %v8639_v24 = vrot.slane %v8623_v14, %v12255_v29  ;;  %v8646_v25 = vrot.slane %v8624_v16, %v12255_v29  ;;  %v8654_v26 = vcombine.high %v8632_v17, %v8632_v17 }
 0x23e   : > { %11752 = vst.msk [vmem:[%s12271_s27 + $0x231] sm:$0x1] %vm631_vm0, %v8632_v17  ;;  %11735 = vst.msk [vmem:[%s12271_s27 + $0x1f0] sm:$0x1] %vm631_vm0, %v8443_v19  ;;  %v8459_v27 = vcombine.high %v8451_v18, %v8451_v18  ;;  %v8460_v28 = vcombine.high %v8458_v20, %v8458_v20  ;;  %v8467_v30 = vrot.slane %v8451_v18, %v12255_v29 }
 0x23f   : > { %v8474_v31 = vrot.slane %v8458_v20, %v12255_v29  ;;  %v8653_v33 = vrot.slane %v8625_v23, %v12255_v29  ;;  %v8655_v36 = vcombine.high %v8639_v24, %v8639_v24  ;;  %v8656_v0 = vcombine.high %v8646_v25, %v8646_v25  ;;  %11753 = vst.msk [vmem:[%s12271_s27 + $0x271] sm:$0x1] %vm631_vm0, %v8646_v25  ;;  %v9034_v20 = vpop.trf.xlu0 }
 0x240   : > { %11754 = vst.msk [vmem:[%s12271_s27 + $0x2b1] sm:$0x1] %vm631_vm0, %v8654_v26  ;;  %11756 = vst.msk [vmem:[%s12271_s27 + $0x331] sm:$0x1] %vm631_vm0, %v8639_v24  ;;  %v8902_v37 = vrot.slane %v8888_v21, %v12255_v29  ;;  %v8481_v38 = vrot.slane %v8459_v27, %v12255_v29  ;;  %v8488_v39 = vrot.slane %v8460_v28, %v12255_v29 }
 0x241   : > { %v8489_v40 = vcombine.high %v8467_v30, %v8467_v30  ;;  %v8490_v41 = vcombine.high %v8474_v31, %v8474_v31  ;;  %11736 = vst.msk [vmem:[%s12271_s27 + $0x230] sm:$0x1] %vm631_vm0, %v8467_v30  ;;  %11740 = vst.msk [vmem:[%s12271_s27 + $0x330] sm:$0x1] %vm631_vm0, %v8474_v31  ;;  %v8657_v42 = vcombine.high %v8653_v33, %v8653_v33 }
 0x242   : > { %11755 = vst.msk [vmem:[%s12271_s27 + $0x2f1] sm:$0x1] %vm631_vm0, %v8656_v0  ;;  %11757 = vst.msk [vmem:[%s12271_s27 + $0x371] sm:$0x1] %vm631_vm0, %v8653_v33  ;;  %v8903_v1 = vcombine.high %v8895_v22, %v8895_v22  ;;  %v8904_v43 = vcombine.high %v8902_v37, %v8902_v37  ;;  %v8911_v44 = vrot.slane %v8895_v22, %v12255_v29 }
 0x243   : > { %11758 = vst.msk [vmem:[%s12271_s27 + $0x3b1] sm:$0x1] %vm631_vm0, %v8655_v36  ;;  %v8491_v34 = vcombine.high %v8481_v38, %v8481_v38  ;;  %v8492_v46 = vcombine.high %v8488_v39, %v8488_v39  ;;  %11737 = vst.msk [vmem:[%s12271_s27 + $0x270] sm:$0x1] %vm631_vm0, %v8481_v38  ;;  %v8918_v47 = vrot.slane %v8902_v37, %v12255_v29  ;;  %v9199_v36 = vpop.trf.xlu1 }
 0x244   : > { %11738 = vst.msk [vmem:[%s12271_s27 + $0x2b0] sm:$0x1] %vm631_vm0, %v8489_v40  ;;  %11741 = vst.msk [vmem:[%s12271_s27 + $0x370] sm:$0x1] %vm631_vm0, %v8488_v39  ;;  %v8724_v48 = vcombine.high %v8706_v32, %v8706_v32  ;;  %v8925_v50 = vrot.slane %v8903_v1, %v12255_v29  ;;  %v8932_v51 = vrot.slane %v8904_v43, %v12255_v29 }
 0x245   : > { %11742 = vst.msk [vmem:[%s12271_s27 + $0x3b0] sm:$0x1] %vm631_vm0, %v8490_v41  ;;  %11759 = vst.msk [vmem:[%s12271_s27 + $0x3f1] sm:$0x1] %vm631_vm0, %v8657_v42  ;;  %v8933_v35 = vcombine.high %v8911_v44, %v8911_v44  ;;  %v8731_v49 = vrot.slane %v8706_v32, %v12255_v29  ;;  %v8934_v52 = vcombine.high %v8918_v47, %v8918_v47 }
 0x246   : > { %11776 = vst.msk [vmem:[%s12271_s27 + $0x33] sm:$0x1] %vm631_vm0, %v8911_v44  ;;  %11739 = vst.msk [vmem:[%s12271_s27 + $0x2f0] sm:$0x1] %vm631_vm0, %v8491_v34  ;;  %v8738_v53 = vrot.slane %v8724_v48, %v12255_v29  ;;  %v8937_v54 = vcombine.high %v8871_v45, %v8871_v45  ;;  %v8944_v6 = vrot.slane %v8871_v45, %v12255_v29 }
 0x247   : > { %11743 = vst.msk [vmem:[%s12271_s27 + $0x3f0] sm:$0x1] %vm631_vm0, %v8492_v46  ;;  %11780 = vst.msk [vmem:[%s12271_s27 + $0x133] sm:$0x1] %vm631_vm0, %v8918_v47  ;;  %v8935_v56 = vcombine.high %v8925_v50, %v8925_v50  ;;  %v8936_v57 = vcombine.high %v8932_v51, %v8932_v51  ;;  %v8739_v58 = vcombine.high %v8731_v49, %v8731_v49 }
 0x248   : > { %11777 = vst.msk [vmem:[%s12271_s27 + $0x73] sm:$0x1] %vm631_vm0, %v8925_v50  ;;  %11778 = vst.msk [vmem:[%s12271_s27 + $0xb3] sm:$0x1] %vm631_vm0, %v8933_v35  ;;  %v8747_v59 = vrot.slane %v8731_v49, %v12255_v29  ;;  %v8740_v60 = vcombine.high %v8738_v53, %v8738_v53  ;;  %v8754_v61 = vrot.slane %v8738_v53, %v12255_v29 }
 0x249   : > { %11781 = vst.msk [vmem:[%s12271_s27 + $0x173] sm:$0x1] %vm631_vm0, %v8932_v51  ;;  %11782 = vst.msk [vmem:[%s12271_s27 + $0x1b3] sm:$0x1] %vm631_vm0, %v8934_v52  ;;  %v8951_v62 = vrot.slane %v8937_v54, %v12255_v29  ;;  %v8952_v63 = vcombine.high %v8944_v6, %v8944_v6  ;;  %v8761_v15 = vrot.slane %v8739_v58, %v12255_v29  ;;  %v9035_v51 = vpop.trf.xlu0 }
 0x24a   : > { %11779 = vst.msk [vmem:[%s12271_s27 + $0xf3] sm:$0x1] %vm631_vm0, %v8935_v56  ;;  %11783 = vst.msk [vmem:[%s12271_s27 + $0x1f3] sm:$0x1] %vm631_vm0, %v8936_v57  ;;  %v8769_v2 = vcombine.high %v8747_v59, %v8747_v59  ;;  %v8960_v3 = vrot.slane %v8944_v6, %v12255_v29  ;;  %v8773_v4 = vcombine.high %v8707_v55, %v8707_v55  ;;  %v9526_v57 = vpop.trf.xlu1 }
 0x24b   : > { %11760 = vst.msk [vmem:[%s12271_s27 + $0x32] sm:$0x1] %vm631_vm0, %v8747_v59  ;;  %v8768_v7 = vrot.slane %v8740_v60, %v12255_v29  ;;  %v8770_v8 = vcombine.high %v8754_v61, %v8754_v61  ;;  %11764 = vst.msk [vmem:[%s12271_s27 + $0x132] sm:$0x1] %vm631_vm0, %v8754_v61  ;;  %v8953_v9 = vcombine.high %v8951_v62, %v8951_v62 }
 0x24c   : > { %v8967_v10 = vrot.slane %v8951_v62, %v12255_v29  ;;  %v8771_v11 = vcombine.high %v8761_v15, %v8761_v15  ;;  %11761 = vst.msk [vmem:[%s12271_s27 + $0x72] sm:$0x1] %vm631_vm0, %v8761_v15  ;;  %11762 = vst.msk [vmem:[%s12271_s27 + $0xb2] sm:$0x1] %vm631_vm0, %v8769_v2  ;;  %v8974_v12 = vrot.slane %v8952_v63, %v12255_v29 }
 0x24d   : > { %v8982_v13 = vcombine.high %v8960_v3, %v8960_v3  ;;  %11784 = vst.msk [vmem:[%s12271_s27 + $0x233] sm:$0x1] %vm631_vm0, %v8960_v3  ;;  %v8780_v14 = vrot.slane %v8707_v55, %v12255_v29  ;;  %v8772_v16 = vcombine.high %v8768_v7, %v8768_v7  ;;  %11765 = vst.msk [vmem:[%s12271_s27 + $0x172] sm:$0x1] %vm631_vm0, %v8768_v7 }
 0x24e   : > { %11766 = vst.msk [vmem:[%s12271_s27 + $0x1b2] sm:$0x1] %vm631_vm0, %v8770_v8  ;;  %v8981_v17 = vrot.slane %v8953_v9, %v12255_v29  ;;  %v8983_v18 = vcombine.high %v8967_v10, %v8967_v10  ;;  %11788 = vst.msk [vmem:[%s12271_s27 + $0x333] sm:$0x1] %vm631_vm0, %v8967_v10  ;;  %v8787_v19 = vrot.slane %v8773_v4, %v12255_v29 }
 0x24f   : > { %11763 = vst.msk [vmem:[%s12271_s27 + $0xf2] sm:$0x1] %vm631_vm0, %v8771_v11  ;;  %v8984_v21 = vcombine.high %v8974_v12, %v8974_v12  ;;  %11785 = vst.msk [vmem:[%s12271_s27 + $0x273] sm:$0x1] %vm631_vm0, %v8974_v12  ;;  %v8788_v22 = vcombine.high %v8780_v14, %v8780_v14  ;;  %v8796_v23 = vrot.slane %v8780_v14, %v12255_v29  ;;  %v9362_v12 = vpop.trf.xlu0 }
 0x250   : > { %11786 = vst.msk [vmem:[%s12271_s27 + $0x2b3] sm:$0x1] %vm631_vm0, %v8982_v13  ;;  %v9216_v24 = vcombine.high %v9198_v5, %v9198_v5  ;;  %11767 = vst.msk [vmem:[%s12271_s27 + $0x1f2] sm:$0x1] %vm631_vm0, %v8772_v16  ;;  %v8985_v25 = vcombine.high %v8981_v17, %v8981_v17  ;;  %v8789_v26 = vcombine.high %v8787_v19, %v8787_v19 }
 0x251   : > { %11789 = vst.msk [vmem:[%s12271_s27 + $0x373] sm:$0x1] %vm631_vm0, %v8981_v17  ;;  %11790 = vst.msk [vmem:[%s12271_s27 + $0x3b3] sm:$0x1] %vm631_vm0, %v8983_v18  ;;  %v8803_v27 = vrot.slane %v8787_v19, %v12255_v29  ;;  %v9223_v28 = vrot.slane %v9198_v5, %v12255_v29  ;;  %v8810_v30 = vrot.slane %v8788_v22, %v12255_v29  ;;  %v9527_v22 = vpop.trf.xlu1 }
 0x252   : > { %11787 = vst.msk [vmem:[%s12271_s27 + $0x2f3] sm:$0x1] %vm631_vm0, %v8984_v21  ;;  %v8818_v31 = vcombine.high %v8796_v23, %v8796_v23  ;;  %11768 = vst.msk [vmem:[%s12271_s27 + $0x232] sm:$0x1] %vm631_vm0, %v8796_v23  ;;  %v9230_v32 = vrot.slane %v9216_v24, %v12255_v29  ;;  %v9052_v33 = vcombine.high %v9034_v20, %v9034_v20 }
 0x253   : > { %11791 = vst.msk [vmem:[%s12271_s27 + $0x3f3] sm:$0x1] %vm631_vm0, %v8985_v25  ;;  %v8817_v0 = vrot.slane %v8789_v26, %v12255_v29  ;;  %v8819_v37 = vcombine.high %v8803_v27, %v8803_v27  ;;  %11772 = vst.msk [vmem:[%s12271_s27 + $0x332] sm:$0x1] %vm631_vm0, %v8803_v27  ;;  %v9231_v38 = vcombine.high %v9223_v28, %v9223_v28 }
 0x254   : > { %v9239_v39 = vrot.slane %v9223_v28, %v12255_v29  ;;  %v8820_v40 = vcombine.high %v8810_v30, %v8810_v30  ;;  %11769 = vst.msk [vmem:[%s12271_s27 + $0x272] sm:$0x1] %vm631_vm0, %v8810_v30  ;;  %11770 = vst.msk [vmem:[%s12271_s27 + $0x2b2] sm:$0x1] %vm631_vm0, %v8818_v31  ;;  %v9232_v41 = vcombine.high %v9230_v32, %v9230_v32 }
 0x255   : > { %v9246_v42 = vrot.slane %v9230_v32, %v12255_v29  ;;  %v9059_v1 = vrot.slane %v9034_v20, %v12255_v29  ;;  %v8821_v43 = vcombine.high %v8817_v0, %v8817_v0  ;;  %11773 = vst.msk [vmem:[%s12271_s27 + $0x372] sm:$0x1] %vm631_vm0, %v8817_v0  ;;  %11774 = vst.msk [vmem:[%s12271_s27 + $0x3b2] sm:$0x1] %vm631_vm0, %v8819_v37 }
 0x256   : > { %v9253_v44 = vrot.slane %v9231_v38, %v12255_v29  ;;  %v9261_v45 = vcombine.high %v9239_v39, %v9239_v39  ;;  %11808 = vst.msk [vmem:[%s12271_s27 + $0x35] sm:$0x1] %vm631_vm0, %v9239_v39  ;;  %v9066_v34 = vrot.slane %v9052_v33, %v12255_v29  ;;  %11771 = vst.msk [vmem:[%s12271_s27 + $0x2f2] sm:$0x1] %vm631_vm0, %v8820_v40 }
 0x257   : > { %v9260_v46 = vrot.slane %v9232_v41, %v12255_v29  ;;  %v9262_v47 = vcombine.high %v9246_v42, %v9246_v42  ;;  %11812 = vst.msk [vmem:[%s12271_s27 + $0x135] sm:$0x1] %vm631_vm0, %v9246_v42  ;;  %v9067_v48 = vcombine.high %v9059_v1, %v9059_v1  ;;  %v9075_v50 = vrot.slane %v9059_v1, %v12255_v29  ;;  %v9363_v41 = vpop.trf.xlu0 }
 0x258   : > { %11775 = vst.msk [vmem:[%s12271_s27 + $0x3f2] sm:$0x1] %vm631_vm0, %v8821_v43  ;;  %v9263_v35 = vcombine.high %v9253_v44, %v9253_v44  ;;  %11809 = vst.msk [vmem:[%s12271_s27 + $0x75] sm:$0x1] %vm631_vm0, %v9253_v44  ;;  %v9068_v49 = vcombine.high %v9066_v34, %v9066_v34  ;;  %v9082_v52 = vrot.slane %v9066_v34, %v12255_v29 }
 0x259   : > { %11810 = vst.msk [vmem:[%s12271_s27 + $0xb5] sm:$0x1] %vm631_vm0, %v9261_v45  ;;  %v9265_v53 = vcombine.high %v9199_v36, %v9199_v36  ;;  %v9264_v54 = vcombine.high %v9260_v46, %v9260_v46  ;;  %11813 = vst.msk [vmem:[%s12271_s27 + $0x175] sm:$0x1] %vm631_vm0, %v9260_v46  ;;  %v9089_v6 = vrot.slane %v9067_v48, %v12255_v29 }
 0x25a   : > { %11814 = vst.msk [vmem:[%s12271_s27 + $0x1b5] sm:$0x1] %vm631_vm0, %v9262_v47  ;;  %v9097_v55 = vcombine.high %v9075_v50, %v9075_v50  ;;  %11792 = vst.msk [vmem:[%s12271_s27 + $0x34] sm:$0x1] %vm631_vm0, %v9075_v50  ;;  %v9272_v56 = vrot.slane %v9199_v36, %v12255_v29  ;;  %v9096_v58 = vrot.slane %v9068_v49, %v12255_v29 }
 0x25b   : > { %11811 = vst.msk [vmem:[%s12271_s27 + $0xf5] sm:$0x1] %vm631_vm0, %v9263_v35  ;;  %v9098_v59 = vcombine.high %v9082_v52, %v9082_v52  ;;  %11796 = vst.msk [vmem:[%s12271_s27 + $0x134] sm:$0x1] %vm631_vm0, %v9082_v52  ;;  %v9279_v60 = vrot.slane %v9265_v53, %v12255_v29  ;;  %v9101_v61 = vcombine.high %v9035_v51, %v9035_v51 }
 0x25c   : > { %11815 = vst.msk [vmem:[%s12271_s27 + $0x1f5] sm:$0x1] %vm631_vm0, %v9264_v54  ;;  %v9099_v62 = vcombine.high %v9089_v6, %v9089_v6  ;;  %11793 = vst.msk [vmem:[%s12271_s27 + $0x74] sm:$0x1] %vm631_vm0, %v9089_v6  ;;  %v9280_v63 = vcombine.high %v9272_v56, %v9272_v56  ;;  %v9288_v15 = vrot.slane %v9272_v56, %v12255_v29  ;;  %v9855_v6 = vpop.trf.xlu1 }
 0x25d   : > { %11794 = vst.msk [vmem:[%s12271_s27 + $0xb4] sm:$0x1] %vm631_vm0, %v9097_v55  ;;  %v9108_v2 = vrot.slane %v9035_v51, %v12255_v29  ;;  %v9100_v3 = vcombine.high %v9096_v58, %v9096_v58  ;;  %11797 = vst.msk [vmem:[%s12271_s27 + $0x174] sm:$0x1] %vm631_vm0, %v9096_v58  ;;  %v9281_v4 = vcombine.high %v9279_v60, %v9279_v60 }
 0x25e   : > { %11798 = vst.msk [vmem:[%s12271_s27 + $0x1b4] sm:$0x1] %vm631_vm0, %v9098_v59  ;;  %v9295_v5 = vrot.slane %v9279_v60, %v12255_v29  ;;  %v9115_v7 = vrot.slane %v9101_v61, %v12255_v29  ;;  %11795 = vst.msk [vmem:[%s12271_s27 + $0xf4] sm:$0x1] %vm631_vm0, %v9099_v62  ;;  %v9302_v8 = vrot.slane %v9280_v63, %v12255_v29  ;;  %v9690_v63 = vpop.trf.xlu0 }
 0x25f   : > { %v9310_v9 = vcombine.high %v9288_v15, %v9288_v15  ;;  %11816 = vst.msk [vmem:[%s12271_s27 + $0x235] sm:$0x1] %vm631_vm0, %v9288_v15  ;;  %v9116_v10 = vcombine.high %v9108_v2, %v9108_v2  ;;  %v9124_v11 = vrot.slane %v9108_v2, %v12255_v29  ;;  %11799 = vst.msk [vmem:[%s12271_s27 + $0x1f4] sm:$0x1] %vm631_vm0, %v9100_v3 }
 0x260   : > { %v9309_v13 = vrot.slane %v9281_v4, %v12255_v29  ;;  %v9311_v14 = vcombine.high %v9295_v5, %v9295_v5  ;;  %11820 = vst.msk [vmem:[%s12271_s27 + $0x335] sm:$0x1] %vm631_vm0, %v9295_v5  ;;  %v9117_v16 = vcombine.high %v9115_v7, %v9115_v7  ;;  %v9131_v17 = vrot.slane %v9115_v7, %v12255_v29 }
 0x261   : > { %v9312_v18 = vcombine.high %v9302_v8, %v9302_v8  ;;  %11817 = vst.msk [vmem:[%s12271_s27 + $0x275] sm:$0x1] %vm631_vm0, %v9302_v8  ;;  %11818 = vst.msk [vmem:[%s12271_s27 + $0x2b5] sm:$0x1] %vm631_vm0, %v9310_v9  ;;  %v9138_v19 = vrot.slane %v9116_v10, %v12255_v29  ;;  %v9146_v20 = vcombine.high %v9124_v11, %v9124_v11 }
 0x262   : > { %11800 = vst.msk [vmem:[%s12271_s27 + $0x234] sm:$0x1] %vm631_vm0, %v9124_v11  ;;  %v9544_v21 = vcombine.high %v9526_v57, %v9526_v57  ;;  %v9313_v23 = vcombine.high %v9309_v13, %v9309_v13  ;;  %11821 = vst.msk [vmem:[%s12271_s27 + $0x375] sm:$0x1] %vm631_vm0, %v9309_v13  ;;  %v9145_v24 = vrot.slane %v9117_v16, %v12255_v29 }
 0x263   : > { %11822 = vst.msk [vmem:[%s12271_s27 + $0x3b5] sm:$0x1] %vm631_vm0, %v9311_v14  ;;  %v9147_v25 = vcombine.high %v9131_v17, %v9131_v17  ;;  %11804 = vst.msk [vmem:[%s12271_s27 + $0x334] sm:$0x1] %vm631_vm0, %v9131_v17  ;;  %v9551_v26 = vrot.slane %v9526_v57, %v12255_v29  ;;  %v9148_v27 = vcombine.high %v9138_v19, %v9138_v19 }
 0x264   : > { %11819 = vst.msk [vmem:[%s12271_s27 + $0x2f5] sm:$0x1] %vm631_vm0, %v9312_v18  ;;  %11801 = vst.msk [vmem:[%s12271_s27 + $0x274] sm:$0x1] %vm631_vm0, %v9138_v19  ;;  %v9558_v28 = vrot.slane %v9544_v21, %v12255_v29  ;;  %v9380_v30 = vcombine.high %v9362_v12, %v9362_v12  ;;  %v9387_v31 = vrot.slane %v9362_v12, %v12255_v29 }
 0x265   : > { %11802 = vst.msk [vmem:[%s12271_s27 + $0x2b4] sm:$0x1] %vm631_vm0, %v9146_v20  ;;  %11823 = vst.msk [vmem:[%s12271_s27 + $0x3f5] sm:$0x1] %vm631_vm0, %v9313_v23  ;;  %v9149_v32 = vcombine.high %v9145_v24, %v9145_v24  ;;  %v9559_v33 = vcombine.high %v9551_v26, %v9551_v26  ;;  %v9567_v36 = vrot.slane %v9551_v26, %v12255_v29  ;;  %v9856_v23 = vpop.trf.xlu1 }
 0x266   : > { %11805 = vst.msk [vmem:[%s12271_s27 + $0x374] sm:$0x1] %vm631_vm0, %v9145_v24  ;;  %11806 = vst.msk [vmem:[%s12271_s27 + $0x3b4] sm:$0x1] %vm631_vm0, %v9147_v25  ;;  %v9593_v0 = vcombine.high %v9527_v22, %v9527_v22  ;;  %v9560_v37 = vcombine.high %v9558_v28, %v9558_v28  ;;  %v9574_v38 = vrot.slane %v9558_v28, %v12255_v29 }
 0x267   : > { %11803 = vst.msk [vmem:[%s12271_s27 + $0x2f4] sm:$0x1] %vm631_vm0, %v9148_v27  ;;  %v9394_v39 = vrot.slane %v9380_v30, %v12255_v29  ;;  %v9395_v40 = vcombine.high %v9387_v31, %v9387_v31  ;;  %11807 = vst.msk [vmem:[%s12271_s27 + $0x3f4] sm:$0x1] %vm631_vm0, %v9149_v32  ;;  %v9581_v42 = vrot.slane %v9559_v33, %v12255_v29 }
 0x268   : > { %v9589_v1 = vcombine.high %v9567_v36, %v9567_v36  ;;  %11840 = vst.msk [vmem:[%s12271_s27 + $0x37] sm:$0x1] %vm631_vm0, %v9567_v36  ;;  %v9403_v43 = vrot.slane %v9387_v31, %v12255_v29  ;;  %v9600_v44 = vrot.slane %v9527_v22, %v12255_v29  ;;  %v9588_v45 = vrot.slane %v9560_v37, %v12255_v29 }
 0x269   : > { %v9590_v34 = vcombine.high %v9574_v38, %v9574_v38  ;;  %11844 = vst.msk [vmem:[%s12271_s27 + $0x137] sm:$0x1] %vm631_vm0, %v9574_v38  ;;  %v9396_v46 = vcombine.high %v9394_v39, %v9394_v39  ;;  %v9410_v47 = vrot.slane %v9394_v39, %v12255_v29  ;;  %v9591_v48 = vcombine.high %v9581_v42, %v9581_v42  ;;  %v9691_v38 = vpop.trf.xlu0 }
 0x26a   : > { %11841 = vst.msk [vmem:[%s12271_s27 + $0x77] sm:$0x1] %vm631_vm0, %v9581_v42  ;;  %11842 = vst.msk [vmem:[%s12271_s27 + $0xb7] sm:$0x1] %vm631_vm0, %v9589_v1  ;;  %v9417_v50 = vrot.slane %v9395_v40, %v12255_v29  ;;  %v9425_v51 = vcombine.high %v9403_v43, %v9403_v43  ;;  %v9607_v35 = vrot.slane %v9593_v0, %v12255_v29 }
 0x26b   : > { %11824 = vst.msk [vmem:[%s12271_s27 + $0x36] sm:$0x1] %vm631_vm0, %v9403_v43  ;;  %v9592_v49 = vcombine.high %v9588_v45, %v9588_v45  ;;  %11845 = vst.msk [vmem:[%s12271_s27 + $0x177] sm:$0x1] %vm631_vm0, %v9588_v45  ;;  %v9424_v52 = vrot.slane %v9396_v46, %v12255_v29  ;;  %v9426_v53 = vcombine.high %v9410_v47, %v9410_v47 }
 0x26c   : > { %11846 = vst.msk [vmem:[%s12271_s27 + $0x1b7] sm:$0x1] %vm631_vm0, %v9590_v34  ;;  %11828 = vst.msk [vmem:[%s12271_s27 + $0x136] sm:$0x1] %vm631_vm0, %v9410_v47  ;;  %v9608_v54 = vcombine.high %v9600_v44, %v9600_v44  ;;  %v9427_v55 = vcombine.high %v9417_v50, %v9417_v50  ;;  %v9609_v56 = vcombine.high %v9607_v35, %v9607_v35 }
 0x26d   : > { %11843 = vst.msk [vmem:[%s12271_s27 + $0xf7] sm:$0x1] %vm631_vm0, %v9591_v48  ;;  %11825 = vst.msk [vmem:[%s12271_s27 + $0x76] sm:$0x1] %vm631_vm0, %v9417_v50  ;;  %v9616_v57 = vrot.slane %v9600_v44, %v12255_v29  ;;  %v9623_v58 = vrot.slane %v9607_v35, %v12255_v29  ;;  %v9428_v59 = vcombine.high %v9424_v52, %v9424_v52  ;;  %v10183_v50 = vpop.trf.xlu1 }
 0x26e   : > { %11826 = vst.msk [vmem:[%s12271_s27 + $0xb6] sm:$0x1] %vm631_vm0, %v9425_v51  ;;  %11847 = vst.msk [vmem:[%s12271_s27 + $0x1f7] sm:$0x1] %vm631_vm0, %v9592_v49  ;;  %v9630_v60 = vrot.slane %v9608_v54, %v12255_v29  ;;  %v9429_v61 = vcombine.high %v9363_v41, %v9363_v41  ;;  %v9436_v62 = vrot.slane %v9363_v41, %v12255_v29 }
 0x26f   : > { %11829 = vst.msk [vmem:[%s12271_s27 + $0x176] sm:$0x1] %vm631_vm0, %v9424_v52  ;;  %11830 = vst.msk [vmem:[%s12271_s27 + $0x1b6] sm:$0x1] %vm631_vm0, %v9426_v53  ;;  %v9637_v15 = vrot.slane %v9609_v56, %v12255_v29  ;;  %v9638_v2 = vcombine.high %v9616_v57, %v9616_v57  ;;  %v9639_v3 = vcombine.high %v9623_v58, %v9623_v58 }
 0x270   : > { %11827 = vst.msk [vmem:[%s12271_s27 + $0xf6] sm:$0x1] %vm631_vm0, %v9427_v55  ;;  %11848 = vst.msk [vmem:[%s12271_s27 + $0x237] sm:$0x1] %vm631_vm0, %v9616_v57  ;;  %v9873_v4 = vcombine.high %v9855_v6, %v9855_v6  ;;  %v9640_v5 = vcombine.high %v9630_v60, %v9630_v60  ;;  %v9443_v7 = vrot.slane %v9429_v61, %v12255_v29 }
 0x271   : > { %11852 = vst.msk [vmem:[%s12271_s27 + $0x337] sm:$0x1] %vm631_vm0, %v9623_v58  ;;  %11831 = vst.msk [vmem:[%s12271_s27 + $0x1f6] sm:$0x1] %vm631_vm0, %v9428_v59  ;;  %v9444_v8 = vcombine.high %v9436_v62, %v9436_v62  ;;  %v9452_v9 = vrot.slane %v9436_v62, %v12255_v29  ;;  %v9641_v10 = vcombine.high %v9637_v15, %v9637_v15 }
 0x272   : > { %11849 = vst.msk [vmem:[%s12271_s27 + $0x277] sm:$0x1] %vm631_vm0, %v9630_v60  ;;  %11850 = vst.msk [vmem:[%s12271_s27 + $0x2b7] sm:$0x1] %vm631_vm0, %v9638_v2  ;;  %v9880_v11 = vrot.slane %v9855_v6, %v12255_v29  ;;  %v9887_v12 = vrot.slane %v9873_v4, %v12255_v29  ;;  %v9708_v13 = vcombine.high %v9690_v63, %v9690_v63  ;;  %v10019_v60 = vpop.trf.xlu0 }
 0x273   : > { %11853 = vst.msk [vmem:[%s12271_s27 + $0x377] sm:$0x1] %vm631_vm0, %v9637_v15  ;;  %11854 = vst.msk [vmem:[%s12271_s27 + $0x3b7] sm:$0x1] %vm631_vm0, %v9639_v3  ;;  %v9445_v14 = vcombine.high %v9443_v7, %v9443_v7  ;;  %v9459_v16 = vrot.slane %v9443_v7, %v12255_v29  ;;  %v9466_v17 = vrot.slane %v9444_v8, %v12255_v29 }
 0x274   : > { %11851 = vst.msk [vmem:[%s12271_s27 + $0x2f7] sm:$0x1] %vm631_vm0, %v9640_v5  ;;  %v9474_v18 = vcombine.high %v9452_v9, %v9452_v9  ;;  %11832 = vst.msk [vmem:[%s12271_s27 + $0x236] sm:$0x1] %vm631_vm0, %v9452_v9  ;;  %v9888_v19 = vcombine.high %v9880_v11, %v9880_v11  ;;  %v9889_v20 = vcombine.high %v9887_v12, %v9887_v12 }
 0x275   : > { %11855 = vst.msk [vmem:[%s12271_s27 + $0x3f7] sm:$0x1] %vm631_vm0, %v9641_v10  ;;  %v9896_v21 = vrot.slane %v9880_v11, %v12255_v29  ;;  %v9903_v22 = vrot.slane %v9887_v12, %v12255_v29  ;;  %v9473_v24 = vrot.slane %v9445_v14, %v12255_v29  ;;  %v9475_v25 = vcombine.high %v9459_v16, %v9459_v16  ;;  %v10184_v11 = vpop.trf.xlu1 }
 0x276   : > { %v9476_v26 = vcombine.high %v9466_v17, %v9466_v17  ;;  %11833 = vst.msk [vmem:[%s12271_s27 + $0x276] sm:$0x1] %vm631_vm0, %v9466_v17  ;;  %11834 = vst.msk [vmem:[%s12271_s27 + $0x2b6] sm:$0x1] %vm631_vm0, %v9474_v18  ;;  %v9715_v27 = vrot.slane %v9690_v63, %v12255_v29  ;;  %v9910_v28 = vrot.slane %v9888_v19, %v12255_v29 }
 0x277   : > { %11836 = vst.msk [vmem:[%s12271_s27 + $0x336] sm:$0x1] %vm631_vm0, %v9459_v16  ;;  %v9917_v30 = vrot.slane %v9889_v20, %v12255_v29  ;;  %v9918_v31 = vcombine.high %v9896_v21, %v9896_v21  ;;  %v9919_v32 = vcombine.high %v9903_v22, %v9903_v22  ;;  %11872 = vst.msk [vmem:[%s12271_s27 + $0x39] sm:$0x1] %vm631_vm0, %v9896_v21 }
 0x278   : > { %11876 = vst.msk [vmem:[%s12271_s27 + $0x139] sm:$0x1] %vm631_vm0, %v9903_v22  ;;  %v9477_v33 = vcombine.high %v9473_v24, %v9473_v24  ;;  %11835 = vst.msk [vmem:[%s12271_s27 + $0x2f6] sm:$0x1] %vm631_vm0, %v9476_v26  ;;  %v9722_v36 = vrot.slane %v9708_v13, %v12255_v29  ;;  %v9723_v0 = vcombine.high %v9715_v27, %v9715_v27 }
 0x279   : > { %11837 = vst.msk [vmem:[%s12271_s27 + $0x376] sm:$0x1] %vm631_vm0, %v9473_v24  ;;  %11838 = vst.msk [vmem:[%s12271_s27 + $0x3b6] sm:$0x1] %vm631_vm0, %v9475_v25  ;;  %v9731_v37 = vrot.slane %v9715_v27, %v12255_v29  ;;  %v9920_v39 = vcombine.high %v9910_v28, %v9910_v28  ;;  %v9921_v40 = vcombine.high %v9917_v30, %v9917_v30 }
 0x27a   : > { %11873 = vst.msk [vmem:[%s12271_s27 + $0x79] sm:$0x1] %vm631_vm0, %v9910_v28  ;;  %11874 = vst.msk [vmem:[%s12271_s27 + $0xb9] sm:$0x1] %vm631_vm0, %v9918_v31  ;;  %v9922_v41 = vcombine.high %v9856_v23, %v9856_v23  ;;  %v9929_v42 = vrot.slane %v9856_v23, %v12255_v29  ;;  %v9724_v1 = vcombine.high %v9722_v36, %v9722_v36 }
 0x27b   : > { %11877 = vst.msk [vmem:[%s12271_s27 + $0x179] sm:$0x1] %vm631_vm0, %v9917_v30  ;;  %11878 = vst.msk [vmem:[%s12271_s27 + $0x1b9] sm:$0x1] %vm631_vm0, %v9919_v32  ;;  %v9738_v43 = vrot.slane %v9722_v36, %v12255_v29  ;;  %v9745_v44 = vrot.slane %v9723_v0, %v12255_v29  ;;  %v9753_v45 = vcombine.high %v9731_v37, %v9731_v37  ;;  %v10020_v30 = vpop.trf.xlu0 }
 0x27c   : > { %11839 = vst.msk [vmem:[%s12271_s27 + $0x3f6] sm:$0x1] %vm631_vm0, %v9477_v33  ;;  %11856 = vst.msk [vmem:[%s12271_s27 + $0x38] sm:$0x1] %vm631_vm0, %v9731_v37  ;;  %v9936_v34 = vrot.slane %v9922_v41, %v12255_v29  ;;  %v9937_v46 = vcombine.high %v9929_v42, %v9929_v42  ;;  %v9945_v47 = vrot.slane %v9929_v42, %v12255_v29 }
 0x27d   : > { %11875 = vst.msk [vmem:[%s12271_s27 + $0xf9] sm:$0x1] %vm631_vm0, %v9920_v39  ;;  %11879 = vst.msk [vmem:[%s12271_s27 + $0x1f9] sm:$0x1] %vm631_vm0, %v9921_v40  ;;  %v9757_v48 = vcombine.high %v9691_v38, %v9691_v38  ;;  %v9752_v51 = vrot.slane %v9724_v1, %v12255_v29  ;;  %v9754_v35 = vcombine.high %v9738_v43, %v9738_v43  ;;  %v10511_v40 = vpop.trf.xlu1 }
 0x27e   : > { %v9755_v49 = vcombine.high %v9745_v44, %v9745_v44  ;;  %11857 = vst.msk [vmem:[%s12271_s27 + $0x78] sm:$0x1] %vm631_vm0, %v9745_v44  ;;  %11858 = vst.msk [vmem:[%s12271_s27 + $0xb8] sm:$0x1] %vm631_vm0, %v9753_v45  ;;  %v9764_v52 = vrot.slane %v9691_v38, %v12255_v29  ;;  %v9938_v53 = vcombine.high %v9936_v34, %v9936_v34 }
 0x27f   : > { %11860 = vst.msk [vmem:[%s12271_s27 + $0x138] sm:$0x1] %vm631_vm0, %v9738_v43  ;;  %v9952_v54 = vrot.slane %v9936_v34, %v12255_v29  ;;  %v9959_v6 = vrot.slane %v9937_v46, %v12255_v29  ;;  %v9967_v55 = vcombine.high %v9945_v47, %v9945_v47  ;;  %11880 = vst.msk [vmem:[%s12271_s27 + $0x239] sm:$0x1] %vm631_vm0, %v9945_v47 }
 0x280   : > { %v9756_v56 = vcombine.high %v9752_v51, %v9752_v51  ;;  %11859 = vst.msk [vmem:[%s12271_s27 + $0xf8] sm:$0x1] %vm631_vm0, %v9755_v49  ;;  %11861 = vst.msk [vmem:[%s12271_s27 + $0x178] sm:$0x1] %vm631_vm0, %v9752_v51  ;;  %v9771_v57 = vrot.slane %v9757_v48, %v12255_v29  ;;  %v9772_v58 = vcombine.high %v9764_v52, %v9764_v52 }
 0x281   : > { %11862 = vst.msk [vmem:[%s12271_s27 + $0x1b8] sm:$0x1] %vm631_vm0, %v9754_v35  ;;  %v9780_v59 = vrot.slane %v9764_v52, %v12255_v29  ;;  %v9966_v61 = vrot.slane %v9938_v53, %v12255_v29  ;;  %v9968_v62 = vcombine.high %v9952_v54, %v9952_v54  ;;  %v9969_v63 = vcombine.high %v9959_v6, %v9959_v6 }
 0x282   : > { %11881 = vst.msk [vmem:[%s12271_s27 + $0x279] sm:$0x1] %vm631_vm0, %v9959_v6  ;;  %11882 = vst.msk [vmem:[%s12271_s27 + $0x2b9] sm:$0x1] %vm631_vm0, %v9967_v55  ;;  %v10201_v15 = vcombine.high %v10183_v50, %v10183_v50  ;;  %v9773_v2 = vcombine.high %v9771_v57, %v9771_v57  ;;  %v9787_v3 = vrot.slane %v9771_v57, %v12255_v29  ;;  %v10347_v57 = vpop.trf.xlu0 }
 0x283   : > { %11884 = vst.msk [vmem:[%s12271_s27 + $0x339] sm:$0x1] %vm631_vm0, %v9952_v54  ;;  %11863 = vst.msk [vmem:[%s12271_s27 + $0x1f8] sm:$0x1] %vm631_vm0, %v9756_v56  ;;  %v9794_v4 = vrot.slane %v9772_v58, %v12255_v29  ;;  %v9802_v5 = vcombine.high %v9780_v59, %v9780_v59  ;;  %v9970_v7 = vcombine.high %v9966_v61, %v9966_v61 }
 0x284   : > { %11864 = vst.msk [vmem:[%s12271_s27 + $0x238] sm:$0x1] %vm631_vm0, %v9780_v59  ;;  %11883 = vst.msk [vmem:[%s12271_s27 + $0x2f9] sm:$0x1] %vm631_vm0, %v9969_v63  ;;  %v10208_v8 = vrot.slane %v10183_v50, %v12255_v29  ;;  %v10215_v9 = vrot.slane %v10201_v15, %v12255_v29  ;;  %v10037_v10 = vcombine.high %v10019_v60, %v10019_v60 }
 0x285   : > { %11885 = vst.msk [vmem:[%s12271_s27 + $0x379] sm:$0x1] %vm631_vm0, %v9966_v61  ;;  %11886 = vst.msk [vmem:[%s12271_s27 + $0x3b9] sm:$0x1] %vm631_vm0, %v9968_v62  ;;  %v9801_v12 = vrot.slane %v9773_v2, %v12255_v29  ;;  %v9803_v13 = vcombine.high %v9787_v3, %v9787_v3  ;;  %v9804_v14 = vcombine.high %v9794_v4, %v9794_v4 }
 0x286   : > { %11865 = vst.msk [vmem:[%s12271_s27 + $0x278] sm:$0x1] %vm631_vm0, %v9794_v4  ;;  %11866 = vst.msk [vmem:[%s12271_s27 + $0x2b8] sm:$0x1] %vm631_vm0, %v9802_v5  ;;  %v10044_v16 = vrot.slane %v10019_v60, %v12255_v29  ;;  %v10216_v17 = vcombine.high %v10208_v8, %v10208_v8  ;;  %v10217_v18 = vcombine.high %v10215_v9, %v10215_v9 }
 0x287   : > { %11868 = vst.msk [vmem:[%s12271_s27 + $0x338] sm:$0x1] %vm631_vm0, %v9787_v3  ;;  %11887 = vst.msk [vmem:[%s12271_s27 + $0x3f9] sm:$0x1] %vm631_vm0, %v9970_v7  ;;  %v10224_v19 = vrot.slane %v10208_v8, %v12255_v29  ;;  %v10231_v20 = vrot.slane %v10215_v9, %v12255_v29  ;;  %v9805_v21 = vcombine.high %v9801_v12, %v9801_v12  ;;  %v10512_v8 = vpop.trf.xlu1 }
 0x288   : > { %11867 = vst.msk [vmem:[%s12271_s27 + $0x2f8] sm:$0x1] %vm631_vm0, %v9804_v14  ;;  %11869 = vst.msk [vmem:[%s12271_s27 + $0x378] sm:$0x1] %vm631_vm0, %v9801_v12  ;;  %v10051_v22 = vrot.slane %v10037_v10, %v12255_v29  ;;  %v10052_v23 = vcombine.high %v10044_v16, %v10044_v16  ;;  %v10060_v24 = vrot.slane %v10044_v16, %v12255_v29 }
 0x289   : > { %11870 = vst.msk [vmem:[%s12271_s27 + $0x3b8] sm:$0x1] %vm631_vm0, %v9803_v13  ;;  %v10238_v25 = vrot.slane %v10216_v17, %v12255_v29  ;;  %v10245_v26 = vrot.slane %v10217_v18, %v12255_v29  ;;  %v10246_v27 = vcombine.high %v10224_v19, %v10224_v19  ;;  %v10247_v28 = vcombine.high %v10231_v20, %v10231_v20 }
 0x28a   : > { %11904 = vst.msk [vmem:[%s12271_s27 + $0x3b] sm:$0x1] %vm631_vm0, %v10224_v19  ;;  %11908 = vst.msk [vmem:[%s12271_s27 + $0x13b] sm:$0x1] %vm631_vm0, %v10231_v20  ;;  %v10053_v31 = vcombine.high %v10051_v22, %v10051_v22  ;;  %v10067_v32 = vrot.slane %v10051_v22, %v12255_v29  ;;  %v10074_v33 = vrot.slane %v10052_v23, %v12255_v29  ;;  %v10348_v22 = vpop.trf.xlu0 }
 0x28b   : > { %11871 = vst.msk [vmem:[%s12271_s27 + $0x3f8] sm:$0x1] %vm631_vm0, %v9805_v21  ;;  %v10082_v36 = vcombine.high %v10060_v24, %v10060_v24  ;;  %11888 = vst.msk [vmem:[%s12271_s27 + $0x3a] sm:$0x1] %vm631_vm0, %v10060_v24  ;;  %v10248_v0 = vcombine.high %v10238_v25, %v10238_v25  ;;  %v10249_v37 = vcombine.high %v10245_v26, %v10245_v26 }
 0x28c   : > { %11905 = vst.msk [vmem:[%s12271_s27 + $0x7b] sm:$0x1] %vm631_vm0, %v10238_v25  ;;  %11906 = vst.msk [vmem:[%s12271_s27 + $0xbb] sm:$0x1] %vm631_vm0, %v10246_v27  ;;  %v10250_v38 = vcombine.high %v10184_v11, %v10184_v11  ;;  %v10257_v39 = vrot.slane %v10184_v11, %v12255_v29  ;;  %v10081_v41 = vrot.slane %v10053_v31, %v12255_v29 }
 0x28d   : > { %11909 = vst.msk [vmem:[%s12271_s27 + $0x17b] sm:$0x1] %vm631_vm0, %v10245_v26  ;;  %11910 = vst.msk [vmem:[%s12271_s27 + $0x1bb] sm:$0x1] %vm631_vm0, %v10247_v28  ;;  %v10083_v42 = vcombine.high %v10067_v32, %v10067_v32  ;;  %v10084_v1 = vcombine.high %v10074_v33, %v10074_v33  ;;  %v10086_v43 = vcombine.high %v10020_v30, %v10020_v30 }
 0x28e   : > { %11889 = vst.msk [vmem:[%s12271_s27 + $0x7a] sm:$0x1] %vm631_vm0, %v10074_v33  ;;  %11890 = vst.msk [vmem:[%s12271_s27 + $0xba] sm:$0x1] %vm631_vm0, %v10082_v36  ;;  %v10264_v44 = vrot.slane %v10250_v38, %v12255_v29  ;;  %v10265_v45 = vcombine.high %v10257_v39, %v10257_v39  ;;  %v10273_v34 = vrot.slane %v10257_v39, %v12255_v29 }
 0x28f   : > { %11892 = vst.msk [vmem:[%s12271_s27 + $0x13a] sm:$0x1] %vm631_vm0, %v10067_v32  ;;  %11907 = vst.msk [vmem:[%s12271_s27 + $0xfb] sm:$0x1] %vm631_vm0, %v10248_v0  ;;  %v10093_v46 = vrot.slane %v10020_v30, %v12255_v29  ;;  %v10085_v47 = vcombine.high %v10081_v41, %v10081_v41  ;;  %v10100_v48 = vrot.slane %v10086_v43, %v12255_v29 }
 0x290   : > { %11911 = vst.msk [vmem:[%s12271_s27 + $0x1fb] sm:$0x1] %vm631_vm0, %v10249_v37  ;;  %11891 = vst.msk [vmem:[%s12271_s27 + $0xfa] sm:$0x1] %vm631_vm0, %v10084_v1  ;;  %v10529_v50 = vcombine.high %v10511_v40, %v10511_v40  ;;  %v10536_v51 = vrot.slane %v10511_v40, %v12255_v29  ;;  %v10266_v35 = vcombine.high %v10264_v44, %v10264_v44 }
 0x291   : > { %11893 = vst.msk [vmem:[%s12271_s27 + $0x17a] sm:$0x1] %vm631_vm0, %v10081_v41  ;;  %11894 = vst.msk [vmem:[%s12271_s27 + $0x1ba] sm:$0x1] %vm631_vm0, %v10083_v42  ;;  %v10280_v49 = vrot.slane %v10264_v44, %v12255_v29  ;;  %v10287_v52 = vrot.slane %v10265_v45, %v12255_v29  ;;  %v10295_v53 = vcombine.high %v10273_v34, %v10273_v34  ;;  %v10839_v41 = vpop.trf.xlu1 }
 0x292   : > { %11912 = vst.msk [vmem:[%s12271_s27 + $0x23b] sm:$0x1] %vm631_vm0, %v10273_v34  ;;  %11895 = vst.msk [vmem:[%s12271_s27 + $0x1fa] sm:$0x1] %vm631_vm0, %v10085_v47  ;;  %v10101_v54 = vcombine.high %v10093_v46, %v10093_v46  ;;  %v10102_v6 = vcombine.high %v10100_v48, %v10100_v48  ;;  %v10109_v55 = vrot.slane %v10093_v46, %v12255_v29 }
 0x293   : > { %v10116_v56 = vrot.slane %v10100_v48, %v12255_v29  ;;  %v10294_v58 = vrot.slane %v10266_v35, %v12255_v29  ;;  %v10296_v59 = vcombine.high %v10280_v49, %v10280_v49  ;;  %v10297_v60 = vcombine.high %v10287_v52, %v10287_v52  ;;  %11913 = vst.msk [vmem:[%s12271_s27 + $0x27b] sm:$0x1] %vm631_vm0, %v10287_v52  ;;  %v10675_v48 = vpop.trf.xlu0 }
 0x294   : > { %11914 = vst.msk [vmem:[%s12271_s27 + $0x2bb] sm:$0x1] %vm631_vm0, %v10295_v53  ;;  %11916 = vst.msk [vmem:[%s12271_s27 + $0x33b] sm:$0x1] %vm631_vm0, %v10280_v49  ;;  %v10543_v61 = vrot.slane %v10529_v50, %v12255_v29  ;;  %v10123_v62 = vrot.slane %v10101_v54, %v12255_v29  ;;  %v10130_v63 = vrot.slane %v10102_v6, %v12255_v29 }
 0x295   : > { %v10131_v15 = vcombine.high %v10109_v55, %v10109_v55  ;;  %v10132_v2 = vcombine.high %v10116_v56, %v10116_v56  ;;  %11896 = vst.msk [vmem:[%s12271_s27 + $0x23a] sm:$0x1] %vm631_vm0, %v10109_v55  ;;  %11900 = vst.msk [vmem:[%s12271_s27 + $0x33a] sm:$0x1] %vm631_vm0, %v10116_v56  ;;  %v10298_v3 = vcombine.high %v10294_v58, %v10294_v58 }
 0x296   : > { %11915 = vst.msk [vmem:[%s12271_s27 + $0x2fb] sm:$0x1] %vm631_vm0, %v10297_v60  ;;  %11917 = vst.msk [vmem:[%s12271_s27 + $0x37b] sm:$0x1] %vm631_vm0, %v10294_v58  ;;  %v10544_v4 = vcombine.high %v10536_v51, %v10536_v51  ;;  %v10545_v5 = vcombine.high %v10543_v61, %v10543_v61  ;;  %v10552_v7 = vrot.slane %v10536_v51, %v12255_v29 }
 0x297   : > { %11918 = vst.msk [vmem:[%s12271_s27 + $0x3bb] sm:$0x1] %vm631_vm0, %v10296_v59  ;;  %v10133_v9 = vcombine.high %v10123_v62, %v10123_v62  ;;  %v10134_v10 = vcombine.high %v10130_v63, %v10130_v63  ;;  %11897 = vst.msk [vmem:[%s12271_s27 + $0x27a] sm:$0x1] %vm631_vm0, %v10123_v62  ;;  %v10559_v11 = vrot.slane %v10543_v61, %v12255_v29 }
 0x298   : > { %11898 = vst.msk [vmem:[%s12271_s27 + $0x2ba] sm:$0x1] %vm631_vm0, %v10131_v15  ;;  %11901 = vst.msk [vmem:[%s12271_s27 + $0x37a] sm:$0x1] %vm631_vm0, %v10130_v63  ;;  %v10365_v12 = vcombine.high %v10347_v57, %v10347_v57  ;;  %v10566_v13 = vrot.slane %v10544_v4, %v12255_v29  ;;  %v10573_v14 = vrot.slane %v10545_v5, %v12255_v29  ;;  %v10840_v4 = vpop.trf.xlu1 }
 0x299   : > { %11902 = vst.msk [vmem:[%s12271_s27 + $0x3ba] sm:$0x1] %vm631_vm0, %v10132_v2  ;;  %11919 = vst.msk [vmem:[%s12271_s27 + $0x3fb] sm:$0x1] %vm631_vm0, %v10298_v3  ;;  %v10574_v16 = vcombine.high %v10552_v7, %v10552_v7  ;;  %v10372_v17 = vrot.slane %v10347_v57, %v12255_v29  ;;  %v10575_v18 = vcombine.high %v10559_v11, %v10559_v11 }
 0x29a   : > { %11936 = vst.msk [vmem:[%s12271_s27 + $0x3d] sm:$0x1] %vm631_vm0, %v10552_v7  ;;  %11899 = vst.msk [vmem:[%s12271_s27 + $0x2fa] sm:$0x1] %vm631_vm0, %v10133_v9  ;;  %v10379_v19 = vrot.slane %v10365_v12, %v12255_v29  ;;  %v10578_v20 = vcombine.high %v10512_v8, %v10512_v8  ;;  %v10585_v21 = vrot.slane %v10512_v8, %v12255_v29 }
 0x29b   : > { %11903 = vst.msk [vmem:[%s12271_s27 + $0x3fa] sm:$0x1] %vm631_vm0, %v10134_v10  ;;  %11940 = vst.msk [vmem:[%s12271_s27 + $0x13d] sm:$0x1] %vm631_vm0, %v10559_v11  ;;  %v10576_v23 = vcombine.high %v10566_v13, %v10566_v13  ;;  %v10577_v24 = vcombine.high %v10573_v14, %v10573_v14  ;;  %v10380_v25 = vcombine.high %v10372_v17, %v10372_v17 }
 0x29c   : > { %11937 = vst.msk [vmem:[%s12271_s27 + $0x7d] sm:$0x1] %vm631_vm0, %v10566_v13  ;;  %11938 = vst.msk [vmem:[%s12271_s27 + $0xbd] sm:$0x1] %vm631_vm0, %v10574_v16  ;;  %v10388_v26 = vrot.slane %v10372_v17, %v12255_v29  ;;  %v10381_v27 = vcombine.high %v10379_v19, %v10379_v19  ;;  %v10395_v28 = vrot.slane %v10379_v19, %v12255_v29 }
 0x29d   : > { %11941 = vst.msk [vmem:[%s12271_s27 + $0x17d] sm:$0x1] %vm631_vm0, %v10573_v14  ;;  %11942 = vst.msk [vmem:[%s12271_s27 + $0x1bd] sm:$0x1] %vm631_vm0, %v10575_v18  ;;  %v10592_v30 = vrot.slane %v10578_v20, %v12255_v29  ;;  %v10593_v31 = vcombine.high %v10585_v21, %v10585_v21  ;;  %v10402_v32 = vrot.slane %v10380_v25, %v12255_v29  ;;  %v10676_v14 = vpop.trf.xlu0 }
 0x29e   : > { %11939 = vst.msk [vmem:[%s12271_s27 + $0xfd] sm:$0x1] %vm631_vm0, %v10576_v23  ;;  %11943 = vst.msk [vmem:[%s12271_s27 + $0x1fd] sm:$0x1] %vm631_vm0, %v10577_v24  ;;  %v10410_v33 = vcombine.high %v10388_v26, %v10388_v26  ;;  %v10601_v36 = vrot.slane %v10585_v21, %v12255_v29  ;;  %v10414_v0 = vcombine.high %v10348_v22, %v10348_v22 }
 0x29f   : > { %11920 = vst.msk [vmem:[%s12271_s27 + $0x3c] sm:$0x1] %vm631_vm0, %v10388_v26  ;;  %v10409_v37 = vrot.slane %v10381_v27, %v12255_v29  ;;  %v10411_v38 = vcombine.high %v10395_v28, %v10395_v28  ;;  %11924 = vst.msk [vmem:[%s12271_s27 + $0x13c] sm:$0x1] %vm631_vm0, %v10395_v28  ;;  %v10594_v39 = vcombine.high %v10592_v30, %v10592_v30 }
 0x2a0   : > { %v10608_v40 = vrot.slane %v10592_v30, %v12255_v29  ;;  %v10412_v42 = vcombine.high %v10402_v32, %v10402_v32  ;;  %11921 = vst.msk [vmem:[%s12271_s27 + $0x7c] sm:$0x1] %vm631_vm0, %v10402_v32  ;;  %11922 = vst.msk [vmem:[%s12271_s27 + $0xbc] sm:$0x1] %vm631_vm0, %v10410_v33  ;;  %v10615_v1 = vrot.slane %v10593_v31, %v12255_v29 }
 0x2a1   : > { %v10623_v43 = vcombine.high %v10601_v36, %v10601_v36  ;;  %11944 = vst.msk [vmem:[%s12271_s27 + $0x23d] sm:$0x1] %vm631_vm0, %v10601_v36  ;;  %v10421_v44 = vrot.slane %v10348_v22, %v12255_v29  ;;  %v10413_v45 = vcombine.high %v10409_v37, %v10409_v37  ;;  %11925 = vst.msk [vmem:[%s12271_s27 + $0x17c] sm:$0x1] %vm631_vm0, %v10409_v37 }
 0x2a2   : > { %11926 = vst.msk [vmem:[%s12271_s27 + $0x1bc] sm:$0x1] %vm631_vm0, %v10411_v38  ;;  %v10622_v34 = vrot.slane %v10594_v39, %v12255_v29  ;;  %v10624_v46 = vcombine.high %v10608_v40, %v10608_v40  ;;  %11948 = vst.msk [vmem:[%s12271_s27 + $0x33d] sm:$0x1] %vm631_vm0, %v10608_v40  ;;  %v10428_v47 = vrot.slane %v10414_v0, %v12255_v29 }
 0x2a3   : > { %11923 = vst.msk [vmem:[%s12271_s27 + $0xfc] sm:$0x1] %vm631_vm0, %v10412_v42  ;;  %v10625_v50 = vcombine.high %v10615_v1, %v10615_v1  ;;  %11945 = vst.msk [vmem:[%s12271_s27 + $0x27d] sm:$0x1] %vm631_vm0, %v10615_v1  ;;  %v10429_v51 = vcombine.high %v10421_v44, %v10421_v44  ;;  %v10437_v35 = vrot.slane %v10421_v44, %v12255_v29 }
 0x2a4   : > { %11946 = vst.msk [vmem:[%s12271_s27 + $0x2bd] sm:$0x1] %vm631_vm0, %v10623_v43  ;;  %v10857_v49 = vcombine.high %v10839_v41, %v10839_v41  ;;  %11927 = vst.msk [vmem:[%s12271_s27 + $0x1fc] sm:$0x1] %vm631_vm0, %v10413_v45  ;;  %v10626_v52 = vcombine.high %v10622_v34, %v10622_v34  ;;  %v10430_v53 = vcombine.high %v10428_v47, %v10428_v47 }
 0x2a5   : > { %11949 = vst.msk [vmem:[%s12271_s27 + $0x37d] sm:$0x1] %vm631_vm0, %v10622_v34  ;;  %11950 = vst.msk [vmem:[%s12271_s27 + $0x3bd] sm:$0x1] %vm631_vm0, %v10624_v46  ;;  %v10444_v54 = vrot.slane %v10428_v47, %v12255_v29  ;;  %v10864_v6 = vrot.slane %v10839_v41, %v12255_v29  ;;  %v10451_v55 = vrot.slane %v10429_v51, %v12255_v29 }
 0x2a6   : > { %11947 = vst.msk [vmem:[%s12271_s27 + $0x2fd] sm:$0x1] %vm631_vm0, %v10625_v50  ;;  %v10459_v56 = vcombine.high %v10437_v35, %v10437_v35  ;;  %11928 = vst.msk [vmem:[%s12271_s27 + $0x23c] sm:$0x1] %vm631_vm0, %v10437_v35  ;;  %v10871_v57 = vrot.slane %v10857_v49, %v12255_v29  ;;  %v10693_v58 = vcombine.high %v10675_v48, %v10675_v48 }
 0x2a7   : > { %11951 = vst.msk [vmem:[%s12271_s27 + $0x3fd] sm:$0x1] %vm631_vm0, %v10626_v52  ;;  %v10458_v59 = vrot.slane %v10430_v53, %v12255_v29  ;;  %v10460_v60 = vcombine.high %v10444_v54, %v10444_v54  ;;  %11932 = vst.msk [vmem:[%s12271_s27 + $0x33c] sm:$0x1] %vm631_vm0, %v10444_v54  ;;  %v10872_v61 = vcombine.high %v10864_v6, %v10864_v6 }
 0x2a8   : > { %v10880_v62 = vrot.slane %v10864_v6, %v12255_v29  ;;  %v10461_v63 = vcombine.high %v10451_v55, %v10451_v55  ;;  %11929 = vst.msk [vmem:[%s12271_s27 + $0x27c] sm:$0x1] %vm631_vm0, %v10451_v55  ;;  %11930 = vst.msk [vmem:[%s12271_s27 + $0x2bc] sm:$0x1] %vm631_vm0, %v10459_v56  ;;  %v10873_v15 = vcombine.high %v10871_v57, %v10871_v57 }
 0x2a9   : > { %v10887_v2 = vrot.slane %v10871_v57, %v12255_v29  ;;  %v10700_v3 = vrot.slane %v10675_v48, %v12255_v29  ;;  %v10462_v5 = vcombine.high %v10458_v59, %v10458_v59  ;;  %11933 = vst.msk [vmem:[%s12271_s27 + $0x37c] sm:$0x1] %vm631_vm0, %v10458_v59  ;;  %11934 = vst.msk [vmem:[%s12271_s27 + $0x3bc] sm:$0x1] %vm631_vm0, %v10460_v60 }
 0x2aa   : > { %v10894_v7 = vrot.slane %v10872_v61, %v12255_v29  ;;  %v10902_v8 = vcombine.high %v10880_v62, %v10880_v62  ;;  %11968 = vst.msk [vmem:[%s12271_s27 + $0x3f] sm:$0x1] %vm631_vm0, %v10880_v62  ;;  %v10707_v9 = vrot.slane %v10693_v58, %v12255_v29  ;;  %11931 = vst.msk [vmem:[%s12271_s27 + $0x2fc] sm:$0x1] %vm631_vm0, %v10461_v63 }
 0x2ab   : > { %v10901_v10 = vrot.slane %v10873_v15, %v12255_v29  ;;  %v10903_v11 = vcombine.high %v10887_v2, %v10887_v2  ;;  %11972 = vst.msk [vmem:[%s12271_s27 + $0x13f] sm:$0x1] %vm631_vm0, %v10887_v2  ;;  %v10708_v12 = vcombine.high %v10700_v3, %v10700_v3  ;;  %v10716_v13 = vrot.slane %v10700_v3, %v12255_v29 }
 0x2ac   : > { %11935 = vst.msk [vmem:[%s12271_s27 + $0x3fc] sm:$0x1] %vm631_vm0, %v10462_v5  ;;  %v10904_v16 = vcombine.high %v10894_v7, %v10894_v7  ;;  %11969 = vst.msk [vmem:[%s12271_s27 + $0x7f] sm:$0x1] %vm631_vm0, %v10894_v7  ;;  %v10709_v17 = vcombine.high %v10707_v9, %v10707_v9  ;;  %v10723_v18 = vrot.slane %v10707_v9, %v12255_v29 }
 0x2ad   : > { %11970 = vst.msk [vmem:[%s12271_s27 + $0xbf] sm:$0x1] %vm631_vm0, %v10902_v8  ;;  %v10906_v19 = vcombine.high %v10840_v4, %v10840_v4  ;;  %v10905_v20 = vcombine.high %v10901_v10, %v10901_v10  ;;  %11973 = vst.msk [vmem:[%s12271_s27 + $0x17f] sm:$0x1] %vm631_vm0, %v10901_v10  ;;  %v10730_v21 = vrot.slane %v10708_v12, %v12255_v29 }
 0x2ae   : > { %11974 = vst.msk [vmem:[%s12271_s27 + $0x1bf] sm:$0x1] %vm631_vm0, %v10903_v11  ;;  %v10738_v22 = vcombine.high %v10716_v13, %v10716_v13  ;;  %11952 = vst.msk [vmem:[%s12271_s27 + $0x3e] sm:$0x1] %vm631_vm0, %v10716_v13  ;;  %v10913_v23 = vrot.slane %v10840_v4, %v12255_v29  ;;  %v10737_v24 = vrot.slane %v10709_v17, %v12255_v29 }
 0x2af   : > { %11971 = vst.msk [vmem:[%s12271_s27 + $0xff] sm:$0x1] %vm631_vm0, %v10904_v16  ;;  %v10739_v25 = vcombine.high %v10723_v18, %v10723_v18  ;;  %11956 = vst.msk [vmem:[%s12271_s27 + $0x13e] sm:$0x1] %vm631_vm0, %v10723_v18  ;;  %v10920_v26 = vrot.slane %v10906_v19, %v12255_v29  ;;  %v10742_v27 = vcombine.high %v10676_v14, %v10676_v14 }
 0x2b0   : > { %11975 = vst.msk [vmem:[%s12271_s27 + $0x1ff] sm:$0x1] %vm631_vm0, %v10905_v20  ;;  %v10740_v28 = vcombine.high %v10730_v21, %v10730_v21  ;;  %11953 = vst.msk [vmem:[%s12271_s27 + $0x7e] sm:$0x1] %vm631_vm0, %v10730_v21  ;;  %v10921_v30 = vcombine.high %v10913_v23, %v10913_v23  ;;  %v10929_v31 = vrot.slane %v10913_v23, %v12255_v29 }
 0x2b1   : > { %11954 = vst.msk [vmem:[%s12271_s27 + $0xbe] sm:$0x1] %vm631_vm0, %v10738_v22  ;;  %v10749_v32 = vrot.slane %v10676_v14, %v12255_v29  ;;  %v10741_v33 = vcombine.high %v10737_v24, %v10737_v24  ;;  %11957 = vst.msk [vmem:[%s12271_s27 + $0x17e] sm:$0x1] %vm631_vm0, %v10737_v24  ;;  %v10922_v36 = vcombine.high %v10920_v26, %v10920_v26 }
 0x2b2   : > { %11958 = vst.msk [vmem:[%s12271_s27 + $0x1be] sm:$0x1] %vm631_vm0, %v10739_v25  ;;  %v10936_v0 = vrot.slane %v10920_v26, %v12255_v29  ;;  %v10756_v37 = vrot.slane %v10742_v27, %v12255_v29  ;;  %11955 = vst.msk [vmem:[%s12271_s27 + $0xfe] sm:$0x1] %vm631_vm0, %v10740_v28  ;;  %v10943_v38 = vrot.slane %v10921_v30, %v12255_v29 }
 0x2b3   : > { %v10951_v39 = vcombine.high %v10929_v31, %v10929_v31  ;;  %11976 = vst.msk [vmem:[%s12271_s27 + $0x23f] sm:$0x1] %vm631_vm0, %v10929_v31  ;;  %v10757_v40 = vcombine.high %v10749_v32, %v10749_v32  ;;  %v10765_v41 = vrot.slane %v10749_v32, %v12255_v29  ;;  %11959 = vst.msk [vmem:[%s12271_s27 + $0x1fe] sm:$0x1] %vm631_vm0, %v10741_v33 }
 0x2b4   : > { %v10950_v42 = vrot.slane %v10922_v36, %v12255_v29  ;;  %v10952_v1 = vcombine.high %v10936_v0, %v10936_v0  ;;  %11980 = vst.msk [vmem:[%s12271_s27 + $0x33f] sm:$0x1] %vm631_vm0, %v10936_v0  ;;  %v10758_v43 = vcombine.high %v10756_v37, %v10756_v37  ;;  %v10772_v44 = vrot.slane %v10756_v37, %v12255_v29 }
 0x2b5   : > { %v10953_v45 = vcombine.high %v10943_v38, %v10943_v38  ;;  %11977 = vst.msk [vmem:[%s12271_s27 + $0x27f] sm:$0x1] %vm631_vm0, %v10943_v38  ;;  %11978 = vst.msk [vmem:[%s12271_s27 + $0x2bf] sm:$0x1] %vm631_vm0, %v10951_v39  ;;  %v10779_v34 = vrot.slane %v10757_v40, %v12255_v29  ;;  %v10787_v46 = vcombine.high %v10765_v41, %v10765_v41 }
 0x2b6   : > { %11960 = vst.msk [vmem:[%s12271_s27 + $0x23e] sm:$0x1] %vm631_vm0, %v10765_v41  ;;  %v10954_v47 = vcombine.high %v10950_v42, %v10950_v42  ;;  %11981 = vst.msk [vmem:[%s12271_s27 + $0x37f] sm:$0x1] %vm631_vm0, %v10950_v42  ;;  %v10786_v48 = vrot.slane %v10758_v43, %v12255_v29  ;;  %v10788_v50 = vcombine.high %v10772_v44, %v10772_v44 }
 0x2b7   : > { %11982 = vst.msk [vmem:[%s12271_s27 + $0x3bf] sm:$0x1] %vm631_vm0, %v10952_v1  ;;  %11964 = vst.msk [vmem:[%s12271_s27 + $0x33e] sm:$0x1] %vm631_vm0, %v10772_v44  ;;  %v10789_v51 = vcombine.high %v10779_v34, %v10779_v34 }
 0x2b8   : > { %11979 = vst.msk [vmem:[%s12271_s27 + $0x2ff] sm:$0x1] %vm631_vm0, %v10953_v45  ;;  %11961 = vst.msk [vmem:[%s12271_s27 + $0x27e] sm:$0x1] %vm631_vm0, %v10779_v34  ;;  %v10790_v35 = vcombine.high %v10786_v48, %v10786_v48 }
 0x2b9   : > { %11962 = vst.msk [vmem:[%s12271_s27 + $0x2be] sm:$0x1] %vm631_vm0, %v10787_v46  ;;  %11983 = vst.msk [vmem:[%s12271_s27 + $0x3ff] sm:$0x1] %vm631_vm0, %v10954_v47 }
 0x2ba   : > { %11965 = vst.msk [vmem:[%s12271_s27 + $0x37e] sm:$0x1] %vm631_vm0, %v10786_v48  ;;  %11966 = vst.msk [vmem:[%s12271_s27 + $0x3be] sm:$0x1] %vm631_vm0, %v10788_v50 }
 0x2bb   : > { %11963 = vst.msk [vmem:[%s12271_s27 + $0x2fe] sm:$0x1] %vm631_vm0, %v10789_v51  ;;  %11967 = vst.msk [vmem:[%s12271_s27 + $0x3fe] sm:$0x1] %vm631_vm0, %v10790_v35 }
 0x2bc PF: > { %s13_s14 = sadd.s32 1, %s12038_s14   ;;  %s15171_s12 = smov %s12034_s13 }
 0x2bd   : > { %p10_p5 = scmp.ge.s32.totalorder %s13_s14, 4   ;;  %s15172_s13 = smov %s15174_s15 }
 0x2bf   :  { %12 = sbr.rel (!%p10_p5) target bundleno = 2 (0x2), region = 69 }

</bundles_post_ra>
